<compile_context>
chip_gen: v6e
topology: v6e:2x2x1
jax: 0.10.0
libtpu: 0.0.40
codegen_flags: <defaults>
</compile_context>

<pallas_src>
import functools

import jax
import jax.numpy as jnp
from jax.experimental import pallas as pl
from jax.experimental.pallas import tpu as pltpu

BB = 8                      # batch tile (sublane-aligned)
TC = 8                      # listener time-chunk per grid step
F_PAD = 128                 # lane-padded raw feature dim
VMEM_LIMIT = 48 * 1024 * 1024


# ----------------------------------------------------------------------------
# shared LSTM gate math (PyTorch gate order: i, f, g, o) -- f32 elementwise
# ----------------------------------------------------------------------------
def _lstm_gates(gates, c_prev, n):
    i = jax.nn.sigmoid(gates[:, 0 * n:1 * n])
    f = jax.nn.sigmoid(gates[:, 1 * n:2 * n])
    g = jnp.tanh(gates[:, 2 * n:3 * n])
    o = jax.nn.sigmoid(gates[:, 3 * n:4 * n])
    c_new = f * c_prev + i * g
    h_new = o * jnp.tanh(c_new)
    return h_new, c_new


# ----------------------------------------------------------------------------
# Listener (unidirectional LSTM, T-chunked) fused with Attention.set_key_value
# ----------------------------------------------------------------------------
def listener_kernel(x_ref, w_ih_ref, b_ref, w_hh_ref,
                    wk_ref, bk_ref, wv_ref, bv_ref,
                    key_ref, val_ref,
                    h_sc, c_sc, hseq_sc):
    tc, bb, fp = x_ref.shape
    H = h_sc.shape[1]
    P = key_ref.shape[-1]

    # reset the recurrent state at the start of every batch block's time sweep
    @pl.when(pl.program_id(1) == 0)
    def _():
        h_sc[...] = jnp.zeros_like(h_sc)
        c_sc[...] = jnp.zeros_like(c_sc)

    # hoisted input projection for the whole chunk: one (tc*bb, F)@(F, 4H) matmul
    x2d = x_ref[...].reshape(tc * bb, fp)                       # bf16, time-major rows
    xg = (jnp.dot(x2d, w_ih_ref[...], preferred_element_type=jnp.float32)
          + b_ref[...])                                          # (tc*bb, 4H) f32

    w_hh = w_hh_ref[...]
    h = h_sc[...]
    c = c_sc[...]
    # serial recurrence, fully unrolled (tc is small & static); only the small
    # recurrent matmul sits on the critical path
    for tt in range(tc):
        gates = xg[tt * bb:(tt + 1) * bb, :] + jnp.dot(
            h.astype(jnp.bfloat16), w_hh, preferred_element_type=jnp.float32)
        h, c = _lstm_gates(gates, c, H)
        hseq_sc[tt * bb:(tt + 1) * bb, :] = h.astype(jnp.bfloat16)
    h_sc[...] = h
    c_sc[...] = c

    # fused key/value projection for the chunk (hidden states never leave VMEM),
    # emitted lane-dense in bf16, time-major (tc, bb, P)
    h2d = hseq_sc[...]
    key_ref[...] = (jnp.dot(h2d, wk_ref[...], preferred_element_type=jnp.float32)
                    + bk_ref[...]).astype(jnp.bfloat16).reshape(tc, bb, P)
    val_ref[...] = (jnp.dot(h2d, wv_ref[...], preferred_element_type=jnp.float32)
                    + bv_ref[...]).astype(jnp.bfloat16).reshape(tc, bb, P)


def run_listener(x_tbf, params, *, bb=BB, tc=TC):
    Tp, Bp, Fp = x_tbf.shape
    H = params["lis_w_hh"].shape[0]
    G = 4 * H
    P = params["att_wk"].shape[1]
    nb, nt = Bp // bb, Tp // tc

    matmul_flops = 2 * Tp * Bp * (Fp * G + H * G + 2 * H * P)
    cost = pl.CostEstimate(
        flops=int(matmul_flops),
        transcendentals=int(Tp * Bp * 4 * H),
        bytes_accessed=int(x_tbf.size * 2 + 4 * Tp * Bp * P
                           + 2 * (Fp * G + H * G + 2 * H * P)))

    grid_spec = pltpu.PrefetchScalarGridSpec(
        num_scalar_prefetch=0,
        grid=(nb, nt),
        in_specs=[
            pl.BlockSpec((tc, bb, Fp), lambda b, t: (t, b, 0)),
            pl.BlockSpec(params["lis_w_ih"].shape, lambda b, t: (0, 0)),
            pl.BlockSpec(params["lis_b"].shape, lambda b, t: (0, 0)),
            pl.BlockSpec(params["lis_w_hh"].shape, lambda b, t: (0, 0)),
            pl.BlockSpec(params["att_wk"].shape, lambda b, t: (0, 0)),
            pl.BlockSpec(params["att_bk"].shape, lambda b, t: (0, 0)),
            pl.BlockSpec(params["att_wv"].shape, lambda b, t: (0, 0)),
            pl.BlockSpec(params["att_bv"].shape, lambda b, t: (0, 0)),
        ],
        out_specs=(
            pl.BlockSpec((tc, bb, P), lambda b, t: (t, b, 0)),
            pl.BlockSpec((tc, bb, P), lambda b, t: (t, b, 0)),
        ),
        scratch_shapes=[
            pltpu.VMEM((bb, H), jnp.float32),            # h carry
            pltpu.VMEM((bb, H), jnp.float32),            # c carry
            pltpu.VMEM((tc * bb, H), jnp.bfloat16),      # chunk hidden states (bf16)
        ],
    )
    return pl.pallas_call(
        listener_kernel,
        out_shape=(jax.ShapeDtypeStruct((Tp, Bp, P), jnp.bfloat16),
                   jax.ShapeDtypeStruct((Tp, Bp, P), jnp.bfloat16)),
        grid_spec=grid_spec,
        compiler_params=pltpu.CompilerParams(
            dimension_semantics=("parallel", "arbitrary"),
            vmem_limit_bytes=VMEM_LIMIT),
        cost_estimate=cost,
    )(x_tbf, params["lis_w_ih"], params["lis_b"], params["lis_w_hh"],
      params["att_wk"], params["att_bk"], params["att_wv"], params["att_bv"])


# ----------------------------------------------------------------------------
# Speller: 2-layer LSTM-cell decoder with dot-product attention, greedy decode
# ----------------------------------------------------------------------------
def speller_kernel(key_ref, val_ref, mask_ref, emb_ref,
                   w1_ref, b1_ref, w2_ref, b2_ref,
                   wq_ref, bq_ref, wchar_ref, bc_ref,
                   logits_ref, attn_ref,
                   h1_sc, c1_sc, h2_sc, c2_sc, ctx_sc, oh_sc,
                   a1_sc, a2_sc, ac_sc):
    max_t, bb, V = logits_ref.shape
    S = h1_sc.shape[1]
    P = ctx_sc.shape[1]
    E = emb_ref.shape[1]

    # fresh decoder state per batch block
    h1_sc[...] = jnp.zeros_like(h1_sc)
    c1_sc[...] = jnp.zeros_like(c1_sc)
    h2_sc[...] = jnp.zeros_like(h2_sc)
    c2_sc[...] = jnp.zeros_like(c2_sc)
    ctx_sc[...] = jnp.zeros_like(ctx_sc)

    # hoisted loop invariants
    mask = mask_ref[...]                                  # (bb, T) additive length mask
    key_f32 = key_ref[...].astype(jnp.float32)            # (T, bb, P) VPU energy path
    val_f32 = val_ref[...].astype(jnp.float32)            # (T, bb, P) VPU context path
    emb_w = emb_ref[...]
    w1 = w1_ref[...]
    w2 = w2_ref[...]
    wq = wq_ref[...]
    wchar = wchar_ref[...]
    b1 = jnp.broadcast_to(b1_ref[...], (bb, 4 * S))
    b2 = jnp.broadcast_to(b2_ref[...], (bb, 4 * S))
    bq = jnp.broadcast_to(bq_ref[...], (bb, P))
    bc = jnp.broadcast_to(bc_ref[...], (bb, V))
    vocab_iota = jax.lax.broadcasted_iota(jnp.int32, (bb, V), 1)

    # <sos> token (index 0) as one-hot, kept in bf16 for the embedding matmul
    oh_sc[...] = (vocab_iota == 0).astype(jnp.bfloat16)

    # greedy decode, fully unrolled (max_t is small & static)
    for t in range(max_t):
        # embedding lookup as a one-hot matmul (MXU-friendly, no gather)
        emb = jnp.dot(oh_sc[...], emb_w, preferred_element_type=jnp.float32)
        # LSTM cell 1 on [embedding ; context ; h1] written in place (no concat)
        a1_sc[:, 0:E] = emb.astype(jnp.bfloat16)
        a1_sc[:, E:E + P] = ctx_sc[...].astype(jnp.bfloat16)
        a1_sc[:, E + P:E + P + S] = h1_sc[...].astype(jnp.bfloat16)
        gates1 = jnp.dot(a1_sc[...], w1, preferred_element_type=jnp.float32) + b1
        h1, c1 = _lstm_gates(gates1, c1_sc[...], S)
        # LSTM cell 2 on [h1 ; h2] with fused [W_ih; W_hh]
        a2_sc[:, 0:S] = h1.astype(jnp.bfloat16)
        a2_sc[:, S:2 * S] = h2_sc[...].astype(jnp.bfloat16)
        gates2 = jnp.dot(a2_sc[...], w2, preferred_element_type=jnp.float32) + b2
        h2, c2 = _lstm_gates(gates2, c2_sc[...], S)
        # query projection (MXU)
        query = jnp.dot(h2.astype(jnp.bfloat16), wq,
                        preferred_element_type=jnp.float32) + bq          # (bb, P)
        # dot-product attention on VPU/XLU (MXU stays busy with the gate matmuls)
        energy = jnp.transpose(
            jnp.sum(key_f32 * query[None, :, :], axis=-1)) + mask          # (bb, T)
        m = jnp.max(energy, axis=-1, keepdims=True)
        e = jnp.exp(energy - m)
        s = jnp.sum(e, axis=-1, keepdims=True)
        attn = e / s                        # exact reciprocal: plots sum to 1
        ctx = jnp.sum(jnp.transpose(attn)[:, :, None] * val_f32, axis=0)   # (bb, P)
        # character distribution on [query ; context] with fused weight
        ac_sc[:, 0:P] = query.astype(jnp.bfloat16)
        ac_sc[:, P:2 * P] = ctx.astype(jnp.bfloat16)
        logits = jnp.dot(ac_sc[...], wchar,
                         preferred_element_type=jnp.float32) + bc          # (bb, V)

        logits_ref[t] = logits
        attn_ref[t] = attn

        # greedy next token -> one-hot (argmax, lowest index on ties)
        maxv = jnp.max(logits, axis=-1, keepdims=True)
        nxt = jnp.min(jnp.where(logits >= maxv, vocab_iota, V),
                      axis=-1, keepdims=True)                               # (bb, 1)
        oh_sc[...] = (vocab_iota == nxt).astype(jnp.bfloat16)

        h1_sc[...] = h1
        c1_sc[...] = c1
        h2_sc[...] = h2
        c2_sc[...] = c2
        ctx_sc[...] = ctx


def run_speller(key, val, mask, params, max_timesteps, *, bb=BB):
    Tp, Bp, P = key.shape
    S = params["query_w"].shape[0]
    E = params["embedding"].shape[1]
    V = params["char_b"].shape[1]
    nb = Bp // bb

    step_flops = (V * E + (E + P + S) * 4 * S + 2 * S * 4 * S
                  + S * P + 2 * Tp * P + 2 * P * V)
    cost = pl.CostEstimate(
        flops=int(2 * max_timesteps * Bp * step_flops),
        transcendentals=int(max_timesteps * Bp * (8 * S + Tp)),
        bytes_accessed=int(4 * Tp * Bp * P + 4 * max_timesteps * Bp * (V + Tp)
                           + 2 * step_flops))

    grid_spec = pltpu.PrefetchScalarGridSpec(
        num_scalar_prefetch=0,
        grid=(nb,),
        in_specs=[
            pl.BlockSpec((Tp, bb, P), lambda b: (0, b, 0)),
            pl.BlockSpec((Tp, bb, P), lambda b: (0, b, 0)),
            pl.BlockSpec((bb, Tp), lambda b: (b, 0)),
            pl.BlockSpec(params["embedding"].shape, lambda b: (0, 0)),
            pl.BlockSpec(params["spell_w1"].shape, lambda b: (0, 0)),
            pl.BlockSpec(params["spell_b1"].shape, lambda b: (0, 0)),
            pl.BlockSpec(params["spell_w2"].shape, lambda b: (0, 0)),
            pl.BlockSpec(params["spell_b2"].shape, lambda b: (0, 0)),
            pl.BlockSpec(params["query_w"].shape, lambda b: (0, 0)),
            pl.BlockSpec(params["query_b"].shape, lambda b: (0, 0)),
            pl.BlockSpec(params["char_w"].shape, lambda b: (0, 0)),
            pl.BlockSpec(params["char_b"].shape, lambda b: (0, 0)),
        ],
        out_specs=(
            pl.BlockSpec((max_timesteps, bb, V), lambda b: (0, b, 0)),
            pl.BlockSpec((max_timesteps, bb, Tp), lambda b: (0, b, 0)),
        ),
        scratch_shapes=[
            pltpu.VMEM((bb, S), jnp.float32),                 # h1
            pltpu.VMEM((bb, S), jnp.float32),                 # c1
            pltpu.VMEM((bb, S), jnp.float32),                 # h2
            pltpu.VMEM((bb, S), jnp.float32),                 # c2
            pltpu.VMEM((bb, P), jnp.float32),                 # context
            pltpu.VMEM((bb, V), jnp.bfloat16),                # one-hot token
            pltpu.VMEM((bb, E + P + S), jnp.bfloat16),        # [emb;ctx;h1]
            pltpu.VMEM((bb, 2 * S), jnp.bfloat16),            # [h1;h2]
            pltpu.VMEM((bb, 2 * P), jnp.bfloat16),            # [query;ctx]
        ],
    )
    return pl.pallas_call(
        speller_kernel,
        out_shape=(jax.ShapeDtypeStruct((max_timesteps, Bp, V), jnp.float32),
                   jax.ShapeDtypeStruct((max_timesteps, Bp, Tp), jnp.float32)),
        grid_spec=grid_spec,
        compiler_params=pltpu.CompilerParams(
            dimension_semantics=("parallel",),
            vmem_limit_bytes=VMEM_LIMIT),
        cost_estimate=cost,
    )(key, val, mask, params["embedding"],
      params["spell_w1"], params["spell_b1"],
      params["spell_w2"], params["spell_b2"],
      params["query_w"], params["query_b"],
      params["char_w"], params["char_b"])


# ----------------------------------------------------------------------------
# parameter construction + full ASRModel.forward (eval mode)
# ----------------------------------------------------------------------------
def init_params(key, input_size, H, S, P, E, V, f_pad=F_PAD):
    ks = iter(jax.random.split(key, 24))

    def w(shape, dtype=jnp.bfloat16):
        # matmul weights in bf16 (f32 accumulation in-kernel), biases in f32
        return (0.1 * jax.random.normal(next(ks), shape, dtype=jnp.float32)
                ).astype(dtype)

    # zero-pad the input projection rows so the lane-padded features contribute 0
    w_ih = jnp.pad(w((input_size, 4 * H)), ((0, f_pad - input_size), (0, 0)))
    return {
        # Listener LSTM (b = pre-summed b_ih + b_hh, PyTorch convention)
        "lis_w_ih": w_ih,
        "lis_w_hh": w((H, 4 * H)),
        "lis_b": w((1, 4 * H), jnp.float32),
        # Attention key/value projections
        "att_wk": w((H, P)), "att_bk": w((1, P), jnp.float32),
        "att_wv": w((H, P)), "att_bv": w((1, P), jnp.float32),
        # Speller (fused weight stacks)
        "embedding": w((V, E)),
        "spell_w1": w((E + P + S, 4 * S)),   # [We1; Wc1; Whh1]
        "spell_b1": w((1, 4 * S), jnp.float32),
        "spell_w2": w((2 * S, 4 * S)),       # [Wih2; Whh2]
        "spell_b2": w((1, 4 * S), jnp.float32),
        "query_w": w((S, P)), "query_b": w((1, P), jnp.float32),
        "char_w": w((2 * P, V)),             # [Wcq; Wcc]
        "char_b": w((1, V), jnp.float32),
    }


@functools.partial(jax.jit, static_argnames=("max_timesteps",))
def asr_forward(x, lx, params, max_timesteps):
    """x: (B, T, F) float32, lx: (B,) int32 -> (raw_outputs, attention_plots)."""
    B, T, F = x.shape
    Fp = params["lis_w_ih"].shape[0]
    B_pad = pl.cdiv(B, BB) * BB
    T_pad = pl.cdiv(T, TC) * TC
    # pad batch/time to tile multiples, features to a dense lane width, cast bf16
    x = jnp.pad(x, ((0, B_pad - B), (0, T_pad - T), (0, Fp - F)))
    lx = jnp.pad(lx, (0, B_pad - B))
    x_tbf = jnp.transpose(x, (1, 0, 2)).astype(jnp.bfloat16)   # (T, B, F) time-major

    # --- Listener (encoder) fused with Attention.set_key_value ---
    key_tbp, val_tbp = run_listener(x_tbf, params)             # (T, B, P) bf16 each

    # additive length mask for the attention softmax (glue, plain JAX)
    t_iota = jnp.arange(T_pad, dtype=jnp.int32)[None, :]
    mask = jnp.where(t_iota < lx[:, None], 0.0, -1e9).astype(jnp.float32)

    # --- Speller (decoder, greedy since y=None / eval) ---
    logits_tbv, attn_tbt = run_speller(key_tbp, val_tbp, mask, params,
                                       max_timesteps)
    raw_outputs = jnp.transpose(logits_tbv, (1, 0, 2))[:B]          # (B, max_T, V)
    attention_plots = jnp.transpose(attn_tbt, (1, 0, 2))[:B, :, :T]  # (B, max_T, T)
    return raw_outputs, attention_plots


if __name__ == "__main__":
    # small shapes consistent with the module's constructor arguments
    # (projection/embedding/vocab chosen lane-dense = 128; gate dims 4*32 = 128)
    B, T = 2, 16
    input_size = 8
    listener_hidden_size = 32
    speller_hidden_size = 32
    projection_size = 128
    embedding_size = 128
    vocab_size = 128
    max_timesteps = 8

    root = jax.random.PRNGKey(0)
    k_x, k_p = jax.random.split(root)
    x = jax.random.normal(k_x, (B, T, input_size), dtype=jnp.float32)
    lx = jnp.array([T, T - 4], dtype=jnp.int32)

    params = init_params(k_p, input_size, listener_hidden_size,
                         speller_hidden_size, projection_size,
                         embedding_size, vocab_size)

    raw_outputs, attention_plots = asr_forward(x, lx, params, max_timesteps)
    jax.block_until_ready((raw_outputs, attention_plots))

    assert raw_outputs.shape == (B, max_timesteps, vocab_size)
    assert attention_plots.shape == (B, max_timesteps, T)
    assert bool(jnp.all(jnp.isfinite(raw_outputs)))
    assert bool(jnp.all(jnp.isfinite(attention_plots)))
    # attention rows should sum to ~1 (exact reciprocal in the softmax)
    assert bool(jnp.all(jnp.abs(jnp.sum(attention_plots, axis=-1) - 1.0) < 1e-3))
    print("KERNEL_OK")
</pallas_src>

<mosaic_0001>
module attributes {stable_mosaic.version = 11 : i64} {
  func.func @listener_kernel(%arg0: i32, %arg1: i32, %arg2: memref<8x8x128xbf16, #tpu.memory_space<vmem>>, %arg3: memref<128x128xbf16, #tpu.memory_space<vmem>>, %arg4: memref<1x128xf32, #tpu.memory_space<vmem>>, %arg5: memref<32x128xbf16, #tpu.memory_space<vmem>>, %arg6: memref<32x128xbf16, #tpu.memory_space<vmem>>, %arg7: memref<1x128xf32, #tpu.memory_space<vmem>>, %arg8: memref<32x128xbf16, #tpu.memory_space<vmem>>, %arg9: memref<1x128xf32, #tpu.memory_space<vmem>>, %arg10: memref<8x8x128xbf16, #tpu.memory_space<vmem>>, %arg11: memref<8x8x128xbf16, #tpu.memory_space<vmem>>, %arg12: memref<8x32xf32, #tpu.memory_space<vmem>>, %arg13: memref<8x32xf32, #tpu.memory_space<vmem>>, %arg14: memref<64x32xbf16, #tpu.memory_space<vmem>>) attributes {dimension_semantics = [#tpu.dimension_semantics<parallel>, #tpu.dimension_semantics<arbitrary>], iteration_bounds = array<i64: 1, 2>, scalar_prefetch = 0 : i64, scratch_operands = 3 : i64, tpu.core_type = #tpu.core_type<tc>, window_params = [{transform_indices = @transform_0, window_bounds = array<i64: 8, 8, 128>}, {pipeline_mode = #tpu.pipeline_mode<synchronous>, transform_indices = @transform_1, window_bounds = array<i64: 128, 128>}, {pipeline_mode = #tpu.pipeline_mode<synchronous>, transform_indices = @transform_2, window_bounds = array<i64: 1, 128>}, {pipeline_mode = #tpu.pipeline_mode<synchronous>, transform_indices = @transform_3, window_bounds = array<i64: 32, 128>}, {pipeline_mode = #tpu.pipeline_mode<synchronous>, transform_indices = @transform_4, window_bounds = array<i64: 32, 128>}, {pipeline_mode = #tpu.pipeline_mode<synchronous>, transform_indices = @transform_5, window_bounds = array<i64: 1, 128>}, {pipeline_mode = #tpu.pipeline_mode<synchronous>, transform_indices = @transform_6, window_bounds = array<i64: 32, 128>}, {pipeline_mode = #tpu.pipeline_mode<synchronous>, transform_indices = @transform_7, window_bounds = array<i64: 1, 128>}, {transform_indices = @transform_8, window_bounds = array<i64: 8, 8, 128>}, {transform_indices = @transform_9, window_bounds = array<i64: 8, 8, 128>}]} {
    %c0_i32 = arith.constant 0 : i32
    %0 = arith.cmpi eq, %arg1, %c0_i32 : i32
    %1 = arith.extui %0 : i1 to i32
    %c0_i32_0 = arith.constant 0 : i32
    %2 = arith.cmpi ne, %1, %c0_i32_0 : i32
    scf.if %2 {
      %cst_76 = arith.constant 0.000000e+00 : f32
      %280 = vector.broadcast %cst_76 : f32 to vector<8x32xf32>
      %c0_77 = arith.constant 0 : index
      %c0_78 = arith.constant 0 : index
      %281 = vector.load %arg12[%c0_77, %c0_78] : memref<8x32xf32, #tpu.memory_space<vmem>>, vector<8x32xf32>
      tpu.vector_store %arg12[%c0_77, %c0_78], %280 {strides = array<i32>} : memref<8x32xf32, #tpu.memory_space<vmem>>, vector<8x32xf32>,
      %cst_79 = arith.constant 0.000000e+00 : f32
      %282 = vector.broadcast %cst_79 : f32 to vector<8x32xf32>
      %c0_80 = arith.constant 0 : index
      %c0_81 = arith.constant 0 : index
      %283 = vector.load %arg13[%c0_80, %c0_81] : memref<8x32xf32, #tpu.memory_space<vmem>>, vector<8x32xf32>
      tpu.vector_store %arg13[%c0_80, %c0_81], %282 {strides = array<i32>} : memref<8x32xf32, #tpu.memory_space<vmem>>, vector<8x32xf32>,
    } else {
    }
    %c0 = arith.constant 0 : index
    %c0_1 = arith.constant 0 : index
    %c0_2 = arith.constant 0 : index
    %3 = vector.load %arg2[%c0, %c0_1, %c0_2] : memref<8x8x128xbf16, #tpu.memory_space<vmem>>, vector<8x8x128xbf16>
    %4 = vector.shape_cast %3 : vector<8x8x128xbf16> to vector<64x128xbf16>
    %c0_3 = arith.constant 0 : index
    %c0_4 = arith.constant 0 : index
    %5 = vector.load %arg3[%c0_3, %c0_4] : memref<128x128xbf16, #tpu.memory_space<vmem>>, vector<128x128xbf16>
    %cst = arith.constant dense<0.000000e+00> : vector<64x128xf32>
    %6 = tpu.matmul %4, %5, %cst {dimension_numbers = #tpu.dot_dimension_numbers<[1], [0], [0], [1], [0, 0, 1, 1], [], []>} : vector<64x128xbf16>, vector<128x128xbf16>, vector<64x128xf32> -> vector<64x128xf32>
    %c0_5 = arith.constant 0 : index
    %c0_6 = arith.constant 0 : index
    %7 = vector.load %arg4[%c0_5, %c0_6] : memref<1x128xf32, #tpu.memory_space<vmem>>, vector<1x128xf32>
    %8 = vector.broadcast %7 : vector<1x128xf32> to vector<64x128xf32>
    %9 = arith.addf %6, %8 : vector<64x128xf32>
    %c0_7 = arith.constant 0 : index
    %c0_8 = arith.constant 0 : index
    %10 = vector.load %arg5[%c0_7, %c0_8] : memref<32x128xbf16, #tpu.memory_space<vmem>>, vector<32x128xbf16>
    %c0_9 = arith.constant 0 : index
    %c0_10 = arith.constant 0 : index
    %11 = vector.load %arg12[%c0_9, %c0_10] : memref<8x32xf32, #tpu.memory_space<vmem>>, vector<8x32xf32>
    %c0_11 = arith.constant 0 : index
    %c0_12 = arith.constant 0 : index
    %12 = vector.load %arg13[%c0_11, %c0_12] : memref<8x32xf32, #tpu.memory_space<vmem>>, vector<8x32xf32>
    %13 = vector.extract_strided_slice %9 {offsets = [0, 0], sizes = [8, 128], strides = [1, 1]} : vector<64x128xf32> to vector<8x128xf32>
    %14 = arith.truncf %11 : vector<8x32xf32> to vector<8x32xbf16>
    %cst_13 = arith.constant dense<0.000000e+00> : vector<8x128xf32>
    %15 = tpu.matmul %14, %10, %cst_13 {dimension_numbers = #tpu.dot_dimension_numbers<[1], [0], [0], [1], [0, 0, 1, 1], [], []>} : vector<8x32xbf16>, vector<32x128xbf16>, vector<8x128xf32> -> vector<8x128xf32>
    %16 = arith.addf %13, %15 : vector<8x128xf32>
    %17 = vector.extract_strided_slice %16 {offsets = [0, 0], sizes = [8, 32], strides = [1, 1]} : vector<8x128xf32> to vector<8x32xf32>
    %18 = arith.negf %17 : vector<8x32xf32>
    %19 = math.exp %18 : vector<8x32xf32>
    %cst_14 = arith.constant 1.000000e+00 : f32
    %20 = vector.broadcast %cst_14 : f32 to vector<8x32xf32>
    %21 = arith.addf %20, %19 : vector<8x32xf32>
    %22 = arith.divf %20, %21 : vector<8x32xf32>
    %23 = vector.extract_strided_slice %16 {offsets = [0, 32], sizes = [8, 32], strides = [1, 1]} : vector<8x128xf32> to vector<8x32xf32>
    %24 = arith.negf %23 : vector<8x32xf32>
    %25 = math.exp %24 : vector<8x32xf32>
    %cst_15 = arith.constant 1.000000e+00 : f32
    %26 = vector.broadcast %cst_15 : f32 to vector<8x32xf32>
    %27 = arith.addf %26, %25 : vector<8x32xf32>
    %28 = arith.divf %26, %27 : vector<8x32xf32>
    %29 = vector.extract_strided_slice %16 {offsets = [0, 64], sizes = [8, 32], strides = [1, 1]} : vector<8x128xf32> to vector<8x32xf32>
    %30 = math.tanh %29 : vector<8x32xf32>
    %31 = vector.extract_strided_slice %16 {offsets = [0, 96], sizes = [8, 32], strides = [1, 1]} : vector<8x128xf32> to vector<8x32xf32>
    %32 = arith.negf %31 : vector<8x32xf32>
    %33 = math.exp %32 : vector<8x32xf32>
    %cst_16 = arith.constant 1.000000e+00 : f32
    %34 = vector.broadcast %cst_16 : f32 to vector<8x32xf32>
    %35 = arith.addf %34, %33 : vector<8x32xf32>
    %36 = arith.divf %34, %35 : vector<8x32xf32>
    %37 = arith.mulf %28, %12 : vector<8x32xf32>
    %38 = arith.mulf %22, %30 : vector<8x32xf32>
    %39 = arith.addf %37, %38 : vector<8x32xf32>
    %40 = math.tanh %39 : vector<8x32xf32>
    %41 = arith.mulf %36, %40 : vector<8x32xf32>
    %42 = arith.truncf %41 : vector<8x32xf32> to vector<8x32xbf16>
    %c0_17 = arith.constant 0 : index
    %c0_18 = arith.constant 0 : index
    %43 = vector.load %arg14[%c0_17, %c0_18] : memref<64x32xbf16, #tpu.memory_space<vmem>>, vector<8x32xbf16>
    tpu.vector_store %arg14[%c0_17, %c0_18], %42 {strides = array<i32>} : memref<64x32xbf16, #tpu.memory_space<vmem>>, vector<8x32xbf16>,
    %44 = vector.extract_strided_slice %9 {offsets = [8, 0], sizes = [8, 128], strides = [1, 1]} : vector<64x128xf32> to vector<8x128xf32>
    %45 = arith.truncf %41 : vector<8x32xf32> to vector<8x32xbf16>
    %cst_19 = arith.constant dense<0.000000e+00> : vector<8x128xf32>
    %46 = tpu.matmul %45, %10, %cst_19 {dimension_numbers = #tpu.dot_dimension_numbers<[1], [0], [0], [1], [0, 0, 1, 1], [], []>} : vector<8x32xbf16>, vector<32x128xbf16>, vector<8x128xf32> -> vector<8x128xf32>
    %47 = arith.addf %44, %46 : vector<8x128xf32>
    %48 = vector.extract_strided_slice %47 {offsets = [0, 0], sizes = [8, 32], strides = [1, 1]} : vector<8x128xf32> to vector<8x32xf32>
    %49 = arith.negf %48 : vector<8x32xf32>
    %50 = math.exp %49 : vector<8x32xf32>
    %cst_20 = arith.constant 1.000000e+00 : f32
    %51 = vector.broadcast %cst_20 : f32 to vector<8x32xf32>
    %52 = arith.addf %51, %50 : vector<8x32xf32>
    %53 = arith.divf %51, %52 : vector<8x32xf32>
    %54 = vector.extract_strided_slice %47 {offsets = [0, 32], sizes = [8, 32], strides = [1, 1]} : vector<8x128xf32> to vector<8x32xf32>
    %55 = arith.negf %54 : vector<8x32xf32>
    %56 = math.exp %55 : vector<8x32xf32>
    %cst_21 = arith.constant 1.000000e+00 : f32
    %57 = vector.broadcast %cst_21 : f32 to vector<8x32xf32>
    %58 = arith.addf %57, %56 : vector<8x32xf32>
    %59 = arith.divf %57, %58 : vector<8x32xf32>
    %60 = vector.extract_strided_slice %47 {offsets = [0, 64], sizes = [8, 32], strides = [1, 1]} : vector<8x128xf32> to vector<8x32xf32>
    %61 = math.tanh %60 : vector<8x32xf32>
    %62 = vector.extract_strided_slice %47 {offsets = [0, 96], sizes = [8, 32], strides = [1, 1]} : vector<8x128xf32> to vector<8x32xf32>
    %63 = arith.negf %62 : vector<8x32xf32>
    %64 = math.exp %63 : vector<8x32xf32>
    %cst_22 = arith.constant 1.000000e+00 : f32
    %65 = vector.broadcast %cst_22 : f32 to vector<8x32xf32>
    %66 = arith.addf %65, %64 : vector<8x32xf32>
    %67 = arith.divf %65, %66 : vector<8x32xf32>
    %68 = arith.mulf %59, %39 : vector<8x32xf32>
    %69 = arith.mulf %53, %61 : vector<8x32xf32>
    %70 = arith.addf %68, %69 : vector<8x32xf32>
    %71 = math.tanh %70 : vector<8x32xf32>
    %72 = arith.mulf %67, %71 : vector<8x32xf32>
    %73 = arith.truncf %72 : vector<8x32xf32> to vector<8x32xbf16>
    %c8 = arith.constant 8 : index
    %c0_23 = arith.constant 0 : index
    %74 = vector.load %arg14[%c8, %c0_23] : memref<64x32xbf16, #tpu.memory_space<vmem>>, vector<8x32xbf16>
    tpu.vector_store %arg14[%c8, %c0_23], %73 {strides = array<i32>} : memref<64x32xbf16, #tpu.memory_space<vmem>>, vector<8x32xbf16>,
    %75 = vector.extract_strided_slice %9 {offsets = [16, 0], sizes = [8, 128], strides = [1, 1]} : vector<64x128xf32> to vector<8x128xf32>
    %76 = arith.truncf %72 : vector<8x32xf32> to vector<8x32xbf16>
    %cst_24 = arith.constant dense<0.000000e+00> : vector<8x128xf32>
    %77 = tpu.matmul %76, %10, %cst_24 {dimension_numbers = #tpu.dot_dimension_numbers<[1], [0], [0], [1], [0, 0, 1, 1], [], []>} : vector<8x32xbf16>, vector<32x128xbf16>, vector<8x128xf32> -> vector<8x128xf32>
    %78 = arith.addf %75, %77 : vector<8x128xf32>
    %79 = vector.extract_strided_slice %78 {offsets = [0, 0], sizes = [8, 32], strides = [1, 1]} : vector<8x128xf32> to vector<8x32xf32>
    %80 = arith.negf %79 : vector<8x32xf32>
    %81 = math.exp %80 : vector<8x32xf32>
    %cst_25 = arith.constant 1.000000e+00 : f32
    %82 = vector.broadcast %cst_25 : f32 to vector<8x32xf32>
    %83 = arith.addf %82, %81 : vector<8x32xf32>
    %84 = arith.divf %82, %83 : vector<8x32xf32>
    %85 = vector.extract_strided_slice %78 {offsets = [0, 32], sizes = [8, 32], strides = [1, 1]} : vector<8x128xf32> to vector<8x32xf32>
    %86 = arith.negf %85 : vector<8x32xf32>
    %87 = math.exp %86 : vector<8x32xf32>
    %cst_26 = arith.constant 1.000000e+00 : f32
    %88 = vector.broadcast %cst_26 : f32 to vector<8x32xf32>
    %89 = arith.addf %88, %87 : vector<8x32xf32>
    %90 = arith.divf %88, %89 : vector<8x32xf32>
    %91 = vector.extract_strided_slice %78 {offsets = [0, 64], sizes = [8, 32], strides = [1, 1]} : vector<8x128xf32> to vector<8x32xf32>
    %92 = math.tanh %91 : vector<8x32xf32>
    %93 = vector.extract_strided_slice %78 {offsets = [0, 96], sizes = [8, 32], strides = [1, 1]} : vector<8x128xf32> to vector<8x32xf32>
    %94 = arith.negf %93 : vector<8x32xf32>
    %95 = math.exp %94 : vector<8x32xf32>
    %cst_27 = arith.constant 1.000000e+00 : f32
    %96 = vector.broadcast %cst_27 : f32 to vector<8x32xf32>
    %97 = arith.addf %96, %95 : vector<8x32xf32>
    %98 = arith.divf %96, %97 : vector<8x32xf32>
    %99 = arith.mulf %90, %70 : vector<8x32xf32>
    %100 = arith.mulf %84, %92 : vector<8x32xf32>
    %101 = arith.addf %99, %100 : vector<8x32xf32>
    %102 = math.tanh %101 : vector<8x32xf32>
    %103 = arith.mulf %98, %102 : vector<8x32xf32>
    %104 = arith.truncf %103 : vector<8x32xf32> to vector<8x32xbf16>
    %c16 = arith.constant 16 : index
    %c0_28 = arith.constant 0 : index
    %105 = vector.load %arg14[%c16, %c0_28] : memref<64x32xbf16, #tpu.memory_space<vmem>>, vector<8x32xbf16>
    tpu.vector_store %arg14[%c16, %c0_28], %104 {strides = array<i32>} : memref<64x32xbf16, #tpu.memory_space<vmem>>, vector<8x32xbf16>,
    %106 = vector.extract_strided_slice %9 {offsets = [24, 0], sizes = [8, 128], strides = [1, 1]} : vector<64x128xf32> to vector<8x128xf32>
    %107 = arith.truncf %103 : vector<8x32xf32> to vector<8x32xbf16>
    %cst_29 = arith.constant dense<0.000000e+00> : vector<8x128xf32>
    %108 = tpu.matmul %107, %10, %cst_29 {dimension_numbers = #tpu.dot_dimension_numbers<[1], [0], [0], [1], [0, 0, 1, 1], [], []>} : vector<8x32xbf16>, vector<32x128xbf16>, vector<8x128xf32> -> vector<8x128xf32>
    %109 = arith.addf %106, %108 : vector<8x128xf32>
    %110 = vector.extract_strided_slice %109 {offsets = [0, 0], sizes = [8, 32], strides = [1, 1]} : vector<8x128xf32> to vector<8x32xf32>
    %111 = arith.negf %110 : vector<8x32xf32>
    %112 = math.exp %111 : vector<8x32xf32>
    %cst_30 = arith.constant 1.000000e+00 : f32
    %113 = vector.broadcast %cst_30 : f32 to vector<8x32xf32>
    %114 = arith.addf %113, %112 : vector<8x32xf32>
    %115 = arith.divf %113, %114 : vector<8x32xf32>
    %116 = vector.extract_strided_slice %109 {offsets = [0, 32], sizes = [8, 32], strides = [1, 1]} : vector<8x128xf32> to vector<8x32xf32>
    %117 = arith.negf %116 : vector<8x32xf32>
    %118 = math.exp %117 : vector<8x32xf32>
    %cst_31 = arith.constant 1.000000e+00 : f32
    %119 = vector.broadcast %cst_31 : f32 to vector<8x32xf32>
    %120 = arith.addf %119, %118 : vector<8x32xf32>
    %121 = arith.divf %119, %120 : vector<8x32xf32>
    %122 = vector.extract_strided_slice %109 {offsets = [0, 64], sizes = [8, 32], strides = [1, 1]} : vector<8x128xf32> to vector<8x32xf32>
    %123 = math.tanh %122 : vector<8x32xf32>
    %124 = vector.extract_strided_slice %109 {offsets = [0, 96], sizes = [8, 32], strides = [1, 1]} : vector<8x128xf32> to vector<8x32xf32>
    %125 = arith.negf %124 : vector<8x32xf32>
    %126 = math.exp %125 : vector<8x32xf32>
    %cst_32 = arith.constant 1.000000e+00 : f32
    %127 = vector.broadcast %cst_32 : f32 to vector<8x32xf32>
    %128 = arith.addf %127, %126 : vector<8x32xf32>
    %129 = arith.divf %127, %128 : vector<8x32xf32>
    %130 = arith.mulf %121, %101 : vector<8x32xf32>
    %131 = arith.mulf %115, %123 : vector<8x32xf32>
    %132 = arith.addf %130, %131 : vector<8x32xf32>
    %133 = math.tanh %132 : vector<8x32xf32>
    %134 = arith.mulf %129, %133 : vector<8x32xf32>
    %135 = arith.truncf %134 : vector<8x32xf32> to vector<8x32xbf16>
    %c24 = arith.constant 24 : index
    %c0_33 = arith.constant 0 : index
    %136 = vector.load %arg14[%c24, %c0_33] : memref<64x32xbf16, #tpu.memory_space<vmem>>, vector<8x32xbf16>
    tpu.vector_store %arg14[%c24, %c0_33], %135 {strides = array<i32>} : memref<64x32xbf16, #tpu.memory_space<vmem>>, vector<8x32xbf16>,
    %137 = vector.extract_strided_slice %9 {offsets = [32, 0], sizes = [8, 128], strides = [1, 1]} : vector<64x128xf32> to vector<8x128xf32>
    %138 = arith.truncf %134 : vector<8x32xf32> to vector<8x32xbf16>
    %cst_34 = arith.constant dense<0.000000e+00> : vector<8x128xf32>
    %139 = tpu.matmul %138, %10, %cst_34 {dimension_numbers = #tpu.dot_dimension_numbers<[1], [0], [0], [1], [0, 0, 1, 1], [], []>} : vector<8x32xbf16>, vector<32x128xbf16>, vector<8x128xf32> -> vector<8x128xf32>
    %140 = arith.addf %137, %139 : vector<8x128xf32>
    %141 = vector.extract_strided_slice %140 {offsets = [0, 0], sizes = [8, 32], strides = [1, 1]} : vector<8x128xf32> to vector<8x32xf32>
    %142 = arith.negf %141 : vector<8x32xf32>
    %143 = math.exp %142 : vector<8x32xf32>
    %cst_35 = arith.constant 1.000000e+00 : f32
    %144 = vector.broadcast %cst_35 : f32 to vector<8x32xf32>
    %145 = arith.addf %144, %143 : vector<8x32xf32>
    %146 = arith.divf %144, %145 : vector<8x32xf32>
    %147 = vector.extract_strided_slice %140 {offsets = [0, 32], sizes = [8, 32], strides = [1, 1]} : vector<8x128xf32> to vector<8x32xf32>
    %148 = arith.negf %147 : vector<8x32xf32>
    %149 = math.exp %148 : vector<8x32xf32>
    %cst_36 = arith.constant 1.000000e+00 : f32
    %150 = vector.broadcast %cst_36 : f32 to vector<8x32xf32>
    %151 = arith.addf %150, %149 : vector<8x32xf32>
    %152 = arith.divf %150, %151 : vector<8x32xf32>
    %153 = vector.extract_strided_slice %140 {offsets = [0, 64], sizes = [8, 32], strides = [1, 1]} : vector<8x128xf32> to vector<8x32xf32>
    %154 = math.tanh %153 : vector<8x32xf32>
    %155 = vector.extract_strided_slice %140 {offsets = [0, 96], sizes = [8, 32], strides = [1, 1]} : vector<8x128xf32> to vector<8x32xf32>
    %156 = arith.negf %155 : vector<8x32xf32>
    %157 = math.exp %156 : vector<8x32xf32>
    %cst_37 = arith.constant 1.000000e+00 : f32
    %158 = vector.broadcast %cst_37 : f32 to vector<8x32xf32>
    %159 = arith.addf %158, %157 : vector<8x32xf32>
    %160 = arith.divf %158, %159 : vector<8x32xf32>
    %161 = arith.mulf %152, %132 : vector<8x32xf32>
    %162 = arith.mulf %146, %154 : vector<8x32xf32>
    %163 = arith.addf %161, %162 : vector<8x32xf32>
    %164 = math.tanh %163 : vector<8x32xf32>
    %165 = arith.mulf %160, %164 : vector<8x32xf32>
    %166 = arith.truncf %165 : vector<8x32xf32> to vector<8x32xbf16>
    %c32 = arith.constant 32 : index
    %c0_38 = arith.constant 0 : index
    %167 = vector.load %arg14[%c32, %c0_38] : memref<64x32xbf16, #tpu.memory_space<vmem>>, vector<8x32xbf16>
    tpu.vector_store %arg14[%c32, %c0_38], %166 {strides = array<i32>} : memref<64x32xbf16, #tpu.memory_space<vmem>>, vector<8x32xbf16>,
    %168 = vector.extract_strided_slice %9 {offsets = [40, 0], sizes = [8, 128], strides = [1, 1]} : vector<64x128xf32> to vector<8x128xf32>
    %169 = arith.truncf %165 : vector<8x32xf32> to vector<8x32xbf16>
    %cst_39 = arith.constant dense<0.000000e+00> : vector<8x128xf32>
    %170 = tpu.matmul %169, %10, %cst_39 {dimension_numbers = #tpu.dot_dimension_numbers<[1], [0], [0], [1], [0, 0, 1, 1], [], []>} : vector<8x32xbf16>, vector<32x128xbf16>, vector<8x128xf32> -> vector<8x128xf32>
    %171 = arith.addf %168, %170 : vector<8x128xf32>
    %172 = vector.extract_strided_slice %171 {offsets = [0, 0], sizes = [8, 32], strides = [1, 1]} : vector<8x128xf32> to vector<8x32xf32>
    %173 = arith.negf %172 : vector<8x32xf32>
    %174 = math.exp %173 : vector<8x32xf32>
    %cst_40 = arith.constant 1.000000e+00 : f32
    %175 = vector.broadcast %cst_40 : f32 to vector<8x32xf32>
    %176 = arith.addf %175, %174 : vector<8x32xf32>
    %177 = arith.divf %175, %176 : vector<8x32xf32>
    %178 = vector.extract_strided_slice %171 {offsets = [0, 32], sizes = [8, 32], strides = [1, 1]} : vector<8x128xf32> to vector<8x32xf32>
    %179 = arith.negf %178 : vector<8x32xf32>
    %180 = math.exp %179 : vector<8x32xf32>
    %cst_41 = arith.constant 1.000000e+00 : f32
    %181 = vector.broadcast %cst_41 : f32 to vector<8x32xf32>
    %182 = arith.addf %181, %180 : vector<8x32xf32>
    %183 = arith.divf %181, %182 : vector<8x32xf32>
    %184 = vector.extract_strided_slice %171 {offsets = [0, 64], sizes = [8, 32], strides = [1, 1]} : vector<8x128xf32> to vector<8x32xf32>
    %185 = math.tanh %184 : vector<8x32xf32>
    %186 = vector.extract_strided_slice %171 {offsets = [0, 96], sizes = [8, 32], strides = [1, 1]} : vector<8x128xf32> to vector<8x32xf32>
    %187 = arith.negf %186 : vector<8x32xf32>
    %188 = math.exp %187 : vector<8x32xf32>
    %cst_42 = arith.constant 1.000000e+00 : f32
    %189 = vector.broadcast %cst_42 : f32 to vector<8x32xf32>
    %190 = arith.addf %189, %188 : vector<8x32xf32>
    %191 = arith.divf %189, %190 : vector<8x32xf32>
    %192 = arith.mulf %183, %163 : vector<8x32xf32>
    %193 = arith.mulf %177, %185 : vector<8x32xf32>
    %194 = arith.addf %192, %193 : vector<8x32xf32>
    %195 = math.tanh %194 : vector<8x32xf32>
    %196 = arith.mulf %191, %195 : vector<8x32xf32>
    %197 = arith.truncf %196 : vector<8x32xf32> to vector<8x32xbf16>
    %c40 = arith.constant 40 : index
    %c0_43 = arith.constant 0 : index
    %198 = vector.load %arg14[%c40, %c0_43] : memref<64x32xbf16, #tpu.memory_space<vmem>>, vector<8x32xbf16>
    tpu.vector_store %arg14[%c40, %c0_43], %197 {strides = array<i32>} : memref<64x32xbf16, #tpu.memory_space<vmem>>, vector<8x32xbf16>,
    %199 = vector.extract_strided_slice %9 {offsets = [48, 0], sizes = [8, 128], strides = [1, 1]} : vector<64x128xf32> to vector<8x128xf32>
    %200 = arith.truncf %196 : vector<8x32xf32> to vector<8x32xbf16>
    %cst_44 = arith.constant dense<0.000000e+00> : vector<8x128xf32>
    %201 = tpu.matmul %200, %10, %cst_44 {dimension_numbers = #tpu.dot_dimension_numbers<[1], [0], [0], [1], [0, 0, 1, 1], [], []>} : vector<8x32xbf16>, vector<32x128xbf16>, vector<8x128xf32> -> vector<8x128xf32>
    %202 = arith.addf %199, %201 : vector<8x128xf32>
    %203 = vector.extract_strided_slice %202 {offsets = [0, 0], sizes = [8, 32], strides = [1, 1]} : vector<8x128xf32> to vector<8x32xf32>
    %204 = arith.negf %203 : vector<8x32xf32>
    %205 = math.exp %204 : vector<8x32xf32>
    %cst_45 = arith.constant 1.000000e+00 : f32
    %206 = vector.broadcast %cst_45 : f32 to vector<8x32xf32>
    %207 = arith.addf %206, %205 : vector<8x32xf32>
    %208 = arith.divf %206, %207 : vector<8x32xf32>
    %209 = vector.extract_strided_slice %202 {offsets = [0, 32], sizes = [8, 32], strides = [1, 1]} : vector<8x128xf32> to vector<8x32xf32>
    %210 = arith.negf %209 : vector<8x32xf32>
    %211 = math.exp %210 : vector<8x32xf32>
    %cst_46 = arith.constant 1.000000e+00 : f32
    %212 = vector.broadcast %cst_46 : f32 to vector<8x32xf32>
    %213 = arith.addf %212, %211 : vector<8x32xf32>
    %214 = arith.divf %212, %213 : vector<8x32xf32>
    %215 = vector.extract_strided_slice %202 {offsets = [0, 64], sizes = [8, 32], strides = [1, 1]} : vector<8x128xf32> to vector<8x32xf32>
    %216 = math.tanh %215 : vector<8x32xf32>
    %217 = vector.extract_strided_slice %202 {offsets = [0, 96], sizes = [8, 32], strides = [1, 1]} : vector<8x128xf32> to vector<8x32xf32>
    %218 = arith.negf %217 : vector<8x32xf32>
    %219 = math.exp %218 : vector<8x32xf32>
    %cst_47 = arith.constant 1.000000e+00 : f32
    %220 = vector.broadcast %cst_47 : f32 to vector<8x32xf32>
    %221 = arith.addf %220, %219 : vector<8x32xf32>
    %222 = arith.divf %220, %221 : vector<8x32xf32>
    %223 = arith.mulf %214, %194 : vector<8x32xf32>
    %224 = arith.mulf %208, %216 : vector<8x32xf32>
    %225 = arith.addf %223, %224 : vector<8x32xf32>
    %226 = math.tanh %225 : vector<8x32xf32>
    %227 = arith.mulf %222, %226 : vector<8x32xf32>
    %228 = arith.truncf %227 : vector<8x32xf32> to vector<8x32xbf16>
    %c48 = arith.constant 48 : index
    %c0_48 = arith.constant 0 : index
    %229 = vector.load %arg14[%c48, %c0_48] : memref<64x32xbf16, #tpu.memory_space<vmem>>, vector<8x32xbf16>
    tpu.vector_store %arg14[%c48, %c0_48], %228 {strides = array<i32>} : memref<64x32xbf16, #tpu.memory_space<vmem>>, vector<8x32xbf16>,
    %230 = vector.extract_strided_slice %9 {offsets = [56, 0], sizes = [8, 128], strides = [1, 1]} : vector<64x128xf32> to vector<8x128xf32>
    %231 = arith.truncf %227 : vector<8x32xf32> to vector<8x32xbf16>
    %cst_49 = arith.constant dense<0.000000e+00> : vector<8x128xf32>
    %232 = tpu.matmul %231, %10, %cst_49 {dimension_numbers = #tpu.dot_dimension_numbers<[1], [0], [0], [1], [0, 0, 1, 1], [], []>} : vector<8x32xbf16>, vector<32x128xbf16>, vector<8x128xf32> -> vector<8x128xf32>
    %233 = arith.addf %230, %232 : vector<8x128xf32>
    %234 = vector.extract_strided_slice %233 {offsets = [0, 0], sizes = [8, 32], strides = [1, 1]} : vector<8x128xf32> to vector<8x32xf32>
    %235 = arith.negf %234 : vector<8x32xf32>
    %236 = math.exp %235 : vector<8x32xf32>
    %cst_50 = arith.constant 1.000000e+00 : f32
    %237 = vector.broadcast %cst_50 : f32 to vector<8x32xf32>
    %238 = arith.addf %237, %236 : vector<8x32xf32>
    %239 = arith.divf %237, %238 : vector<8x32xf32>
    %240 = vector.extract_strided_slice %233 {offsets = [0, 32], sizes = [8, 32], strides = [1, 1]} : vector<8x128xf32> to vector<8x32xf32>
    %241 = arith.negf %240 : vector<8x32xf32>
    %242 = math.exp %241 : vector<8x32xf32>
    %cst_51 = arith.constant 1.000000e+00 : f32
    %243 = vector.broadcast %cst_51 : f32 to vector<8x32xf32>
    %244 = arith.addf %243, %242 : vector<8x32xf32>
    %245 = arith.divf %243, %244 : vector<8x32xf32>
    %246 = vector.extract_strided_slice %233 {offsets = [0, 64], sizes = [8, 32], strides = [1, 1]} : vector<8x128xf32> to vector<8x32xf32>
    %247 = math.tanh %246 : vector<8x32xf32>
    %248 = vector.extract_strided_slice %233 {offsets = [0, 96], sizes = [8, 32], strides = [1, 1]} : vector<8x128xf32> to vector<8x32xf32>
    %249 = arith.negf %248 : vector<8x32xf32>
    %250 = math.exp %249 : vector<8x32xf32>
    %cst_52 = arith.constant 1.000000e+00 : f32
    %251 = vector.broadcast %cst_52 : f32 to vector<8x32xf32>
    %252 = arith.addf %251, %250 : vector<8x32xf32>
    %253 = arith.divf %251, %252 : vector<8x32xf32>
    %254 = arith.mulf %245, %225 : vector<8x32xf32>
    %255 = arith.mulf %239, %247 : vector<8x32xf32>
    %256 = arith.addf %254, %255 : vector<8x32xf32>
    %257 = math.tanh %256 : vector<8x32xf32>
    %258 = arith.mulf %253, %257 : vector<8x32xf32>
    %259 = arith.truncf %258 : vector<8x32xf32> to vector<8x32xbf16>
    %c56 = arith.constant 56 : index
    %c0_53 = arith.constant 0 : index
    %260 = vector.load %arg14[%c56, %c0_53] : memref<64x32xbf16, #tpu.memory_space<vmem>>, vector<8x32xbf16>
    tpu.vector_store %arg14[%c56, %c0_53], %259 {strides = array<i32>} : memref<64x32xbf16, #tpu.memory_space<vmem>>, vector<8x32xbf16>,
    %c0_54 = arith.constant 0 : index
    %c0_55 = arith.constant 0 : index
    %261 = vector.load %arg12[%c0_54, %c0_55] : memref<8x32xf32, #tpu.memory_space<vmem>>, vector<8x32xf32>
    tpu.vector_store %arg12[%c0_54, %c0_55], %258 {strides = array<i32>} : memref<8x32xf32, #tpu.memory_space<vmem>>, vector<8x32xf32>,
    %c0_56 = arith.constant 0 : index
    %c0_57 = arith.constant 0 : index
    %262 = vector.load %arg13[%c0_56, %c0_57] : memref<8x32xf32, #tpu.memory_space<vmem>>, vector<8x32xf32>
    tpu.vector_store %arg13[%c0_56, %c0_57], %256 {strides = array<i32>} : memref<8x32xf32, #tpu.memory_space<vmem>>, vector<8x32xf32>,
    %c0_58 = arith.constant 0 : index
    %c0_59 = arith.constant 0 : index
    %263 = vector.load %arg14[%c0_58, %c0_59] : memref<64x32xbf16, #tpu.memory_space<vmem>>, vector<64x32xbf16>
    %c0_60 = arith.constant 0 : index
    %c0_61 = arith.constant 0 : index
    %264 = vector.load %arg6[%c0_60, %c0_61] : memref<32x128xbf16, #tpu.memory_space<vmem>>, vector<32x128xbf16>
    %cst_62 = arith.constant dense<0.000000e+00> : vector<64x128xf32>
    %265 = tpu.matmul %263, %264, %cst_62 {dimension_numbers = #tpu.dot_dimension_numbers<[1], [0], [0], [1], [0, 0, 1, 1], [], []>} : vector<64x32xbf16>, vector<32x128xbf16>, vector<64x128xf32> -> vector<64x128xf32>
    %c0_63 = arith.constant 0 : index
    %c0_64 = arith.constant 0 : index
    %266 = vector.load %arg7[%c0_63, %c0_64] : memref<1x128xf32, #tpu.memory_space<vmem>>, vector<1x128xf32>
    %267 = vector.broadcast %266 : vector<1x128xf32> to vector<64x128xf32>
    %268 = arith.addf %265, %267 : vector<64x128xf32>
    %269 = arith.truncf %268 : vector<64x128xf32> to vector<64x128xbf16>
    %270 = vector.shape_cast %269 : vector<64x128xbf16> to vector<8x8x128xbf16>
    %c0_65 = arith.constant 0 : index
    %c0_66 = arith.constant 0 : index
    %c0_67 = arith.constant 0 : index
    %271 = vector.load %arg10[%c0_65, %c0_66, %c0_67] : memref<8x8x128xbf16, #tpu.memory_space<vmem>>, vector<8x8x128xbf16>
    tpu.vector_store %arg10[%c0_65, %c0_66, %c0_67], %270 {strides = array<i32>} : memref<8x8x128xbf16, #tpu.memory_space<vmem>>, vector<8x8x128xbf16>,
    %c0_68 = arith.constant 0 : index
    %c0_69 = arith.constant 0 : index
    %272 = vector.load %arg8[%c0_68, %c0_69] : memref<32x128xbf16, #tpu.memory_space<vmem>>, vector<32x128xbf16>
    %cst_70 = arith.constant dense<0.000000e+00> : vector<64x128xf32>
    %273 = tpu.matmul %263, %272, %cst_70 {dimension_numbers = #tpu.dot_dimension_numbers<[1], [0], [0], [1], [0, 0, 1, 1], [], []>} : vector<64x32xbf16>, vector<32x128xbf16>, vector<64x128xf32> -> vector<64x128xf32>
    %c0_71 = arith.constant 0 : index
    %c0_72 = arith.constant 0 : index
    %274 = vector.load %arg9[%c0_71, %c0_72] : memref<1x128xf32, #tpu.memory_space<vmem>>, vector<1x128xf32>
    %275 = vector.broadcast %274 : vector<1x128xf32> to vector<64x128xf32>
    %276 = arith.addf %273, %275 : vector<64x128xf32>
    %277 = arith.truncf %276 : vector<64x128xf32> to vector<64x128xbf16>
    %278 = vector.shape_cast %277 : vector<64x128xbf16> to vector<8x8x128xbf16>
    %c0_73 = arith.constant 0 : index
    %c0_74 = arith.constant 0 : index
    %c0_75 = arith.constant 0 : index
    %279 = vector.load %arg11[%c0_73, %c0_74, %c0_75] : memref<8x8x128xbf16, #tpu.memory_space<vmem>>, vector<8x8x128xbf16>
    tpu.vector_store %arg11[%c0_73, %c0_74, %c0_75], %278 {strides = array<i32>} : memref<8x8x128xbf16, #tpu.memory_space<vmem>>, vector<8x8x128xbf16>,
    return
  }
  func.func @transform_0(%arg0: i32, %arg1: i32) -> (i32, i32, i32) {
    %c0_i32 = arith.constant 0 : i32
    %c0_i32_0 = arith.constant 0 : i32
    return %arg1, %arg0, %c0_i32 : i32, i32, i32
  }
  func.func @transform_1(%arg0: i32, %arg1: i32) -> (i32, i32) {
    %c0_i32 = arith.constant 0 : i32
    %c0_i32_0 = arith.constant 0 : i32
    %c0_i32_1 = arith.constant 0 : i32
    return %c0_i32, %c0_i32_0 : i32, i32
  }
  func.func @transform_2(%arg0: i32, %arg1: i32) -> (i32, i32) {
    %c0_i32 = arith.constant 0 : i32
    %c0_i32_0 = arith.constant 0 : i32
    %c0_i32_1 = arith.constant 0 : i32
    return %c0_i32, %c0_i32_0 : i32, i32
  }
  func.func @transform_3(%arg0: i32, %arg1: i32) -> (i32, i32) {
    %c0_i32 = arith.constant 0 : i32
    %c0_i32_0 = arith.constant 0 : i32
    %c0_i32_1 = arith.constant 0 : i32
    return %c0_i32, %c0_i32_0 : i32, i32
  }
  func.func @transform_4(%arg0: i32, %arg1: i32) -> (i32, i32) {
    %c0_i32 = arith.constant 0 : i32
    %c0_i32_0 = arith.constant 0 : i32
    %c0_i32_1 = arith.constant 0 : i32
    return %c0_i32, %c0_i32_0 : i32, i32
  }
  func.func @transform_5(%arg0: i32, %arg1: i32) -> (i32, i32) {
    %c0_i32 = arith.constant 0 : i32
    %c0_i32_0 = arith.constant 0 : i32
    %c0_i32_1 = arith.constant 0 : i32
    return %c0_i32, %c0_i32_0 : i32, i32
  }
  func.func @transform_6(%arg0: i32, %arg1: i32) -> (i32, i32) {
    %c0_i32 = arith.constant 0 : i32
    %c0_i32_0 = arith.constant 0 : i32
    %c0_i32_1 = arith.constant 0 : i32
    return %c0_i32, %c0_i32_0 : i32, i32
  }
  func.func @transform_7(%arg0: i32, %arg1: i32) -> (i32, i32) {
    %c0_i32 = arith.constant 0 : i32
    %c0_i32_0 = arith.constant 0 : i32
    %c0_i32_1 = arith.constant 0 : i32
    return %c0_i32, %c0_i32_0 : i32, i32
  }
  func.func @transform_8(%arg0: i32, %arg1: i32) -> (i32, i32, i32) {
    %c0_i32 = arith.constant 0 : i32
    %c0_i32_0 = arith.constant 0 : i32
    return %arg1, %arg0, %c0_i32 : i32, i32, i32
  }
  func.func @transform_9(%arg0: i32, %arg1: i32) -> (i32, i32, i32) {
    %c0_i32 = arith.constant 0 : i32
    %c0_i32_0 = arith.constant 0 : i32
    return %arg1, %arg0, %c0_i32 : i32, i32, i32
  }
}

module attributes {stable_mosaic.version = 11 : i64} {
  func.func @speller_kernel(%arg0: i32, %arg1: memref<16x8x128xbf16, #tpu.memory_space<vmem>>, %arg2: memref<16x8x128xbf16, #tpu.memory_space<vmem>>, %arg3: memref<8x16xf32, #tpu.memory_space<vmem>>, %arg4: memref<128x128xbf16, #tpu.memory_space<vmem>>, %arg5: memref<288x128xbf16, #tpu.memory_space<vmem>>, %arg6: memref<1x128xf32, #tpu.memory_space<vmem>>, %arg7: memref<64x128xbf16, #tpu.memory_space<vmem>>, %arg8: memref<1x128xf32, #tpu.memory_space<vmem>>, %arg9: memref<32x128xbf16, #tpu.memory_space<vmem>>, %arg10: memref<1x128xf32, #tpu.memory_space<vmem>>, %arg11: memref<256x128xbf16, #tpu.memory_space<vmem>>, %arg12: memref<1x128xf32, #tpu.memory_space<vmem>>, %arg13: memref<8x8x128xf32, #tpu.memory_space<vmem>>, %arg14: memref<8x8x16xf32, #tpu.memory_space<vmem>>, %arg15: memref<8x32xf32, #tpu.memory_space<vmem>>, %arg16: memref<8x32xf32, #tpu.memory_space<vmem>>, %arg17: memref<8x32xf32, #tpu.memory_space<vmem>>, %arg18: memref<8x32xf32, #tpu.memory_space<vmem>>, %arg19: memref<8x128xf32, #tpu.memory_space<vmem>>, %arg20: memref<8x128xbf16, #tpu.memory_space<vmem>>, %arg21: memref<8x288xbf16, #tpu.memory_space<vmem>>, %arg22: memref<8x64xbf16, #tpu.memory_space<vmem>>, %arg23: memref<8x256xbf16, #tpu.memory_space<vmem>>) attributes {dimension_semantics = [#tpu.dimension_semantics<parallel>], iteration_bounds = array<i64: 1>, scalar_prefetch = 0 : i64, scratch_operands = 9 : i64, tpu.core_type = #tpu.core_type<tc>, window_params = [{transform_indices = @transform_0, window_bounds = array<i64: 16, 8, 128>}, {transform_indices = @transform_1, window_bounds = array<i64: 16, 8, 128>}, {transform_indices = @transform_2, window_bounds = array<i64: 8, 16>}, {pipeline_mode = #tpu.pipeline_mode<synchronous>, transform_indices = @transform_3, window_bounds = array<i64: 128, 128>}, {pipeline_mode = #tpu.pipeline_mode<synchronous>, transform_indices = @transform_4, window_bounds = array<i64: 288, 128>}, {pipeline_mode = #tpu.pipeline_mode<synchronous>, transform_indices = @transform_5, window_bounds = array<i64: 1, 128>}, {pipeline_mode = #tpu.pipeline_mode<synchronous>, transform_indices = @transform_6, window_bounds = array<i64: 64, 128>}, {pipeline_mode = #tpu.pipeline_mode<synchronous>, transform_indices = @transform_7, window_bounds = array<i64: 1, 128>}, {pipeline_mode = #tpu.pipeline_mode<synchronous>, transform_indices = @transform_8, window_bounds = array<i64: 32, 128>}, {pipeline_mode = #tpu.pipeline_mode<synchronous>, transform_indices = @transform_9, window_bounds = array<i64: 1, 128>}, {pipeline_mode = #tpu.pipeline_mode<synchronous>, transform_indices = @transform_10, window_bounds = array<i64: 256, 128>}, {pipeline_mode = #tpu.pipeline_mode<synchronous>, transform_indices = @transform_11, window_bounds = array<i64: 1, 128>}, {transform_indices = @transform_12, window_bounds = array<i64: 8, 8, 128>}, {transform_indices = @transform_13, window_bounds = array<i64: 8, 8, 16>}]} {
    %cst = arith.constant 0.000000e+00 : f32
    %0 = vector.broadcast %cst : f32 to vector<8x32xf32>
    %c0 = arith.constant 0 : index
    %c0_0 = arith.constant 0 : index
    %1 = vector.load %arg15[%c0, %c0_0] : memref<8x32xf32, #tpu.memory_space<vmem>>, vector<8x32xf32>
    tpu.vector_store %arg15[%c0, %c0_0], %0 {strides = array<i32>} : memref<8x32xf32, #tpu.memory_space<vmem>>, vector<8x32xf32>,
    %cst_1 = arith.constant 0.000000e+00 : f32
    %2 = vector.broadcast %cst_1 : f32 to vector<8x32xf32>
    %c0_2 = arith.constant 0 : index
    %c0_3 = arith.constant 0 : index
    %3 = vector.load %arg16[%c0_2, %c0_3] : memref<8x32xf32, #tpu.memory_space<vmem>>, vector<8x32xf32>
    tpu.vector_store %arg16[%c0_2, %c0_3], %2 {strides = array<i32>} : memref<8x32xf32, #tpu.memory_space<vmem>>, vector<8x32xf32>,
    %cst_4 = arith.constant 0.000000e+00 : f32
    %4 = vector.broadcast %cst_4 : f32 to vector<8x32xf32>
    %c0_5 = arith.constant 0 : index
    %c0_6 = arith.constant 0 : index
    %5 = vector.load %arg17[%c0_5, %c0_6] : memref<8x32xf32, #tpu.memory_space<vmem>>, vector<8x32xf32>
    tpu.vector_store %arg17[%c0_5, %c0_6], %4 {strides = array<i32>} : memref<8x32xf32, #tpu.memory_space<vmem>>, vector<8x32xf32>,
    %cst_7 = arith.constant 0.000000e+00 : f32
    %6 = vector.broadcast %cst_7 : f32 to vector<8x32xf32>
    %c0_8 = arith.constant 0 : index
    %c0_9 = arith.constant 0 : index
    %7 = vector.load %arg18[%c0_8, %c0_9] : memref<8x32xf32, #tpu.memory_space<vmem>>, vector<8x32xf32>
    tpu.vector_store %arg18[%c0_8, %c0_9], %6 {strides = array<i32>} : memref<8x32xf32, #tpu.memory_space<vmem>>, vector<8x32xf32>,
    %cst_10 = arith.constant 0.000000e+00 : f32
    %8 = vector.broadcast %cst_10 : f32 to vector<8x128xf32>
    %c0_11 = arith.constant 0 : index
    %c0_12 = arith.constant 0 : index
    %9 = vector.load %arg19[%c0_11, %c0_12] : memref<8x128xf32, #tpu.memory_space<vmem>>, vector<8x128xf32>
    tpu.vector_store %arg19[%c0_11, %c0_12], %8 {strides = array<i32>} : memref<8x128xf32, #tpu.memory_space<vmem>>, vector<8x128xf32>,
    %c0_13 = arith.constant 0 : index
    %c0_14 = arith.constant 0 : index
    %10 = vector.load %arg3[%c0_13, %c0_14] : memref<8x16xf32, #tpu.memory_space<vmem>>, vector<8x16xf32>
    %c0_15 = arith.constant 0 : index
    %c0_16 = arith.constant 0 : index
    %c0_17 = arith.constant 0 : index
    %11 = vector.load %arg1[%c0_15, %c0_16, %c0_17] : memref<16x8x128xbf16, #tpu.memory_space<vmem>>, vector<16x8x128xbf16>
    %12 = arith.extf %11 : vector<16x8x128xbf16> to vector<16x8x128xf32>
    %c0_18 = arith.constant 0 : index
    %c0_19 = arith.constant 0 : index
    %c0_20 = arith.constant 0 : index
    %13 = vector.load %arg2[%c0_18, %c0_19, %c0_20] : memref<16x8x128xbf16, #tpu.memory_space<vmem>>, vector<16x8x128xbf16>
    %14 = arith.extf %13 : vector<16x8x128xbf16> to vector<16x8x128xf32>
    %c0_21 = arith.constant 0 : index
    %c0_22 = arith.constant 0 : index
    %15 = vector.load %arg4[%c0_21, %c0_22] : memref<128x128xbf16, #tpu.memory_space<vmem>>, vector<128x128xbf16>
    %c0_23 = arith.constant 0 : index
    %c0_24 = arith.constant 0 : index
    %16 = vector.load %arg5[%c0_23, %c0_24] : memref<288x128xbf16, #tpu.memory_space<vmem>>, vector<288x128xbf16>
    %c0_25 = arith.constant 0 : index
    %c0_26 = arith.constant 0 : index
    %17 = vector.load %arg7[%c0_25, %c0_26] : memref<64x128xbf16, #tpu.memory_space<vmem>>, vector<64x128xbf16>
    %c0_27 = arith.constant 0 : index
    %c0_28 = arith.constant 0 : index
    %18 = vector.load %arg9[%c0_27, %c0_28] : memref<32x128xbf16, #tpu.memory_space<vmem>>, vector<32x128xbf16>
    %c0_29 = arith.constant 0 : index
    %c0_30 = arith.constant 0 : index
    %19 = vector.load %arg11[%c0_29, %c0_30] : memref<256x128xbf16, #tpu.memory_space<vmem>>, vector<256x128xbf16>
    %c0_31 = arith.constant 0 : index
    %c0_32 = arith.constant 0 : index
    %20 = vector.load %arg6[%c0_31, %c0_32] : memref<1x128xf32, #tpu.memory_space<vmem>>, vector<1x128xf32>
    %21 = vector.shape_cast %20 : vector<1x128xf32> to vector<1x128xf32>
    %22 = vector.broadcast %21 : vector<1x128xf32> to vector<8x128xf32>
    %c0_33 = arith.constant 0 : index
    %c0_34 = arith.constant 0 : index
    %23 = vector.load %arg8[%c0_33, %c0_34] : memref<1x128xf32, #tpu.memory_space<vmem>>, vector<1x128xf32>
    %24 = vector.shape_cast %23 : vector<1x128xf32> to vector<1x128xf32>
    %25 = vector.broadcast %24 : vector<1x128xf32> to vector<8x128xf32>
    %c0_35 = arith.constant 0 : index
    %c0_36 = arith.constant 0 : index
    %26 = vector.load %arg10[%c0_35, %c0_36] : memref<1x128xf32, #tpu.memory_space<vmem>>, vector<1x128xf32>
    %27 = vector.shape_cast %26 : vector<1x128xf32> to vector<1x128xf32>
    %28 = vector.broadcast %27 : vector<1x128xf32> to vector<8x128xf32>
    %c0_37 = arith.constant 0 : index
    %c0_38 = arith.constant 0 : index
    %29 = vector.load %arg12[%c0_37, %c0_38] : memref<1x128xf32, #tpu.memory_space<vmem>>, vector<1x128xf32>
    %30 = vector.shape_cast %29 : vector<1x128xf32> to vector<1x128xf32>
    %31 = vector.broadcast %30 : vector<1x128xf32> to vector<8x128xf32>
    %32 = tpu.iota {dimensions = array<i32: 1>} : vector<8x128xi32>
    %c0_i32 = arith.constant 0 : i32
    %33 = vector.broadcast %c0_i32 : i32 to vector<8x128xi32>
    %34 = arith.cmpi eq, %32, %33 : vector<8x128xi32>
    %35 = arith.extui %34 : vector<8x128xi1> to vector<8x128xi32>
    %36 = arith.sitofp %35 : vector<8x128xi32> to vector<8x128xf32>
    %37 = arith.truncf %36 : vector<8x128xf32> to vector<8x128xbf16>
    %c0_39 = arith.constant 0 : index
    %c0_40 = arith.constant 0 : index
    %38 = vector.load %arg20[%c0_39, %c0_40] : memref<8x128xbf16, #tpu.memory_space<vmem>>, vector<8x128xbf16>
    tpu.vector_store %arg20[%c0_39, %c0_40], %37 {strides = array<i32>} : memref<8x128xbf16, #tpu.memory_space<vmem>>, vector<8x128xbf16>,
    %c0_41 = arith.constant 0 : index
    %c0_42 = arith.constant 0 : index
    %39 = vector.load %arg20[%c0_41, %c0_42] : memref<8x128xbf16, #tpu.memory_space<vmem>>, vector<8x128xbf16>
    %cst_43 = arith.constant dense<0.000000e+00> : vector<8x128xf32>
    %40 = tpu.matmul %39, %15, %cst_43 {dimension_numbers = #tpu.dot_dimension_numbers<[1], [0], [0], [1], [0, 0, 1, 1], [], []>} : vector<8x128xbf16>, vector<128x128xbf16>, vector<8x128xf32> -> vector<8x128xf32>
    %41 = arith.truncf %40 : vector<8x128xf32> to vector<8x128xbf16>
    %c0_44 = arith.constant 0 : index
    %c0_45 = arith.constant 0 : index
    %42 = vector.load %arg21[%c0_44, %c0_45] : memref<8x288xbf16, #tpu.memory_space<vmem>>, vector<8x128xbf16>
    tpu.vector_store %arg21[%c0_44, %c0_45], %41 {strides = array<i32>} : memref<8x288xbf16, #tpu.memory_space<vmem>>, vector<8x128xbf16>,
    %c0_46 = arith.constant 0 : index
    %c0_47 = arith.constant 0 : index
    %43 = vector.load %arg19[%c0_46, %c0_47] : memref<8x128xf32, #tpu.memory_space<vmem>>, vector<8x128xf32>
    %44 = arith.truncf %43 : vector<8x128xf32> to vector<8x128xbf16>
    %c0_48 = arith.constant 0 : index
    %c128 = arith.constant 128 : index
    %45 = vector.load %arg21[%c0_48, %c128] : memref<8x288xbf16, #tpu.memory_space<vmem>>, vector<8x128xbf16>
    tpu.vector_store %arg21[%c0_48, %c128], %44 {strides = array<i32>} : memref<8x288xbf16, #tpu.memory_space<vmem>>, vector<8x128xbf16>,
    %c0_49 = arith.constant 0 : index
    %c0_50 = arith.constant 0 : index
    %46 = vector.load %arg15[%c0_49, %c0_50] : memref<8x32xf32, #tpu.memory_space<vmem>>, vector<8x32xf32>
    %47 = arith.truncf %46 : vector<8x32xf32> to vector<8x32xbf16>
    %c0_51 = arith.constant 0 : index
    %c256 = arith.constant 256 : index
    %48 = vector.load %arg21[%c0_51, %c256] : memref<8x288xbf16, #tpu.memory_space<vmem>>, vector<8x32xbf16>
    tpu.vector_store %arg21[%c0_51, %c256], %47 {strides = array<i32>} : memref<8x288xbf16, #tpu.memory_space<vmem>>, vector<8x32xbf16>,
    %c0_52 = arith.constant 0 : index
    %c0_53 = arith.constant 0 : index
    %49 = vector.load %arg21[%c0_52, %c0_53] : memref<8x288xbf16, #tpu.memory_space<vmem>>, vector<8x288xbf16>
    %cst_54 = arith.constant dense<0.000000e+00> : vector<8x128xf32>
    %50 = tpu.matmul %49, %16, %cst_54 {dimension_numbers = #tpu.dot_dimension_numbers<[1], [0], [0], [1], [0, 0, 1, 1], [], []>} : vector<8x288xbf16>, vector<288x128xbf16>, vector<8x128xf32> -> vector<8x128xf32>
    %51 = arith.addf %50, %22 : vector<8x128xf32>
    %c0_55 = arith.constant 0 : index
    %c0_56 = arith.constant 0 : index
    %52 = vector.load %arg16[%c0_55, %c0_56] : memref<8x32xf32, #tpu.memory_space<vmem>>, vector<8x32xf32>
    %53 = vector.extract_strided_slice %51 {offsets = [0, 0], sizes = [8, 32], strides = [1, 1]} : vector<8x128xf32> to vector<8x32xf32>
    %54 = arith.negf %53 : vector<8x32xf32>
    %55 = math.exp %54 : vector<8x32xf32>
    %cst_57 = arith.constant 1.000000e+00 : f32
    %56 = vector.broadcast %cst_57 : f32 to vector<8x32xf32>
    %57 = arith.addf %56, %55 : vector<8x32xf32>
    %58 = arith.divf %56, %57 : vector<8x32xf32>
    %59 = vector.extract_strided_slice %51 {offsets = [0, 32], sizes = [8, 32], strides = [1, 1]} : vector<8x128xf32> to vector<8x32xf32>
    %60 = arith.negf %59 : vector<8x32xf32>
    %61 = math.exp %60 : vector<8x32xf32>
    %cst_58 = arith.constant 1.000000e+00 : f32
    %62 = vector.broadcast %cst_58 : f32 to vector<8x32xf32>
    %63 = arith.addf %62, %61 : vector<8x32xf32>
    %64 = arith.divf %62, %63 : vector<8x32xf32>
    %65 = vector.extract_strided_slice %51 {offsets = [0, 64], sizes = [8, 32], strides = [1, 1]} : vector<8x128xf32> to vector<8x32xf32>
    %66 = math.tanh %65 : vector<8x32xf32>
    %67 = vector.extract_strided_slice %51 {offsets = [0, 96], sizes = [8, 32], strides = [1, 1]} : vector<8x128xf32> to vector<8x32xf32>
    %68 = arith.negf %67 : vector<8x32xf32>
    %69 = math.exp %68 : vector<8x32xf32>
    %cst_59 = arith.constant 1.000000e+00 : f32
    %70 = vector.broadcast %cst_59 : f32 to vector<8x32xf32>
    %71 = arith.addf %70, %69 : vector<8x32xf32>
    %72 = arith.divf %70, %71 : vector<8x32xf32>
    %73 = arith.mulf %64, %52 : vector<8x32xf32>
    %74 = arith.mulf %58, %66 : vector<8x32xf32>
    %75 = arith.addf %73, %74 : vector<8x32xf32>
    %76 = math.tanh %75 : vector<8x32xf32>
    %77 = arith.mulf %72, %76 : vector<8x32xf32>
    %78 = arith.truncf %77 : vector<8x32xf32> to vector<8x32xbf16>
    %c0_60 = arith.constant 0 : index
    %c0_61 = arith.constant 0 : index
    %79 = vector.load %arg22[%c0_60, %c0_61] : memref<8x64xbf16, #tpu.memory_space<vmem>>, vector<8x32xbf16>
    tpu.vector_store %arg22[%c0_60, %c0_61], %78 {strides = array<i32>} : memref<8x64xbf16, #tpu.memory_space<vmem>>, vector<8x32xbf16>,
    %c0_62 = arith.constant 0 : index
    %c0_63 = arith.constant 0 : index
    %80 = vector.load %arg17[%c0_62, %c0_63] : memref<8x32xf32, #tpu.memory_space<vmem>>, vector<8x32xf32>
    %81 = arith.truncf %80 : vector<8x32xf32> to vector<8x32xbf16>
    %c0_64 = arith.constant 0 : index
    %c32 = arith.constant 32 : index
    %82 = vector.load %arg22[%c0_64, %c32] : memref<8x64xbf16, #tpu.memory_space<vmem>>, vector<8x32xbf16>
    tpu.vector_store %arg22[%c0_64, %c32], %81 {strides = array<i32>} : memref<8x64xbf16, #tpu.memory_space<vmem>>, vector<8x32xbf16>,
    %c0_65 = arith.constant 0 : index
    %c0_66 = arith.constant 0 : index
    %83 = vector.load %arg22[%c0_65, %c0_66] : memref<8x64xbf16, #tpu.memory_space<vmem>>, vector<8x64xbf16>
    %cst_67 = arith.constant dense<0.000000e+00> : vector<8x128xf32>
    %84 = tpu.matmul %83, %17, %cst_67 {dimension_numbers = #tpu.dot_dimension_numbers<[1], [0], [0], [1], [0, 0, 1, 1], [], []>} : vector<8x64xbf16>, vector<64x128xbf16>, vector<8x128xf32> -> vector<8x128xf32>
    %85 = arith.addf %84, %25 : vector<8x128xf32>
    %c0_68 = arith.constant 0 : index
    %c0_69 = arith.constant 0 : index
    %86 = vector.load %arg18[%c0_68, %c0_69] : memref<8x32xf32, #tpu.memory_space<vmem>>, vector<8x32xf32>
    %87 = vector.extract_strided_slice %85 {offsets = [0, 0], sizes = [8, 32], strides = [1, 1]} : vector<8x128xf32> to vector<8x32xf32>
    %88 = arith.negf %87 : vector<8x32xf32>
    %89 = math.exp %88 : vector<8x32xf32>
    %cst_70 = arith.constant 1.000000e+00 : f32
    %90 = vector.broadcast %cst_70 : f32 to vector<8x32xf32>
    %91 = arith.addf %90, %89 : vector<8x32xf32>
    %92 = arith.divf %90, %91 : vector<8x32xf32>
    %93 = vector.extract_strided_slice %85 {offsets = [0, 32], sizes = [8, 32], strides = [1, 1]} : vector<8x128xf32> to vector<8x32xf32>
    %94 = arith.negf %93 : vector<8x32xf32>
    %95 = math.exp %94 : vector<8x32xf32>
    %cst_71 = arith.constant 1.000000e+00 : f32
    %96 = vector.broadcast %cst_71 : f32 to vector<8x32xf32>
    %97 = arith.addf %96, %95 : vector<8x32xf32>
    %98 = arith.divf %96, %97 : vector<8x32xf32>
    %99 = vector.extract_strided_slice %85 {offsets = [0, 64], sizes = [8, 32], strides = [1, 1]} : vector<8x128xf32> to vector<8x32xf32>
    %100 = math.tanh %99 : vector<8x32xf32>
    %101 = vector.extract_strided_slice %85 {offsets = [0, 96], sizes = [8, 32], strides = [1, 1]} : vector<8x128xf32> to vector<8x32xf32>
    %102 = arith.negf %101 : vector<8x32xf32>
    %103 = math.exp %102 : vector<8x32xf32>
    %cst_72 = arith.constant 1.000000e+00 : f32
    %104 = vector.broadcast %cst_72 : f32 to vector<8x32xf32>
    %105 = arith.addf %104, %103 : vector<8x32xf32>
    %106 = arith.divf %104, %105 : vector<8x32xf32>
    %107 = arith.mulf %98, %86 : vector<8x32xf32>
    %108 = arith.mulf %92, %100 : vector<8x32xf32>
    %109 = arith.addf %107, %108 : vector<8x32xf32>
    %110 = math.tanh %109 : vector<8x32xf32>
    %111 = arith.mulf %106, %110 : vector<8x32xf32>
    %112 = arith.truncf %111 : vector<8x32xf32> to vector<8x32xbf16>
    %cst_73 = arith.constant dense<0.000000e+00> : vector<8x128xf32>
    %113 = tpu.matmul %112, %18, %cst_73 {dimension_numbers = #tpu.dot_dimension_numbers<[1], [0], [0], [1], [0, 0, 1, 1], [], []>} : vector<8x32xbf16>, vector<32x128xbf16>, vector<8x128xf32> -> vector<8x128xf32>
    %114 = arith.addf %113, %28 : vector<8x128xf32>
    %115 = vector.shape_cast %114 : vector<8x128xf32> to vector<1x8x128xf32>
    %116 = vector.broadcast %115 : vector<1x8x128xf32> to vector<16x8x128xf32>
    %117 = arith.mulf %12, %116 : vector<16x8x128xf32>
    %cst_74 = arith.constant dense<0.000000e+00> : vector<16x8xf32>
    %118 = vector.multi_reduction <add>, %117, %cst_74 [2] : vector<16x8x128xf32> to vector<16x8xf32>
    %119 = tpu.transpose %118, [1, 0] : vector<16x8xf32> -> vector<8x16xf32>
    %120 = arith.addf %119, %10 : vector<8x16xf32>
    %cst_75 = arith.constant dense<0xFF800000> : vector<8xf32>
    %121 = vector.multi_reduction <maximumf>, %120, %cst_75 [1] : vector<8x16xf32> to vector<8xf32>
    %122 = vector.shape_cast %121 : vector<8xf32> to vector<8x1xf32>
    %123 = vector.broadcast %122 : vector<8x1xf32> to vector<8x16xf32>
    %124 = arith.subf %120, %123 : vector<8x16xf32>
    %125 = math.exp %124 : vector<8x16xf32>
    %cst_76 = arith.constant dense<0.000000e+00> : vector<8xf32>
    %126 = vector.multi_reduction <add>, %125, %cst_76 [1] : vector<8x16xf32> to vector<8xf32>
    %127 = vector.shape_cast %126 : vector<8xf32> to vector<8x1xf32>
    %128 = vector.broadcast %127 : vector<8x1xf32> to vector<8x16xf32>
    %129 = arith.divf %125, %128 : vector<8x16xf32>
    %130 = tpu.transpose %129, [1, 0] : vector<8x16xf32> -> vector<16x8xf32>
    %131 = vector.shape_cast %130 : vector<16x8xf32> to vector<16x8x1xf32>
    %132 = vector.broadcast %131 : vector<16x8x1xf32> to vector<16x8x128xf32>
    %133 = arith.mulf %132, %14 : vector<16x8x128xf32>
    %cst_77 = arith.constant dense<0.000000e+00> : vector<8x128xf32>
    %134 = vector.multi_reduction <add>, %133, %cst_77 [0] : vector<16x8x128xf32> to vector<8x128xf32>
    %135 = arith.truncf %114 : vector<8x128xf32> to vector<8x128xbf16>
    %c0_78 = arith.constant 0 : index
    %c0_79 = arith.constant 0 : index
    %136 = vector.load %arg23[%c0_78, %c0_79] : memref<8x256xbf16, #tpu.memory_space<vmem>>, vector<8x128xbf16>
    tpu.vector_store %arg23[%c0_78, %c0_79], %135 {strides = array<i32>} : memref<8x256xbf16, #tpu.memory_space<vmem>>, vector<8x128xbf16>,
    %137 = arith.truncf %134 : vector<8x128xf32> to vector<8x128xbf16>
    %c0_80 = arith.constant 0 : index
    %c128_81 = arith.constant 128 : index
    %138 = vector.load %arg23[%c0_80, %c128_81] : memref<8x256xbf16, #tpu.memory_space<vmem>>, vector<8x128xbf16>
    tpu.vector_store %arg23[%c0_80, %c128_81], %137 {strides = array<i32>} : memref<8x256xbf16, #tpu.memory_space<vmem>>, vector<8x128xbf16>,
    %c0_82 = arith.constant 0 : index
    %c0_83 = arith.constant 0 : index
    %139 = vector.load %arg23[%c0_82, %c0_83] : memref<8x256xbf16, #tpu.memory_space<vmem>>, vector<8x256xbf16>
    %cst_84 = arith.constant dense<0.000000e+00> : vector<8x128xf32>
    %140 = tpu.matmul %139, %19, %cst_84 {dimension_numbers = #tpu.dot_dimension_numbers<[1], [0], [0], [1], [0, 0, 1, 1], [], []>} : vector<8x256xbf16>, vector<256x128xbf16>, vector<8x128xf32> -> vector<8x128xf32>
    %141 = arith.addf %140, %31 : vector<8x128xf32>
    %c0_85 = arith.constant 0 : index
    %c0_86 = arith.constant 0 : index
    %c0_87 = arith.constant 0 : index
    %142 = vector.load %arg13[%c0_85, %c0_86, %c0_87] : memref<8x8x128xf32, #tpu.memory_space<vmem>>, vector<1x8x128xf32>
    %143 = vector.shape_cast %142 : vector<1x8x128xf32> to vector<8x128xf32>
    %144 = vector.shape_cast %141 : vector<8x128xf32> to vector<1x8x128xf32>
    tpu.vector_store %arg13[%c0_85, %c0_86, %c0_87], %144 {strides = array<i32>} : memref<8x8x128xf32, #tpu.memory_space<vmem>>, vector<1x8x128xf32>,
    %c0_88 = arith.constant 0 : index
    %c0_89 = arith.constant 0 : index
    %c0_90 = arith.constant 0 : index
    %145 = vector.load %arg14[%c0_88, %c0_89, %c0_90] : memref<8x8x16xf32, #tpu.memory_space<vmem>>, vector<1x8x16xf32>
    %146 = vector.shape_cast %145 : vector<1x8x16xf32> to vector<8x16xf32>
    %147 = vector.shape_cast %129 : vector<8x16xf32> to vector<1x8x16xf32>
    tpu.vector_store %arg14[%c0_88, %c0_89, %c0_90], %147 {strides = array<i32>} : memref<8x8x16xf32, #tpu.memory_space<vmem>>, vector<1x8x16xf32>,
    %cst_91 = arith.constant dense<0xFF800000> : vector<8xf32>
    %148 = vector.multi_reduction <maximumf>, %141, %cst_91 [1] : vector<8x128xf32> to vector<8xf32>
    %149 = vector.shape_cast %148 : vector<8xf32> to vector<8x1xf32>
    %150 = vector.broadcast %149 : vector<8x1xf32> to vector<8x128xf32>
    %151 = arith.cmpf oge, %141, %150 : vector<8x128xf32>
    %c128_i32 = arith.constant 128 : i32
    %152 = vector.broadcast %c128_i32 : i32 to vector<8x128xi32>
    %153 = arith.select %151, %32, %152 : vector<8x128xi1>, vector<8x128xi32>
    %cst_92 = arith.constant dense<2147483647> : vector<8xi32>
    %154 = vector.multi_reduction <minsi>, %153, %cst_92 [1] : vector<8x128xi32> to vector<8xi32>
    %155 = vector.shape_cast %154 : vector<8xi32> to vector<8x1xi32>
    %156 = vector.broadcast %155 : vector<8x1xi32> to vector<8x128xi32>
    %157 = arith.cmpi eq, %32, %156 : vector<8x128xi32>
    %158 = arith.extui %157 : vector<8x128xi1> to vector<8x128xi32>
    %159 = arith.sitofp %158 : vector<8x128xi32> to vector<8x128xf32>
    %160 = arith.truncf %159 : vector<8x128xf32> to vector<8x128xbf16>
    %c0_93 = arith.constant 0 : index
    %c0_94 = arith.constant 0 : index
    %161 = vector.load %arg20[%c0_93, %c0_94] : memref<8x128xbf16, #tpu.memory_space<vmem>>, vector<8x128xbf16>
    tpu.vector_store %arg20[%c0_93, %c0_94], %160 {strides = array<i32>} : memref<8x128xbf16, #tpu.memory_space<vmem>>, vector<8x128xbf16>,
    %c0_95 = arith.constant 0 : index
    %c0_96 = arith.constant 0 : index
    %162 = vector.load %arg15[%c0_95, %c0_96] : memref<8x32xf32, #tpu.memory_space<vmem>>, vector<8x32xf32>
    tpu.vector_store %arg15[%c0_95, %c0_96], %77 {strides = array<i32>} : memref<8x32xf32, #tpu.memory_space<vmem>>, vector<8x32xf32>,
    %c0_97 = arith.constant 0 : index
    %c0_98 = arith.constant 0 : index
    %163 = vector.load %arg16[%c0_97, %c0_98] : memref<8x32xf32, #tpu.memory_space<vmem>>, vector<8x32xf32>
    tpu.vector_store %arg16[%c0_97, %c0_98], %75 {strides = array<i32>} : memref<8x32xf32, #tpu.memory_space<vmem>>, vector<8x32xf32>,
    %c0_99 = arith.constant 0 : index
    %c0_100 = arith.constant 0 : index
    %164 = vector.load %arg17[%c0_99, %c0_100] : memref<8x32xf32, #tpu.memory_space<vmem>>, vector<8x32xf32>
    tpu.vector_store %arg17[%c0_99, %c0_100], %111 {strides = array<i32>} : memref<8x32xf32, #tpu.memory_space<vmem>>, vector<8x32xf32>,
    %c0_101 = arith.constant 0 : index
    %c0_102 = arith.constant 0 : index
    %165 = vector.load %arg18[%c0_101, %c0_102] : memref<8x32xf32, #tpu.memory_space<vmem>>, vector<8x32xf32>
    tpu.vector_store %arg18[%c0_101, %c0_102], %109 {strides = array<i32>} : memref<8x32xf32, #tpu.memory_space<vmem>>, vector<8x32xf32>,
    %c0_103 = arith.constant 0 : index
    %c0_104 = arith.constant 0 : index
    %166 = vector.load %arg19[%c0_103, %c0_104] : memref<8x128xf32, #tpu.memory_space<vmem>>, vector<8x128xf32>
    tpu.vector_store %arg19[%c0_103, %c0_104], %134 {strides = array<i32>} : memref<8x128xf32, #tpu.memory_space<vmem>>, vector<8x128xf32>,
    %c0_105 = arith.constant 0 : index
    %c0_106 = arith.constant 0 : index
    %167 = vector.load %arg20[%c0_105, %c0_106] : memref<8x128xbf16, #tpu.memory_space<vmem>>, vector<8x128xbf16>
    %cst_107 = arith.constant dense<0.000000e+00> : vector<8x128xf32>
    %168 = tpu.matmul %167, %15, %cst_107 {dimension_numbers = #tpu.dot_dimension_numbers<[1], [0], [0], [1], [0, 0, 1, 1], [], []>} : vector<8x128xbf16>, vector<128x128xbf16>, vector<8x128xf32> -> vector<8x128xf32>
    %169 = arith.truncf %168 : vector<8x128xf32> to vector<8x128xbf16>
    %c0_108 = arith.constant 0 : index
    %c0_109 = arith.constant 0 : index
    %170 = vector.load %arg21[%c0_108, %c0_109] : memref<8x288xbf16, #tpu.memory_space<vmem>>, vector<8x128xbf16>
    tpu.vector_store %arg21[%c0_108, %c0_109], %169 {strides = array<i32>} : memref<8x288xbf16, #tpu.memory_space<vmem>>, vector<8x128xbf16>,
    %c0_110 = arith.constant 0 : index
    %c0_111 = arith.constant 0 : index
    %171 = vector.load %arg19[%c0_110, %c0_111] : memref<8x128xf32, #tpu.memory_space<vmem>>, vector<8x128xf32>
    %172 = arith.truncf %171 : vector<8x128xf32> to vector<8x128xbf16>
    %c0_112 = arith.constant 0 : index
    %c128_113 = arith.constant 128 : index
    %173 = vector.load %arg21[%c0_112, %c128_113] : memref<8x288xbf16, #tpu.memory_space<vmem>>, vector<8x128xbf16>
    tpu.vector_store %arg21[%c0_112, %c128_113], %172 {strides = array<i32>} : memref<8x288xbf16, #tpu.memory_space<vmem>>, vector<8x128xbf16>,
    %c0_114 = arith.constant 0 : index
    %c0_115 = arith.constant 0 : index
    %174 = vector.load %arg15[%c0_114, %c0_115] : memref<8x32xf32, #tpu.memory_space<vmem>>, vector<8x32xf32>
    %175 = arith.truncf %174 : vector<8x32xf32> to vector<8x32xbf16>
    %c0_116 = arith.constant 0 : index
    %c256_117 = arith.constant 256 : index
    %176 = vector.load %arg21[%c0_116, %c256_117] : memref<8x288xbf16, #tpu.memory_space<vmem>>, vector<8x32xbf16>
    tpu.vector_store %arg21[%c0_116, %c256_117], %175 {strides = array<i32>} : memref<8x288xbf16, #tpu.memory_space<vmem>>, vector<8x32xbf16>,
    %c0_118 = arith.constant 0 : index
    %c0_119 = arith.constant 0 : index
    %177 = vector.load %arg21[%c0_118, %c0_119] : memref<8x288xbf16, #tpu.memory_space<vmem>>, vector<8x288xbf16>
    %cst_120 = arith.constant dense<0.000000e+00> : vector<8x128xf32>
    %178 = tpu.matmul %177, %16, %cst_120 {dimension_numbers = #tpu.dot_dimension_numbers<[1], [0], [0], [1], [0, 0, 1, 1], [], []>} : vector<8x288xbf16>, vector<288x128xbf16>, vector<8x128xf32> -> vector<8x128xf32>
    %179 = arith.addf %178, %22 : vector<8x128xf32>
    %c0_121 = arith.constant 0 : index
    %c0_122 = arith.constant 0 : index
    %180 = vector.load %arg16[%c0_121, %c0_122] : memref<8x32xf32, #tpu.memory_space<vmem>>, vector<8x32xf32>
    %181 = vector.extract_strided_slice %179 {offsets = [0, 0], sizes = [8, 32], strides = [1, 1]} : vector<8x128xf32> to vector<8x32xf32>
    %182 = arith.negf %181 : vector<8x32xf32>
    %183 = math.exp %182 : vector<8x32xf32>
    %cst_123 = arith.constant 1.000000e+00 : f32
    %184 = vector.broadcast %cst_123 : f32 to vector<8x32xf32>
    %185 = arith.addf %184, %183 : vector<8x32xf32>
    %186 = arith.divf %184, %185 : vector<8x32xf32>
    %187 = vector.extract_strided_slice %179 {offsets = [0, 32], sizes = [8, 32], strides = [1, 1]} : vector<8x128xf32> to vector<8x32xf32>
    %188 = arith.negf %187 : vector<8x32xf32>
    %189 = math.exp %188 : vector<8x32xf32>
    %cst_124 = arith.constant 1.000000e+00 : f32
    %190 = vector.broadcast %cst_124 : f32 to vector<8x32xf32>
    %191 = arith.addf %190, %189 : vector<8x32xf32>
    %192 = arith.divf %190, %191 : vector<8x32xf32>
    %193 = vector.extract_strided_slice %179 {offsets = [0, 64], sizes = [8, 32], strides = [1, 1]} : vector<8x128xf32> to vector<8x32xf32>
    %194 = math.tanh %193 : vector<8x32xf32>
    %195 = vector.extract_strided_slice %179 {offsets = [0, 96], sizes = [8, 32], strides = [1, 1]} : vector<8x128xf32> to vector<8x32xf32>
    %196 = arith.negf %195 : vector<8x32xf32>
    %197 = math.exp %196 : vector<8x32xf32>
    %cst_125 = arith.constant 1.000000e+00 : f32
    %198 = vector.broadcast %cst_125 : f32 to vector<8x32xf32>
    %199 = arith.addf %198, %197 : vector<8x32xf32>
    %200 = arith.divf %198, %199 : vector<8x32xf32>
    %201 = arith.mulf %192, %180 : vector<8x32xf32>
    %202 = arith.mulf %186, %194 : vector<8x32xf32>
    %203 = arith.addf %201, %202 : vector<8x32xf32>
    %204 = math.tanh %203 : vector<8x32xf32>
    %205 = arith.mulf %200, %204 : vector<8x32xf32>
    %206 = arith.truncf %205 : vector<8x32xf32> to vector<8x32xbf16>
    %c0_126 = arith.constant 0 : index
    %c0_127 = arith.constant 0 : index
    %207 = vector.load %arg22[%c0_126, %c0_127] : memref<8x64xbf16, #tpu.memory_space<vmem>>, vector<8x32xbf16>
    tpu.vector_store %arg22[%c0_126, %c0_127], %206 {strides = array<i32>} : memref<8x64xbf16, #tpu.memory_space<vmem>>, vector<8x32xbf16>,
    %c0_128 = arith.constant 0 : index
    %c0_129 = arith.constant 0 : index
    %208 = vector.load %arg17[%c0_128, %c0_129] : memref<8x32xf32, #tpu.memory_space<vmem>>, vector<8x32xf32>
    %209 = arith.truncf %208 : vector<8x32xf32> to vector<8x32xbf16>
    %c0_130 = arith.constant 0 : index
    %c32_131 = arith.constant 32 : index
    %210 = vector.load %arg22[%c0_130, %c32_131] : memref<8x64xbf16, #tpu.memory_space<vmem>>, vector<8x32xbf16>
    tpu.vector_store %arg22[%c0_130, %c32_131], %209 {strides = array<i32>} : memref<8x64xbf16, #tpu.memory_space<vmem>>, vector<8x32xbf16>,
    %c0_132 = arith.constant 0 : index
    %c0_133 = arith.constant 0 : index
    %211 = vector.load %arg22[%c0_132, %c0_133] : memref<8x64xbf16, #tpu.memory_space<vmem>>, vector<8x64xbf16>
    %cst_134 = arith.constant dense<0.000000e+00> : vector<8x128xf32>
    %212 = tpu.matmul %211, %17, %cst_134 {dimension_numbers = #tpu.dot_dimension_numbers<[1], [0], [0], [1], [0, 0, 1, 1], [], []>} : vector<8x64xbf16>, vector<64x128xbf16>, vector<8x128xf32> -> vector<8x128xf32>
    %213 = arith.addf %212, %25 : vector<8x128xf32>
    %c0_135 = arith.constant 0 : index
    %c0_136 = arith.constant 0 : index
    %214 = vector.load %arg18[%c0_135, %c0_136] : memref<8x32xf32, #tpu.memory_space<vmem>>, vector<8x32xf32>
    %215 = vector.extract_strided_slice %213 {offsets = [0, 0], sizes = [8, 32], strides = [1, 1]} : vector<8x128xf32> to vector<8x32xf32>
    %216 = arith.negf %215 : vector<8x32xf32>
    %217 = math.exp %216 : vector<8x32xf32>
    %cst_137 = arith.constant 1.000000e+00 : f32
    %218 = vector.broadcast %cst_137 : f32 to vector<8x32xf32>
    %219 = arith.addf %218, %217 : vector<8x32xf32>
    %220 = arith.divf %218, %219 : vector<8x32xf32>
    %221 = vector.extract_strided_slice %213 {offsets = [0, 32], sizes = [8, 32], strides = [1, 1]} : vector<8x128xf32> to vector<8x32xf32>
    %222 = arith.negf %221 : vector<8x32xf32>
    %223 = math.exp %222 : vector<8x32xf32>
    %cst_138 = arith.constant 1.000000e+00 : f32
    %224 = vector.broadcast %cst_138 : f32 to vector<8x32xf32>
    %225 = arith.addf %224, %223 : vector<8x32xf32>
    %226 = arith.divf %224, %225 : vector<8x32xf32>
    %227 = vector.extract_strided_slice %213 {offsets = [0, 64], sizes = [8, 32], strides = [1, 1]} : vector<8x128xf32> to vector<8x32xf32>
    %228 = math.tanh %227 : vector<8x32xf32>
    %229 = vector.extract_strided_slice %213 {offsets = [0, 96], sizes = [8, 32], strides = [1, 1]} : vector<8x128xf32> to vector<8x32xf32>
    %230 = arith.negf %229 : vector<8x32xf32>
    %231 = math.exp %230 : vector<8x32xf32>
    %cst_139 = arith.constant 1.000000e+00 : f32
    %232 = vector.broadcast %cst_139 : f32 to vector<8x32xf32>
    %233 = arith.addf %232, %231 : vector<8x32xf32>
    %234 = arith.divf %232, %233 : vector<8x32xf32>
    %235 = arith.mulf %226, %214 : vector<8x32xf32>
    %236 = arith.mulf %220, %228 : vector<8x32xf32>
    %237 = arith.addf %235, %236 : vector<8x32xf32>
    %238 = math.tanh %237 : vector<8x32xf32>
    %239 = arith.mulf %234, %238 : vector<8x32xf32>
    %240 = arith.truncf %239 : vector<8x32xf32> to vector<8x32xbf16>
    %cst_140 = arith.constant dense<0.000000e+00> : vector<8x128xf32>
    %241 = tpu.matmul %240, %18, %cst_140 {dimension_numbers = #tpu.dot_dimension_numbers<[1], [0], [0], [1], [0, 0, 1, 1], [], []>} : vector<8x32xbf16>, vector<32x128xbf16>, vector<8x128xf32> -> vector<8x128xf32>
    %242 = arith.addf %241, %28 : vector<8x128xf32>
    %243 = vector.shape_cast %242 : vector<8x128xf32> to vector<1x8x128xf32>
    %244 = vector.broadcast %243 : vector<1x8x128xf32> to vector<16x8x128xf32>
    %245 = arith.mulf %12, %244 : vector<16x8x128xf32>
    %cst_141 = arith.constant dense<0.000000e+00> : vector<16x8xf32>
    %246 = vector.multi_reduction <add>, %245, %cst_141 [2] : vector<16x8x128xf32> to vector<16x8xf32>
    %247 = tpu.transpose %246, [1, 0] : vector<16x8xf32> -> vector<8x16xf32>
    %248 = arith.addf %247, %10 : vector<8x16xf32>
    %cst_142 = arith.constant dense<0xFF800000> : vector<8xf32>
    %249 = vector.multi_reduction <maximumf>, %248, %cst_142 [1] : vector<8x16xf32> to vector<8xf32>
    %250 = vector.shape_cast %249 : vector<8xf32> to vector<8x1xf32>
    %251 = vector.broadcast %250 : vector<8x1xf32> to vector<8x16xf32>
    %252 = arith.subf %248, %251 : vector<8x16xf32>
    %253 = math.exp %252 : vector<8x16xf32>
    %cst_143 = arith.constant dense<0.000000e+00> : vector<8xf32>
    %254 = vector.multi_reduction <add>, %253, %cst_143 [1] : vector<8x16xf32> to vector<8xf32>
    %255 = vector.shape_cast %254 : vector<8xf32> to vector<8x1xf32>
    %256 = vector.broadcast %255 : vector<8x1xf32> to vector<8x16xf32>
    %257 = arith.divf %253, %256 : vector<8x16xf32>
    %258 = tpu.transpose %257, [1, 0] : vector<8x16xf32> -> vector<16x8xf32>
    %259 = vector.shape_cast %258 : vector<16x8xf32> to vector<16x8x1xf32>
    %260 = vector.broadcast %259 : vector<16x8x1xf32> to vector<16x8x128xf32>
    %261 = arith.mulf %260, %14 : vector<16x8x128xf32>
    %cst_144 = arith.constant dense<0.000000e+00> : vector<8x128xf32>
    %262 = vector.multi_reduction <add>, %261, %cst_144 [0] : vector<16x8x128xf32> to vector<8x128xf32>
    %263 = arith.truncf %242 : vector<8x128xf32> to vector<8x128xbf16>
    %c0_145 = arith.constant 0 : index
    %c0_146 = arith.constant 0 : index
    %264 = vector.load %arg23[%c0_145, %c0_146] : memref<8x256xbf16, #tpu.memory_space<vmem>>, vector<8x128xbf16>
    tpu.vector_store %arg23[%c0_145, %c0_146], %263 {strides = array<i32>} : memref<8x256xbf16, #tpu.memory_space<vmem>>, vector<8x128xbf16>,
    %265 = arith.truncf %262 : vector<8x128xf32> to vector<8x128xbf16>
    %c0_147 = arith.constant 0 : index
    %c128_148 = arith.constant 128 : index
    %266 = vector.load %arg23[%c0_147, %c128_148] : memref<8x256xbf16, #tpu.memory_space<vmem>>, vector<8x128xbf16>
    tpu.vector_store %arg23[%c0_147, %c128_148], %265 {strides = array<i32>} : memref<8x256xbf16, #tpu.memory_space<vmem>>, vector<8x128xbf16>,
    %c0_149 = arith.constant 0 : index
    %c0_150 = arith.constant 0 : index
    %267 = vector.load %arg23[%c0_149, %c0_150] : memref<8x256xbf16, #tpu.memory_space<vmem>>, vector<8x256xbf16>
    %cst_151 = arith.constant dense<0.000000e+00> : vector<8x128xf32>
    %268 = tpu.matmul %267, %19, %cst_151 {dimension_numbers = #tpu.dot_dimension_numbers<[1], [0], [0], [1], [0, 0, 1, 1], [], []>} : vector<8x256xbf16>, vector<256x128xbf16>, vector<8x128xf32> -> vector<8x128xf32>
    %269 = arith.addf %268, %31 : vector<8x128xf32>
    %c1 = arith.constant 1 : index
    %c0_152 = arith.constant 0 : index
    %c0_153 = arith.constant 0 : index
    %270 = vector.load %arg13[%c1, %c0_152, %c0_153] : memref<8x8x128xf32, #tpu.memory_space<vmem>>, vector<1x8x128xf32>
    %271 = vector.shape_cast %270 : vector<1x8x128xf32> to vector<8x128xf32>
    %272 = vector.shape_cast %269 : vector<8x128xf32> to vector<1x8x128xf32>
    tpu.vector_store %arg13[%c1, %c0_152, %c0_153], %272 {strides = array<i32>} : memref<8x8x128xf32, #tpu.memory_space<vmem>>, vector<1x8x128xf32>,
    %c1_154 = arith.constant 1 : index
    %c0_155 = arith.constant 0 : index
    %c0_156 = arith.constant 0 : index
    %273 = vector.load %arg14[%c1_154, %c0_155, %c0_156] : memref<8x8x16xf32, #tpu.memory_space<vmem>>, vector<1x8x16xf32>
    %274 = vector.shape_cast %273 : vector<1x8x16xf32> to vector<8x16xf32>
    %275 = vector.shape_cast %257 : vector<8x16xf32> to vector<1x8x16xf32>
    tpu.vector_store %arg14[%c1_154, %c0_155, %c0_156], %275 {strides = array<i32>} : memref<8x8x16xf32, #tpu.memory_space<vmem>>, vector<1x8x16xf32>,
    %cst_157 = arith.constant dense<0xFF800000> : vector<8xf32>
    %276 = vector.multi_reduction <maximumf>, %269, %cst_157 [1] : vector<8x128xf32> to vector<8xf32>
    %277 = vector.shape_cast %276 : vector<8xf32> to vector<8x1xf32>
    %278 = vector.broadcast %277 : vector<8x1xf32> to vector<8x128xf32>
    %279 = arith.cmpf oge, %269, %278 : vector<8x128xf32>
    %c128_i32_158 = arith.constant 128 : i32
    %280 = vector.broadcast %c128_i32_158 : i32 to vector<8x128xi32>
    %281 = arith.select %279, %32, %280 : vector<8x128xi1>, vector<8x128xi32>
    %cst_159 = arith.constant dense<2147483647> : vector<8xi32>
    %282 = vector.multi_reduction <minsi>, %281, %cst_159 [1] : vector<8x128xi32> to vector<8xi32>
    %283 = vector.shape_cast %282 : vector<8xi32> to vector<8x1xi32>
    %284 = vector.broadcast %283 : vector<8x1xi32> to vector<8x128xi32>
    %285 = arith.cmpi eq, %32, %284 : vector<8x128xi32>
    %286 = arith.extui %285 : vector<8x128xi1> to vector<8x128xi32>
    %287 = arith.sitofp %286 : vector<8x128xi32> to vector<8x128xf32>
    %288 = arith.truncf %287 : vector<8x128xf32> to vector<8x128xbf16>
    %c0_160 = arith.constant 0 : index
    %c0_161 = arith.constant 0 : index
    %289 = vector.load %arg20[%c0_160, %c0_161] : memref<8x128xbf16, #tpu.memory_space<vmem>>, vector<8x128xbf16>
    tpu.vector_store %arg20[%c0_160, %c0_161], %288 {strides = array<i32>} : memref<8x128xbf16, #tpu.memory_space<vmem>>, vector<8x128xbf16>,
    %c0_162 = arith.constant 0 : index
    %c0_163 = arith.constant 0 : index
    %290 = vector.load %arg15[%c0_162, %c0_163] : memref<8x32xf32, #tpu.memory_space<vmem>>, vector<8x32xf32>
    tpu.vector_store %arg15[%c0_162, %c0_163], %205 {strides = array<i32>} : memref<8x32xf32, #tpu.memory_space<vmem>>, vector<8x32xf32>,
    %c0_164 = arith.constant 0 : index
    %c0_165 = arith.constant 0 : index
    %291 = vector.load %arg16[%c0_164, %c0_165] : memref<8x32xf32, #tpu.memory_space<vmem>>, vector<8x32xf32>
    tpu.vector_store %arg16[%c0_164, %c0_165], %203 {strides = array<i32>} : memref<8x32xf32, #tpu.memory_space<vmem>>, vector<8x32xf32>,
    %c0_166 = arith.constant 0 : index
    %c0_167 = arith.constant 0 : index
    %292 = vector.load %arg17[%c0_166, %c0_167] : memref<8x32xf32, #tpu.memory_space<vmem>>, vector<8x32xf32>
    tpu.vector_store %arg17[%c0_166, %c0_167], %239 {strides = array<i32>} : memref<8x32xf32, #tpu.memory_space<vmem>>, vector<8x32xf32>,
    %c0_168 = arith.constant 0 : index
    %c0_169 = arith.constant 0 : index
    %293 = vector.load %arg18[%c0_168, %c0_169] : memref<8x32xf32, #tpu.memory_space<vmem>>, vector<8x32xf32>
    tpu.vector_store %arg18[%c0_168, %c0_169], %237 {strides = array<i32>} : memref<8x32xf32, #tpu.memory_space<vmem>>, vector<8x32xf32>,
    %c0_170 = arith.constant 0 : index
    %c0_171 = arith.constant 0 : index
    %294 = vector.load %arg19[%c0_170, %c0_171] : memref<8x128xf32, #tpu.memory_space<vmem>>, vector<8x128xf32>
    tpu.vector_store %arg19[%c0_170, %c0_171], %262 {strides = array<i32>} : memref<8x128xf32, #tpu.memory_space<vmem>>, vector<8x128xf32>,
    %c0_172 = arith.constant 0 : index
    %c0_173 = arith.constant 0 : index
    %295 = vector.load %arg20[%c0_172, %c0_173] : memref<8x128xbf16, #tpu.memory_space<vmem>>, vector<8x128xbf16>
    %cst_174 = arith.constant dense<0.000000e+00> : vector<8x128xf32>
    %296 = tpu.matmul %295, %15, %cst_174 {dimension_numbers = #tpu.dot_dimension_numbers<[1], [0], [0], [1], [0, 0, 1, 1], [], []>} : vector<8x128xbf16>, vector<128x128xbf16>, vector<8x128xf32> -> vector<8x128xf32>
    %297 = arith.truncf %296 : vector<8x128xf32> to vector<8x128xbf16>
    %c0_175 = arith.constant 0 : index
    %c0_176 = arith.constant 0 : index
    %298 = vector.load %arg21[%c0_175, %c0_176] : memref<8x288xbf16, #tpu.memory_space<vmem>>, vector<8x128xbf16>
    tpu.vector_store %arg21[%c0_175, %c0_176], %297 {strides = array<i32>} : memref<8x288xbf16, #tpu.memory_space<vmem>>, vector<8x128xbf16>,
    %c0_177 = arith.constant 0 : index
    %c0_178 = arith.constant 0 : index
    %299 = vector.load %arg19[%c0_177, %c0_178] : memref<8x128xf32, #tpu.memory_space<vmem>>, vector<8x128xf32>
    %300 = arith.truncf %299 : vector<8x128xf32> to vector<8x128xbf16>
    %c0_179 = arith.constant 0 : index
    %c128_180 = arith.constant 128 : index
    %301 = vector.load %arg21[%c0_179, %c128_180] : memref<8x288xbf16, #tpu.memory_space<vmem>>, vector<8x128xbf16>
    tpu.vector_store %arg21[%c0_179, %c128_180], %300 {strides = array<i32>} : memref<8x288xbf16, #tpu.memory_space<vmem>>, vector<8x128xbf16>,
    %c0_181 = arith.constant 0 : index
    %c0_182 = arith.constant 0 : index
    %302 = vector.load %arg15[%c0_181, %c0_182] : memref<8x32xf32, #tpu.memory_space<vmem>>, vector<8x32xf32>
    %303 = arith.truncf %302 : vector<8x32xf32> to vector<8x32xbf16>
    %c0_183 = arith.constant 0 : index
    %c256_184 = arith.constant 256 : index
    %304 = vector.load %arg21[%c0_183, %c256_184] : memref<8x288xbf16, #tpu.memory_space<vmem>>, vector<8x32xbf16>
    tpu.vector_store %arg21[%c0_183, %c256_184], %303 {strides = array<i32>} : memref<8x288xbf16, #tpu.memory_space<vmem>>, vector<8x32xbf16>,
    %c0_185 = arith.constant 0 : index
    %c0_186 = arith.constant 0 : index
    %305 = vector.load %arg21[%c0_185, %c0_186] : memref<8x288xbf16, #tpu.memory_space<vmem>>, vector<8x288xbf16>
    %cst_187 = arith.constant dense<0.000000e+00> : vector<8x128xf32>
    %306 = tpu.matmul %305, %16, %cst_187 {dimension_numbers = #tpu.dot_dimension_numbers<[1], [0], [0], [1], [0, 0, 1, 1], [], []>} : vector<8x288xbf16>, vector<288x128xbf16>, vector<8x128xf32> -> vector<8x128xf32>
    %307 = arith.addf %306, %22 : vector<8x128xf32>
    %c0_188 = arith.constant 0 : index
    %c0_189 = arith.constant 0 : index
    %308 = vector.load %arg16[%c0_188, %c0_189] : memref<8x32xf32, #tpu.memory_space<vmem>>, vector<8x32xf32>
    %309 = vector.extract_strided_slice %307 {offsets = [0, 0], sizes = [8, 32], strides = [1, 1]} : vector<8x128xf32> to vector<8x32xf32>
    %310 = arith.negf %309 : vector<8x32xf32>
    %311 = math.exp %310 : vector<8x32xf32>
    %cst_190 = arith.constant 1.000000e+00 : f32
    %312 = vector.broadcast %cst_190 : f32 to vector<8x32xf32>
    %313 = arith.addf %312, %311 : vector<8x32xf32>
    %314 = arith.divf %312, %313 : vector<8x32xf32>
    %315 = vector.extract_strided_slice %307 {offsets = [0, 32], sizes = [8, 32], strides = [1, 1]} : vector<8x128xf32> to vector<8x32xf32>
    %316 = arith.negf %315 : vector<8x32xf32>
    %317 = math.exp %316 : vector<8x32xf32>
    %cst_191 = arith.constant 1.000000e+00 : f32
    %318 = vector.broadcast %cst_191 : f32 to vector<8x32xf32>
    %319 = arith.addf %318, %317 : vector<8x32xf32>
    %320 = arith.divf %318, %319 : vector<8x32xf32>
    %321 = vector.extract_strided_slice %307 {offsets = [0, 64], sizes = [8, 32], strides = [1, 1]} : vector<8x128xf32> to vector<8x32xf32>
    %322 = math.tanh %321 : vector<8x32xf32>
    %323 = vector.extract_strided_slice %307 {offsets = [0, 96], sizes = [8, 32], strides = [1, 1]} : vector<8x128xf32> to vector<8x32xf32>
    %324 = arith.negf %323 : vector<8x32xf32>
    %325 = math.exp %324 : vector<8x32xf32>
    %cst_192 = arith.constant 1.000000e+00 : f32
    %326 = vector.broadcast %cst_192 : f32 to vector<8x32xf32>
    %327 = arith.addf %326, %325 : vector<8x32xf32>
    %328 = arith.divf %326, %327 : vector<8x32xf32>
    %329 = arith.mulf %320, %308 : vector<8x32xf32>
    %330 = arith.mulf %314, %322 : vector<8x32xf32>
    %331 = arith.addf %329, %330 : vector<8x32xf32>
    %332 = math.tanh %331 : vector<8x32xf32>
    %333 = arith.mulf %328, %332 : vector<8x32xf32>
    %334 = arith.truncf %333 : vector<8x32xf32> to vector<8x32xbf16>
    %c0_193 = arith.constant 0 : index
    %c0_194 = arith.constant 0 : index
    %335 = vector.load %arg22[%c0_193, %c0_194] : memref<8x64xbf16, #tpu.memory_space<vmem>>, vector<8x32xbf16>
    tpu.vector_store %arg22[%c0_193, %c0_194], %334 {strides = array<i32>} : memref<8x64xbf16, #tpu.memory_space<vmem>>, vector<8x32xbf16>,
    %c0_195 = arith.constant 0 : index
    %c0_196 = arith.constant 0 : index
    %336 = vector.load %arg17[%c0_195, %c0_196] : memref<8x32xf32, #tpu.memory_space<vmem>>, vector<8x32xf32>
    %337 = arith.truncf %336 : vector<8x32xf32> to vector<8x32xbf16>
    %c0_197 = arith.constant 0 : index
    %c32_198 = arith.constant 32 : index
    %338 = vector.load %arg22[%c0_197, %c32_198] : memref<8x64xbf16, #tpu.memory_space<vmem>>, vector<8x32xbf16>
    tpu.vector_store %arg22[%c0_197, %c32_198], %337 {strides = array<i32>} : memref<8x64xbf16, #tpu.memory_space<vmem>>, vector<8x32xbf16>,
    %c0_199 = arith.constant 0 : index
    %c0_200 = arith.constant 0 : index
    %339 = vector.load %arg22[%c0_199, %c0_200] : memref<8x64xbf16, #tpu.memory_space<vmem>>, vector<8x64xbf16>
    %cst_201 = arith.constant dense<0.000000e+00> : vector<8x128xf32>
    %340 = tpu.matmul %339, %17, %cst_201 {dimension_numbers = #tpu.dot_dimension_numbers<[1], [0], [0], [1], [0, 0, 1, 1], [], []>} : vector<8x64xbf16>, vector<64x128xbf16>, vector<8x128xf32> -> vector<8x128xf32>
    %341 = arith.addf %340, %25 : vector<8x128xf32>
    %c0_202 = arith.constant 0 : index
    %c0_203 = arith.constant 0 : index
    %342 = vector.load %arg18[%c0_202, %c0_203] : memref<8x32xf32, #tpu.memory_space<vmem>>, vector<8x32xf32>
    %343 = vector.extract_strided_slice %341 {offsets = [0, 0], sizes = [8, 32], strides = [1, 1]} : vector<8x128xf32> to vector<8x32xf32>
    %344 = arith.negf %343 : vector<8x32xf32>
    %345 = math.exp %344 : vector<8x32xf32>
    %cst_204 = arith.constant 1.000000e+00 : f32
    %346 = vector.broadcast %cst_204 : f32 to vector<8x32xf32>
    %347 = arith.addf %346, %345 : vector<8x32xf32>
    %348 = arith.divf %346, %347 : vector<8x32xf32>
    %349 = vector.extract_strided_slice %341 {offsets = [0, 32], sizes = [8, 32], strides = [1, 1]} : vector<8x128xf32> to vector<8x32xf32>
    %350 = arith.negf %349 : vector<8x32xf32>
    %351 = math.exp %350 : vector<8x32xf32>
    %cst_205 = arith.constant 1.000000e+00 : f32
    %352 = vector.broadcast %cst_205 : f32 to vector<8x32xf32>
    %353 = arith.addf %352, %351 : vector<8x32xf32>
    %354 = arith.divf %352, %353 : vector<8x32xf32>
    %355 = vector.extract_strided_slice %341 {offsets = [0, 64], sizes = [8, 32], strides = [1, 1]} : vector<8x128xf32> to vector<8x32xf32>
    %356 = math.tanh %355 : vector<8x32xf32>
    %357 = vector.extract_strided_slice %341 {offsets = [0, 96], sizes = [8, 32], strides = [1, 1]} : vector<8x128xf32> to vector<8x32xf32>
    %358 = arith.negf %357 : vector<8x32xf32>
    %359 = math.exp %358 : vector<8x32xf32>
    %cst_206 = arith.constant 1.000000e+00 : f32
    %360 = vector.broadcast %cst_206 : f32 to vector<8x32xf32>
    %361 = arith.addf %360, %359 : vector<8x32xf32>
    %362 = arith.divf %360, %361 : vector<8x32xf32>
    %363 = arith.mulf %354, %342 : vector<8x32xf32>
    %364 = arith.mulf %348, %356 : vector<8x32xf32>
    %365 = arith.addf %363, %364 : vector<8x32xf32>
    %366 = math.tanh %365 : vector<8x32xf32>
    %367 = arith.mulf %362, %366 : vector<8x32xf32>
    %368 = arith.truncf %367 : vector<8x32xf32> to vector<8x32xbf16>
    %cst_207 = arith.constant dense<0.000000e+00> : vector<8x128xf32>
    %369 = tpu.matmul %368, %18, %cst_207 {dimension_numbers = #tpu.dot_dimension_numbers<[1], [0], [0], [1], [0, 0, 1, 1], [], []>} : vector<8x32xbf16>, vector<32x128xbf16>, vector<8x128xf32> -> vector<8x128xf32>
    %370 = arith.addf %369, %28 : vector<8x128xf32>
    %371 = vector.shape_cast %370 : vector<8x128xf32> to vector<1x8x128xf32>
    %372 = vector.broadcast %371 : vector<1x8x128xf32> to vector<16x8x128xf32>
    %373 = arith.mulf %12, %372 : vector<16x8x128xf32>
    %cst_208 = arith.constant dense<0.000000e+00> : vector<16x8xf32>
    %374 = vector.multi_reduction <add>, %373, %cst_208 [2] : vector<16x8x128xf32> to vector<16x8xf32>
    %375 = tpu.transpose %374, [1, 0] : vector<16x8xf32> -> vector<8x16xf32>
    %376 = arith.addf %375, %10 : vector<8x16xf32>
    %cst_209 = arith.constant dense<0xFF800000> : vector<8xf32>
    %377 = vector.multi_reduction <maximumf>, %376, %cst_209 [1] : vector<8x16xf32> to vector<8xf32>
    %378 = vector.shape_cast %377 : vector<8xf32> to vector<8x1xf32>
    %379 = vector.broadcast %378 : vector<8x1xf32> to vector<8x16xf32>
    %380 = arith.subf %376, %379 : vector<8x16xf32>
    %381 = math.exp %380 : vector<8x16xf32>
    %cst_210 = arith.constant dense<0.000000e+00> : vector<8xf32>
    %382 = vector.multi_reduction <add>, %381, %cst_210 [1] : vector<8x16xf32> to vector<8xf32>
    %383 = vector.shape_cast %382 : vector<8xf32> to vector<8x1xf32>
    %384 = vector.broadcast %383 : vector<8x1xf32> to vector<8x16xf32>
    %385 = arith.divf %381, %384 : vector<8x16xf32>
    %386 = tpu.transpose %385, [1, 0] : vector<8x16xf32> -> vector<16x8xf32>
    %387 = vector.shape_cast %386 : vector<16x8xf32> to vector<16x8x1xf32>
    %388 = vector.broadcast %387 : vector<16x8x1xf32> to vector<16x8x128xf32>
    %389 = arith.mulf %388, %14 : vector<16x8x128xf32>
    %cst_211 = arith.constant dense<0.000000e+00> : vector<8x128xf32>
    %390 = vector.multi_reduction <add>, %389, %cst_211 [0] : vector<16x8x128xf32> to vector<8x128xf32>
    %391 = arith.truncf %370 : vector<8x128xf32> to vector<8x128xbf16>
    %c0_212 = arith.constant 0 : index
    %c0_213 = arith.constant 0 : index
    %392 = vector.load %arg23[%c0_212, %c0_213] : memref<8x256xbf16, #tpu.memory_space<vmem>>, vector<8x128xbf16>
    tpu.vector_store %arg23[%c0_212, %c0_213], %391 {strides = array<i32>} : memref<8x256xbf16, #tpu.memory_space<vmem>>, vector<8x128xbf16>,
    %393 = arith.truncf %390 : vector<8x128xf32> to vector<8x128xbf16>
    %c0_214 = arith.constant 0 : index
    %c128_215 = arith.constant 128 : index
    %394 = vector.load %arg23[%c0_214, %c128_215] : memref<8x256xbf16, #tpu.memory_space<vmem>>, vector<8x128xbf16>
    tpu.vector_store %arg23[%c0_214, %c128_215], %393 {strides = array<i32>} : memref<8x256xbf16, #tpu.memory_space<vmem>>, vector<8x128xbf16>,
    %c0_216 = arith.constant 0 : index
    %c0_217 = arith.constant 0 : index
    %395 = vector.load %arg23[%c0_216, %c0_217] : memref<8x256xbf16, #tpu.memory_space<vmem>>, vector<8x256xbf16>
    %cst_218 = arith.constant dense<0.000000e+00> : vector<8x128xf32>
    %396 = tpu.matmul %395, %19, %cst_218 {dimension_numbers = #tpu.dot_dimension_numbers<[1], [0], [0], [1], [0, 0, 1, 1], [], []>} : vector<8x256xbf16>, vector<256x128xbf16>, vector<8x128xf32> -> vector<8x128xf32>
    %397 = arith.addf %396, %31 : vector<8x128xf32>
    %c2 = arith.constant 2 : index
    %c0_219 = arith.constant 0 : index
    %c0_220 = arith.constant 0 : index
    %398 = vector.load %arg13[%c2, %c0_219, %c0_220] : memref<8x8x128xf32, #tpu.memory_space<vmem>>, vector<1x8x128xf32>
    %399 = vector.shape_cast %398 : vector<1x8x128xf32> to vector<8x128xf32>
    %400 = vector.shape_cast %397 : vector<8x128xf32> to vector<1x8x128xf32>
    tpu.vector_store %arg13[%c2, %c0_219, %c0_220], %400 {strides = array<i32>} : memref<8x8x128xf32, #tpu.memory_space<vmem>>, vector<1x8x128xf32>,
    %c2_221 = arith.constant 2 : index
    %c0_222 = arith.constant 0 : index
    %c0_223 = arith.constant 0 : index
    %401 = vector.load %arg14[%c2_221, %c0_222, %c0_223] : memref<8x8x16xf32, #tpu.memory_space<vmem>>, vector<1x8x16xf32>
    %402 = vector.shape_cast %401 : vector<1x8x16xf32> to vector<8x16xf32>
    %403 = vector.shape_cast %385 : vector<8x16xf32> to vector<1x8x16xf32>
    tpu.vector_store %arg14[%c2_221, %c0_222, %c0_223], %403 {strides = array<i32>} : memref<8x8x16xf32, #tpu.memory_space<vmem>>, vector<1x8x16xf32>,
    %cst_224 = arith.constant dense<0xFF800000> : vector<8xf32>
    %404 = vector.multi_reduction <maximumf>, %397, %cst_224 [1] : vector<8x128xf32> to vector<8xf32>
    %405 = vector.shape_cast %404 : vector<8xf32> to vector<8x1xf32>
    %406 = vector.broadcast %405 : vector<8x1xf32> to vector<8x128xf32>
    %407 = arith.cmpf oge, %397, %406 : vector<8x128xf32>
    %c128_i32_225 = arith.constant 128 : i32
    %408 = vector.broadcast %c128_i32_225 : i32 to vector<8x128xi32>
    %409 = arith.select %407, %32, %408 : vector<8x128xi1>, vector<8x128xi32>
    %cst_226 = arith.constant dense<2147483647> : vector<8xi32>
    %410 = vector.multi_reduction <minsi>, %409, %cst_226 [1] : vector<8x128xi32> to vector<8xi32>
    %411 = vector.shape_cast %410 : vector<8xi32> to vector<8x1xi32>
    %412 = vector.broadcast %411 : vector<8x1xi32> to vector<8x128xi32>
    %413 = arith.cmpi eq, %32, %412 : vector<8x128xi32>
    %414 = arith.extui %413 : vector<8x128xi1> to vector<8x128xi32>
    %415 = arith.sitofp %414 : vector<8x128xi32> to vector<8x128xf32>
    %416 = arith.truncf %415 : vector<8x128xf32> to vector<8x128xbf16>
    %c0_227 = arith.constant 0 : index
    %c0_228 = arith.constant 0 : index
    %417 = vector.load %arg20[%c0_227, %c0_228] : memref<8x128xbf16, #tpu.memory_space<vmem>>, vector<8x128xbf16>
    tpu.vector_store %arg20[%c0_227, %c0_228], %416 {strides = array<i32>} : memref<8x128xbf16, #tpu.memory_space<vmem>>, vector<8x128xbf16>,
    %c0_229 = arith.constant 0 : index
    %c0_230 = arith.constant 0 : index
    %418 = vector.load %arg15[%c0_229, %c0_230] : memref<8x32xf32, #tpu.memory_space<vmem>>, vector<8x32xf32>
    tpu.vector_store %arg15[%c0_229, %c0_230], %333 {strides = array<i32>} : memref<8x32xf32, #tpu.memory_space<vmem>>, vector<8x32xf32>,
    %c0_231 = arith.constant 0 : index
    %c0_232 = arith.constant 0 : index
    %419 = vector.load %arg16[%c0_231, %c0_232] : memref<8x32xf32, #tpu.memory_space<vmem>>, vector<8x32xf32>
    tpu.vector_store %arg16[%c0_231, %c0_232], %331 {strides = array<i32>} : memref<8x32xf32, #tpu.memory_space<vmem>>, vector<8x32xf32>,
    %c0_233 = arith.constant 0 : index
    %c0_234 = arith.constant 0 : index
    %420 = vector.load %arg17[%c0_233, %c0_234] : memref<8x32xf32, #tpu.memory_space<vmem>>, vector<8x32xf32>
    tpu.vector_store %arg17[%c0_233, %c0_234], %367 {strides = array<i32>} : memref<8x32xf32, #tpu.memory_space<vmem>>, vector<8x32xf32>,
    %c0_235 = arith.constant 0 : index
    %c0_236 = arith.constant 0 : index
    %421 = vector.load %arg18[%c0_235, %c0_236] : memref<8x32xf32, #tpu.memory_space<vmem>>, vector<8x32xf32>
    tpu.vector_store %arg18[%c0_235, %c0_236], %365 {strides = array<i32>} : memref<8x32xf32, #tpu.memory_space<vmem>>, vector<8x32xf32>,
    %c0_237 = arith.constant 0 : index
    %c0_238 = arith.constant 0 : index
    %422 = vector.load %arg19[%c0_237, %c0_238] : memref<8x128xf32, #tpu.memory_space<vmem>>, vector<8x128xf32>
    tpu.vector_store %arg19[%c0_237, %c0_238], %390 {strides = array<i32>} : memref<8x128xf32, #tpu.memory_space<vmem>>, vector<8x128xf32>,
    %c0_239 = arith.constant 0 : index
    %c0_240 = arith.constant 0 : index
    %423 = vector.load %arg20[%c0_239, %c0_240] : memref<8x128xbf16, #tpu.memory_space<vmem>>, vector<8x128xbf16>
    %cst_241 = arith.constant dense<0.000000e+00> : vector<8x128xf32>
    %424 = tpu.matmul %423, %15, %cst_241 {dimension_numbers = #tpu.dot_dimension_numbers<[1], [0], [0], [1], [0, 0, 1, 1], [], []>} : vector<8x128xbf16>, vector<128x128xbf16>, vector<8x128xf32> -> vector<8x128xf32>
    %425 = arith.truncf %424 : vector<8x128xf32> to vector<8x128xbf16>
    %c0_242 = arith.constant 0 : index
    %c0_243 = arith.constant 0 : index
    %426 = vector.load %arg21[%c0_242, %c0_243] : memref<8x288xbf16, #tpu.memory_space<vmem>>, vector<8x128xbf16>
    tpu.vector_store %arg21[%c0_242, %c0_243], %425 {strides = array<i32>} : memref<8x288xbf16, #tpu.memory_space<vmem>>, vector<8x128xbf16>,
    %c0_244 = arith.constant 0 : index
    %c0_245 = arith.constant 0 : index
    %427 = vector.load %arg19[%c0_244, %c0_245] : memref<8x128xf32, #tpu.memory_space<vmem>>, vector<8x128xf32>
    %428 = arith.truncf %427 : vector<8x128xf32> to vector<8x128xbf16>
    %c0_246 = arith.constant 0 : index
    %c128_247 = arith.constant 128 : index
    %429 = vector.load %arg21[%c0_246, %c128_247] : memref<8x288xbf16, #tpu.memory_space<vmem>>, vector<8x128xbf16>
    tpu.vector_store %arg21[%c0_246, %c128_247], %428 {strides = array<i32>} : memref<8x288xbf16, #tpu.memory_space<vmem>>, vector<8x128xbf16>,
    %c0_248 = arith.constant 0 : index
    %c0_249 = arith.constant 0 : index
    %430 = vector.load %arg15[%c0_248, %c0_249] : memref<8x32xf32, #tpu.memory_space<vmem>>, vector<8x32xf32>
    %431 = arith.truncf %430 : vector<8x32xf32> to vector<8x32xbf16>
    %c0_250 = arith.constant 0 : index
    %c256_251 = arith.constant 256 : index
    %432 = vector.load %arg21[%c0_250, %c256_251] : memref<8x288xbf16, #tpu.memory_space<vmem>>, vector<8x32xbf16>
    tpu.vector_store %arg21[%c0_250, %c256_251], %431 {strides = array<i32>} : memref<8x288xbf16, #tpu.memory_space<vmem>>, vector<8x32xbf16>,
    %c0_252 = arith.constant 0 : index
    %c0_253 = arith.constant 0 : index
    %433 = vector.load %arg21[%c0_252, %c0_253] : memref<8x288xbf16, #tpu.memory_space<vmem>>, vector<8x288xbf16>
    %cst_254 = arith.constant dense<0.000000e+00> : vector<8x128xf32>
    %434 = tpu.matmul %433, %16, %cst_254 {dimension_numbers = #tpu.dot_dimension_numbers<[1], [0], [0], [1], [0, 0, 1, 1], [], []>} : vector<8x288xbf16>, vector<288x128xbf16>, vector<8x128xf32> -> vector<8x128xf32>
    %435 = arith.addf %434, %22 : vector<8x128xf32>
    %c0_255 = arith.constant 0 : index
    %c0_256 = arith.constant 0 : index
    %436 = vector.load %arg16[%c0_255, %c0_256] : memref<8x32xf32, #tpu.memory_space<vmem>>, vector<8x32xf32>
    %437 = vector.extract_strided_slice %435 {offsets = [0, 0], sizes = [8, 32], strides = [1, 1]} : vector<8x128xf32> to vector<8x32xf32>
    %438 = arith.negf %437 : vector<8x32xf32>
    %439 = math.exp %438 : vector<8x32xf32>
    %cst_257 = arith.constant 1.000000e+00 : f32
    %440 = vector.broadcast %cst_257 : f32 to vector<8x32xf32>
    %441 = arith.addf %440, %439 : vector<8x32xf32>
    %442 = arith.divf %440, %441 : vector<8x32xf32>
    %443 = vector.extract_strided_slice %435 {offsets = [0, 32], sizes = [8, 32], strides = [1, 1]} : vector<8x128xf32> to vector<8x32xf32>
    %444 = arith.negf %443 : vector<8x32xf32>
    %445 = math.exp %444 : vector<8x32xf32>
    %cst_258 = arith.constant 1.000000e+00 : f32
    %446 = vector.broadcast %cst_258 : f32 to vector<8x32xf32>
    %447 = arith.addf %446, %445 : vector<8x32xf32>
    %448 = arith.divf %446, %447 : vector<8x32xf32>
    %449 = vector.extract_strided_slice %435 {offsets = [0, 64], sizes = [8, 32], strides = [1, 1]} : vector<8x128xf32> to vector<8x32xf32>
    %450 = math.tanh %449 : vector<8x32xf32>
    %451 = vector.extract_strided_slice %435 {offsets = [0, 96], sizes = [8, 32], strides = [1, 1]} : vector<8x128xf32> to vector<8x32xf32>
    %452 = arith.negf %451 : vector<8x32xf32>
    %453 = math.exp %452 : vector<8x32xf32>
    %cst_259 = arith.constant 1.000000e+00 : f32
    %454 = vector.broadcast %cst_259 : f32 to vector<8x32xf32>
    %455 = arith.addf %454, %453 : vector<8x32xf32>
    %456 = arith.divf %454, %455 : vector<8x32xf32>
    %457 = arith.mulf %448, %436 : vector<8x32xf32>
    %458 = arith.mulf %442, %450 : vector<8x32xf32>
    %459 = arith.addf %457, %458 : vector<8x32xf32>
    %460 = math.tanh %459 : vector<8x32xf32>
    %461 = arith.mulf %456, %460 : vector<8x32xf32>
    %462 = arith.truncf %461 : vector<8x32xf32> to vector<8x32xbf16>
    %c0_260 = arith.constant 0 : index
    %c0_261 = arith.constant 0 : index
    %463 = vector.load %arg22[%c0_260, %c0_261] : memref<8x64xbf16, #tpu.memory_space<vmem>>, vector<8x32xbf16>
    tpu.vector_store %arg22[%c0_260, %c0_261], %462 {strides = array<i32>} : memref<8x64xbf16, #tpu.memory_space<vmem>>, vector<8x32xbf16>,
    %c0_262 = arith.constant 0 : index
    %c0_263 = arith.constant 0 : index
    %464 = vector.load %arg17[%c0_262, %c0_263] : memref<8x32xf32, #tpu.memory_space<vmem>>, vector<8x32xf32>
    %465 = arith.truncf %464 : vector<8x32xf32> to vector<8x32xbf16>
    %c0_264 = arith.constant 0 : index
    %c32_265 = arith.constant 32 : index
    %466 = vector.load %arg22[%c0_264, %c32_265] : memref<8x64xbf16, #tpu.memory_space<vmem>>, vector<8x32xbf16>
    tpu.vector_store %arg22[%c0_264, %c32_265], %465 {strides = array<i32>} : memref<8x64xbf16, #tpu.memory_space<vmem>>, vector<8x32xbf16>,
    %c0_266 = arith.constant 0 : index
    %c0_267 = arith.constant 0 : index
    %467 = vector.load %arg22[%c0_266, %c0_267] : memref<8x64xbf16, #tpu.memory_space<vmem>>, vector<8x64xbf16>
    %cst_268 = arith.constant dense<0.000000e+00> : vector<8x128xf32>
    %468 = tpu.matmul %467, %17, %cst_268 {dimension_numbers = #tpu.dot_dimension_numbers<[1], [0], [0], [1], [0, 0, 1, 1], [], []>} : vector<8x64xbf16>, vector<64x128xbf16>, vector<8x128xf32> -> vector<8x128xf32>
    %469 = arith.addf %468, %25 : vector<8x128xf32>
    %c0_269 = arith.constant 0 : index
    %c0_270 = arith.constant 0 : index
    %470 = vector.load %arg18[%c0_269, %c0_270] : memref<8x32xf32, #tpu.memory_space<vmem>>, vector<8x32xf32>
    %471 = vector.extract_strided_slice %469 {offsets = [0, 0], sizes = [8, 32], strides = [1, 1]} : vector<8x128xf32> to vector<8x32xf32>
    %472 = arith.negf %471 : vector<8x32xf32>
    %473 = math.exp %472 : vector<8x32xf32>
    %cst_271 = arith.constant 1.000000e+00 : f32
    %474 = vector.broadcast %cst_271 : f32 to vector<8x32xf32>
    %475 = arith.addf %474, %473 : vector<8x32xf32>
    %476 = arith.divf %474, %475 : vector<8x32xf32>
    %477 = vector.extract_strided_slice %469 {offsets = [0, 32], sizes = [8, 32], strides = [1, 1]} : vector<8x128xf32> to vector<8x32xf32>
    %478 = arith.negf %477 : vector<8x32xf32>
    %479 = math.exp %478 : vector<8x32xf32>
    %cst_272 = arith.constant 1.000000e+00 : f32
    %480 = vector.broadcast %cst_272 : f32 to vector<8x32xf32>
    %481 = arith.addf %480, %479 : vector<8x32xf32>
    %482 = arith.divf %480, %481 : vector<8x32xf32>
    %483 = vector.extract_strided_slice %469 {offsets = [0, 64], sizes = [8, 32], strides = [1, 1]} : vector<8x128xf32> to vector<8x32xf32>
    %484 = math.tanh %483 : vector<8x32xf32>
    %485 = vector.extract_strided_slice %469 {offsets = [0, 96], sizes = [8, 32], strides = [1, 1]} : vector<8x128xf32> to vector<8x32xf32>
    %486 = arith.negf %485 : vector<8x32xf32>
    %487 = math.exp %486 : vector<8x32xf32>
    %cst_273 = arith.constant 1.000000e+00 : f32
    %488 = vector.broadcast %cst_273 : f32 to vector<8x32xf32>
    %489 = arith.addf %488, %487 : vector<8x32xf32>
    %490 = arith.divf %488, %489 : vector<8x32xf32>
    %491 = arith.mulf %482, %470 : vector<8x32xf32>
    %492 = arith.mulf %476, %484 : vector<8x32xf32>
    %493 = arith.addf %491, %492 : vector<8x32xf32>
    %494 = math.tanh %493 : vector<8x32xf32>
    %495 = arith.mulf %490, %494 : vector<8x32xf32>
    %496 = arith.truncf %495 : vector<8x32xf32> to vector<8x32xbf16>
    %cst_274 = arith.constant dense<0.000000e+00> : vector<8x128xf32>
    %497 = tpu.matmul %496, %18, %cst_274 {dimension_numbers = #tpu.dot_dimension_numbers<[1], [0], [0], [1], [0, 0, 1, 1], [], []>} : vector<8x32xbf16>, vector<32x128xbf16>, vector<8x128xf32> -> vector<8x128xf32>
    %498 = arith.addf %497, %28 : vector<8x128xf32>
    %499 = vector.shape_cast %498 : vector<8x128xf32> to vector<1x8x128xf32>
    %500 = vector.broadcast %499 : vector<1x8x128xf32> to vector<16x8x128xf32>
    %501 = arith.mulf %12, %500 : vector<16x8x128xf32>
    %cst_275 = arith.constant dense<0.000000e+00> : vector<16x8xf32>
    %502 = vector.multi_reduction <add>, %501, %cst_275 [2] : vector<16x8x128xf32> to vector<16x8xf32>
    %503 = tpu.transpose %502, [1, 0] : vector<16x8xf32> -> vector<8x16xf32>
    %504 = arith.addf %503, %10 : vector<8x16xf32>
    %cst_276 = arith.constant dense<0xFF800000> : vector<8xf32>
    %505 = vector.multi_reduction <maximumf>, %504, %cst_276 [1] : vector<8x16xf32> to vector<8xf32>
    %506 = vector.shape_cast %505 : vector<8xf32> to vector<8x1xf32>
    %507 = vector.broadcast %506 : vector<8x1xf32> to vector<8x16xf32>
    %508 = arith.subf %504, %507 : vector<8x16xf32>
    %509 = math.exp %508 : vector<8x16xf32>
    %cst_277 = arith.constant dense<0.000000e+00> : vector<8xf32>
    %510 = vector.multi_reduction <add>, %509, %cst_277 [1] : vector<8x16xf32> to vector<8xf32>
    %511 = vector.shape_cast %510 : vector<8xf32> to vector<8x1xf32>
    %512 = vector.broadcast %511 : vector<8x1xf32> to vector<8x16xf32>
    %513 = arith.divf %509, %512 : vector<8x16xf32>
    %514 = tpu.transpose %513, [1, 0] : vector<8x16xf32> -> vector<16x8xf32>
    %515 = vector.shape_cast %514 : vector<16x8xf32> to vector<16x8x1xf32>
    %516 = vector.broadcast %515 : vector<16x8x1xf32> to vector<16x8x128xf32>
    %517 = arith.mulf %516, %14 : vector<16x8x128xf32>
    %cst_278 = arith.constant dense<0.000000e+00> : vector<8x128xf32>
    %518 = vector.multi_reduction <add>, %517, %cst_278 [0] : vector<16x8x128xf32> to vector<8x128xf32>
    %519 = arith.truncf %498 : vector<8x128xf32> to vector<8x128xbf16>
    %c0_279 = arith.constant 0 : index
    %c0_280 = arith.constant 0 : index
    %520 = vector.load %arg23[%c0_279, %c0_280] : memref<8x256xbf16, #tpu.memory_space<vmem>>, vector<8x128xbf16>
    tpu.vector_store %arg23[%c0_279, %c0_280], %519 {strides = array<i32>} : memref<8x256xbf16, #tpu.memory_space<vmem>>, vector<8x128xbf16>,
    %521 = arith.truncf %518 : vector<8x128xf32> to vector<8x128xbf16>
    %c0_281 = arith.constant 0 : index
    %c128_282 = arith.constant 128 : index
    %522 = vector.load %arg23[%c0_281, %c128_282] : memref<8x256xbf16, #tpu.memory_space<vmem>>, vector<8x128xbf16>
    tpu.vector_store %arg23[%c0_281, %c128_282], %521 {strides = array<i32>} : memref<8x256xbf16, #tpu.memory_space<vmem>>, vector<8x128xbf16>,
    %c0_283 = arith.constant 0 : index
    %c0_284 = arith.constant 0 : index
    %523 = vector.load %arg23[%c0_283, %c0_284] : memref<8x256xbf16, #tpu.memory_space<vmem>>, vector<8x256xbf16>
    %cst_285 = arith.constant dense<0.000000e+00> : vector<8x128xf32>
    %524 = tpu.matmul %523, %19, %cst_285 {dimension_numbers = #tpu.dot_dimension_numbers<[1], [0], [0], [1], [0, 0, 1, 1], [], []>} : vector<8x256xbf16>, vector<256x128xbf16>, vector<8x128xf32> -> vector<8x128xf32>
    %525 = arith.addf %524, %31 : vector<8x128xf32>
    %c3 = arith.constant 3 : index
    %c0_286 = arith.constant 0 : index
    %c0_287 = arith.constant 0 : index
    %526 = vector.load %arg13[%c3, %c0_286, %c0_287] : memref<8x8x128xf32, #tpu.memory_space<vmem>>, vector<1x8x128xf32>
    %527 = vector.shape_cast %526 : vector<1x8x128xf32> to vector<8x128xf32>
    %528 = vector.shape_cast %525 : vector<8x128xf32> to vector<1x8x128xf32>
    tpu.vector_store %arg13[%c3, %c0_286, %c0_287], %528 {strides = array<i32>} : memref<8x8x128xf32, #tpu.memory_space<vmem>>, vector<1x8x128xf32>,
    %c3_288 = arith.constant 3 : index
    %c0_289 = arith.constant 0 : index
    %c0_290 = arith.constant 0 : index
    %529 = vector.load %arg14[%c3_288, %c0_289, %c0_290] : memref<8x8x16xf32, #tpu.memory_space<vmem>>, vector<1x8x16xf32>
    %530 = vector.shape_cast %529 : vector<1x8x16xf32> to vector<8x16xf32>
    %531 = vector.shape_cast %513 : vector<8x16xf32> to vector<1x8x16xf32>
    tpu.vector_store %arg14[%c3_288, %c0_289, %c0_290], %531 {strides = array<i32>} : memref<8x8x16xf32, #tpu.memory_space<vmem>>, vector<1x8x16xf32>,
    %cst_291 = arith.constant dense<0xFF800000> : vector<8xf32>
    %532 = vector.multi_reduction <maximumf>, %525, %cst_291 [1] : vector<8x128xf32> to vector<8xf32>
    %533 = vector.shape_cast %532 : vector<8xf32> to vector<8x1xf32>
    %534 = vector.broadcast %533 : vector<8x1xf32> to vector<8x128xf32>
    %535 = arith.cmpf oge, %525, %534 : vector<8x128xf32>
    %c128_i32_292 = arith.constant 128 : i32
    %536 = vector.broadcast %c128_i32_292 : i32 to vector<8x128xi32>
    %537 = arith.select %535, %32, %536 : vector<8x128xi1>, vector<8x128xi32>
    %cst_293 = arith.constant dense<2147483647> : vector<8xi32>
    %538 = vector.multi_reduction <minsi>, %537, %cst_293 [1] : vector<8x128xi32> to vector<8xi32>
    %539 = vector.shape_cast %538 : vector<8xi32> to vector<8x1xi32>
    %540 = vector.broadcast %539 : vector<8x1xi32> to vector<8x128xi32>
    %541 = arith.cmpi eq, %32, %540 : vector<8x128xi32>
    %542 = arith.extui %541 : vector<8x128xi1> to vector<8x128xi32>
    %543 = arith.sitofp %542 : vector<8x128xi32> to vector<8x128xf32>
    %544 = arith.truncf %543 : vector<8x128xf32> to vector<8x128xbf16>
    %c0_294 = arith.constant 0 : index
    %c0_295 = arith.constant 0 : index
    %545 = vector.load %arg20[%c0_294, %c0_295] : memref<8x128xbf16, #tpu.memory_space<vmem>>, vector<8x128xbf16>
    tpu.vector_store %arg20[%c0_294, %c0_295], %544 {strides = array<i32>} : memref<8x128xbf16, #tpu.memory_space<vmem>>, vector<8x128xbf16>,
    %c0_296 = arith.constant 0 : index
    %c0_297 = arith.constant 0 : index
    %546 = vector.load %arg15[%c0_296, %c0_297] : memref<8x32xf32, #tpu.memory_space<vmem>>, vector<8x32xf32>
    tpu.vector_store %arg15[%c0_296, %c0_297], %461 {strides = array<i32>} : memref<8x32xf32, #tpu.memory_space<vmem>>, vector<8x32xf32>,
    %c0_298 = arith.constant 0 : index
    %c0_299 = arith.constant 0 : index
    %547 = vector.load %arg16[%c0_298, %c0_299] : memref<8x32xf32, #tpu.memory_space<vmem>>, vector<8x32xf32>
    tpu.vector_store %arg16[%c0_298, %c0_299], %459 {strides = array<i32>} : memref<8x32xf32, #tpu.memory_space<vmem>>, vector<8x32xf32>,
    %c0_300 = arith.constant 0 : index
    %c0_301 = arith.constant 0 : index
    %548 = vector.load %arg17[%c0_300, %c0_301] : memref<8x32xf32, #tpu.memory_space<vmem>>, vector<8x32xf32>
    tpu.vector_store %arg17[%c0_300, %c0_301], %495 {strides = array<i32>} : memref<8x32xf32, #tpu.memory_space<vmem>>, vector<8x32xf32>,
    %c0_302 = arith.constant 0 : index
    %c0_303 = arith.constant 0 : index
    %549 = vector.load %arg18[%c0_302, %c0_303] : memref<8x32xf32, #tpu.memory_space<vmem>>, vector<8x32xf32>
    tpu.vector_store %arg18[%c0_302, %c0_303], %493 {strides = array<i32>} : memref<8x32xf32, #tpu.memory_space<vmem>>, vector<8x32xf32>,
    %c0_304 = arith.constant 0 : index
    %c0_305 = arith.constant 0 : index
    %550 = vector.load %arg19[%c0_304, %c0_305] : memref<8x128xf32, #tpu.memory_space<vmem>>, vector<8x128xf32>
    tpu.vector_store %arg19[%c0_304, %c0_305], %518 {strides = array<i32>} : memref<8x128xf32, #tpu.memory_space<vmem>>, vector<8x128xf32>,
    %c0_306 = arith.constant 0 : index
    %c0_307 = arith.constant 0 : index
    %551 = vector.load %arg20[%c0_306, %c0_307] : memref<8x128xbf16, #tpu.memory_space<vmem>>, vector<8x128xbf16>
    %cst_308 = arith.constant dense<0.000000e+00> : vector<8x128xf32>
    %552 = tpu.matmul %551, %15, %cst_308 {dimension_numbers = #tpu.dot_dimension_numbers<[1], [0], [0], [1], [0, 0, 1, 1], [], []>} : vector<8x128xbf16>, vector<128x128xbf16>, vector<8x128xf32> -> vector<8x128xf32>
    %553 = arith.truncf %552 : vector<8x128xf32> to vector<8x128xbf16>
    %c0_309 = arith.constant 0 : index
    %c0_310 = arith.constant 0 : index
    %554 = vector.load %arg21[%c0_309, %c0_310] : memref<8x288xbf16, #tpu.memory_space<vmem>>, vector<8x128xbf16>
    tpu.vector_store %arg21[%c0_309, %c0_310], %553 {strides = array<i32>} : memref<8x288xbf16, #tpu.memory_space<vmem>>, vector<8x128xbf16>,
    %c0_311 = arith.constant 0 : index
    %c0_312 = arith.constant 0 : index
    %555 = vector.load %arg19[%c0_311, %c0_312] : memref<8x128xf32, #tpu.memory_space<vmem>>, vector<8x128xf32>
    %556 = arith.truncf %555 : vector<8x128xf32> to vector<8x128xbf16>
    %c0_313 = arith.constant 0 : index
    %c128_314 = arith.constant 128 : index
    %557 = vector.load %arg21[%c0_313, %c128_314] : memref<8x288xbf16, #tpu.memory_space<vmem>>, vector<8x128xbf16>
    tpu.vector_store %arg21[%c0_313, %c128_314], %556 {strides = array<i32>} : memref<8x288xbf16, #tpu.memory_space<vmem>>, vector<8x128xbf16>,
    %c0_315 = arith.constant 0 : index
    %c0_316 = arith.constant 0 : index
    %558 = vector.load %arg15[%c0_315, %c0_316] : memref<8x32xf32, #tpu.memory_space<vmem>>, vector<8x32xf32>
    %559 = arith.truncf %558 : vector<8x32xf32> to vector<8x32xbf16>
    %c0_317 = arith.constant 0 : index
    %c256_318 = arith.constant 256 : index
    %560 = vector.load %arg21[%c0_317, %c256_318] : memref<8x288xbf16, #tpu.memory_space<vmem>>, vector<8x32xbf16>
    tpu.vector_store %arg21[%c0_317, %c256_318], %559 {strides = array<i32>} : memref<8x288xbf16, #tpu.memory_space<vmem>>, vector<8x32xbf16>,
    %c0_319 = arith.constant 0 : index
    %c0_320 = arith.constant 0 : index
    %561 = vector.load %arg21[%c0_319, %c0_320] : memref<8x288xbf16, #tpu.memory_space<vmem>>, vector<8x288xbf16>
    %cst_321 = arith.constant dense<0.000000e+00> : vector<8x128xf32>
    %562 = tpu.matmul %561, %16, %cst_321 {dimension_numbers = #tpu.dot_dimension_numbers<[1], [0], [0], [1], [0, 0, 1, 1], [], []>} : vector<8x288xbf16>, vector<288x128xbf16>, vector<8x128xf32> -> vector<8x128xf32>
    %563 = arith.addf %562, %22 : vector<8x128xf32>
    %c0_322 = arith.constant 0 : index
    %c0_323 = arith.constant 0 : index
    %564 = vector.load %arg16[%c0_322, %c0_323] : memref<8x32xf32, #tpu.memory_space<vmem>>, vector<8x32xf32>
    %565 = vector.extract_strided_slice %563 {offsets = [0, 0], sizes = [8, 32], strides = [1, 1]} : vector<8x128xf32> to vector<8x32xf32>
    %566 = arith.negf %565 : vector<8x32xf32>
    %567 = math.exp %566 : vector<8x32xf32>
    %cst_324 = arith.constant 1.000000e+00 : f32
    %568 = vector.broadcast %cst_324 : f32 to vector<8x32xf32>
    %569 = arith.addf %568, %567 : vector<8x32xf32>
    %570 = arith.divf %568, %569 : vector<8x32xf32>
    %571 = vector.extract_strided_slice %563 {offsets = [0, 32], sizes = [8, 32], strides = [1, 1]} : vector<8x128xf32> to vector<8x32xf32>
    %572 = arith.negf %571 : vector<8x32xf32>
    %573 = math.exp %572 : vector<8x32xf32>
    %cst_325 = arith.constant 1.000000e+00 : f32
    %574 = vector.broadcast %cst_325 : f32 to vector<8x32xf32>
    %575 = arith.addf %574, %573 : vector<8x32xf32>
    %576 = arith.divf %574, %575 : vector<8x32xf32>
    %577 = vector.extract_strided_slice %563 {offsets = [0, 64], sizes = [8, 32], strides = [1, 1]} : vector<8x128xf32> to vector<8x32xf32>
    %578 = math.tanh %577 : vector<8x32xf32>
    %579 = vector.extract_strided_slice %563 {offsets = [0, 96], sizes = [8, 32], strides = [1, 1]} : vector<8x128xf32> to vector<8x32xf32>
    %580 = arith.negf %579 : vector<8x32xf32>
    %581 = math.exp %580 : vector<8x32xf32>
    %cst_326 = arith.constant 1.000000e+00 : f32
    %582 = vector.broadcast %cst_326 : f32 to vector<8x32xf32>
    %583 = arith.addf %582, %581 : vector<8x32xf32>
    %584 = arith.divf %582, %583 : vector<8x32xf32>
    %585 = arith.mulf %576, %564 : vector<8x32xf32>
    %586 = arith.mulf %570, %578 : vector<8x32xf32>
    %587 = arith.addf %585, %586 : vector<8x32xf32>
    %588 = math.tanh %587 : vector<8x32xf32>
    %589 = arith.mulf %584, %588 : vector<8x32xf32>
    %590 = arith.truncf %589 : vector<8x32xf32> to vector<8x32xbf16>
    %c0_327 = arith.constant 0 : index
    %c0_328 = arith.constant 0 : index
    %591 = vector.load %arg22[%c0_327, %c0_328] : memref<8x64xbf16, #tpu.memory_space<vmem>>, vector<8x32xbf16>
    tpu.vector_store %arg22[%c0_327, %c0_328], %590 {strides = array<i32>} : memref<8x64xbf16, #tpu.memory_space<vmem>>, vector<8x32xbf16>,
    %c0_329 = arith.constant 0 : index
    %c0_330 = arith.constant 0 : index
    %592 = vector.load %arg17[%c0_329, %c0_330] : memref<8x32xf32, #tpu.memory_space<vmem>>, vector<8x32xf32>
    %593 = arith.truncf %592 : vector<8x32xf32> to vector<8x32xbf16>
    %c0_331 = arith.constant 0 : index
    %c32_332 = arith.constant 32 : index
    %594 = vector.load %arg22[%c0_331, %c32_332] : memref<8x64xbf16, #tpu.memory_space<vmem>>, vector<8x32xbf16>
    tpu.vector_store %arg22[%c0_331, %c32_332], %593 {strides = array<i32>} : memref<8x64xbf16, #tpu.memory_space<vmem>>, vector<8x32xbf16>,
    %c0_333 = arith.constant 0 : index
    %c0_334 = arith.constant 0 : index
    %595 = vector.load %arg22[%c0_333, %c0_334] : memref<8x64xbf16, #tpu.memory_space<vmem>>, vector<8x64xbf16>
    %cst_335 = arith.constant dense<0.000000e+00> : vector<8x128xf32>
    %596 = tpu.matmul %595, %17, %cst_335 {dimension_numbers = #tpu.dot_dimension_numbers<[1], [0], [0], [1], [0, 0, 1, 1], [], []>} : vector<8x64xbf16>, vector<64x128xbf16>, vector<8x128xf32> -> vector<8x128xf32>
    %597 = arith.addf %596, %25 : vector<8x128xf32>
    %c0_336 = arith.constant 0 : index
    %c0_337 = arith.constant 0 : index
    %598 = vector.load %arg18[%c0_336, %c0_337] : memref<8x32xf32, #tpu.memory_space<vmem>>, vector<8x32xf32>
    %599 = vector.extract_strided_slice %597 {offsets = [0, 0], sizes = [8, 32], strides = [1, 1]} : vector<8x128xf32> to vector<8x32xf32>
    %600 = arith.negf %599 : vector<8x32xf32>
    %601 = math.exp %600 : vector<8x32xf32>
    %cst_338 = arith.constant 1.000000e+00 : f32
    %602 = vector.broadcast %cst_338 : f32 to vector<8x32xf32>
    %603 = arith.addf %602, %601 : vector<8x32xf32>
    %604 = arith.divf %602, %603 : vector<8x32xf32>
    %605 = vector.extract_strided_slice %597 {offsets = [0, 32], sizes = [8, 32], strides = [1, 1]} : vector<8x128xf32> to vector<8x32xf32>
    %606 = arith.negf %605 : vector<8x32xf32>
    %607 = math.exp %606 : vector<8x32xf32>
    %cst_339 = arith.constant 1.000000e+00 : f32
    %608 = vector.broadcast %cst_339 : f32 to vector<8x32xf32>
    %609 = arith.addf %608, %607 : vector<8x32xf32>
    %610 = arith.divf %608, %609 : vector<8x32xf32>
    %611 = vector.extract_strided_slice %597 {offsets = [0, 64], sizes = [8, 32], strides = [1, 1]} : vector<8x128xf32> to vector<8x32xf32>
    %612 = math.tanh %611 : vector<8x32xf32>
    %613 = vector.extract_strided_slice %597 {offsets = [0, 96], sizes = [8, 32], strides = [1, 1]} : vector<8x128xf32> to vector<8x32xf32>
    %614 = arith.negf %613 : vector<8x32xf32>
    %615 = math.exp %614 : vector<8x32xf32>
    %cst_340 = arith.constant 1.000000e+00 : f32
    %616 = vector.broadcast %cst_340 : f32 to vector<8x32xf32>
    %617 = arith.addf %616, %615 : vector<8x32xf32>
    %618 = arith.divf %616, %617 : vector<8x32xf32>
    %619 = arith.mulf %610, %598 : vector<8x32xf32>
    %620 = arith.mulf %604, %612 : vector<8x32xf32>
    %621 = arith.addf %619, %620 : vector<8x32xf32>
    %622 = math.tanh %621 : vector<8x32xf32>
    %623 = arith.mulf %618, %622 : vector<8x32xf32>
    %624 = arith.truncf %623 : vector<8x32xf32> to vector<8x32xbf16>
    %cst_341 = arith.constant dense<0.000000e+00> : vector<8x128xf32>
    %625 = tpu.matmul %624, %18, %cst_341 {dimension_numbers = #tpu.dot_dimension_numbers<[1], [0], [0], [1], [0, 0, 1, 1], [], []>} : vector<8x32xbf16>, vector<32x128xbf16>, vector<8x128xf32> -> vector<8x128xf32>
    %626 = arith.addf %625, %28 : vector<8x128xf32>
    %627 = vector.shape_cast %626 : vector<8x128xf32> to vector<1x8x128xf32>
    %628 = vector.broadcast %627 : vector<1x8x128xf32> to vector<16x8x128xf32>
    %629 = arith.mulf %12, %628 : vector<16x8x128xf32>
    %cst_342 = arith.constant dense<0.000000e+00> : vector<16x8xf32>
    %630 = vector.multi_reduction <add>, %629, %cst_342 [2] : vector<16x8x128xf32> to vector<16x8xf32>
    %631 = tpu.transpose %630, [1, 0] : vector<16x8xf32> -> vector<8x16xf32>
    %632 = arith.addf %631, %10 : vector<8x16xf32>
    %cst_343 = arith.constant dense<0xFF800000> : vector<8xf32>
    %633 = vector.multi_reduction <maximumf>, %632, %cst_343 [1] : vector<8x16xf32> to vector<8xf32>
    %634 = vector.shape_cast %633 : vector<8xf32> to vector<8x1xf32>
    %635 = vector.broadcast %634 : vector<8x1xf32> to vector<8x16xf32>
    %636 = arith.subf %632, %635 : vector<8x16xf32>
    %637 = math.exp %636 : vector<8x16xf32>
    %cst_344 = arith.constant dense<0.000000e+00> : vector<8xf32>
    %638 = vector.multi_reduction <add>, %637, %cst_344 [1] : vector<8x16xf32> to vector<8xf32>
    %639 = vector.shape_cast %638 : vector<8xf32> to vector<8x1xf32>
    %640 = vector.broadcast %639 : vector<8x1xf32> to vector<8x16xf32>
    %641 = arith.divf %637, %640 : vector<8x16xf32>
    %642 = tpu.transpose %641, [1, 0] : vector<8x16xf32> -> vector<16x8xf32>
    %643 = vector.shape_cast %642 : vector<16x8xf32> to vector<16x8x1xf32>
    %644 = vector.broadcast %643 : vector<16x8x1xf32> to vector<16x8x128xf32>
    %645 = arith.mulf %644, %14 : vector<16x8x128xf32>
    %cst_345 = arith.constant dense<0.000000e+00> : vector<8x128xf32>
    %646 = vector.multi_reduction <add>, %645, %cst_345 [0] : vector<16x8x128xf32> to vector<8x128xf32>
    %647 = arith.truncf %626 : vector<8x128xf32> to vector<8x128xbf16>
    %c0_346 = arith.constant 0 : index
    %c0_347 = arith.constant 0 : index
    %648 = vector.load %arg23[%c0_346, %c0_347] : memref<8x256xbf16, #tpu.memory_space<vmem>>, vector<8x128xbf16>
    tpu.vector_store %arg23[%c0_346, %c0_347], %647 {strides = array<i32>} : memref<8x256xbf16, #tpu.memory_space<vmem>>, vector<8x128xbf16>,
    %649 = arith.truncf %646 : vector<8x128xf32> to vector<8x128xbf16>
    %c0_348 = arith.constant 0 : index
    %c128_349 = arith.constant 128 : index
    %650 = vector.load %arg23[%c0_348, %c128_349] : memref<8x256xbf16, #tpu.memory_space<vmem>>, vector<8x128xbf16>
    tpu.vector_store %arg23[%c0_348, %c128_349], %649 {strides = array<i32>} : memref<8x256xbf16, #tpu.memory_space<vmem>>, vector<8x128xbf16>,
    %c0_350 = arith.constant 0 : index
    %c0_351 = arith.constant 0 : index
    %651 = vector.load %arg23[%c0_350, %c0_351] : memref<8x256xbf16, #tpu.memory_space<vmem>>, vector<8x256xbf16>
    %cst_352 = arith.constant dense<0.000000e+00> : vector<8x128xf32>
    %652 = tpu.matmul %651, %19, %cst_352 {dimension_numbers = #tpu.dot_dimension_numbers<[1], [0], [0], [1], [0, 0, 1, 1], [], []>} : vector<8x256xbf16>, vector<256x128xbf16>, vector<8x128xf32> -> vector<8x128xf32>
    %653 = arith.addf %652, %31 : vector<8x128xf32>
    %c4 = arith.constant 4 : index
    %c0_353 = arith.constant 0 : index
    %c0_354 = arith.constant 0 : index
    %654 = vector.load %arg13[%c4, %c0_353, %c0_354] : memref<8x8x128xf32, #tpu.memory_space<vmem>>, vector<1x8x128xf32>
    %655 = vector.shape_cast %654 : vector<1x8x128xf32> to vector<8x128xf32>
    %656 = vector.shape_cast %653 : vector<8x128xf32> to vector<1x8x128xf32>
    tpu.vector_store %arg13[%c4, %c0_353, %c0_354], %656 {strides = array<i32>} : memref<8x8x128xf32, #tpu.memory_space<vmem>>, vector<1x8x128xf32>,
    %c4_355 = arith.constant 4 : index
    %c0_356 = arith.constant 0 : index
    %c0_357 = arith.constant 0 : index
    %657 = vector.load %arg14[%c4_355, %c0_356, %c0_357] : memref<8x8x16xf32, #tpu.memory_space<vmem>>, vector<1x8x16xf32>
    %658 = vector.shape_cast %657 : vector<1x8x16xf32> to vector<8x16xf32>
    %659 = vector.shape_cast %641 : vector<8x16xf32> to vector<1x8x16xf32>
    tpu.vector_store %arg14[%c4_355, %c0_356, %c0_357], %659 {strides = array<i32>} : memref<8x8x16xf32, #tpu.memory_space<vmem>>, vector<1x8x16xf32>,
    %cst_358 = arith.constant dense<0xFF800000> : vector<8xf32>
    %660 = vector.multi_reduction <maximumf>, %653, %cst_358 [1] : vector<8x128xf32> to vector<8xf32>
    %661 = vector.shape_cast %660 : vector<8xf32> to vector<8x1xf32>
    %662 = vector.broadcast %661 : vector<8x1xf32> to vector<8x128xf32>
    %663 = arith.cmpf oge, %653, %662 : vector<8x128xf32>
    %c128_i32_359 = arith.constant 128 : i32
    %664 = vector.broadcast %c128_i32_359 : i32 to vector<8x128xi32>
    %665 = arith.select %663, %32, %664 : vector<8x128xi1>, vector<8x128xi32>
    %cst_360 = arith.constant dense<2147483647> : vector<8xi32>
    %666 = vector.multi_reduction <minsi>, %665, %cst_360 [1] : vector<8x128xi32> to vector<8xi32>
    %667 = vector.shape_cast %666 : vector<8xi32> to vector<8x1xi32>
    %668 = vector.broadcast %667 : vector<8x1xi32> to vector<8x128xi32>
    %669 = arith.cmpi eq, %32, %668 : vector<8x128xi32>
    %670 = arith.extui %669 : vector<8x128xi1> to vector<8x128xi32>
    %671 = arith.sitofp %670 : vector<8x128xi32> to vector<8x128xf32>
    %672 = arith.truncf %671 : vector<8x128xf32> to vector<8x128xbf16>
    %c0_361 = arith.constant 0 : index
    %c0_362 = arith.constant 0 : index
    %673 = vector.load %arg20[%c0_361, %c0_362] : memref<8x128xbf16, #tpu.memory_space<vmem>>, vector<8x128xbf16>
    tpu.vector_store %arg20[%c0_361, %c0_362], %672 {strides = array<i32>} : memref<8x128xbf16, #tpu.memory_space<vmem>>, vector<8x128xbf16>,
    %c0_363 = arith.constant 0 : index
    %c0_364 = arith.constant 0 : index
    %674 = vector.load %arg15[%c0_363, %c0_364] : memref<8x32xf32, #tpu.memory_space<vmem>>, vector<8x32xf32>
    tpu.vector_store %arg15[%c0_363, %c0_364], %589 {strides = array<i32>} : memref<8x32xf32, #tpu.memory_space<vmem>>, vector<8x32xf32>,
    %c0_365 = arith.constant 0 : index
    %c0_366 = arith.constant 0 : index
    %675 = vector.load %arg16[%c0_365, %c0_366] : memref<8x32xf32, #tpu.memory_space<vmem>>, vector<8x32xf32>
    tpu.vector_store %arg16[%c0_365, %c0_366], %587 {strides = array<i32>} : memref<8x32xf32, #tpu.memory_space<vmem>>, vector<8x32xf32>,
    %c0_367 = arith.constant 0 : index
    %c0_368 = arith.constant 0 : index
    %676 = vector.load %arg17[%c0_367, %c0_368] : memref<8x32xf32, #tpu.memory_space<vmem>>, vector<8x32xf32>
    tpu.vector_store %arg17[%c0_367, %c0_368], %623 {strides = array<i32>} : memref<8x32xf32, #tpu.memory_space<vmem>>, vector<8x32xf32>,
    %c0_369 = arith.constant 0 : index
    %c0_370 = arith.constant 0 : index
    %677 = vector.load %arg18[%c0_369, %c0_370] : memref<8x32xf32, #tpu.memory_space<vmem>>, vector<8x32xf32>
    tpu.vector_store %arg18[%c0_369, %c0_370], %621 {strides = array<i32>} : memref<8x32xf32, #tpu.memory_space<vmem>>, vector<8x32xf32>,
    %c0_371 = arith.constant 0 : index
    %c0_372 = arith.constant 0 : index
    %678 = vector.load %arg19[%c0_371, %c0_372] : memref<8x128xf32, #tpu.memory_space<vmem>>, vector<8x128xf32>
    tpu.vector_store %arg19[%c0_371, %c0_372], %646 {strides = array<i32>} : memref<8x128xf32, #tpu.memory_space<vmem>>, vector<8x128xf32>,
    %c0_373 = arith.constant 0 : index
    %c0_374 = arith.constant 0 : index
    %679 = vector.load %arg20[%c0_373, %c0_374] : memref<8x128xbf16, #tpu.memory_space<vmem>>, vector<8x128xbf16>
    %cst_375 = arith.constant dense<0.000000e+00> : vector<8x128xf32>
    %680 = tpu.matmul %679, %15, %cst_375 {dimension_numbers = #tpu.dot_dimension_numbers<[1], [0], [0], [1], [0, 0, 1, 1], [], []>} : vector<8x128xbf16>, vector<128x128xbf16>, vector<8x128xf32> -> vector<8x128xf32>
    %681 = arith.truncf %680 : vector<8x128xf32> to vector<8x128xbf16>
    %c0_376 = arith.constant 0 : index
    %c0_377 = arith.constant 0 : index
    %682 = vector.load %arg21[%c0_376, %c0_377] : memref<8x288xbf16, #tpu.memory_space<vmem>>, vector<8x128xbf16>
    tpu.vector_store %arg21[%c0_376, %c0_377], %681 {strides = array<i32>} : memref<8x288xbf16, #tpu.memory_space<vmem>>, vector<8x128xbf16>,
    %c0_378 = arith.constant 0 : index
    %c0_379 = arith.constant 0 : index
    %683 = vector.load %arg19[%c0_378, %c0_379] : memref<8x128xf32, #tpu.memory_space<vmem>>, vector<8x128xf32>
    %684 = arith.truncf %683 : vector<8x128xf32> to vector<8x128xbf16>
    %c0_380 = arith.constant 0 : index
    %c128_381 = arith.constant 128 : index
    %685 = vector.load %arg21[%c0_380, %c128_381] : memref<8x288xbf16, #tpu.memory_space<vmem>>, vector<8x128xbf16>
    tpu.vector_store %arg21[%c0_380, %c128_381], %684 {strides = array<i32>} : memref<8x288xbf16, #tpu.memory_space<vmem>>, vector<8x128xbf16>,
    %c0_382 = arith.constant 0 : index
    %c0_383 = arith.constant 0 : index
    %686 = vector.load %arg15[%c0_382, %c0_383] : memref<8x32xf32, #tpu.memory_space<vmem>>, vector<8x32xf32>
    %687 = arith.truncf %686 : vector<8x32xf32> to vector<8x32xbf16>
    %c0_384 = arith.constant 0 : index
    %c256_385 = arith.constant 256 : index
    %688 = vector.load %arg21[%c0_384, %c256_385] : memref<8x288xbf16, #tpu.memory_space<vmem>>, vector<8x32xbf16>
    tpu.vector_store %arg21[%c0_384, %c256_385], %687 {strides = array<i32>} : memref<8x288xbf16, #tpu.memory_space<vmem>>, vector<8x32xbf16>,
    %c0_386 = arith.constant 0 : index
    %c0_387 = arith.constant 0 : index
    %689 = vector.load %arg21[%c0_386, %c0_387] : memref<8x288xbf16, #tpu.memory_space<vmem>>, vector<8x288xbf16>
    %cst_388 = arith.constant dense<0.000000e+00> : vector<8x128xf32>
    %690 = tpu.matmul %689, %16, %cst_388 {dimension_numbers = #tpu.dot_dimension_numbers<[1], [0], [0], [1], [0, 0, 1, 1], [], []>} : vector<8x288xbf16>, vector<288x128xbf16>, vector<8x128xf32> -> vector<8x128xf32>
    %691 = arith.addf %690, %22 : vector<8x128xf32>
    %c0_389 = arith.constant 0 : index
    %c0_390 = arith.constant 0 : index
    %692 = vector.load %arg16[%c0_389, %c0_390] : memref<8x32xf32, #tpu.memory_space<vmem>>, vector<8x32xf32>
    %693 = vector.extract_strided_slice %691 {offsets = [0, 0], sizes = [8, 32], strides = [1, 1]} : vector<8x128xf32> to vector<8x32xf32>
    %694 = arith.negf %693 : vector<8x32xf32>
    %695 = math.exp %694 : vector<8x32xf32>
    %cst_391 = arith.constant 1.000000e+00 : f32
    %696 = vector.broadcast %cst_391 : f32 to vector<8x32xf32>
    %697 = arith.addf %696, %695 : vector<8x32xf32>
    %698 = arith.divf %696, %697 : vector<8x32xf32>
    %699 = vector.extract_strided_slice %691 {offsets = [0, 32], sizes = [8, 32], strides = [1, 1]} : vector<8x128xf32> to vector<8x32xf32>
    %700 = arith.negf %699 : vector<8x32xf32>
    %701 = math.exp %700 : vector<8x32xf32>
    %cst_392 = arith.constant 1.000000e+00 : f32
    %702 = vector.broadcast %cst_392 : f32 to vector<8x32xf32>
    %703 = arith.addf %702, %701 : vector<8x32xf32>
    %704 = arith.divf %702, %703 : vector<8x32xf32>
    %705 = vector.extract_strided_slice %691 {offsets = [0, 64], sizes = [8, 32], strides = [1, 1]} : vector<8x128xf32> to vector<8x32xf32>
    %706 = math.tanh %705 : vector<8x32xf32>
    %707 = vector.extract_strided_slice %691 {offsets = [0, 96], sizes = [8, 32], strides = [1, 1]} : vector<8x128xf32> to vector<8x32xf32>
    %708 = arith.negf %707 : vector<8x32xf32>
    %709 = math.exp %708 : vector<8x32xf32>
    %cst_393 = arith.constant 1.000000e+00 : f32
    %710 = vector.broadcast %cst_393 : f32 to vector<8x32xf32>
    %711 = arith.addf %710, %709 : vector<8x32xf32>
    %712 = arith.divf %710, %711 : vector<8x32xf32>
    %713 = arith.mulf %704, %692 : vector<8x32xf32>
    %714 = arith.mulf %698, %706 : vector<8x32xf32>
    %715 = arith.addf %713, %714 : vector<8x32xf32>
    %716 = math.tanh %715 : vector<8x32xf32>
    %717 = arith.mulf %712, %716 : vector<8x32xf32>
    %718 = arith.truncf %717 : vector<8x32xf32> to vector<8x32xbf16>
    %c0_394 = arith.constant 0 : index
    %c0_395 = arith.constant 0 : index
    %719 = vector.load %arg22[%c0_394, %c0_395] : memref<8x64xbf16, #tpu.memory_space<vmem>>, vector<8x32xbf16>
    tpu.vector_store %arg22[%c0_394, %c0_395], %718 {strides = array<i32>} : memref<8x64xbf16, #tpu.memory_space<vmem>>, vector<8x32xbf16>,
    %c0_396 = arith.constant 0 : index
    %c0_397 = arith.constant 0 : index
    %720 = vector.load %arg17[%c0_396, %c0_397] : memref<8x32xf32, #tpu.memory_space<vmem>>, vector<8x32xf32>
    %721 = arith.truncf %720 : vector<8x32xf32> to vector<8x32xbf16>
    %c0_398 = arith.constant 0 : index
    %c32_399 = arith.constant 32 : index
    %722 = vector.load %arg22[%c0_398, %c32_399] : memref<8x64xbf16, #tpu.memory_space<vmem>>, vector<8x32xbf16>
    tpu.vector_store %arg22[%c0_398, %c32_399], %721 {strides = array<i32>} : memref<8x64xbf16, #tpu.memory_space<vmem>>, vector<8x32xbf16>,
    %c0_400 = arith.constant 0 : index
    %c0_401 = arith.constant 0 : index
    %723 = vector.load %arg22[%c0_400, %c0_401] : memref<8x64xbf16, #tpu.memory_space<vmem>>, vector<8x64xbf16>
    %cst_402 = arith.constant dense<0.000000e+00> : vector<8x128xf32>
    %724 = tpu.matmul %723, %17, %cst_402 {dimension_numbers = #tpu.dot_dimension_numbers<[1], [0], [0], [1], [0, 0, 1, 1], [], []>} : vector<8x64xbf16>, vector<64x128xbf16>, vector<8x128xf32> -> vector<8x128xf32>
    %725 = arith.addf %724, %25 : vector<8x128xf32>
    %c0_403 = arith.constant 0 : index
    %c0_404 = arith.constant 0 : index
    %726 = vector.load %arg18[%c0_403, %c0_404] : memref<8x32xf32, #tpu.memory_space<vmem>>, vector<8x32xf32>
    %727 = vector.extract_strided_slice %725 {offsets = [0, 0], sizes = [8, 32], strides = [1, 1]} : vector<8x128xf32> to vector<8x32xf32>
    %728 = arith.negf %727 : vector<8x32xf32>
    %729 = math.exp %728 : vector<8x32xf32>
    %cst_405 = arith.constant 1.000000e+00 : f32
    %730 = vector.broadcast %cst_405 : f32 to vector<8x32xf32>
    %731 = arith.addf %730, %729 : vector<8x32xf32>
    %732 = arith.divf %730, %731 : vector<8x32xf32>
    %733 = vector.extract_strided_slice %725 {offsets = [0, 32], sizes = [8, 32], strides = [1, 1]} : vector<8x128xf32> to vector<8x32xf32>
    %734 = arith.negf %733 : vector<8x32xf32>
    %735 = math.exp %734 : vector<8x32xf32>
    %cst_406 = arith.constant 1.000000e+00 : f32
    %736 = vector.broadcast %cst_406 : f32 to vector<8x32xf32>
    %737 = arith.addf %736, %735 : vector<8x32xf32>
    %738 = arith.divf %736, %737 : vector<8x32xf32>
    %739 = vector.extract_strided_slice %725 {offsets = [0, 64], sizes = [8, 32], strides = [1, 1]} : vector<8x128xf32> to vector<8x32xf32>
    %740 = math.tanh %739 : vector<8x32xf32>
    %741 = vector.extract_strided_slice %725 {offsets = [0, 96], sizes = [8, 32], strides = [1, 1]} : vector<8x128xf32> to vector<8x32xf32>
    %742 = arith.negf %741 : vector<8x32xf32>
    %743 = math.exp %742 : vector<8x32xf32>
    %cst_407 = arith.constant 1.000000e+00 : f32
    %744 = vector.broadcast %cst_407 : f32 to vector<8x32xf32>
    %745 = arith.addf %744, %743 : vector<8x32xf32>
    %746 = arith.divf %744, %745 : vector<8x32xf32>
    %747 = arith.mulf %738, %726 : vector<8x32xf32>
    %748 = arith.mulf %732, %740 : vector<8x32xf32>
    %749 = arith.addf %747, %748 : vector<8x32xf32>
    %750 = math.tanh %749 : vector<8x32xf32>
    %751 = arith.mulf %746, %750 : vector<8x32xf32>
    %752 = arith.truncf %751 : vector<8x32xf32> to vector<8x32xbf16>
    %cst_408 = arith.constant dense<0.000000e+00> : vector<8x128xf32>
    %753 = tpu.matmul %752, %18, %cst_408 {dimension_numbers = #tpu.dot_dimension_numbers<[1], [0], [0], [1], [0, 0, 1, 1], [], []>} : vector<8x32xbf16>, vector<32x128xbf16>, vector<8x128xf32> -> vector<8x128xf32>
    %754 = arith.addf %753, %28 : vector<8x128xf32>
    %755 = vector.shape_cast %754 : vector<8x128xf32> to vector<1x8x128xf32>
    %756 = vector.broadcast %755 : vector<1x8x128xf32> to vector<16x8x128xf32>
    %757 = arith.mulf %12, %756 : vector<16x8x128xf32>
    %cst_409 = arith.constant dense<0.000000e+00> : vector<16x8xf32>
    %758 = vector.multi_reduction <add>, %757, %cst_409 [2] : vector<16x8x128xf32> to vector<16x8xf32>
    %759 = tpu.transpose %758, [1, 0] : vector<16x8xf32> -> vector<8x16xf32>
    %760 = arith.addf %759, %10 : vector<8x16xf32>
    %cst_410 = arith.constant dense<0xFF800000> : vector<8xf32>
    %761 = vector.multi_reduction <maximumf>, %760, %cst_410 [1] : vector<8x16xf32> to vector<8xf32>
    %762 = vector.shape_cast %761 : vector<8xf32> to vector<8x1xf32>
    %763 = vector.broadcast %762 : vector<8x1xf32> to vector<8x16xf32>
    %764 = arith.subf %760, %763 : vector<8x16xf32>
    %765 = math.exp %764 : vector<8x16xf32>
    %cst_411 = arith.constant dense<0.000000e+00> : vector<8xf32>
    %766 = vector.multi_reduction <add>, %765, %cst_411 [1] : vector<8x16xf32> to vector<8xf32>
    %767 = vector.shape_cast %766 : vector<8xf32> to vector<8x1xf32>
    %768 = vector.broadcast %767 : vector<8x1xf32> to vector<8x16xf32>
    %769 = arith.divf %765, %768 : vector<8x16xf32>
    %770 = tpu.transpose %769, [1, 0] : vector<8x16xf32> -> vector<16x8xf32>
    %771 = vector.shape_cast %770 : vector<16x8xf32> to vector<16x8x1xf32>
    %772 = vector.broadcast %771 : vector<16x8x1xf32> to vector<16x8x128xf32>
    %773 = arith.mulf %772, %14 : vector<16x8x128xf32>
    %cst_412 = arith.constant dense<0.000000e+00> : vector<8x128xf32>
    %774 = vector.multi_reduction <add>, %773, %cst_412 [0] : vector<16x8x128xf32> to vector<8x128xf32>
    %775 = arith.truncf %754 : vector<8x128xf32> to vector<8x128xbf16>
    %c0_413 = arith.constant 0 : index
    %c0_414 = arith.constant 0 : index
    %776 = vector.load %arg23[%c0_413, %c0_414] : memref<8x256xbf16, #tpu.memory_space<vmem>>, vector<8x128xbf16>
    tpu.vector_store %arg23[%c0_413, %c0_414], %775 {strides = array<i32>} : memref<8x256xbf16, #tpu.memory_space<vmem>>, vector<8x128xbf16>,
    %777 = arith.truncf %774 : vector<8x128xf32> to vector<8x128xbf16>
    %c0_415 = arith.constant 0 : index
    %c128_416 = arith.constant 128 : index
    %778 = vector.load %arg23[%c0_415, %c128_416] : memref<8x256xbf16, #tpu.memory_space<vmem>>, vector<8x128xbf16>
    tpu.vector_store %arg23[%c0_415, %c128_416], %777 {strides = array<i32>} : memref<8x256xbf16, #tpu.memory_space<vmem>>, vector<8x128xbf16>,
    %c0_417 = arith.constant 0 : index
    %c0_418 = arith.constant 0 : index
    %779 = vector.load %arg23[%c0_417, %c0_418] : memref<8x256xbf16, #tpu.memory_space<vmem>>, vector<8x256xbf16>
    %cst_419 = arith.constant dense<0.000000e+00> : vector<8x128xf32>
    %780 = tpu.matmul %779, %19, %cst_419 {dimension_numbers = #tpu.dot_dimension_numbers<[1], [0], [0], [1], [0, 0, 1, 1], [], []>} : vector<8x256xbf16>, vector<256x128xbf16>, vector<8x128xf32> -> vector<8x128xf32>
    %781 = arith.addf %780, %31 : vector<8x128xf32>
    %c5 = arith.constant 5 : index
    %c0_420 = arith.constant 0 : index
    %c0_421 = arith.constant 0 : index
    %782 = vector.load %arg13[%c5, %c0_420, %c0_421] : memref<8x8x128xf32, #tpu.memory_space<vmem>>, vector<1x8x128xf32>
    %783 = vector.shape_cast %782 : vector<1x8x128xf32> to vector<8x128xf32>
    %784 = vector.shape_cast %781 : vector<8x128xf32> to vector<1x8x128xf32>
    tpu.vector_store %arg13[%c5, %c0_420, %c0_421], %784 {strides = array<i32>} : memref<8x8x128xf32, #tpu.memory_space<vmem>>, vector<1x8x128xf32>,
    %c5_422 = arith.constant 5 : index
    %c0_423 = arith.constant 0 : index
    %c0_424 = arith.constant 0 : index
    %785 = vector.load %arg14[%c5_422, %c0_423, %c0_424] : memref<8x8x16xf32, #tpu.memory_space<vmem>>, vector<1x8x16xf32>
    %786 = vector.shape_cast %785 : vector<1x8x16xf32> to vector<8x16xf32>
    %787 = vector.shape_cast %769 : vector<8x16xf32> to vector<1x8x16xf32>
    tpu.vector_store %arg14[%c5_422, %c0_423, %c0_424], %787 {strides = array<i32>} : memref<8x8x16xf32, #tpu.memory_space<vmem>>, vector<1x8x16xf32>,
    %cst_425 = arith.constant dense<0xFF800000> : vector<8xf32>
    %788 = vector.multi_reduction <maximumf>, %781, %cst_425 [1] : vector<8x128xf32> to vector<8xf32>
    %789 = vector.shape_cast %788 : vector<8xf32> to vector<8x1xf32>
    %790 = vector.broadcast %789 : vector<8x1xf32> to vector<8x128xf32>
    %791 = arith.cmpf oge, %781, %790 : vector<8x128xf32>
    %c128_i32_426 = arith.constant 128 : i32
    %792 = vector.broadcast %c128_i32_426 : i32 to vector<8x128xi32>
    %793 = arith.select %791, %32, %792 : vector<8x128xi1>, vector<8x128xi32>
    %cst_427 = arith.constant dense<2147483647> : vector<8xi32>
    %794 = vector.multi_reduction <minsi>, %793, %cst_427 [1] : vector<8x128xi32> to vector<8xi32>
    %795 = vector.shape_cast %794 : vector<8xi32> to vector<8x1xi32>
    %796 = vector.broadcast %795 : vector<8x1xi32> to vector<8x128xi32>
    %797 = arith.cmpi eq, %32, %796 : vector<8x128xi32>
    %798 = arith.extui %797 : vector<8x128xi1> to vector<8x128xi32>
    %799 = arith.sitofp %798 : vector<8x128xi32> to vector<8x128xf32>
    %800 = arith.truncf %799 : vector<8x128xf32> to vector<8x128xbf16>
    %c0_428 = arith.constant 0 : index
    %c0_429 = arith.constant 0 : index
    %801 = vector.load %arg20[%c0_428, %c0_429] : memref<8x128xbf16, #tpu.memory_space<vmem>>, vector<8x128xbf16>
    tpu.vector_store %arg20[%c0_428, %c0_429], %800 {strides = array<i32>} : memref<8x128xbf16, #tpu.memory_space<vmem>>, vector<8x128xbf16>,
    %c0_430 = arith.constant 0 : index
    %c0_431 = arith.constant 0 : index
    %802 = vector.load %arg15[%c0_430, %c0_431] : memref<8x32xf32, #tpu.memory_space<vmem>>, vector<8x32xf32>
    tpu.vector_store %arg15[%c0_430, %c0_431], %717 {strides = array<i32>} : memref<8x32xf32, #tpu.memory_space<vmem>>, vector<8x32xf32>,
    %c0_432 = arith.constant 0 : index
    %c0_433 = arith.constant 0 : index
    %803 = vector.load %arg16[%c0_432, %c0_433] : memref<8x32xf32, #tpu.memory_space<vmem>>, vector<8x32xf32>
    tpu.vector_store %arg16[%c0_432, %c0_433], %715 {strides = array<i32>} : memref<8x32xf32, #tpu.memory_space<vmem>>, vector<8x32xf32>,
    %c0_434 = arith.constant 0 : index
    %c0_435 = arith.constant 0 : index
    %804 = vector.load %arg17[%c0_434, %c0_435] : memref<8x32xf32, #tpu.memory_space<vmem>>, vector<8x32xf32>
    tpu.vector_store %arg17[%c0_434, %c0_435], %751 {strides = array<i32>} : memref<8x32xf32, #tpu.memory_space<vmem>>, vector<8x32xf32>,
    %c0_436 = arith.constant 0 : index
    %c0_437 = arith.constant 0 : index
    %805 = vector.load %arg18[%c0_436, %c0_437] : memref<8x32xf32, #tpu.memory_space<vmem>>, vector<8x32xf32>
    tpu.vector_store %arg18[%c0_436, %c0_437], %749 {strides = array<i32>} : memref<8x32xf32, #tpu.memory_space<vmem>>, vector<8x32xf32>,
    %c0_438 = arith.constant 0 : index
    %c0_439 = arith.constant 0 : index
    %806 = vector.load %arg19[%c0_438, %c0_439] : memref<8x128xf32, #tpu.memory_space<vmem>>, vector<8x128xf32>
    tpu.vector_store %arg19[%c0_438, %c0_439], %774 {strides = array<i32>} : memref<8x128xf32, #tpu.memory_space<vmem>>, vector<8x128xf32>,
    %c0_440 = arith.constant 0 : index
    %c0_441 = arith.constant 0 : index
    %807 = vector.load %arg20[%c0_440, %c0_441] : memref<8x128xbf16, #tpu.memory_space<vmem>>, vector<8x128xbf16>
    %cst_442 = arith.constant dense<0.000000e+00> : vector<8x128xf32>
    %808 = tpu.matmul %807, %15, %cst_442 {dimension_numbers = #tpu.dot_dimension_numbers<[1], [0], [0], [1], [0, 0, 1, 1], [], []>} : vector<8x128xbf16>, vector<128x128xbf16>, vector<8x128xf32> -> vector<8x128xf32>
    %809 = arith.truncf %808 : vector<8x128xf32> to vector<8x128xbf16>
    %c0_443 = arith.constant 0 : index
    %c0_444 = arith.constant 0 : index
    %810 = vector.load %arg21[%c0_443, %c0_444] : memref<8x288xbf16, #tpu.memory_space<vmem>>, vector<8x128xbf16>
    tpu.vector_store %arg21[%c0_443, %c0_444], %809 {strides = array<i32>} : memref<8x288xbf16, #tpu.memory_space<vmem>>, vector<8x128xbf16>,
    %c0_445 = arith.constant 0 : index
    %c0_446 = arith.constant 0 : index
    %811 = vector.load %arg19[%c0_445, %c0_446] : memref<8x128xf32, #tpu.memory_space<vmem>>, vector<8x128xf32>
    %812 = arith.truncf %811 : vector<8x128xf32> to vector<8x128xbf16>
    %c0_447 = arith.constant 0 : index
    %c128_448 = arith.constant 128 : index
    %813 = vector.load %arg21[%c0_447, %c128_448] : memref<8x288xbf16, #tpu.memory_space<vmem>>, vector<8x128xbf16>
    tpu.vector_store %arg21[%c0_447, %c128_448], %812 {strides = array<i32>} : memref<8x288xbf16, #tpu.memory_space<vmem>>, vector<8x128xbf16>,
    %c0_449 = arith.constant 0 : index
    %c0_450 = arith.constant 0 : index
    %814 = vector.load %arg15[%c0_449, %c0_450] : memref<8x32xf32, #tpu.memory_space<vmem>>, vector<8x32xf32>
    %815 = arith.truncf %814 : vector<8x32xf32> to vector<8x32xbf16>
    %c0_451 = arith.constant 0 : index
    %c256_452 = arith.constant 256 : index
    %816 = vector.load %arg21[%c0_451, %c256_452] : memref<8x288xbf16, #tpu.memory_space<vmem>>, vector<8x32xbf16>
    tpu.vector_store %arg21[%c0_451, %c256_452], %815 {strides = array<i32>} : memref<8x288xbf16, #tpu.memory_space<vmem>>, vector<8x32xbf16>,
    %c0_453 = arith.constant 0 : index
    %c0_454 = arith.constant 0 : index
    %817 = vector.load %arg21[%c0_453, %c0_454] : memref<8x288xbf16, #tpu.memory_space<vmem>>, vector<8x288xbf16>
    %cst_455 = arith.constant dense<0.000000e+00> : vector<8x128xf32>
    %818 = tpu.matmul %817, %16, %cst_455 {dimension_numbers = #tpu.dot_dimension_numbers<[1], [0], [0], [1], [0, 0, 1, 1], [], []>} : vector<8x288xbf16>, vector<288x128xbf16>, vector<8x128xf32> -> vector<8x128xf32>
    %819 = arith.addf %818, %22 : vector<8x128xf32>
    %c0_456 = arith.constant 0 : index
    %c0_457 = arith.constant 0 : index
    %820 = vector.load %arg16[%c0_456, %c0_457] : memref<8x32xf32, #tpu.memory_space<vmem>>, vector<8x32xf32>
    %821 = vector.extract_strided_slice %819 {offsets = [0, 0], sizes = [8, 32], strides = [1, 1]} : vector<8x128xf32> to vector<8x32xf32>
    %822 = arith.negf %821 : vector<8x32xf32>
    %823 = math.exp %822 : vector<8x32xf32>
    %cst_458 = arith.constant 1.000000e+00 : f32
    %824 = vector.broadcast %cst_458 : f32 to vector<8x32xf32>
    %825 = arith.addf %824, %823 : vector<8x32xf32>
    %826 = arith.divf %824, %825 : vector<8x32xf32>
    %827 = vector.extract_strided_slice %819 {offsets = [0, 32], sizes = [8, 32], strides = [1, 1]} : vector<8x128xf32> to vector<8x32xf32>
    %828 = arith.negf %827 : vector<8x32xf32>
    %829 = math.exp %828 : vector<8x32xf32>
    %cst_459 = arith.constant 1.000000e+00 : f32
    %830 = vector.broadcast %cst_459 : f32 to vector<8x32xf32>
    %831 = arith.addf %830, %829 : vector<8x32xf32>
    %832 = arith.divf %830, %831 : vector<8x32xf32>
    %833 = vector.extract_strided_slice %819 {offsets = [0, 64], sizes = [8, 32], strides = [1, 1]} : vector<8x128xf32> to vector<8x32xf32>
    %834 = math.tanh %833 : vector<8x32xf32>
    %835 = vector.extract_strided_slice %819 {offsets = [0, 96], sizes = [8, 32], strides = [1, 1]} : vector<8x128xf32> to vector<8x32xf32>
    %836 = arith.negf %835 : vector<8x32xf32>
    %837 = math.exp %836 : vector<8x32xf32>
    %cst_460 = arith.constant 1.000000e+00 : f32
    %838 = vector.broadcast %cst_460 : f32 to vector<8x32xf32>
    %839 = arith.addf %838, %837 : vector<8x32xf32>
    %840 = arith.divf %838, %839 : vector<8x32xf32>
    %841 = arith.mulf %832, %820 : vector<8x32xf32>
    %842 = arith.mulf %826, %834 : vector<8x32xf32>
    %843 = arith.addf %841, %842 : vector<8x32xf32>
    %844 = math.tanh %843 : vector<8x32xf32>
    %845 = arith.mulf %840, %844 : vector<8x32xf32>
    %846 = arith.truncf %845 : vector<8x32xf32> to vector<8x32xbf16>
    %c0_461 = arith.constant 0 : index
    %c0_462 = arith.constant 0 : index
    %847 = vector.load %arg22[%c0_461, %c0_462] : memref<8x64xbf16, #tpu.memory_space<vmem>>, vector<8x32xbf16>
    tpu.vector_store %arg22[%c0_461, %c0_462], %846 {strides = array<i32>} : memref<8x64xbf16, #tpu.memory_space<vmem>>, vector<8x32xbf16>,
    %c0_463 = arith.constant 0 : index
    %c0_464 = arith.constant 0 : index
    %848 = vector.load %arg17[%c0_463, %c0_464] : memref<8x32xf32, #tpu.memory_space<vmem>>, vector<8x32xf32>
    %849 = arith.truncf %848 : vector<8x32xf32> to vector<8x32xbf16>
    %c0_465 = arith.constant 0 : index
    %c32_466 = arith.constant 32 : index
    %850 = vector.load %arg22[%c0_465, %c32_466] : memref<8x64xbf16, #tpu.memory_space<vmem>>, vector<8x32xbf16>
    tpu.vector_store %arg22[%c0_465, %c32_466], %849 {strides = array<i32>} : memref<8x64xbf16, #tpu.memory_space<vmem>>, vector<8x32xbf16>,
    %c0_467 = arith.constant 0 : index
    %c0_468 = arith.constant 0 : index
    %851 = vector.load %arg22[%c0_467, %c0_468] : memref<8x64xbf16, #tpu.memory_space<vmem>>, vector<8x64xbf16>
    %cst_469 = arith.constant dense<0.000000e+00> : vector<8x128xf32>
    %852 = tpu.matmul %851, %17, %cst_469 {dimension_numbers = #tpu.dot_dimension_numbers<[1], [0], [0], [1], [0, 0, 1, 1], [], []>} : vector<8x64xbf16>, vector<64x128xbf16>, vector<8x128xf32> -> vector<8x128xf32>
    %853 = arith.addf %852, %25 : vector<8x128xf32>
    %c0_470 = arith.constant 0 : index
    %c0_471 = arith.constant 0 : index
    %854 = vector.load %arg18[%c0_470, %c0_471] : memref<8x32xf32, #tpu.memory_space<vmem>>, vector<8x32xf32>
    %855 = vector.extract_strided_slice %853 {offsets = [0, 0], sizes = [8, 32], strides = [1, 1]} : vector<8x128xf32> to vector<8x32xf32>
    %856 = arith.negf %855 : vector<8x32xf32>
    %857 = math.exp %856 : vector<8x32xf32>
    %cst_472 = arith.constant 1.000000e+00 : f32
    %858 = vector.broadcast %cst_472 : f32 to vector<8x32xf32>
    %859 = arith.addf %858, %857 : vector<8x32xf32>
    %860 = arith.divf %858, %859 : vector<8x32xf32>
    %861 = vector.extract_strided_slice %853 {offsets = [0, 32], sizes = [8, 32], strides = [1, 1]} : vector<8x128xf32> to vector<8x32xf32>
    %862 = arith.negf %861 : vector<8x32xf32>
    %863 = math.exp %862 : vector<8x32xf32>
    %cst_473 = arith.constant 1.000000e+00 : f32
    %864 = vector.broadcast %cst_473 : f32 to vector<8x32xf32>
    %865 = arith.addf %864, %863 : vector<8x32xf32>
    %866 = arith.divf %864, %865 : vector<8x32xf32>
    %867 = vector.extract_strided_slice %853 {offsets = [0, 64], sizes = [8, 32], strides = [1, 1]} : vector<8x128xf32> to vector<8x32xf32>
    %868 = math.tanh %867 : vector<8x32xf32>
    %869 = vector.extract_strided_slice %853 {offsets = [0, 96], sizes = [8, 32], strides = [1, 1]} : vector<8x128xf32> to vector<8x32xf32>
    %870 = arith.negf %869 : vector<8x32xf32>
    %871 = math.exp %870 : vector<8x32xf32>
    %cst_474 = arith.constant 1.000000e+00 : f32
    %872 = vector.broadcast %cst_474 : f32 to vector<8x32xf32>
    %873 = arith.addf %872, %871 : vector<8x32xf32>
    %874 = arith.divf %872, %873 : vector<8x32xf32>
    %875 = arith.mulf %866, %854 : vector<8x32xf32>
    %876 = arith.mulf %860, %868 : vector<8x32xf32>
    %877 = arith.addf %875, %876 : vector<8x32xf32>
    %878 = math.tanh %877 : vector<8x32xf32>
    %879 = arith.mulf %874, %878 : vector<8x32xf32>
    %880 = arith.truncf %879 : vector<8x32xf32> to vector<8x32xbf16>
    %cst_475 = arith.constant dense<0.000000e+00> : vector<8x128xf32>
    %881 = tpu.matmul %880, %18, %cst_475 {dimension_numbers = #tpu.dot_dimension_numbers<[1], [0], [0], [1], [0, 0, 1, 1], [], []>} : vector<8x32xbf16>, vector<32x128xbf16>, vector<8x128xf32> -> vector<8x128xf32>
    %882 = arith.addf %881, %28 : vector<8x128xf32>
    %883 = vector.shape_cast %882 : vector<8x128xf32> to vector<1x8x128xf32>
    %884 = vector.broadcast %883 : vector<1x8x128xf32> to vector<16x8x128xf32>
    %885 = arith.mulf %12, %884 : vector<16x8x128xf32>
    %cst_476 = arith.constant dense<0.000000e+00> : vector<16x8xf32>
    %886 = vector.multi_reduction <add>, %885, %cst_476 [2] : vector<16x8x128xf32> to vector<16x8xf32>
    %887 = tpu.transpose %886, [1, 0] : vector<16x8xf32> -> vector<8x16xf32>
    %888 = arith.addf %887, %10 : vector<8x16xf32>
    %cst_477 = arith.constant dense<0xFF800000> : vector<8xf32>
    %889 = vector.multi_reduction <maximumf>, %888, %cst_477 [1] : vector<8x16xf32> to vector<8xf32>
    %890 = vector.shape_cast %889 : vector<8xf32> to vector<8x1xf32>
    %891 = vector.broadcast %890 : vector<8x1xf32> to vector<8x16xf32>
    %892 = arith.subf %888, %891 : vector<8x16xf32>
    %893 = math.exp %892 : vector<8x16xf32>
    %cst_478 = arith.constant dense<0.000000e+00> : vector<8xf32>
    %894 = vector.multi_reduction <add>, %893, %cst_478 [1] : vector<8x16xf32> to vector<8xf32>
    %895 = vector.shape_cast %894 : vector<8xf32> to vector<8x1xf32>
    %896 = vector.broadcast %895 : vector<8x1xf32> to vector<8x16xf32>
    %897 = arith.divf %893, %896 : vector<8x16xf32>
    %898 = tpu.transpose %897, [1, 0] : vector<8x16xf32> -> vector<16x8xf32>
    %899 = vector.shape_cast %898 : vector<16x8xf32> to vector<16x8x1xf32>
    %900 = vector.broadcast %899 : vector<16x8x1xf32> to vector<16x8x128xf32>
    %901 = arith.mulf %900, %14 : vector<16x8x128xf32>
    %cst_479 = arith.constant dense<0.000000e+00> : vector<8x128xf32>
    %902 = vector.multi_reduction <add>, %901, %cst_479 [0] : vector<16x8x128xf32> to vector<8x128xf32>
    %903 = arith.truncf %882 : vector<8x128xf32> to vector<8x128xbf16>
    %c0_480 = arith.constant 0 : index
    %c0_481 = arith.constant 0 : index
    %904 = vector.load %arg23[%c0_480, %c0_481] : memref<8x256xbf16, #tpu.memory_space<vmem>>, vector<8x128xbf16>
    tpu.vector_store %arg23[%c0_480, %c0_481], %903 {strides = array<i32>} : memref<8x256xbf16, #tpu.memory_space<vmem>>, vector<8x128xbf16>,
    %905 = arith.truncf %902 : vector<8x128xf32> to vector<8x128xbf16>
    %c0_482 = arith.constant 0 : index
    %c128_483 = arith.constant 128 : index
    %906 = vector.load %arg23[%c0_482, %c128_483] : memref<8x256xbf16, #tpu.memory_space<vmem>>, vector<8x128xbf16>
    tpu.vector_store %arg23[%c0_482, %c128_483], %905 {strides = array<i32>} : memref<8x256xbf16, #tpu.memory_space<vmem>>, vector<8x128xbf16>,
    %c0_484 = arith.constant 0 : index
    %c0_485 = arith.constant 0 : index
    %907 = vector.load %arg23[%c0_484, %c0_485] : memref<8x256xbf16, #tpu.memory_space<vmem>>, vector<8x256xbf16>
    %cst_486 = arith.constant dense<0.000000e+00> : vector<8x128xf32>
    %908 = tpu.matmul %907, %19, %cst_486 {dimension_numbers = #tpu.dot_dimension_numbers<[1], [0], [0], [1], [0, 0, 1, 1], [], []>} : vector<8x256xbf16>, vector<256x128xbf16>, vector<8x128xf32> -> vector<8x128xf32>
    %909 = arith.addf %908, %31 : vector<8x128xf32>
    %c6 = arith.constant 6 : index
    %c0_487 = arith.constant 0 : index
    %c0_488 = arith.constant 0 : index
    %910 = vector.load %arg13[%c6, %c0_487, %c0_488] : memref<8x8x128xf32, #tpu.memory_space<vmem>>, vector<1x8x128xf32>
    %911 = vector.shape_cast %910 : vector<1x8x128xf32> to vector<8x128xf32>
    %912 = vector.shape_cast %909 : vector<8x128xf32> to vector<1x8x128xf32>
    tpu.vector_store %arg13[%c6, %c0_487, %c0_488], %912 {strides = array<i32>} : memref<8x8x128xf32, #tpu.memory_space<vmem>>, vector<1x8x128xf32>,
    %c6_489 = arith.constant 6 : index
    %c0_490 = arith.constant 0 : index
    %c0_491 = arith.constant 0 : index
    %913 = vector.load %arg14[%c6_489, %c0_490, %c0_491] : memref<8x8x16xf32, #tpu.memory_space<vmem>>, vector<1x8x16xf32>
    %914 = vector.shape_cast %913 : vector<1x8x16xf32> to vector<8x16xf32>
    %915 = vector.shape_cast %897 : vector<8x16xf32> to vector<1x8x16xf32>
    tpu.vector_store %arg14[%c6_489, %c0_490, %c0_491], %915 {strides = array<i32>} : memref<8x8x16xf32, #tpu.memory_space<vmem>>, vector<1x8x16xf32>,
    %cst_492 = arith.constant dense<0xFF800000> : vector<8xf32>
    %916 = vector.multi_reduction <maximumf>, %909, %cst_492 [1] : vector<8x128xf32> to vector<8xf32>
    %917 = vector.shape_cast %916 : vector<8xf32> to vector<8x1xf32>
    %918 = vector.broadcast %917 : vector<8x1xf32> to vector<8x128xf32>
    %919 = arith.cmpf oge, %909, %918 : vector<8x128xf32>
    %c128_i32_493 = arith.constant 128 : i32
    %920 = vector.broadcast %c128_i32_493 : i32 to vector<8x128xi32>
    %921 = arith.select %919, %32, %920 : vector<8x128xi1>, vector<8x128xi32>
    %cst_494 = arith.constant dense<2147483647> : vector<8xi32>
    %922 = vector.multi_reduction <minsi>, %921, %cst_494 [1] : vector<8x128xi32> to vector<8xi32>
    %923 = vector.shape_cast %922 : vector<8xi32> to vector<8x1xi32>
    %924 = vector.broadcast %923 : vector<8x1xi32> to vector<8x128xi32>
    %925 = arith.cmpi eq, %32, %924 : vector<8x128xi32>
    %926 = arith.extui %925 : vector<8x128xi1> to vector<8x128xi32>
    %927 = arith.sitofp %926 : vector<8x128xi32> to vector<8x128xf32>
    %928 = arith.truncf %927 : vector<8x128xf32> to vector<8x128xbf16>
    %c0_495 = arith.constant 0 : index
    %c0_496 = arith.constant 0 : index
    %929 = vector.load %arg20[%c0_495, %c0_496] : memref<8x128xbf16, #tpu.memory_space<vmem>>, vector<8x128xbf16>
    tpu.vector_store %arg20[%c0_495, %c0_496], %928 {strides = array<i32>} : memref<8x128xbf16, #tpu.memory_space<vmem>>, vector<8x128xbf16>,
    %c0_497 = arith.constant 0 : index
    %c0_498 = arith.constant 0 : index
    %930 = vector.load %arg15[%c0_497, %c0_498] : memref<8x32xf32, #tpu.memory_space<vmem>>, vector<8x32xf32>
    tpu.vector_store %arg15[%c0_497, %c0_498], %845 {strides = array<i32>} : memref<8x32xf32, #tpu.memory_space<vmem>>, vector<8x32xf32>,
    %c0_499 = arith.constant 0 : index
    %c0_500 = arith.constant 0 : index
    %931 = vector.load %arg16[%c0_499, %c0_500] : memref<8x32xf32, #tpu.memory_space<vmem>>, vector<8x32xf32>
    tpu.vector_store %arg16[%c0_499, %c0_500], %843 {strides = array<i32>} : memref<8x32xf32, #tpu.memory_space<vmem>>, vector<8x32xf32>,
    %c0_501 = arith.constant 0 : index
    %c0_502 = arith.constant 0 : index
    %932 = vector.load %arg17[%c0_501, %c0_502] : memref<8x32xf32, #tpu.memory_space<vmem>>, vector<8x32xf32>
    tpu.vector_store %arg17[%c0_501, %c0_502], %879 {strides = array<i32>} : memref<8x32xf32, #tpu.memory_space<vmem>>, vector<8x32xf32>,
    %c0_503 = arith.constant 0 : index
    %c0_504 = arith.constant 0 : index
    %933 = vector.load %arg18[%c0_503, %c0_504] : memref<8x32xf32, #tpu.memory_space<vmem>>, vector<8x32xf32>
    tpu.vector_store %arg18[%c0_503, %c0_504], %877 {strides = array<i32>} : memref<8x32xf32, #tpu.memory_space<vmem>>, vector<8x32xf32>,
    %c0_505 = arith.constant 0 : index
    %c0_506 = arith.constant 0 : index
    %934 = vector.load %arg19[%c0_505, %c0_506] : memref<8x128xf32, #tpu.memory_space<vmem>>, vector<8x128xf32>
    tpu.vector_store %arg19[%c0_505, %c0_506], %902 {strides = array<i32>} : memref<8x128xf32, #tpu.memory_space<vmem>>, vector<8x128xf32>,
    %c0_507 = arith.constant 0 : index
    %c0_508 = arith.constant 0 : index
    %935 = vector.load %arg20[%c0_507, %c0_508] : memref<8x128xbf16, #tpu.memory_space<vmem>>, vector<8x128xbf16>
    %cst_509 = arith.constant dense<0.000000e+00> : vector<8x128xf32>
    %936 = tpu.matmul %935, %15, %cst_509 {dimension_numbers = #tpu.dot_dimension_numbers<[1], [0], [0], [1], [0, 0, 1, 1], [], []>} : vector<8x128xbf16>, vector<128x128xbf16>, vector<8x128xf32> -> vector<8x128xf32>
    %937 = arith.truncf %936 : vector<8x128xf32> to vector<8x128xbf16>
    %c0_510 = arith.constant 0 : index
    %c0_511 = arith.constant 0 : index
    %938 = vector.load %arg21[%c0_510, %c0_511] : memref<8x288xbf16, #tpu.memory_space<vmem>>, vector<8x128xbf16>
    tpu.vector_store %arg21[%c0_510, %c0_511], %937 {strides = array<i32>} : memref<8x288xbf16, #tpu.memory_space<vmem>>, vector<8x128xbf16>,
    %c0_512 = arith.constant 0 : index
    %c0_513 = arith.constant 0 : index
    %939 = vector.load %arg19[%c0_512, %c0_513] : memref<8x128xf32, #tpu.memory_space<vmem>>, vector<8x128xf32>
    %940 = arith.truncf %939 : vector<8x128xf32> to vector<8x128xbf16>
    %c0_514 = arith.constant 0 : index
    %c128_515 = arith.constant 128 : index
    %941 = vector.load %arg21[%c0_514, %c128_515] : memref<8x288xbf16, #tpu.memory_space<vmem>>, vector<8x128xbf16>
    tpu.vector_store %arg21[%c0_514, %c128_515], %940 {strides = array<i32>} : memref<8x288xbf16, #tpu.memory_space<vmem>>, vector<8x128xbf16>,
    %c0_516 = arith.constant 0 : index
    %c0_517 = arith.constant 0 : index
    %942 = vector.load %arg15[%c0_516, %c0_517] : memref<8x32xf32, #tpu.memory_space<vmem>>, vector<8x32xf32>
    %943 = arith.truncf %942 : vector<8x32xf32> to vector<8x32xbf16>
    %c0_518 = arith.constant 0 : index
    %c256_519 = arith.constant 256 : index
    %944 = vector.load %arg21[%c0_518, %c256_519] : memref<8x288xbf16, #tpu.memory_space<vmem>>, vector<8x32xbf16>
    tpu.vector_store %arg21[%c0_518, %c256_519], %943 {strides = array<i32>} : memref<8x288xbf16, #tpu.memory_space<vmem>>, vector<8x32xbf16>,
    %c0_520 = arith.constant 0 : index
    %c0_521 = arith.constant 0 : index
    %945 = vector.load %arg21[%c0_520, %c0_521] : memref<8x288xbf16, #tpu.memory_space<vmem>>, vector<8x288xbf16>
    %cst_522 = arith.constant dense<0.000000e+00> : vector<8x128xf32>
    %946 = tpu.matmul %945, %16, %cst_522 {dimension_numbers = #tpu.dot_dimension_numbers<[1], [0], [0], [1], [0, 0, 1, 1], [], []>} : vector<8x288xbf16>, vector<288x128xbf16>, vector<8x128xf32> -> vector<8x128xf32>
    %947 = arith.addf %946, %22 : vector<8x128xf32>
    %c0_523 = arith.constant 0 : index
    %c0_524 = arith.constant 0 : index
    %948 = vector.load %arg16[%c0_523, %c0_524] : memref<8x32xf32, #tpu.memory_space<vmem>>, vector<8x32xf32>
    %949 = vector.extract_strided_slice %947 {offsets = [0, 0], sizes = [8, 32], strides = [1, 1]} : vector<8x128xf32> to vector<8x32xf32>
    %950 = arith.negf %949 : vector<8x32xf32>
    %951 = math.exp %950 : vector<8x32xf32>
    %cst_525 = arith.constant 1.000000e+00 : f32
    %952 = vector.broadcast %cst_525 : f32 to vector<8x32xf32>
    %953 = arith.addf %952, %951 : vector<8x32xf32>
    %954 = arith.divf %952, %953 : vector<8x32xf32>
    %955 = vector.extract_strided_slice %947 {offsets = [0, 32], sizes = [8, 32], strides = [1, 1]} : vector<8x128xf32> to vector<8x32xf32>
    %956 = arith.negf %955 : vector<8x32xf32>
    %957 = math.exp %956 : vector<8x32xf32>
    %cst_526 = arith.constant 1.000000e+00 : f32
    %958 = vector.broadcast %cst_526 : f32 to vector<8x32xf32>
    %959 = arith.addf %958, %957 : vector<8x32xf32>
    %960 = arith.divf %958, %959 : vector<8x32xf32>
    %961 = vector.extract_strided_slice %947 {offsets = [0, 64], sizes = [8, 32], strides = [1, 1]} : vector<8x128xf32> to vector<8x32xf32>
    %962 = math.tanh %961 : vector<8x32xf32>
    %963 = vector.extract_strided_slice %947 {offsets = [0, 96], sizes = [8, 32], strides = [1, 1]} : vector<8x128xf32> to vector<8x32xf32>
    %964 = arith.negf %963 : vector<8x32xf32>
    %965 = math.exp %964 : vector<8x32xf32>
    %cst_527 = arith.constant 1.000000e+00 : f32
    %966 = vector.broadcast %cst_527 : f32 to vector<8x32xf32>
    %967 = arith.addf %966, %965 : vector<8x32xf32>
    %968 = arith.divf %966, %967 : vector<8x32xf32>
    %969 = arith.mulf %960, %948 : vector<8x32xf32>
    %970 = arith.mulf %954, %962 : vector<8x32xf32>
    %971 = arith.addf %969, %970 : vector<8x32xf32>
    %972 = math.tanh %971 : vector<8x32xf32>
    %973 = arith.mulf %968, %972 : vector<8x32xf32>
    %974 = arith.truncf %973 : vector<8x32xf32> to vector<8x32xbf16>
    %c0_528 = arith.constant 0 : index
    %c0_529 = arith.constant 0 : index
    %975 = vector.load %arg22[%c0_528, %c0_529] : memref<8x64xbf16, #tpu.memory_space<vmem>>, vector<8x32xbf16>
    tpu.vector_store %arg22[%c0_528, %c0_529], %974 {strides = array<i32>} : memref<8x64xbf16, #tpu.memory_space<vmem>>, vector<8x32xbf16>,
    %c0_530 = arith.constant 0 : index
    %c0_531 = arith.constant 0 : index
    %976 = vector.load %arg17[%c0_530, %c0_531] : memref<8x32xf32, #tpu.memory_space<vmem>>, vector<8x32xf32>
    %977 = arith.truncf %976 : vector<8x32xf32> to vector<8x32xbf16>
    %c0_532 = arith.constant 0 : index
    %c32_533 = arith.constant 32 : index
    %978 = vector.load %arg22[%c0_532, %c32_533] : memref<8x64xbf16, #tpu.memory_space<vmem>>, vector<8x32xbf16>
    tpu.vector_store %arg22[%c0_532, %c32_533], %977 {strides = array<i32>} : memref<8x64xbf16, #tpu.memory_space<vmem>>, vector<8x32xbf16>,
    %c0_534 = arith.constant 0 : index
    %c0_535 = arith.constant 0 : index
    %979 = vector.load %arg22[%c0_534, %c0_535] : memref<8x64xbf16, #tpu.memory_space<vmem>>, vector<8x64xbf16>
    %cst_536 = arith.constant dense<0.000000e+00> : vector<8x128xf32>
    %980 = tpu.matmul %979, %17, %cst_536 {dimension_numbers = #tpu.dot_dimension_numbers<[1], [0], [0], [1], [0, 0, 1, 1], [], []>} : vector<8x64xbf16>, vector<64x128xbf16>, vector<8x128xf32> -> vector<8x128xf32>
    %981 = arith.addf %980, %25 : vector<8x128xf32>
    %c0_537 = arith.constant 0 : index
    %c0_538 = arith.constant 0 : index
    %982 = vector.load %arg18[%c0_537, %c0_538] : memref<8x32xf32, #tpu.memory_space<vmem>>, vector<8x32xf32>
    %983 = vector.extract_strided_slice %981 {offsets = [0, 0], sizes = [8, 32], strides = [1, 1]} : vector<8x128xf32> to vector<8x32xf32>
    %984 = arith.negf %983 : vector<8x32xf32>
    %985 = math.exp %984 : vector<8x32xf32>
    %cst_539 = arith.constant 1.000000e+00 : f32
    %986 = vector.broadcast %cst_539 : f32 to vector<8x32xf32>
    %987 = arith.addf %986, %985 : vector<8x32xf32>
    %988 = arith.divf %986, %987 : vector<8x32xf32>
    %989 = vector.extract_strided_slice %981 {offsets = [0, 32], sizes = [8, 32], strides = [1, 1]} : vector<8x128xf32> to vector<8x32xf32>
    %990 = arith.negf %989 : vector<8x32xf32>
    %991 = math.exp %990 : vector<8x32xf32>
    %cst_540 = arith.constant 1.000000e+00 : f32
    %992 = vector.broadcast %cst_540 : f32 to vector<8x32xf32>
    %993 = arith.addf %992, %991 : vector<8x32xf32>
    %994 = arith.divf %992, %993 : vector<8x32xf32>
    %995 = vector.extract_strided_slice %981 {offsets = [0, 64], sizes = [8, 32], strides = [1, 1]} : vector<8x128xf32> to vector<8x32xf32>
    %996 = math.tanh %995 : vector<8x32xf32>
    %997 = vector.extract_strided_slice %981 {offsets = [0, 96], sizes = [8, 32], strides = [1, 1]} : vector<8x128xf32> to vector<8x32xf32>
    %998 = arith.negf %997 : vector<8x32xf32>
    %999 = math.exp %998 : vector<8x32xf32>
    %cst_541 = arith.constant 1.000000e+00 : f32
    %1000 = vector.broadcast %cst_541 : f32 to vector<8x32xf32>
    %1001 = arith.addf %1000, %999 : vector<8x32xf32>
    %1002 = arith.divf %1000, %1001 : vector<8x32xf32>
    %1003 = arith.mulf %994, %982 : vector<8x32xf32>
    %1004 = arith.mulf %988, %996 : vector<8x32xf32>
    %1005 = arith.addf %1003, %1004 : vector<8x32xf32>
    %1006 = math.tanh %1005 : vector<8x32xf32>
    %1007 = arith.mulf %1002, %1006 : vector<8x32xf32>
    %1008 = arith.truncf %1007 : vector<8x32xf32> to vector<8x32xbf16>
    %cst_542 = arith.constant dense<0.000000e+00> : vector<8x128xf32>
    %1009 = tpu.matmul %1008, %18, %cst_542 {dimension_numbers = #tpu.dot_dimension_numbers<[1], [0], [0], [1], [0, 0, 1, 1], [], []>} : vector<8x32xbf16>, vector<32x128xbf16>, vector<8x128xf32> -> vector<8x128xf32>
    %1010 = arith.addf %1009, %28 : vector<8x128xf32>
    %1011 = vector.shape_cast %1010 : vector<8x128xf32> to vector<1x8x128xf32>
    %1012 = vector.broadcast %1011 : vector<1x8x128xf32> to vector<16x8x128xf32>
    %1013 = arith.mulf %12, %1012 : vector<16x8x128xf32>
    %cst_543 = arith.constant dense<0.000000e+00> : vector<16x8xf32>
    %1014 = vector.multi_reduction <add>, %1013, %cst_543 [2] : vector<16x8x128xf32> to vector<16x8xf32>
    %1015 = tpu.transpose %1014, [1, 0] : vector<16x8xf32> -> vector<8x16xf32>
    %1016 = arith.addf %1015, %10 : vector<8x16xf32>
    %cst_544 = arith.constant dense<0xFF800000> : vector<8xf32>
    %1017 = vector.multi_reduction <maximumf>, %1016, %cst_544 [1] : vector<8x16xf32> to vector<8xf32>
    %1018 = vector.shape_cast %1017 : vector<8xf32> to vector<8x1xf32>
    %1019 = vector.broadcast %1018 : vector<8x1xf32> to vector<8x16xf32>
    %1020 = arith.subf %1016, %1019 : vector<8x16xf32>
    %1021 = math.exp %1020 : vector<8x16xf32>
    %cst_545 = arith.constant dense<0.000000e+00> : vector<8xf32>
    %1022 = vector.multi_reduction <add>, %1021, %cst_545 [1] : vector<8x16xf32> to vector<8xf32>
    %1023 = vector.shape_cast %1022 : vector<8xf32> to vector<8x1xf32>
    %1024 = vector.broadcast %1023 : vector<8x1xf32> to vector<8x16xf32>
    %1025 = arith.divf %1021, %1024 : vector<8x16xf32>
    %1026 = tpu.transpose %1025, [1, 0] : vector<8x16xf32> -> vector<16x8xf32>
    %1027 = vector.shape_cast %1026 : vector<16x8xf32> to vector<16x8x1xf32>
    %1028 = vector.broadcast %1027 : vector<16x8x1xf32> to vector<16x8x128xf32>
    %1029 = arith.mulf %1028, %14 : vector<16x8x128xf32>
    %cst_546 = arith.constant dense<0.000000e+00> : vector<8x128xf32>
    %1030 = vector.multi_reduction <add>, %1029, %cst_546 [0] : vector<16x8x128xf32> to vector<8x128xf32>
    %1031 = arith.truncf %1010 : vector<8x128xf32> to vector<8x128xbf16>
    %c0_547 = arith.constant 0 : index
    %c0_548 = arith.constant 0 : index
    %1032 = vector.load %arg23[%c0_547, %c0_548] : memref<8x256xbf16, #tpu.memory_space<vmem>>, vector<8x128xbf16>
    tpu.vector_store %arg23[%c0_547, %c0_548], %1031 {strides = array<i32>} : memref<8x256xbf16, #tpu.memory_space<vmem>>, vector<8x128xbf16>,
    %1033 = arith.truncf %1030 : vector<8x128xf32> to vector<8x128xbf16>
    %c0_549 = arith.constant 0 : index
    %c128_550 = arith.constant 128 : index
    %1034 = vector.load %arg23[%c0_549, %c128_550] : memref<8x256xbf16, #tpu.memory_space<vmem>>, vector<8x128xbf16>
    tpu.vector_store %arg23[%c0_549, %c128_550], %1033 {strides = array<i32>} : memref<8x256xbf16, #tpu.memory_space<vmem>>, vector<8x128xbf16>,
    %c0_551 = arith.constant 0 : index
    %c0_552 = arith.constant 0 : index
    %1035 = vector.load %arg23[%c0_551, %c0_552] : memref<8x256xbf16, #tpu.memory_space<vmem>>, vector<8x256xbf16>
    %cst_553 = arith.constant dense<0.000000e+00> : vector<8x128xf32>
    %1036 = tpu.matmul %1035, %19, %cst_553 {dimension_numbers = #tpu.dot_dimension_numbers<[1], [0], [0], [1], [0, 0, 1, 1], [], []>} : vector<8x256xbf16>, vector<256x128xbf16>, vector<8x128xf32> -> vector<8x128xf32>
    %1037 = arith.addf %1036, %31 : vector<8x128xf32>
    %c7 = arith.constant 7 : index
    %c0_554 = arith.constant 0 : index
    %c0_555 = arith.constant 0 : index
    %1038 = vector.load %arg13[%c7, %c0_554, %c0_555] : memref<8x8x128xf32, #tpu.memory_space<vmem>>, vector<1x8x128xf32>
    %1039 = vector.shape_cast %1038 : vector<1x8x128xf32> to vector<8x128xf32>
    %1040 = vector.shape_cast %1037 : vector<8x128xf32> to vector<1x8x128xf32>
    tpu.vector_store %arg13[%c7, %c0_554, %c0_555], %1040 {strides = array<i32>} : memref<8x8x128xf32, #tpu.memory_space<vmem>>, vector<1x8x128xf32>,
    %c7_556 = arith.constant 7 : index
    %c0_557 = arith.constant 0 : index
    %c0_558 = arith.constant 0 : index
    %1041 = vector.load %arg14[%c7_556, %c0_557, %c0_558] : memref<8x8x16xf32, #tpu.memory_space<vmem>>, vector<1x8x16xf32>
    %1042 = vector.shape_cast %1041 : vector<1x8x16xf32> to vector<8x16xf32>
    %1043 = vector.shape_cast %1025 : vector<8x16xf32> to vector<1x8x16xf32>
    tpu.vector_store %arg14[%c7_556, %c0_557, %c0_558], %1043 {strides = array<i32>} : memref<8x8x16xf32, #tpu.memory_space<vmem>>, vector<1x8x16xf32>,
    %cst_559 = arith.constant dense<0xFF800000> : vector<8xf32>
    %1044 = vector.multi_reduction <maximumf>, %1037, %cst_559 [1] : vector<8x128xf32> to vector<8xf32>
    %1045 = vector.shape_cast %1044 : vector<8xf32> to vector<8x1xf32>
    %1046 = vector.broadcast %1045 : vector<8x1xf32> to vector<8x128xf32>
    %1047 = arith.cmpf oge, %1037, %1046 : vector<8x128xf32>
    %c128_i32_560 = arith.constant 128 : i32
    %1048 = vector.broadcast %c128_i32_560 : i32 to vector<8x128xi32>
    %1049 = arith.select %1047, %32, %1048 : vector<8x128xi1>, vector<8x128xi32>
    %cst_561 = arith.constant dense<2147483647> : vector<8xi32>
    %1050 = vector.multi_reduction <minsi>, %1049, %cst_561 [1] : vector<8x128xi32> to vector<8xi32>
    %1051 = vector.shape_cast %1050 : vector<8xi32> to vector<8x1xi32>
    %1052 = vector.broadcast %1051 : vector<8x1xi32> to vector<8x128xi32>
    %1053 = arith.cmpi eq, %32, %1052 : vector<8x128xi32>
    %1054 = arith.extui %1053 : vector<8x128xi1> to vector<8x128xi32>
    %1055 = arith.sitofp %1054 : vector<8x128xi32> to vector<8x128xf32>
    %1056 = arith.truncf %1055 : vector<8x128xf32> to vector<8x128xbf16>
    %c0_562 = arith.constant 0 : index
    %c0_563 = arith.constant 0 : index
    %1057 = vector.load %arg20[%c0_562, %c0_563] : memref<8x128xbf16, #tpu.memory_space<vmem>>, vector<8x128xbf16>
    tpu.vector_store %arg20[%c0_562, %c0_563], %1056 {strides = array<i32>} : memref<8x128xbf16, #tpu.memory_space<vmem>>, vector<8x128xbf16>,
    %c0_564 = arith.constant 0 : index
    %c0_565 = arith.constant 0 : index
    %1058 = vector.load %arg15[%c0_564, %c0_565] : memref<8x32xf32, #tpu.memory_space<vmem>>, vector<8x32xf32>
    tpu.vector_store %arg15[%c0_564, %c0_565], %973 {strides = array<i32>} : memref<8x32xf32, #tpu.memory_space<vmem>>, vector<8x32xf32>,
    %c0_566 = arith.constant 0 : index
    %c0_567 = arith.constant 0 : index
    %1059 = vector.load %arg16[%c0_566, %c0_567] : memref<8x32xf32, #tpu.memory_space<vmem>>, vector<8x32xf32>
    tpu.vector_store %arg16[%c0_566, %c0_567], %971 {strides = array<i32>} : memref<8x32xf32, #tpu.memory_space<vmem>>, vector<8x32xf32>,
    %c0_568 = arith.constant 0 : index
    %c0_569 = arith.constant 0 : index
    %1060 = vector.load %arg17[%c0_568, %c0_569] : memref<8x32xf32, #tpu.memory_space<vmem>>, vector<8x32xf32>
    tpu.vector_store %arg17[%c0_568, %c0_569], %1007 {strides = array<i32>} : memref<8x32xf32, #tpu.memory_space<vmem>>, vector<8x32xf32>,
    %c0_570 = arith.constant 0 : index
    %c0_571 = arith.constant 0 : index
    %1061 = vector.load %arg18[%c0_570, %c0_571] : memref<8x32xf32, #tpu.memory_space<vmem>>, vector<8x32xf32>
    tpu.vector_store %arg18[%c0_570, %c0_571], %1005 {strides = array<i32>} : memref<8x32xf32, #tpu.memory_space<vmem>>, vector<8x32xf32>,
    %c0_572 = arith.constant 0 : index
    %c0_573 = arith.constant 0 : index
    %1062 = vector.load %arg19[%c0_572, %c0_573] : memref<8x128xf32, #tpu.memory_space<vmem>>, vector<8x128xf32>
    tpu.vector_store %arg19[%c0_572, %c0_573], %1030 {strides = array<i32>} : memref<8x128xf32, #tpu.memory_space<vmem>>, vector<8x128xf32>,
    return
  }
  func.func @transform_0(%arg0: i32) -> (i32, i32, i32) {
    %c0_i32 = arith.constant 0 : i32
    %c0_i32_0 = arith.constant 0 : i32
    %c0_i32_1 = arith.constant 0 : i32
    return %c0_i32, %arg0, %c0_i32_0 : i32, i32, i32
  }
  func.func @transform_1(%arg0: i32) -> (i32, i32, i32) {
    %c0_i32 = arith.constant 0 : i32
    %c0_i32_0 = arith.constant 0 : i32
    %c0_i32_1 = arith.constant 0 : i32
    return %c0_i32, %arg0, %c0_i32_0 : i32, i32, i32
  }
  func.func @transform_2(%arg0: i32) -> (i32, i32) {
    %c0_i32 = arith.constant 0 : i32
    %c0_i32_0 = arith.constant 0 : i32
    return %arg0, %c0_i32 : i32, i32
  }
  func.func @transform_3(%arg0: i32) -> (i32, i32) {
    %c0_i32 = arith.constant 0 : i32
    %c0_i32_0 = arith.constant 0 : i32
    %c0_i32_1 = arith.constant 0 : i32
    return %c0_i32, %c0_i32_0 : i32, i32
  }
  func.func @transform_4(%arg0: i32) -> (i32, i32) {
    %c0_i32 = arith.constant 0 : i32
    %c0_i32_0 = arith.constant 0 : i32
    %c0_i32_1 = arith.constant 0 : i32
    return %c0_i32, %c0_i32_0 : i32, i32
  }
  func.func @transform_5(%arg0: i32) -> (i32, i32) {
    %c0_i32 = arith.constant 0 : i32
    %c0_i32_0 = arith.constant 0 : i32
    %c0_i32_1 = arith.constant 0 : i32
    return %c0_i32, %c0_i32_0 : i32, i32
  }
  func.func @transform_6(%arg0: i32) -> (i32, i32) {
    %c0_i32 = arith.constant 0 : i32
    %c0_i32_0 = arith.constant 0 : i32
    %c0_i32_1 = arith.constant 0 : i32
    return %c0_i32, %c0_i32_0 : i32, i32
  }
  func.func @transform_7(%arg0: i32) -> (i32, i32) {
    %c0_i32 = arith.constant 0 : i32
    %c0_i32_0 = arith.constant 0 : i32
    %c0_i32_1 = arith.constant 0 : i32
    return %c0_i32, %c0_i32_0 : i32, i32
  }
  func.func @transform_8(%arg0: i32) -> (i32, i32) {
    %c0_i32 = arith.constant 0 : i32
    %c0_i32_0 = arith.constant 0 : i32
    %c0_i32_1 = arith.constant 0 : i32
    return %c0_i32, %c0_i32_0 : i32, i32
  }
  func.func @transform_9(%arg0: i32) -> (i32, i32) {
    %c0_i32 = arith.constant 0 : i32
    %c0_i32_0 = arith.constant 0 : i32
    %c0_i32_1 = arith.constant 0 : i32
    return %c0_i32, %c0_i32_0 : i32, i32
  }
  func.func @transform_10(%arg0: i32) -> (i32, i32) {
    %c0_i32 = arith.constant 0 : i32
    %c0_i32_0 = arith.constant 0 : i32
    %c0_i32_1 = arith.constant 0 : i32
    return %c0_i32, %c0_i32_0 : i32, i32
  }
  func.func @transform_11(%arg0: i32) -> (i32, i32) {
    %c0_i32 = arith.constant 0 : i32
    %c0_i32_0 = arith.constant 0 : i32
    %c0_i32_1 = arith.constant 0 : i32
    return %c0_i32, %c0_i32_0 : i32, i32
  }
  func.func @transform_12(%arg0: i32) -> (i32, i32, i32) {
    %c0_i32 = arith.constant 0 : i32
    %c0_i32_0 = arith.constant 0 : i32
    %c0_i32_1 = arith.constant 0 : i32
    return %c0_i32, %arg0, %c0_i32_0 : i32, i32, i32
  }
  func.func @transform_13(%arg0: i32) -> (i32, i32, i32) {
    %c0_i32 = arith.constant 0 : i32
    %c0_i32_0 = arith.constant 0 : i32
    %c0_i32_1 = arith.constant 0 : i32
    return %c0_i32, %arg0, %c0_i32_0 : i32, i32, i32
  }
}

</mosaic_0001>

<bundles_post_ra>
// kernel: asr_forward.2
= control target key start
LH: loop header
LB: loop body
LE: loop exit
PB: predicated region body
PF: predicated region fallthrough
CT: control target
= control target key end

     0   :  { %15 = vsyncpa [#allocation6], 0  ;;  %s2886_s0 = inlined_call_operand.vmem [shape: bf16[16,8,128], index: 0, kind: input, shape index: {}]   ;;  %s2887_s1 = inlined_call_operand.vmem [shape: bf16[128,128], index: 1, kind: input, shape index: {}]   ;;  %s2888_s2 = inlined_call_operand.hbm [shape: f32[1,128], index: 2, kind: input, shape index: {}]   ;;  %s2889_s3 = inlined_call_operand.hbm [shape: bf16[32,128], index: 3, kind: input, shape index: {}]   ;;  %s2890_s4 = inlined_call_operand.hbm [shape: bf16[32,128], index: 4, kind: input, shape index: {}]   ;;  %s2891_s5 = inlined_call_operand.hbm [shape: f32[1,128], index: 5, kind: input, shape index: {}]   ;;  %s2892_s6 = inlined_call_operand.hbm [shape: bf16[32,128], index: 6, kind: input, shape index: {}]   ;;  %s2893_s7 = inlined_call_operand.hbm [shape: f32[1,128], index: 7, kind: input, shape index: {}]   ;;  %s2894_s8 = inlined_call_operand.vmem [shape: bf16[16,8,128], index: 8, kind: output, shape index: {0}]   ;;  %s2895_s9 = inlined_call_operand.vmem [shape: bf16[16,8,128], index: 9, kind: output, shape index: {1}]  }
   0x1   :  { %16 = vsyncpa [#allocation8], 0 }
   0x2   :  { %17 = vsyncpa [#allocation11], 0 }
   0x3   :  { %18 = vsyncpa [#allocation14], 0  ;;  %s2550_s30 = smov 0   ;;  %s2552_s10 = smov 0  }
   0x4   :  { %s2554_s11 = smov 0  }
   0x5 LB: > { %s2486_s12 = smov [#allocation7]   ;;  %s1782_s14 = sadd.s32 4294967295, %s2484_s11   ;;  %s2484_s11 = sphi %s2554_s11, %s24_s11   ;;  %s2480_s10 = sphi %s2552_s10, %s2906_s10   ;;  %s2476_s30 = sphi %s2550_s30, %s2905_s30  }
   0x6   : > { %s298_s13 = sshll.u32 %s2486_s12, 4  ;;  %p1784_p0 = scmp.ge.s32.totalorder %s2484_s11, 1  ;;  %s299_s13 = int_to_ptr.vmem [resolvable:$true] %s298_s13 }
   0x7   : > { %p272_p1 = scmp.lt.s32.totalorder %s2484_s11, 3  ;;  %p2568_p2 = scmp.eq.s32.totalorder %s1782_s14, 0 }
   0x8   : > { %s2487_s17 = smov [#allocation10]   ;;  %s33_s20 = sadd.s32 1, %s2480_s10 }
   0x9   : > { %s2899_s15 = scalar_select %p2568_p2, 1, 0 }
   0xa   : > { %p2572_p3 = pnand %p1784_p0, %p272_p1  ;;  %s325_s18 = sshll.u32 %s2487_s17, 4  ;;  %s326_s18 = int_to_ptr.vmem [resolvable:$true] %s325_s18 }
   0xb   : > { %s2301_s22 = scalar_lea.vmem %s299_s13, 256  ;;  %p2309_p10 = scmp.lt.s32.totalorder %s299_s13, %s299_s13 }
   0xc   : > { %s2900_s16 = scalar_select %p2572_p3, 1, 0 }
   0xd   : > { %p2135_p4 = pneg %p2572_p3  ;;  %p2302_p7 = scmp.ne.s32.totalorder %s299_s13, %s2301_s22 }
   0xe   : > { %p2310_p11 = scmp.lt.s32.totalorder %s2301_s22, %s2301_s22 }
   0xf   : > { %p2580_p5 = pnand %p2568_p2, %p2135_p4 }
  0x10   : > { %p2311_p12 = por %p2310_p11, %p2309_p10 }
  0x11   : > { %p2587_p6 = pneg %p2580_p5 }
  0x13   : > { %p2304_p8 = pnand %p2302_p7, %p2587_p6 }
  0x15   : > { %p2305_p9 = pneg %p2304_p8 }
  0x17   : > { %p2312_p13 = pnand %p2311_p12, %p2305_p9 }
  0x19   : > { %2315 = shalt.err (!%p2312_p13)
}
  0x1a   : > { %s2488_s23 = smov 64   ;;  %s2489_s24 = smov 4  }
  0x1b   : > { %2141 = dma.hbm_to_vmem [thread:$0]  (!%p2580_p5), %s2889_s3, 256, %s299_s13, [#allocation8], %s2488_s23, %s2488_s23, %s2489_s24  }
  0x1c   : > { %s2327_s27 = scalar_lea.vmem %s326_s18, 16  ;;  %s2334_s28 = scalar_lea.vmem %s326_s18, 32 }
  0x1d   : > { %p2328_p0 = scmp.ne.s32.totalorder %s326_s18, %s2327_s27  ;;  %p2335_p7 = scmp.lt.s32.totalorder %s326_s18, %s326_s18 }
  0x1e   : > { %p2336_p8 = scmp.lt.s32.totalorder %s2334_s28, %s2327_s27 }
  0x1f   : > { %p2330_p1 = pnand %p2328_p0, %p2587_p6 }
  0x20   : > { %p2337_p9 = por %p2336_p8, %p2335_p7 }
  0x21   : > { %p2331_p4 = pneg %p2330_p1 }
  0x23   : > { %p2338_p10 = pnand %p2337_p9, %p2331_p4 }
  0x25   : > { %2341 = shalt.err (!%p2338_p10)
}
  0x26   : > { %2147 = dma.hbm_to_vmem [thread:$0]  (!%p2580_p5), %s2891_s5, 16, %s326_s18, [#allocation11]  }
  0x27   : > { %p34_p11 = scmp.ge.s32.totalorder %s33_s20, 2  ;;  %s2490_s13 = smov [#allocation5]  }
  0x28   : > { %s288_s14 = sshll.u32 %s2490_s13, 4  ;;  %s2491_s17 = smov [#allocation9]   ;;  %s289_s14 = int_to_ptr.vmem [resolvable:$true] %s288_s14 }
  0x29   : > { %s2908_s20 = smov (%p34_p11, %s33_s20), 0  ;;  %s311_s22 = sshll.u32 %s2491_s17, 4  ;;  %s312_s22 = int_to_ptr.vmem [resolvable:$true] %s311_s22 }
  0x2a   : > { %s2353_s25 = scalar_lea.vmem %s289_s14, 16  ;;  %s2360_s26 = scalar_lea.vmem %s289_s14, 32 }
  0x2b   : > { %p2354_p12 = scmp.ne.s32.totalorder %s289_s14, %s2353_s25  ;;  %p2361_p1 = scmp.lt.s32.totalorder %s289_s14, %s289_s14 }
  0x2c   : > { %p2362_p4 = scmp.lt.s32.totalorder %s2360_s26, %s2353_s25 }
  0x2d   : > { %p2356_p13 = pnand %p2354_p12, %p2587_p6 }
  0x2e   : > { %p2363_p7 = por %p2362_p4, %p2361_p1 }
  0x2f   : > { %p2357_p0 = pneg %p2356_p13 }
  0x31   : > { %p2364_p8 = pnand %p2363_p7, %p2357_p0 }
  0x33   : > { %2367 = shalt.err (!%p2364_p8)
}
  0x34   : > { %2138 = dma.hbm_to_vmem [thread:$0]  (!%p2580_p5), %s2888_s2, 16, %s289_s14, [#allocation6]  }
  0x35   : > { %s2379_s28 = scalar_lea.vmem %s312_s22, 256  ;;  %p2387_p12 = scmp.lt.s32.totalorder %s312_s22, %s312_s22 }
  0x36   : > { %p2380_p9 = scmp.ne.s32.totalorder %s312_s22, %s2379_s28  ;;  %p2388_p13 = scmp.lt.s32.totalorder %s2379_s28, %s2379_s28 }
  0x38   : > { %p2382_p10 = pnand %p2380_p9, %p2587_p6  ;;  %p2389_p2 = por %p2388_p13, %p2387_p12 }
  0x3a   : > { %p2383_p11 = pneg %p2382_p10 }
  0x3c   : > { %p2390_p3 = pnand %p2389_p2, %p2383_p11 }
  0x3e   : > { %2393 = shalt.err (!%p2390_p3)
}
  0x3f   : > { %2144 = dma.hbm_to_vmem [thread:$0]  (!%p2580_p5), %s2890_s4, 256, %s312_s22, [#allocation8], %s2488_s23, %s2488_s23, %s2489_s24  }
  0x40   : > { %s2492_s13 = smov [#allocation12]   ;;  %s2493_s17 = smov [#allocation13]  }
  0x41   : > { %s335_s14 = sshll.u32 %s2492_s13, 4  ;;  %s349_s25 = sshll.u32 %s2493_s17, 4  ;;  %s336_s14 = int_to_ptr.vmem [resolvable:$true] %s335_s14  ;;  %s350_s25 = int_to_ptr.vmem [resolvable:$true] %s349_s25 }
  0x42   : > { %s2405_s26 = scalar_lea.vmem %s336_s14, 256  ;;  %p2413_p1 = scmp.lt.s32.totalorder %s336_s14, %s336_s14 }
  0x43   : > { %p2406_p0 = scmp.ne.s32.totalorder %s336_s14, %s2405_s26  ;;  %p2414_p4 = scmp.lt.s32.totalorder %s2405_s26, %s2405_s26 }
  0x45   : > { %p2408_p2 = pnand %p2406_p0, %p2587_p6  ;;  %p2415_p7 = por %p2414_p4, %p2413_p1 }
  0x47   : > { %p2409_p3 = pneg %p2408_p2 }
  0x49   : > { %p2416_p8 = pnand %p2415_p7, %p2409_p3 }
  0x4b   : > { %2419 = shalt.err (!%p2416_p8)
}
  0x4c   : > { %2150 = dma.hbm_to_vmem [thread:$0]  (!%p2580_p5), %s2892_s6, 256, %s336_s14, [#allocation11], %s2488_s23, %s2488_s23, %s2489_s24  }
  0x4d   : > { %s2431_s27 = scalar_lea.vmem %s350_s25, 16  ;;  %s2438_s28 = scalar_lea.vmem %s350_s25, 32 }
  0x4e   : > { %p2432_p9 = scmp.ne.s32.totalorder %s350_s25, %s2431_s27  ;;  %p2439_p12 = scmp.lt.s32.totalorder %s350_s25, %s350_s25 }
  0x4f   : > { %p2440_p13 = scmp.lt.s32.totalorder %s2438_s28, %s2431_s27 }
  0x50   : > { %p2434_p10 = pnand %p2432_p9, %p2587_p6 }
  0x51   : > { %p2441_p0 = por %p2440_p13, %p2439_p12 }
  0x52   : > { %p2435_p11 = pneg %p2434_p10 }
  0x54   : > { %p2442_p2 = pnand %p2441_p0, %p2435_p11 }
  0x56   : > { %2445 = shalt.err (!%p2442_p2)
}
  0x57   : > { %2153 = dma.hbm_to_vmem [thread:$0]  (!%p2580_p5), %s2893_s7, 16, %s350_s25, [#allocation14]  }
  0x58   : > { %p2903_p3 = scmp.ne.s32.totalorder %s2900_s16, 0 }
  0x59   : > { %p2904_p1 = scmp.ne.s32.totalorder (!%p2903_p3), %s2899_s15, 0 }
  0x5a   : > { %374 = sbr.rel (%p2903_p3) target bundleno = 5888 (0x1700), region = 52 }
  0x5f   : > { %2459 = dma.done.wait (%p2904_p1), [#allocation6], 16  }
  0x60   : > { %2461 = vsyncadd (%p2904_p1), [#allocation6], 4294967280 }
  0x61   : > { %2463 = dma.done.wait (%p2904_p1), [#allocation8], 512  }
  0x62   : > { %2465 = vsyncadd (%p2904_p1), [#allocation8], 4294966784 }
  0x63   : > { %2467 = dma.done.wait (%p2904_p1), [#allocation11], 272  }
  0x64   : > { %2469 = vsyncadd (%p2904_p1), [#allocation11], 4294967024 }
  0x65   : > { %2471 = dma.done.wait (%p2904_p1), [#allocation14], 16  }
  0x66   : > { %2473 = vsyncadd (%p2904_p1), [#allocation14], 4294967280  ;;  %s1799_s16 = sshll.u32 %s2476_s30, 3  ;;  %p1805_p6 = scmp.ne.s32.totalorder %s2476_s30, 0 }
  0x67   : > { %p445_p5 = scmp.lt.s32.totalorder %s1799_s16, 15 }
  0x68   : > { %475 = sbr.rel (%p1805_p6) target bundleno = 111 (0x6f), region = 80 }
  0x69   : > { %s2910_s16 = smov (!%p445_p5, %s1799_s16), 15 }
  0x6a   : > { %s1800_s19 = sshll.u32 %s2910_s16, 2 }
  0x6b   : > { %s2666_s24 = scalar_lea.vmem %s2886_s0, %s1800_s19  ;;  %s2671_s17 = scalar_lea.vmem %s2894_s8, %s1800_s19 }
  0x6c   : > { %s2676_s15 = scalar_lea.vmem %s2895_s9, %s1800_s19 }
  0x6d   : > { %vm476_vm0 = vcmask 261120   ;;  %v2494_v0 = vmov 0.0  }
  0x6e   : > { %477 = vst.msk [vmem:[#allocation2] sm:$0xff] %vm476_vm0, %v2494_v0  ;;  %478 = vst.msk [vmem:[#allocation3] sm:$0xff] %vm476_vm0, %v2494_v0 }
  0x6f PF: > { %v2204_v1 = vld [vmem:[%s2887_s1 + $0x38] sm:$0xff]   ;;  %v2205_v2 = vld [vmem:[%s2887_s1 + $0x30] sm:$0xff]   ;;  %v2495_v3 = vmov 0.0   ;;  %vm2496_vm1 = vmmov 0   ;;  %v2206_v4 = vld [vmem:[%s2887_s1 + $0x28] sm:$0xff]   ;;  %vm666_vm2 = vcmask 261120  }
  0x70   : > { %2023 = vmatprep.subr.bf16.mxu1 %v2495_v3  ;;  %1999 = vmatprep.subr.bf16.mxu0 %v2204_v1  ;;  %v2691_v5 = vld [vmem:[#allocation7 + $0x8] sm:$0xff]   ;;  %v2697_v7 = vld [vmem:[#allocation7] sm:$0xff]   ;;  %v2211_v13 = vld [vmem:[%s2887_s1 + $0x8] sm:$0xff]   ;;  %s2497_s18 = smov 64   ;;  %s2498_s27 = smov 32   ;;  %vm746_vm3 = vcmask 257024  }
  0x71   : > { %2027 = vmatprep.mubr.msk.bf16.mxu1 %vm2496_vm1, %v2495_v3  ;;  %2000 = vmatpush3.bf16.msra.mxu0 %v2204_v1  ;;  %v2207_v6 = vld [vmem:[%s2887_s1 + $0x20] sm:$0xff]   ;;  %v2208_v11 = vld [vmem:[%s2887_s1 + $0x18] sm:$0xff]   ;;  %v2209_v12 = vld [vmem:[%s2887_s1 + $0x10] sm:$0xff]  }
  0x72   : > { %2001 = vmatprep.subr.bf16.mxu0 %v2205_v2  ;;  %2024 = vmatpush3.bf16.msra.mxu1 %v2691_v5  ;;  %v2214_v10 = vld [vmem:[%s2666_s24] sm:$0xff]   ;;  %v2215_v15 = vld [vmem:[%s2666_s24 + $0x8] sm:$0xff]   ;;  %v2730_v21 = vld [vmem:[#allocation5] ss:$0 sm:$0xff] }
  0x73   : > { %2025 = vmatprep.subr.bf16.mxu1 %v2495_v3  ;;  %2015 = vmatprep.mubr.bf16.mxu0 %v2214_v10  ;;  %v2213_v14 = vld [vmem:[%s2887_s1] sm:$0xff]  }
  0x75   : > { %2002 = vmatpush3.bf16.msra.mxu0 %v2205_v2  ;;  %v651_v8 = vld [vmem:[#allocation2] sm:$0xff]  ;;  %v652_v26 = vld [vmem:[#allocation3] sm:$0xff] }
  0x76   : > { %2003 = vmatprep.subr.bf16.mxu0 %v2206_v4  ;;  %v653_v9 = vpack.c.bf16 %v651_v8, %v651_v8  ;;  %2026 = vmatpush3.bf16.msra.mxu1 %v2697_v7 }
  0x77   : > { %2031 = vmatprep.subr.bf16.mxu1 %v2495_v3 }
  0x79   : > { %2004 = vmatpush3.bf16.msra.mxu0 %v2206_v4  ;;  %2028 = vmatmul.mubr.msk.bf16.vlgmr.msra.gmra.mxu1 %vm666_vm2, %v653_v9 }
  0x7a   : > { %2005 = vmatprep.subr.bf16.mxu0 %v2207_v6  ;;  %2032 = vmatpush3.bf16.msra.mxu1 %v2691_v5 }
  0x7b   : > { %2033 = vmatprep.subr.bf16.mxu1 %v2495_v3  ;;  %2035 = vmatprep.mubr.msk.bf16.mxu1 %vm2496_vm1, %v2495_v3 }
  0x7d   : > { %2006 = vmatpush3.bf16.msra.mxu0 %v2207_v6 }
  0x7e   : > { %2007 = vmatprep.subr.bf16.mxu0 %v2208_v11  ;;  %2034 = vmatpush3.bf16.msra.mxu1 %v2697_v7 }
  0x7f   : > { %2039 = vmatprep.subr.bf16.mxu1 %v2495_v3 }
  0x81   : > { %2008 = vmatpush3.bf16.msra.mxu0 %v2208_v11 }
  0x82   : > { %2009 = vmatprep.subr.bf16.mxu0 %v2209_v12 }
  0x85   : > { %2010 = vmatpush3.bf16.msra.mxu0 %v2209_v12 }
  0x86   : > { %2011 = vmatprep.subr.bf16.mxu0 %v2211_v13 }
  0x89   : > { %2012 = vmatpush3.bf16.msra.mxu0 %v2211_v13 }
  0x8a   : > { %2013 = vmatprep.subr.bf16.mxu0 %v2213_v14 }
  0x8d   : > { %2014 = vmatpush3.bf16.msra.mxu0 %v2213_v14 }
  0x8e   : > { %2063 = vmatprep.subr.bf16.mxu0 %v2495_v3 }
  0x90   : > { %2016 = vmatmul.mubr.bf16.vlgmr.msra.gmra.mxu0 %v2215_v15 }
  0x91   : > { %2064 = vmatpush3.bf16.msra.mxu0 %v2691_v5 }
  0x92   : > { %2065 = vmatprep.subr.bf16.mxu0 %v2495_v3 }
  0x95   : > { %2066 = vmatpush3.bf16.msra.mxu0 %v2697_v7 }
  0x96   : > { %2079 = vmatprep.subr.bf16.mxu0 %v2495_v3 }
 0x139   : > { %v704_v16 = vpop.f32.mrf.mxu1 }
 0x13b   : > { %v2029_v17 = vpop.f32.mrf.mxu1 }
 0x13d   : > { %v707_v18 = vpop.f32.mrf.mxu1 }
 0x13f   : > { %v2030_v19 = vpop.f32.mrf.mxu1 }
 0x150   : > { %v2728_v20 = vpop.f32.mrf.mxu0 }
 0x151   : > { %v625_v1 = vadd.f32 %v2728_v20, %v2730_v21 }
 0x152   : > { %v616_v22 = vpop.f32.mrf.mxu0 }
 0x153   : > { %v617_v23 = vadd.f32 %v2730_v21, %v616_v22 }
 0x154   : > { %v2748_v42 = vpop.f32.mrf.mxu0 }
 0x155   : > { %v710_v24 = vadd.f32 %v704_v16, %v617_v23 }
 0x156   : > { %v619_v43 = vpop.f32.mrf.mxu0 }
 0x157   : > { %2226 = vtanh.f32 %v710_v24  ;;  %v1822_v27 = vmul.f32 -1.442695, %v710_v24  ;;  %v620_v44 = vadd.f32 %v2730_v21, %v619_v43  ;;  %v2216_v43 = vld [vmem:[%s2666_s24 + $0x10] sm:$0xff]  }
 0x158   : > { %2019 = vmatprep.mubr.bf16.mxu0 %v2216_v43 }
 0x159   : > { %2228 = vpow2.f32 %v1822_v27 }
 0x164   : > { %v2227_v25 = vpop.eup %2226 }
 0x165   : > { %724 = vrot.lane.b32.xlu0 %v2227_v25, %s2497_s18 }
 0x166   : > { %v2229_v28 = vpop.eup %2228 }
 0x167   : > { %v714_v29 = vadd.f32 1.0, %v2229_v28 }
 0x169   : > { %719 = vrot.lane.b32.xlu0 %v652_v26, %s2498_s27  ;;  %2230 = vrcp.f32 %v714_v29  ;;  %v628_v26 = vadd.f32 %v2748_v42, %v2730_v21 }
 0x176   : > { %v2231_v30 = vpop.eup %2230 }
 0x1d7   : > { %v725_v31 = vpop.permute.xlu0 %724 }
 0x1d8   : > { %v727_v32 = vmul.f32 %v2231_v30, %v725_v31 }
 0x1da   : > { %729 = vrot.lane.b32.xlu1 %v727_v32, %s2498_s27 }
 0x1db   : > { %v720_v33 = vpop.permute.xlu0 %719 }
 0x1dc   : > { %v722_v34 = vmul.f32 %v2231_v30, %v720_v33 }
 0x24c   : > { %v730_v35 = vpop.permute.xlu1 %729 }
 0x24d   : > { %v732_v36 = vadd.f32 %v730_v35, %v722_v34 }
 0x24f   : > { %2232 = vtanh.f32 %v732_v36 }
 0x25c   : > { %v2233_v37 = vpop.eup %2232 }
 0x25d   : > { %735 = vrot.lane.b32.xlu1 %v2233_v37, %s2497_s18 }
 0x2cf   : > { %v736_v38 = vpop.permute.xlu1 %735 }
 0x2d0   : > { %v738_v39 = vmul.f32 %v2231_v30, %v736_v38 }
 0x2d2   : > { %v2737_v40 = vpack.c.bf16 %v738_v39, %v738_v39 }
 0x2d4   : > { %748 = vrot.lane.b32.xlu0 %v2737_v40, %s2498_s27 }
 0x346   : > { %v749_v41 = vpop.permute.xlu0 %748 }
 0x347   : > { %2036 = vmatmul.mubr.msk.bf16.vlgmr.msra.gmra.mxu1 %vm666_vm2, %v749_v41 }
 0x348   : > { %2040 = vmatpush3.bf16.msra.mxu1 %v2691_v5  ;;  %2043 = vmatprep.mubr.msk.bf16.mxu1 %vm2496_vm1, %v2495_v3 }
 0x349   : > { %2041 = vmatprep.subr.bf16.mxu1 %v2495_v3 }
 0x34c   : > { %2042 = vmatpush3.bf16.msra.mxu1 %v2697_v7 }
 0x34d   : > { %2047 = vmatprep.subr.bf16.mxu1 %v2495_v3 }
 0x407   : > { %v787_v45 = vpop.f32.mrf.mxu1 }
 0x408   : > { %v793_v46 = vadd.f32 %v787_v45, %v620_v44  ;;  %v2217_v44 = vld [vmem:[%s2666_s24 + $0x18] sm:$0xff]   ;;  %s2499_s24 = smov 96  }
 0x409   : > { %v2037_v47 = vpop.f32.mrf.mxu1  ;;  %2020 = vmatmul.mubr.bf16.gmra.mxu0 %v2217_v44 }
 0x40a   : > { %2234 = vtanh.f32 %v793_v46  ;;  %v1825_v51 = vmul.f32 -1.442695, %v793_v46  ;;  %2067 = vmatprep.mubr.msk.bf16.mxu0 %vm2496_vm1, %v2495_v3 }
 0x40b   : > { %v790_v48 = vpop.f32.mrf.mxu1 }
 0x40c   : > { %2236 = vpow2.f32 %v1825_v51 }
 0x40d   : > { %v2038_v49 = vpop.f32.mrf.mxu1 }
 0x417   : > { %v2235_v50 = vpop.eup %2234 }
 0x418   : > { %803 = vrot.lane.b32.xlu1 %v2235_v50, %s2497_s18 }
 0x419   : > { %v2237_v52 = vpop.eup %2236 }
 0x41a   : > { %v797_v53 = vadd.f32 1.0, %v2237_v52 }
 0x41c   : > { %2238 = vrcp.f32 %v797_v53 }
 0x429   : > { %v2239_v54 = vpop.eup %2238 }
 0x42a   : > { %v801_v57 = vmul.f32 %v2239_v54, %v732_v36 }
 0x48a   : > { %v804_v55 = vpop.permute.xlu1 %803 }
 0x48b   : > { %v806_v56 = vmul.f32 %v2239_v54, %v804_v55 }
 0x48d   : > { %808 = vrot.lane.b32.xlu0 %v806_v56, %s2498_s27 }
 0x4c9   : > { %v2800_v50 = vpop.f32.mrf.mxu0 }
 0x4cb   : > { %v632_v51 = vpop.f32.mrf.mxu0 }
 0x4cc   : > { %v633_v52 = vadd.f32 %v2730_v21, %v632_v51 }
 0x4ff   : > { %v809_v58 = vpop.permute.xlu0 %808 }
 0x500   : > { %v811_v59 = vadd.f32 %v809_v58, %v801_v57 }
 0x502   : > { %2240 = vtanh.f32 %v811_v59 }
 0x50f   : > { %v2241_v60 = vpop.eup %2240 }
 0x510   : > { %814 = vrot.lane.b32.xlu1 %v2241_v60, %s2497_s18 }
 0x582   : > { %v815_v61 = vpop.permute.xlu1 %814 }
 0x583   : > { %v817_v62 = vmul.f32 %v2239_v54, %v815_v61 }
 0x585   : > { %v2754_v63 = vpack.c.bf16 %v817_v62, %v817_v62 }
 0x587   : > { %826 = vrot.lane.b32.xlu0 %v2754_v63, %s2498_s27 }
 0x5f9   : > { %v827_v0 = vpop.permute.xlu0 %826 }
 0x5fa   : > { %2044 = vmatmul.mubr.msk.bf16.vlgmr.msra.gmra.mxu1 %vm666_vm2, %v827_v0 }
 0x5fb   : > { %2048 = vmatpush3.bf16.msra.mxu1 %v2691_v5  ;;  %2051 = vmatprep.mubr.msk.bf16.mxu1 %vm2496_vm1, %v2495_v3 }
 0x5fc   : > { %2049 = vmatprep.subr.bf16.mxu1 %v2495_v3 }
 0x5ff   : > { %2050 = vmatpush3.bf16.msra.mxu1 %v2697_v7 }
 0x600   : > { %2055 = vmatprep.subr.bf16.mxu1 %v2495_v3 }
 0x6ba   : > { %v865_v2 = vpop.f32.mrf.mxu1 }
 0x6bb   : > { %v871_v4 = vadd.f32 %v865_v2, %v625_v1 }
 0x6bc   : > { %v2045_v6 = vpop.f32.mrf.mxu1 }
 0x6bd   : > { %2242 = vtanh.f32 %v871_v4  ;;  %v1828_v11 = vmul.f32 -1.442695, %v871_v4 }
 0x6be   : > { %v868_v8 = vpop.f32.mrf.mxu1 }
 0x6bf   : > { %2244 = vpow2.f32 %v1828_v11 }
 0x6c0   : > { %v2046_v9 = vpop.f32.mrf.mxu1 }
 0x6ca   : > { %v2243_v10 = vpop.eup %2242 }
 0x6cb   : > { %881 = vrot.lane.b32.xlu1 %v2243_v10, %s2497_s18 }
 0x6cc   : > { %v2245_v12 = vpop.eup %2244 }
 0x6cd   : > { %v875_v13 = vadd.f32 1.0, %v2245_v12 }
 0x6cf   : > { %2246 = vrcp.f32 %v875_v13  ;;  %v2022_v13 = vpop.f32.mrf.mxu0 }
 0x6dc   : > { %v2247_v14 = vpop.eup %2246 }
 0x6dd   : > { %v879_v17 = vmul.f32 %v2247_v14, %v811_v59 }
 0x73d   : > { %v882_v15 = vpop.permute.xlu1 %881 }
 0x73e   : > { %v884_v16 = vmul.f32 %v2247_v14, %v882_v15 }
 0x740   : > { %886 = vrot.lane.b32.xlu0 %v884_v16, %s2498_s27 }
 0x7b2   : > { %v887_v18 = vpop.permute.xlu0 %886 }
 0x7b3   : > { %v889_v19 = vadd.f32 %v887_v18, %v879_v17 }
 0x7b5   : > { %2248 = vtanh.f32 %v889_v19 }
 0x7c2   : > { %v2249_v20 = vpop.eup %2248 }
 0x7c3   : > { %892 = vrot.lane.b32.xlu1 %v2249_v20, %s2497_s18 }
 0x835   : > { %v893_v22 = vpop.permute.xlu1 %892 }
 0x836   : > { %v895_v23 = vmul.f32 %v2247_v14, %v893_v22  ;;  %v635_v14 = vpop.f32.mrf.mxu0 }
 0x837   : > { %v636_v15 = vadd.f32 %v2730_v21, %v635_v14 }
 0x838   : > { %v2770_v24 = vpack.c.bf16 %v895_v23, %v895_v23 }
 0x83a   : > { %904 = vrot.lane.b32.xlu0 %v2770_v24, %s2498_s27 }
 0x8ac   : > { %v905_v25 = vpop.permute.xlu0 %904 }
 0x8ad   : > { %2052 = vmatmul.mubr.msk.bf16.vlgmr.msra.gmra.mxu1 %vm666_vm2, %v905_v25 }
 0x8ae   : > { %2056 = vmatpush3.bf16.msra.mxu1 %v2691_v5  ;;  %2059 = vmatprep.mubr.msk.bf16.mxu1 %vm2496_vm1, %v2495_v3 }
 0x8af   : > { %2057 = vmatprep.subr.bf16.mxu1 %v2495_v3 }
 0x8b2   : > { %2058 = vmatpush3.bf16.msra.mxu1 %v2697_v7 }
 0x8b3   : > { %2071 = vmatprep.subr.bf16.mxu1 %v2495_v3 }
 0x96d   : > { %v943_v27 = vpop.f32.mrf.mxu1 }
 0x96e   : > { %v949_v28 = vadd.f32 %v943_v27, %v628_v26 }
 0x96f   : > { %v2053_v29 = vpop.f32.mrf.mxu1 }
 0x970   : > { %2250 = vtanh.f32 %v949_v28  ;;  %v1831_v33 = vmul.f32 -1.442695, %v949_v28 }
 0x971   : > { %v946_v30 = vpop.f32.mrf.mxu1 }
 0x972   : > { %2252 = vpow2.f32 %v1831_v33 }
 0x973   : > { %v2054_v31 = vpop.f32.mrf.mxu1 }
 0x97d   : > { %v2251_v32 = vpop.eup %2250 }
 0x97e   : > { %959 = vrot.lane.b32.xlu1 %v2251_v32, %s2497_s18 }
 0x97f   : > { %v2253_v34 = vpop.eup %2252 }
 0x980   : > { %v953_v35 = vadd.f32 1.0, %v2253_v34 }
 0x982   : > { %2254 = vrcp.f32 %v953_v35  ;;  %v641_v35 = vadd.f32 %v2800_v50, %v2730_v21 }
 0x98f   : > { %v2255_v36 = vpop.eup %2254 }
 0x990   : > { %v957_v39 = vmul.f32 %v2255_v36, %v889_v19 }
 0x9f0   : > { %v960_v37 = vpop.permute.xlu1 %959 }
 0x9f1   : > { %v962_v38 = vmul.f32 %v2255_v36, %v960_v37 }
 0x9f3   : > { %964 = vrot.lane.b32.xlu0 %v962_v38, %s2498_s27 }
 0xa65   : > { %v965_v41 = vpop.permute.xlu0 %964 }
 0xa66   : > { %v967_v42 = vadd.f32 %v965_v41, %v957_v39 }
 0xa68   : > { %2256 = vtanh.f32 %v967_v42 }
 0xa75   : > { %v2257_v45 = vpop.eup %2256 }
 0xa76   : > { %970 = vrot.lane.b32.xlu1 %v2257_v45, %s2497_s18 }
 0xae8   : > { %v971_v46 = vpop.permute.xlu1 %970 }
 0xae9   : > { %v973_v47 = vmul.f32 %v2255_v36, %v971_v46 }
 0xaeb   : > { %v2790_v48 = vpack.c.bf16 %v973_v47, %v973_v47 }
 0xaed   : > { %982 = vrot.lane.b32.xlu0 %v2790_v48, %s2498_s27 }
 0xb5f   : > { %v983_v49 = vpop.permute.xlu0 %982 }
 0xb60   : > { %2060 = vmatmul.mubr.msk.bf16.vlgmr.msra.gmra.mxu1 %vm666_vm2, %v983_v49 }
 0xb61   : > { %2072 = vmatpush3.bf16.msra.mxu1 %v2691_v5  ;;  %2075 = vmatprep.mubr.msk.bf16.mxu1 %vm2496_vm1, %v2495_v3 }
 0xb62   : > { %2073 = vmatprep.subr.bf16.mxu1 %v2495_v3 }
 0xb65   : > { %2074 = vmatpush3.bf16.msra.mxu1 %v2697_v7 }
 0xc20   : > { %v1021_v53 = vpop.f32.mrf.mxu1 }
 0xc21   : > { %v1027_v54 = vadd.f32 %v1021_v53, %v633_v52 }
 0xc22   : > { %v2061_v55 = vpop.f32.mrf.mxu1 }
 0xc23   : > { %2258 = vtanh.f32 %v1027_v54  ;;  %v1834_v59 = vmul.f32 -1.442695, %v1027_v54 }
 0xc24   : > { %v1024_v56 = vpop.f32.mrf.mxu1 }
 0xc25   : > { %2260 = vpow2.f32 %v1834_v59 }
 0xc26   : > { %v2062_v57 = vpop.f32.mrf.mxu1 }
 0xc30   : > { %v2259_v58 = vpop.eup %2258 }
 0xc31   : > { %1037 = vrot.lane.b32.xlu1 %v2259_v58, %s2497_s18  ;;  %v644_v58 = vadd.f32 %v2022_v13, %v2730_v21 }
 0xc32   : > { %v2261_v60 = vpop.eup %2260 }
 0xc33   : > { %v1031_v61 = vadd.f32 1.0, %v2261_v60 }
 0xc35   : > { %2262 = vrcp.f32 %v1031_v61 }
 0xc42   : > { %v2263_v62 = vpop.eup %2262 }
 0xc43   : > { %v1035_v2 = vmul.f32 %v2263_v62, %v967_v42 }
 0xca3   : > { %v1038_v0 = vpop.permute.xlu1 %1037 }
 0xca4   : > { %v1040_v1 = vmul.f32 %v2263_v62, %v1038_v0 }
 0xca6   : > { %1042 = vrot.lane.b32.xlu0 %v1040_v1, %s2498_s27 }
 0xd18   : > { %v1043_v4 = vpop.permute.xlu0 %1042 }
 0xd19   : > { %v1045_v6 = vadd.f32 %v1043_v4, %v1035_v2 }
 0xd1b   : > { %2264 = vtanh.f32 %v1045_v6 }
 0xd28   : > { %v2265_v8 = vpop.eup %2264 }
 0xd29   : > { %1048 = vrot.lane.b32.xlu1 %v2265_v8, %s2497_s18 }
 0xd9b   : > { %v1049_v9 = vpop.permute.xlu1 %1048 }
 0xd9c   : > { %v1051_v10 = vmul.f32 %v2263_v62, %v1049_v9 }
 0xd9e   : > { %v2806_v11 = vpack.c.bf16 %v1051_v10, %v1051_v10 }
 0xda0   : > { %1060 = vrot.lane.b32.xlu0 %v2806_v11, %s2498_s27 }
 0xe12   : > { %v1061_v12 = vpop.permute.xlu0 %1060 }
 0xe13   : > { %2068 = vmatmul.mubr.msk.bf16.vlgmr.msra.gmra.mxu0 %vm666_vm2, %v1061_v12 }
 0xe14   : > { %2080 = vmatpush3.bf16.msra.mxu0 %v2691_v5  ;;  %2083 = vmatprep.mubr.msk.bf16.mxu0 %vm2496_vm1, %v2495_v3 }
 0xe15   : > { %2081 = vmatprep.subr.bf16.mxu0 %v2495_v3 }
 0xe18   : > { %2082 = vmatpush3.bf16.msra.mxu0 %v2697_v7 }
 0xed3   : > { %v1099_v16 = vpop.f32.mrf.mxu0 }
 0xed4   : > { %v1105_v17 = vadd.f32 %v1099_v16, %v636_v15  ;;  %v2219_v16 = vld [vmem:[#allocation12 + $0x8] sm:$0xff]  }
 0xed5   : > { %v2069_v18 = vpop.f32.mrf.mxu0  ;;  %2099 = vmatprep.subr.bf16.mxu0 %v2219_v16 }
 0xed6   : > { %2266 = vtanh.f32 %v1105_v17  ;;  %v1837_v5 = vmul.f32 -1.442695, %v1105_v17 }
 0xed7   : > { %v1102_v19 = vpop.f32.mrf.mxu0 }
 0xed8   : > { %2268 = vpow2.f32 %v1837_v5 }
 0xed9   : > { %v2070_v20 = vpop.f32.mrf.mxu0 }
 0xee3   : > { %v2267_v22 = vpop.eup %2266 }
 0xee4   : > { %1115 = vrot.lane.b32.xlu1 %v2267_v22, %s2497_s18 }
 0xee5   : > { %v2269_v23 = vpop.eup %2268 }
 0xee6   : > { %v1109_v25 = vadd.f32 1.0, %v2269_v23 }
 0xee8   : > { %2270 = vrcp.f32 %v1109_v25 }
 0xef5   : > { %v2271_v3 = vpop.eup %2270 }
 0xef6   : > { %v1113_v27 = vmul.f32 %v2271_v3, %v1045_v6 }
 0xf56   : > { %v1116_v7 = vpop.permute.xlu1 %1115 }
 0xf57   : > { %v1118_v26 = vmul.f32 %v2271_v3, %v1116_v7 }
 0xf59   : > { %1120 = vrot.lane.b32.xlu0 %v1118_v26, %s2498_s27 }
 0xfcb   : > { %v1121_v28 = vpop.permute.xlu0 %1120 }
 0xfcc   : > { %v1123_v29 = vadd.f32 %v1121_v28, %v1113_v27 }
 0xfce   : > { %2272 = vtanh.f32 %v1123_v29 }
 0xfdb   : > { %v2273_v30 = vpop.eup %2272 }
 0xfdc   : > { %1126 = vrot.lane.b32.xlu1 %v2273_v30, %s2497_s18 }
0x104e   : > { %v1127_v31 = vpop.permute.xlu1 %1126 }
0x104f   : > { %v1129_v32 = vmul.f32 %v2271_v3, %v1127_v31 }
0x1051   : > { %v2820_v33 = vpack.c.bf16 %v1129_v32, %v1129_v32  ;;  %v1845_v32 = vld [vmem:[#allocation10] ss:$0 sm:$0xff] }
0x1053   : > { %1138 = vrot.lane.b32.xlu0 %v2820_v33, %s2498_s27 }
0x10c5   : > { %v1139_v34 = vpop.permute.xlu0 %1138 }
0x10c6   : > { %2076 = vmatmul.mubr.msk.bf16.vlgmr.msra.gmra.mxu1 %vm666_vm2, %v1139_v34 }
0x1186   : > { %v1177_v36 = vpop.f32.mrf.mxu1 }
0x1187   : > { %v1183_v37 = vadd.f32 %v1177_v36, %v641_v35 }
0x1188   : > { %v2077_v38 = vpop.f32.mrf.mxu1 }
0x1189   : > { %2274 = vtanh.f32 %v1183_v37  ;;  %v1840_v43 = vmul.f32 -1.442695, %v1183_v37 }
0x118a   : > { %v1180_v39 = vpop.f32.mrf.mxu1 }
0x118b   : > { %2276 = vpow2.f32 %v1840_v43 }
0x118c   : > { %v2078_v41 = vpop.f32.mrf.mxu1 }
0x1196   : > { %v2275_v42 = vpop.eup %2274 }
0x1197   : > { %1193 = vrot.lane.b32.xlu1 %v2275_v42, %s2497_s18 }
0x1198   : > { %v2277_v44 = vpop.eup %2276 }
0x1199   : > { %v1187_v45 = vadd.f32 1.0, %v2277_v44 }
0x119b   : > { %2278 = vrcp.f32 %v1187_v45 }
0x11a8   : > { %v2279_v46 = vpop.eup %2278 }
0x11a9   : > { %v1191_v50 = vmul.f32 %v2279_v46, %v1123_v29 }
0x1209   : > { %v1194_v47 = vpop.permute.xlu1 %1193 }
0x120a   : > { %v1196_v49 = vmul.f32 %v2279_v46, %v1194_v47 }
0x120c   : > { %1198 = vrot.lane.b32.xlu0 %v1196_v49, %s2498_s27 }
0x127e   : > { %v1199_v51 = vpop.permute.xlu0 %1198 }
0x127f   : > { %v1201_v52 = vadd.f32 %v1199_v51, %v1191_v50 }
0x1281   : > { %2280 = vtanh.f32 %v1201_v52 }
0x128e   : > { %v2281_v53 = vpop.eup %2280 }
0x128f   : > { %1204 = vrot.lane.b32.xlu1 %v2281_v53, %s2497_s18 }
0x1301   : > { %v1205_v54 = vpop.permute.xlu1 %1204 }
0x1302   : > { %v1207_v55 = vmul.f32 %v2279_v46, %v1205_v54 }
0x1304   : > { %v1208_v56 = vpack.c.bf16 %v1207_v55, %v1207_v55 }
0x1306   : > { %1216 = vrot.lane.b32.xlu0 %v1208_v56, %s2498_s27 }
0x1378   : > { %v1217_v57 = vpop.permute.xlu0 %1216 }
0x1379   : > { %2084 = vmatmul.mubr.msk.bf16.vlgmr.msra.gmra.mxu0 %vm666_vm2, %v1217_v57 }
0x137a   : > { %2100 = vmatpush3.bf16.msra.mxu0 %v2219_v16 }
0x1439   : > { %v1255_v59 = vpop.f32.mrf.mxu0 }
0x143a   : > { %v1261_v60 = vadd.f32 %v1255_v59, %v644_v58 }
0x143b   : > { %v2085_v61 = vpop.f32.mrf.mxu0 }
0x143c   : > { %2282 = vtanh.f32 %v1261_v60  ;;  %v1843_v2 = vmul.f32 -1.442695, %v1261_v60 }
0x143d   : > { %v1258_v62 = vpop.f32.mrf.mxu0 }
0x143e   : > { %2284 = vpow2.f32 %v1843_v2 }
0x143f   : > { %v2086_v0 = vpop.f32.mrf.mxu0 }
0x1449   : > { %v2283_v1 = vpop.eup %2282 }
0x144a   : > { %1271 = vrot.lane.b32.xlu1 %v2283_v1, %s2497_s18 }
0x144b   : > { %v2285_v4 = vpop.eup %2284 }
0x144c   : > { %v1265_v6 = vadd.f32 1.0, %v2285_v4 }
0x144e   : > { %2286 = vrcp.f32 %v1265_v6 }
0x145b   : > { %v2287_v8 = vpop.eup %2286 }
0x145c   : > { %v1269_v21 = vmul.f32 %v2287_v8, %v1201_v52 }
0x14bc   : > { %v1272_v9 = vpop.permute.xlu1 %1271 }
0x14bd   : > { %v1274_v10 = vmul.f32 %v2287_v8, %v1272_v9 }
0x14bf   : > { %1276 = vrot.lane.b32.xlu0 %v1274_v10, %s2498_s27 }
0x14c3   : > { %743 = vrot.lane.b32.xlu0 %v2737_v40, %s2498_s27  ;;  %v2218_v40 = vld [vmem:[#allocation9 + $0x8] sm:$0xff]  }
0x14c4   : > { %2087 = vmatprep.subr.bf16.mxu1 %v2218_v40 }
0x14c5   : > { %2088 = vmatpush3.bf16.msra.mxu1 %v2218_v40 }
0x14c7   : > { %900 = vrot.lane.b32.xlu0 %v2770_v24, %s2498_s27  ;;  %v2220_v24 = vld [vmem:[#allocation9] sm:$0xff]  }
0x14c8   : > { %2089 = vmatprep.subr.bf16.mxu1 %v2220_v24 }
0x14c9   : > { %2090 = vmatpush3.bf16.msra.mxu1 %v2220_v24 }
0x14cb   : > { %1056 = vrot.lane.b32.xlu0 %v2806_v11, %s2498_s27  ;;  %v2222_v11 = vld [vmem:[#allocation12] sm:$0xff]  }
0x14cc   : > { %2101 = vmatprep.subr.bf16.mxu0 %v2222_v11 }
0x14cd   : > { %2102 = vmatpush3.bf16.msra.mxu0 %v2222_v11 }
0x14cf   : > { %1212 = vrot.lane.b32.xlu0 %v1208_v56, %s2498_s27 }
0x1531   : > { %v1277_v12 = vpop.permute.xlu0 %1276 }
0x1532   : > { %v1279_v13 = vadd.f32 %v1277_v12, %v1269_v21 }
0x1534   : > { %2288 = vtanh.f32 %v1279_v13 }
0x1535   : > { %v744_v14 = vpop.permute.xlu0 %743 }
0x1536   : > { %747 = vst.msk [vmem:[#allocation4] sm:$0xf] %vm746_vm3, %v744_v14 }
0x1539   : > { %v901_v15 = vpop.permute.xlu0 %900 }
0x153a   : > { %903 = vst.msk [vmem:[#allocation4 + $0x8] sm:$0xf] %vm746_vm3, %v901_v15 }
0x153d   : > { %v1057_v17 = vpop.permute.xlu0 %1056 }
0x153e   : > { %1059 = vst.msk [vmem:[#allocation4 + $0x10] sm:$0xf] %vm746_vm3, %v1057_v17 }
0x1541   : > { %v2289_v18 = vpop.eup %2288  ;;  %v1213_v19 = vpop.permute.xlu0 %1212 }
0x1542   : > { %1215 = vst.msk [vmem:[#allocation4 + $0x18] sm:$0xf] %vm746_vm3, %v1213_v19  ;;  %1282 = vrot.lane.b32.xlu1 %v2289_v18, %s2497_s18 }
0x1546   : > { %822 = vrot.lane.b32.xlu1 %v2754_v63, %s2498_s27 }
0x154a   : > { %978 = vrot.lane.b32.xlu1 %v2790_v48, %s2498_s27 }
0x154e   : > { %1134 = vrot.lane.b32.xlu1 %v2820_v33, %s2498_s27  ;;  %v1864_v33 = vld [vmem:[#allocation13] ss:$0 sm:$0xff] }
0x15b4   : > { %v1283_v20 = vpop.permute.xlu1 %1282 }
0x15b5   : > { %v1285_v22 = vmul.f32 %v2287_v8, %v1283_v20 }
0x15b7   : > { %v1888_v5 = vpack.c.bf16 %v1285_v22, %v1285_v22  ;;  %1295 = vrot.lane.b32.xlu0 %v1285_v22, %s2498_s27 }
0x15b8   : > { %v823_v23 = vpop.permute.xlu1 %822 }
0x15b9   : > { %825 = vst.msk [vmem:[#allocation4 + $0x4] sm:$0xf] %vm746_vm3, %v823_v23  ;;  %1290 = vrot.lane.b32.xlu1 %v1888_v5, %s2498_s27 }
0x15bc   : > { %v979_v25 = vpop.permute.xlu1 %978 }
0x15bd   : > { %981 = vst.msk [vmem:[#allocation4 + $0xc] sm:$0xf] %vm746_vm3, %v979_v25  ;;  %1300 = vrot.lane.b32.xlu1 %v1279_v13, %s2499_s24 }
0x15c0   : > { %v1135_v63 = vpop.permute.xlu1 %1134  ;;  %v2221_v48 = vld [vmem:[#allocation4] sm:$0xff]  }
0x15c1   : > { %1137 = vst.msk [vmem:[#allocation4 + $0x14] sm:$0xf] %vm746_vm3, %v1135_v63  ;;  %2091 = vmatprep.mubr.msk.bf16.mxu1 %vm666_vm2, %v2221_v48  ;;  %2103 = vmatprep.mubr.msk.bf16.mxu0 %vm666_vm2, %v2221_v48 }
0x15c4   : > { %v2223_v3 = vld [vmem:[#allocation4 + $0x8] sm:$0xff]  }
0x15c5   : > { %2092 = vmatmul.mubr.msk.bf16.vlgmr.msra.gmra.mxu1 %vm666_vm2, %v2223_v3  ;;  %2104 = vmatmul.mubr.msk.bf16.vlgmr.msra.gmra.mxu0 %vm666_vm2, %v2223_v3 }
0x15c8   : > { %v2224_v7 = vld [vmem:[#allocation4 + $0x10] sm:$0xff]  }
0x15c9   : > { %2095 = vmatprep.mubr.msk.bf16.mxu1 %vm666_vm2, %v2224_v7  ;;  %2107 = vmatprep.mubr.msk.bf16.mxu0 %vm666_vm2, %v2224_v7 }
0x1629   : > { %v1296_v26 = vpop.permute.xlu0 %1295 }
0x162a   : > { %1298 = vst.msk [vmem:[#allocation2] sm:$0xff] %vm666_vm2, %v1296_v26 }
0x162b   : > { %v1291_v27 = vpop.permute.xlu1 %1290 }
0x162c   : > { %1293 = vst.msk [vmem:[#allocation4 + $0x1c] sm:$0xf] %vm746_vm3, %v1291_v27 }
0x162f   : > { %v1301_v28 = vpop.permute.xlu1 %1300 }
0x1630   : > { %1303 = vst.msk [vmem:[#allocation3] sm:$0xff] %vm666_vm2, %v1301_v28 }
0x1633   : > { %v2225_v29 = vld [vmem:[#allocation4 + $0x18] sm:$0xff]  }
0x1634   : > { %2096 = vmatmul.mubr.msk.bf16.gmra.mxu1 %vm666_vm2, %v2225_v29  ;;  %2108 = vmatmul.mubr.msk.bf16.gmra.mxu0 %vm666_vm2, %v2225_v29 }
0x1685   : > { %v2093_v30 = vpop.f32.mrf.mxu1  ;;  %v2105_v31 = vpop.f32.mrf.mxu0 }
0x1686   : > { %v1410_v38 = vadd.f32 %v2093_v30, %v1845_v32  ;;  %v1538_v39 = vadd.f32 %v2105_v31, %v1864_v33 }
0x1687   : > { %v1401_v34 = vpop.f32.mrf.mxu1  ;;  %v1529_v35 = vpop.f32.mrf.mxu0 }
0x1688   : > { %v1402_v43 = vadd.f32 %v1845_v32, %v1401_v34  ;;  %v1530_v44 = vadd.f32 %v1864_v33, %v1529_v35 }
0x1689   : > { %v2094_v36 = vpop.f32.mrf.mxu1  ;;  %v2106_v37 = vpop.f32.mrf.mxu0 }
0x168a   : > { %v1413_v41 = vadd.f32 %v2094_v36, %v1845_v32  ;;  %v1541_v42 = vadd.f32 %v2106_v37, %v1864_v33 }
0x168b   : > { %v1404_v45 = vpop.f32.mrf.mxu1  ;;  %v1532_v46 = vpop.f32.mrf.mxu0 }
0x168c   : > { %v1913_v47 = vpack.c.bf16 %v1413_v41, %v1410_v38  ;;  %v1933_v49 = vpack.c.bf16 %v1541_v42, %v1538_v39  ;;  %v1405_v50 = vadd.f32 %v1845_v32, %v1404_v45  ;;  %v1533_v51 = vadd.f32 %v1864_v33, %v1532_v46 }
0x168e   : > { %1945 = vst [vmem:[%s2671_s17 + $0x8] sm:$0xff] %v1913_v47   ;;  %1948 = vst [vmem:[%s2676_s15 + $0x8] sm:$0xff] %v1933_v49   ;;  %v1908_v52 = vpack.c.bf16 %v1405_v50, %v1402_v43  ;;  %v1928_v53 = vpack.c.bf16 %v1533_v51, %v1530_v44 }
0x1690   : > { %1909 = vst [vmem:[%s2671_s17] sm:$0xff] %v1908_v52   ;;  %1929 = vst [vmem:[%s2676_s15] sm:$0xff] %v1928_v53  }
0x16f4   : > { %v2097_v54 = vpop.f32.mrf.mxu1  ;;  %v2109_v55 = vpop.f32.mrf.mxu0 }
0x16f5   : > { %v1426_v60 = vadd.f32 %v2097_v54, %v1845_v32  ;;  %v1554_v61 = vadd.f32 %v2109_v55, %v1864_v33 }
0x16f6   : > { %v1417_v56 = vpop.f32.mrf.mxu1  ;;  %v1545_v57 = vpop.f32.mrf.mxu0 }
0x16f7   : > { %v1418_v1 = vadd.f32 %v1845_v32, %v1417_v56  ;;  %v1546_v2 = vadd.f32 %v1864_v33, %v1545_v57 }
0x16f8   : > { %v2098_v58 = vpop.f32.mrf.mxu1  ;;  %v2110_v59 = vpop.f32.mrf.mxu0 }
0x16f9   : > { %v1429_v62 = vadd.f32 %v2098_v58, %v1845_v32  ;;  %v1557_v0 = vadd.f32 %v2110_v59, %v1864_v33 }
0x16fa   : > { %v1420_v4 = vpop.f32.mrf.mxu1  ;;  %v1548_v6 = vpop.f32.mrf.mxu0 }
0x16fb   : > { %v1923_v8 = vpack.c.bf16 %v1429_v62, %v1426_v60  ;;  %v1943_v9 = vpack.c.bf16 %v1557_v0, %v1554_v61  ;;  %v1421_v10 = vadd.f32 %v1845_v32, %v1420_v4  ;;  %v1549_v21 = vadd.f32 %v1864_v33, %v1548_v6 }
0x16fd   : > { %1947 = vst [vmem:[%s2671_s17 + $0x18] sm:$0xff] %v1923_v8   ;;  %1950 = vst [vmem:[%s2676_s15 + $0x18] sm:$0xff] %v1943_v9   ;;  %v1918_v12 = vpack.c.bf16 %v1421_v10, %v1418_v1  ;;  %v1938_v13 = vpack.c.bf16 %v1549_v21, %v1546_v2 }
0x16ff   : > { %1946 = vst [vmem:[%s2671_s17 + $0x10] sm:$0xff] %v1918_v12   ;;  %1949 = vst [vmem:[%s2676_s15 + $0x10] sm:$0xff] %v1938_v13  }
0x1700 PF: > { %s24_s11 = sadd.s32 1, %s2484_s11   ;;  %s2905_s30 = smov %s2480_s10 }
0x1701   : > { %p21_p4 = scmp.ge.s32.totalorder %s24_s11, 4   ;;  %s2906_s10 = smov %s2908_s20 }
0x1703   :  { %23 = sbr.rel (!%p21_p4) target bundleno = 5 (0x5), region = 123 }
0x1708   :  { %1651 = vsyncpa [#allocation6], 1 }
0x1709   :  { %1653 = vsyncpa [#allocation6 + $0x1], 1 }
0x170a   :  { %1654 = vsyncpa [#allocation8], 1 }
0x170b   :  { %1655 = vsyncpa [#allocation11], 1 }
0x170c   :  { %1656 = vsyncpa [#allocation14], 1 }

// kernel: asr_forward.3
= control target key start
LH: loop header
LB: loop body
LE: loop exit
PB: predicated region body
PF: predicated region fallthrough
CT: control target
= control target key end

     0   :  { %19 = vsyncpa [#allocation12], 0  ;;  %s11538_s0 = inlined_call_operand.vmem [shape: bf16[16,8,128], index: 0, kind: input, shape index: {}]   ;;  %s11539_s1 = inlined_call_operand.vmem [shape: bf16[16,8,128], index: 1, kind: input, shape index: {}]   ;;  %s11540_s2 = inlined_call_operand.vmem [shape: f32[8,16], index: 2, kind: input, shape index: {}]   ;;  %s11541_s3 = inlined_call_operand.hbm [shape: bf16[128,128], index: 3, kind: input, shape index: {}]   ;;  %s11542_s4 = inlined_call_operand.vmem [shape: bf16[288,128], index: 4, kind: input, shape index: {}]   ;;  %s11543_s5 = inlined_call_operand.vmem [shape: f32[1,128], index: 5, kind: input, shape index: {}]   ;;  %s11544_s6 = inlined_call_operand.hbm [shape: bf16[64,128], index: 6, kind: input, shape index: {}]   ;;  %s11545_s7 = inlined_call_operand.vmem [shape: f32[1,128], index: 7, kind: input, shape index: {}]   ;;  %s11546_s8 = inlined_call_operand.hbm [shape: bf16[32,128], index: 8, kind: input, shape index: {}]   ;;  %s11547_s9 = inlined_call_operand.vmem [shape: f32[1,128], index: 9, kind: input, shape index: {}]   ;;  %s11548_s10 = inlined_call_operand.vmem [shape: bf16[256,128], index: 10, kind: input, shape index: {}]   ;;  %s11549_s11 = inlined_call_operand.hbm [shape: f32[1,128], index: 11, kind: input, shape index: {}]   ;;  %s11550_s12 = inlined_call_operand.vmem [shape: f32[8,8,128], index: 12, kind: output, shape index: {0}]   ;;  %s11551_s13 = inlined_call_operand.vmem [shape: f32[8,8,16], index: 13, kind: output, shape index: {1}]  }
   0x1   :  { %20 = vsyncpa [#allocation14], 0 }
   0x2   :  { %21 = vsyncpa [#allocation17], 0  ;;  %s8544_s25 = smov [#allocation13]   ;;  %s8545_s27 = smov [#allocation11]  }
   0x3   :  { %s49_s26 = sshll.u32 %s8544_s25, 4  ;;  %s33_s28 = sshll.u32 %s8545_s27, 4  ;;  %s50_s26 = int_to_ptr.vmem [resolvable:$true] %s49_s26  ;;  %s34_s28 = int_to_ptr.vmem [resolvable:$true] %s33_s28 }
   0x4   :  { %s8466_s29 = scalar_lea.vmem %s50_s26, 512  ;;  %p8471_p1 = scmp.lt.s32.totalorder %s50_s26, %s50_s26 }
   0x5   :  { %p8467_p0 = scmp.ne.s32.totalorder %s50_s26, %s8466_s29  ;;  %p8472_p2 = scmp.lt.s32.totalorder %s8466_s29, %s8466_s29 }
   0x7   :  { %p8473_p3 = por %p8472_p2, %p8471_p1 }
   0x9   :  { %p8474_p4 = pnand %p8473_p3, %p8467_p0 }
   0xb   :  { %8477 = shalt.err (!%p8474_p4)
}
   0xc   :  { %s8546_s30 = smov 64   ;;  %s8547_s14 = smov 4  }
   0xd   :  { %55 = dma.hbm_to_vmem [thread:$0]  %s11544_s6, 512, %s50_s26, [#allocation14], %s8546_s30, %s8546_s30, %s8547_s14  }
   0xe   :  { %s8486_s17 = scalar_lea.vmem %s34_s28, 1024  ;;  %p8491_p6 = scmp.lt.s32.totalorder %s34_s28, %s34_s28 }
   0xf   :  { %p8487_p5 = scmp.ne.s32.totalorder %s34_s28, %s8486_s17  ;;  %p8492_p7 = scmp.lt.s32.totalorder %s8486_s17, %s8486_s17 }
  0x11   :  { %p8493_p8 = por %p8492_p7, %p8491_p6 }
  0x13   :  { %p8494_p9 = pnand %p8493_p8, %p8487_p5 }
  0x15   :  { %8497 = shalt.err (!%p8494_p9)
}
  0x16   :  { %39 = dma.hbm_to_vmem [thread:$0]  %s11541_s3, 1024, %s34_s28, [#allocation12], %s8546_s30, %s8546_s30, %s8547_s14  }
  0x17   :  { %s8548_s20 = smov [#allocation15]   ;;  %s8549_s22 = smov [#allocation16]  }
  0x18   :  { %s63_s21 = sshll.u32 %s8548_s20, 4  ;;  %s80_s23 = sshll.u32 %s8549_s22, 4  ;;  %s64_s21 = int_to_ptr.vmem [resolvable:$true] %s63_s21  ;;  %s81_s23 = int_to_ptr.vmem [resolvable:$true] %s80_s23 }
  0x19   :  { %s8506_s6 = scalar_lea.vmem %s64_s21, 256  ;;  %p8511_p11 = scmp.lt.s32.totalorder %s64_s21, %s64_s21 }
  0x1a   :  { %p8507_p10 = scmp.ne.s32.totalorder %s64_s21, %s8506_s6  ;;  %p8512_p12 = scmp.lt.s32.totalorder %s8506_s6, %s8506_s6 }
  0x1c   :  { %p8513_p13 = por %p8512_p12, %p8511_p11 }
  0x1e   :  { %p8514_p0 = pnand %p8513_p13, %p8507_p10 }
  0x20   :  { %8517 = shalt.err (!%p8514_p0)
}
  0x21   :  { %69 = dma.hbm_to_vmem [thread:$0]  %s11546_s8, 256, %s64_s21, [#allocation14], %s8546_s30, %s8546_s30, %s8547_s14  }
  0x22   :  { %s8526_s3 = scalar_lea.vmem %s81_s23, 16  ;;  %s8530_s26 = scalar_lea.vmem %s81_s23, 32 }
  0x23   :  { %p8527_p1 = scmp.ne.s32.totalorder %s81_s23, %s8526_s3  ;;  %p8531_p2 = scmp.lt.s32.totalorder %s81_s23, %s81_s23 }
  0x24   :  { %p8532_p3 = scmp.lt.s32.totalorder %s8530_s26, %s8526_s3 }
  0x26   :  { %p8533_p4 = por %p8532_p3, %p8531_p2 }
  0x28   :  { %p8534_p5 = pnand %p8533_p4, %p8527_p1 }
  0x2a   :  { %8537 = shalt.err (!%p8534_p5)
}
  0x2b   :  { %83 = dma.hbm_to_vmem [thread:$0]  %s11549_s11, 16, %s81_s23, [#allocation17]  }
  0x2c   :  { %8538 = dma.done.wait [#allocation12], 1024  }
  0x2d   :  { %8539 = vsyncadd [#allocation12], 4294966272 }
  0x2e   :  { %8540 = dma.done.wait [#allocation14], 768  }
  0x2f   :  { %8541 = vsyncadd [#allocation14], 4294966528 }
  0x30   :  { %8542 = dma.done.wait [#allocation17], 16  }
  0x31   :  { %8543 = vsyncadd [#allocation17], 4294967280  ;;  %v292_v0 = vlaneseq  ;;  %v11552_v1 = vmov 0.0   ;;  %vm8551_vm0 = vmmov 0   ;;  %v8651_v5 = vld [vmem:[#allocation11 + $0x38] sm:$0xff]   ;;  %v8654_v6 = vld [vmem:[#allocation11 + $0x30] sm:$0xff]  }
  0x32   :  { %7664 = vmatprep.subr.bf16.mxu0 %v11552_v1  ;;  %7680 = vmatprep.mubr.msk.bf16.mxu0 %vm8551_vm0, %v11552_v1  ;;  %v8658_v7 = vld [vmem:[#allocation11 + $0x28] sm:$0xff]   ;;  %v8661_v8 = vld [vmem:[#allocation11 + $0x20] sm:$0xff]   ;;  %v8070_v13 = vld [vmem:[%s11542_s4 + $0x68] sm:$0xff]   ;;  %vm97_vm2 = vcmask 261120   ;;  %vm395_vm3 = vcmask 257024   ;;  %v8552_v37 = vmov 0.0|0.0  }
  0x33   :  { %v8647_v2 = vand.u32 127, %v292_v0  ;;  %7665 = vmatpush3.bf16.msra.mxu0 %v8651_v5  ;;  %v8666_v9 = vld [vmem:[%s11542_s4 + $0x78] sm:$0xff]   ;;  %v8068_v11 = vld [vmem:[%s11542_s4 + $0x70] sm:$0xff]   ;;  %v8687_v15 = vld [vmem:[#allocation11 + $0x10] sm:$0xff]   ;;  %98 = vst.msk [vmem:[#allocation2] sm:$0xff] %vm97_vm2, %v11552_v1  ;;  %552 = vmatprep.mubr.bf16.mxu1 %v8552_v37  ;;  %s8553_s27 = smov 32  }
  0x34   :  { %7666 = vmatprep.subr.bf16.mxu0 %v11552_v1  ;;  %v8067_v10 = vld [vmem:[%s11542_s4 + $0x38] sm:$0xff]   ;;  %7161 = vmatprep.subr.bf16.mxu1 %v8666_v9  ;;  %v8069_v12 = vld [vmem:[%s11542_s4 + $0x30] sm:$0xff]   ;;  %v8071_v16 = vld [vmem:[%s11542_s4 + $0x28] sm:$0xff]   ;;  %99 = vst.msk [vmem:[#allocation3] sm:$0xff] %vm97_vm2, %v11552_v1  ;;  %vm645_vm4 = vcmask 519424   ;;  %vm672_vm5 = vcmask 523264  }
  0x35   :  { %vm294_vm1 = vcmp.eq.s32.totalorder %v8647_v2, 0  ;;  %7162 = vmatpush3.bf16.msra.mxu1 %v8067_v10  ;;  %v8684_v14 = vld [vmem:[#allocation11 + $0x18] sm:$0xff]   ;;  %v8072_v17 = vld [vmem:[%s11542_s4 + $0x60] sm:$0xff]   ;;  %v8074_v19 = vld [vmem:[%s11542_s4 + $0x58] sm:$0xff]   ;;  %100 = vst.msk [vmem:[#allocation4] sm:$0xff] %vm97_vm2, %v11552_v1  ;;  %vm932_vm6 = vcmask 1041409  }
  0x36   :  { %v6795_v3 = vsel %vm294_vm1, 1.0, %v11552_v1  ;;  %7163 = vmatprep.subr.bf16.mxu1 %v8068_v11  ;;  %v8073_v18 = vld [vmem:[%s11542_s4 + $0x20] sm:$0xff]   ;;  %v8075_v21 = vld [vmem:[%s11542_s4 + $0x18] sm:$0xff]   ;;  %v8718_v24 = vld [vmem:[%s11542_s4 + $0x50] sm:$0xff]   ;;  %101 = vst.msk [vmem:[#allocation5] sm:$0xff] %vm97_vm2, %v11552_v1  ;;  %vm934_vm7 = vcmask 1042434  }
  0x37   :  { %v297_v4 = vpack.c.bf16 %v6795_v3, %v6795_v3  ;;  %7667 = vmatpush3.bf16.msra.mxu0 %v8654_v6  ;;  %v8703_v20 = vld [vmem:[#allocation11 + $0x8] sm:$0xff]   ;;  %v8710_v22 = vld [vmem:[#allocation11] sm:$0xff]   ;;  %v8738_v26 = vld [vmem:[%s11542_s4 + $0x48] sm:$0xff]   ;;  %vm936_vm8 = vcmask 1043459   ;;  %vm938_vm9 = vcmask 1044484   ;;  %vm940_vm10 = vcmask 1045509  }
  0x38   :  { %7668 = vmatprep.subr.bf16.mxu0 %v11552_v1  ;;  %v8723_v25 = vld [vmem:[%s11542_s4 + $0x10] sm:$0xff]   ;;  %v8743_v27 = vld [vmem:[%s11542_s4 + $0x8] sm:$0xff]   ;;  %v8750_v28 = vld [vmem:[%s11542_s4 + $0x40] sm:$0xff]   ;;  %vm942_vm11 = vcmask 1046534   ;;  %vm944_vm12 = vcmask 1047559   ;;  %vm988_vm13 = vcmask 130048  }
  0x39   :  { %298 = vst [vmem:[#allocation7] sm:$0xf] %v297_v4  ;;  %7164 = vmatpush3.bf16.msra.mxu1 %v8069_v12  ;;  %v8755_v29 = vld [vmem:[%s11542_s4] sm:$0xff]   ;;  %v8764_v35 = vld [vmem:[%s11542_s4 + $0x88] sm:$0xff]   ;;  %s8554_s21 = smov 96  }
  0x3a   :  { %7165 = vmatprep.subr.bf16.mxu1 %v8070_v13  ;;  %v393_v30 = vld [vmem:[#allocation2] sm:$0xff]  ;;  %v8792_v4 = vld [vmem:[#allocation13 + $0x18] sm:$0xff]  }
  0x3b   :  { %7669 = vmatpush3.bf16.msra.mxu0 %v8658_v7  ;;  %v394_v31 = vpack.c.bf16 %v393_v30, %v393_v30  ;;  %v8770_v39 = vld [vmem:[%s11542_s4 + $0x80] sm:$0xff]   ;;  %v600_v54 = vld [vmem:[#allocation3] sm:$0xff] }
  0x3c   :  { %7670 = vmatprep.subr.bf16.mxu0 %v11552_v1  ;;  %v8783_v45 = vld [vmem:[%s11543_s5] ss:$0 sm:$0xff]  ;;  %v8795_v10 = vld [vmem:[#allocation13 + $0x10] sm:$0xff]   ;;  %v637_v11 = vld [vmem:[#allocation4] sm:$0xff] }
  0x3d   :  { %7166 = vmatpush3.bf16.msra.mxu1 %v8071_v16  ;;  %396 = vst.msk [vmem:[#allocation8 + $0x8] sm:$0xf] %vm395_vm3, %v394_v31  ;;  %v6963_v13 = vpack.c.bf16 %v637_v11, %v637_v11  ;;  %v8802_v16 = vld [vmem:[#allocation13 + $0x8] sm:$0xff]  }
  0x3e   :  { %7167 = vmatprep.subr.bf16.mxu1 %v8072_v17  ;;  %v8806_v17 = vld [vmem:[#allocation13] sm:$0xff]  }
  0x3f   :  { %7671 = vmatpush3.bf16.msra.mxu0 %v8661_v8 }
  0x40   :  { %7672 = vmatprep.subr.bf16.mxu0 %v11552_v1  ;;  %v299_v23 = vld [vmem:[#allocation7] sm:$0xf] }
  0x41   :  { %7168 = vmatpush3.bf16.msra.mxu1 %v8073_v18 }
  0x42   :  { %7169 = vmatprep.subr.bf16.mxu1 %v8074_v19 }
  0x43   :  { %7673 = vmatpush3.bf16.msra.mxu0 %v8684_v14 }
  0x44   :  { %7674 = vmatprep.subr.bf16.mxu0 %v11552_v1  ;;  %v8084_v40 = vld [vmem:[#allocation8 + $0x8] ss:$0 sps:$4 sm:$0xff]  }
  0x45   :  { %7170 = vmatpush3.bf16.msra.mxu1 %v8075_v21  ;;  %v716_v21 = vld [vmem:[#allocation5] sm:$0xff] }
  0x46   :  { %7171 = vmatprep.subr.bf16.mxu1 %v8718_v24 }
  0x47   :  { %7675 = vmatpush3.bf16.msra.mxu0 %v8687_v15 }
  0x48   :  { %7676 = vmatprep.subr.bf16.mxu0 %v11552_v1 }
  0x49   :  { %7172 = vmatpush3.bf16.msra.mxu1 %v8723_v25 }
  0x4a   :  { %7173 = vmatprep.subr.bf16.mxu1 %v8738_v26 }
  0x4b   :  { %7677 = vmatpush3.bf16.msra.mxu0 %v8703_v20 }
  0x4c   :  { %7678 = vmatprep.subr.bf16.mxu0 %v11552_v1 }
  0x4d   :  { %7174 = vmatpush3.bf16.msra.mxu1 %v8743_v27 }
  0x4e   :  { %7175 = vmatprep.subr.bf16.mxu1 %v8750_v28 }
  0x4f   :  { %7679 = vmatpush3.bf16.msra.mxu0 %v8710_v22 }
  0x51   :  { %7176 = vmatpush3.bf16.msra.mxu1 %v8755_v29 }
  0x52   :  { %7681 = vmatmul.mubr.bf16.vlgmr.msra.gmra.mxu0 %v299_v23  ;;  %7684 = vmatprep.subr.bf16.mxu1 %v11552_v1 }
 0x112   :  { %v382_v32 = vpop.f32.mrf.mxu0 }
 0x113   :  { %v8443_v34 = vpack.c.bf16 %v382_v32, %v382_v32 }
 0x114   :  { %v7682_v33 = vpop.f32.mrf.mxu0 }
 0x115   :  { %553 = vmatmul.mubr.bf16.vlgmr.msra.gmra.mxu1 %v8443_v34  ;;  %v8824_v33 = vld [vmem:[%s11545_s7] ss:$0 sm:$0xff] }
 0x116   :  { %v385_v36 = vpop.f32.mrf.mxu0  ;;  %7685 = vmatpush3.bf16.msra.mxu1 %v8764_v35  ;;  %7688 = vmatprep.mubr.msk.bf16.mxu1 %vm8551_vm0, %v11552_v1 }
 0x117   :  { %7686 = vmatprep.subr.bf16.mxu1 %v11552_v1 }
 0x118   :  { %v7683_v38 = vpop.f32.mrf.mxu0 }
 0x11a   :  { %7687 = vmatpush3.bf16.msra.mxu1 %v8770_v39 }
 0x11b   :  { %7692 = vmatprep.subr.bf16.mxu1 %v11552_v1 }
 0x11d   :  { %7689 = vmatmul.mubr.msk.bf16.vlgmr.msra.gmra.mxu1 %vm97_vm2, %v8084_v40 }
 0x11e   :  { %7700 = vmatprep.mubr.msk.bf16.mxu1 %vm8551_vm0, %v11552_v1  ;;  %7693 = vmatpush3.bf16.msra.mxu1 %v8792_v4 }
 0x11f   :  { %7694 = vmatprep.subr.bf16.mxu1 %v11552_v1 }
 0x122   :  { %7695 = vmatpush3.bf16.msra.mxu1 %v8795_v10 }
 0x123   :  { %7696 = vmatprep.subr.bf16.mxu1 %v11552_v1 }
 0x126   :  { %7697 = vmatpush3.bf16.msra.mxu1 %v8802_v16 }
 0x127   :  { %7698 = vmatprep.subr.bf16.mxu1 %v11552_v1 }
 0x12a   :  { %7699 = vmatpush3.bf16.msra.mxu1 %v8806_v17 }
 0x12b   :  { %7704 = vmatprep.subr.bf16.mxu1 %v11552_v1 }
 0x1d5   :  { %v7177_v41 = vpop.f32.mrf.mxu1 }
 0x1d7   :  { %v7178_v42 = vpop.f32.mrf.mxu1 }
 0x1d8   :  { %v7179_v43 = vadd.f32 %v7178_v42, %v7177_v41 }
 0x1d9   :  { %v7180_v44 = vpop.f32.mrf.mxu1 }
 0x1da   :  { %v555_v47 = vadd.f32 %v7179_v43, %v8783_v45 }
 0x1db   :  { %v7181_v46 = vpop.f32.mrf.mxu1 }
 0x1dd   :  { %v594_v48 = vpop.f32.mrf.mxu1 }
 0x1de   :  { %v595_v49 = vadd.f32 %v594_v48, %v555_v47 }
 0x1df   :  { %v7690_v50 = vpop.f32.mrf.mxu1 }
 0x1e0   :  { %8114 = vtanh.f32 %v595_v49  ;;  %v6826_v55 = vmul.f32 -1.442695, %v595_v49 }
 0x1e1   :  { %v597_v51 = vpop.f32.mrf.mxu1 }
 0x1e2   :  { %8116 = vpow2.f32 %v6826_v55 }
 0x1e3   :  { %v7691_v52 = vpop.f32.mrf.mxu1 }
 0x1ed   :  { %v8115_v53 = vpop.eup %8114 }
 0x1ee   :  { %614 = vrot.lane.b32.xlu0 %v8115_v53, %s8546_s30  ;;  %v8832_v53 = vld [vmem:[#allocation15 + $0x8] sm:$0xff]  }
 0x1ef   :  { %v8117_v56 = vpop.eup %8116 }
 0x1f0   :  { %v604_v57 = vadd.f32 1.0, %v8117_v56 }
 0x1f2   :  { %609 = vrot.lane.b32.xlu0 %v600_v54, %s8553_s27  ;;  %8118 = vrcp.f32 %v604_v57  ;;  %v8835_v54 = vld [vmem:[#allocation15] sm:$0xff]  }
 0x1ff   :  { %v8119_v58 = vpop.eup %8118 }
 0x260   :  { %v615_v59 = vpop.permute.xlu0 %614 }
 0x261   :  { %v617_v60 = vmul.f32 %v8119_v58, %v615_v59 }
 0x263   :  { %619 = vrot.lane.b32.xlu1 %v617_v60, %s8553_s27 }
 0x264   :  { %v610_v61 = vpop.permute.xlu0 %609 }
 0x265   :  { %v612_v62 = vmul.f32 %v8119_v58, %v610_v61 }
 0x2d5   :  { %v620_v63 = vpop.permute.xlu1 %619 }
 0x2d6   :  { %v8789_v3 = vadd.f32 %v620_v63, %v612_v62 }
 0x2d8   :  { %8120 = vtanh.f32 %v8789_v3 }
 0x2e5   :  { %v8121_v12 = vpop.eup %8120 }
 0x2e6   :  { %625 = vrot.lane.b32.xlu1 %v8121_v12, %s8546_s30  ;;  %v7125_v12 = vld [vmem:[%s11538_s0 + $0x20] sm:$0xff]  }
 0x2ea   :  { %642 = vrot.lane.b32.xlu1 %v6963_v13, %s8553_s27 }
 0x2ee   :  { %725 = vrot.lane.b32.xlu1 %v716_v21, %s8553_s27 }
 0x358   :  { %v626_v18 = vpop.permute.xlu1 %625 }
 0x359   :  { %v8810_v19 = vmul.f32 %v8119_v58, %v626_v18 }
 0x35b   :  { %v6962_v23 = vpack.c.bf16 %v8810_v19, %v8810_v19 }
 0x35c   :  { %v643_v30 = vpop.permute.xlu1 %642 }
 0x35d   :  { %633 = vrot.lane.b32.xlu0 %v6962_v23, %s8553_s27  ;;  %v8898_v23 = vunpack.c.l.bf16 %v7125_v12 }
 0x35f   :  { %11723 = vst [vmem:[#allocation24_spill] sm:$0xff] %v8898_v23 }
 0x360   :  { %v726_v49 = vpop.permute.xlu1 %725 }
 0x3cf   :  { %v634_v31 = vpop.permute.xlu0 %633 }
 0x3d0   :  { %636 = vst.msk [vmem:[#allocation9] sm:$0xf] %vm395_vm3, %v634_v31  ;;  %v7123_v31 = vld [vmem:[%s11538_s0 + $0x10] sm:$0xff]  }
 0x3d1   :  { %646 = vst.msk [vmem:[#allocation9] sm:$0xf] %vm645_vm4, %v643_v30  ;;  %v8900_v30 = vunpack.c.h.bf16 %v7125_v12 }
 0x3d3   :  { %11724 = vst [vmem:[#allocation25_spill] sm:$0xff] %v8900_v30 }
 0x3d8   :  { %v647_v32 = vld [vmem:[#allocation9] sm:$0xf] }
 0x3d9   :  { %7701 = vmatmul.mubr.msk.bf16.vlgmr.msra.gmra.mxu1 %vm672_vm5, %v647_v32  ;;  %v7126_v32 = vld [vmem:[%s11538_s0 + $0x28] sm:$0xff]  }
 0x3da   :  { %7708 = vmatprep.mubr.msk.bf16.mxu1 %vm8551_vm0, %v11552_v1  ;;  %7705 = vmatpush3.bf16.msra.mxu1 %v8832_v53 }
 0x3db   :  { %7706 = vmatprep.subr.bf16.mxu1 %v11552_v1 }
 0x3de   :  { %7707 = vmatpush3.bf16.msra.mxu1 %v8835_v54 }
 0x3df   :  { %7712 = vmatprep.subr.bf16.mxu1 %v11552_v1 }
 0x499   :  { %v710_v34 = vpop.f32.mrf.mxu1 }
 0x49a   :  { %v711_v36 = vadd.f32 %v8824_v33, %v710_v34 }
 0x49b   :  { %v7702_v37 = vpop.f32.mrf.mxu1 }
 0x49c   :  { %8122 = vtanh.f32 %v711_v36  ;;  %v6834_v42 = vmul.f32 -1.442695, %v711_v36  ;;  %v8912_v37 = vunpack.c.l.bf16 %v7123_v31 }
 0x49d   :  { %v713_v38 = vpop.f32.mrf.mxu1 }
 0x49e   :  { %8124 = vpow2.f32 %v6834_v42  ;;  %11725 = vst [vmem:[#allocation26_spill] sm:$0xff] %v8912_v37  ;;  %v8914_v38 = vunpack.c.l.bf16 %v7126_v32  ;;  %v8920_v42 = vunpack.c.h.bf16 %v7123_v31 }
 0x49f   :  { %v7703_v40 = vpop.f32.mrf.mxu1 }
 0x4a0   :  { %11726 = vst [vmem:[#allocation27_spill] sm:$0xff] %v8914_v38  ;;  %11727 = vst [vmem:[#allocation28_spill] sm:$0xff] %v8920_v42 }
 0x4a9   :  { %v8123_v41 = vpop.eup %8122 }
 0x4aa   :  { %730 = vrot.lane.b32.xlu0 %v8123_v41, %s8546_s30 }
 0x4ab   :  { %v8125_v43 = vpop.eup %8124 }
 0x4ac   :  { %v720_v44 = vadd.f32 1.0, %v8125_v43  ;;  %v8922_v43 = vunpack.c.h.bf16 %v7126_v32 }
 0x4ae   :  { %8126 = vrcp.f32 %v720_v44  ;;  %11728 = vst [vmem:[#allocation29_spill] sm:$0xff] %v8922_v43  ;;  %v7124_v44 = vld [vmem:[%s11538_s0 + $0x18] sm:$0xff]  }
 0x4bb   :  { %v8127_v46 = vpop.eup %8126 }
 0x4bc   :  { %v728_v50 = vmul.f32 %v8127_v46, %v726_v49  ;;  %v8934_v49 = vunpack.c.l.bf16 %v7124_v44 }
 0x4be   :  { %11729 = vst [vmem:[#allocation30_spill] sm:$0xff] %v8934_v49 }
 0x51c   :  { %v731_v47 = vpop.permute.xlu0 %730 }
 0x51d   :  { %v733_v48 = vmul.f32 %v8127_v46, %v731_v47 }
 0x51f   :  { %735 = vrot.lane.b32.xlu0 %v733_v48, %s8553_s27 }
 0x591   :  { %v736_v51 = vpop.permute.xlu0 %735 }
 0x592   :  { %v8829_v52 = vadd.f32 %v736_v51, %v728_v50 }
 0x594   :  { %8128 = vtanh.f32 %v8829_v52 }
 0x5a1   :  { %v8129_v55 = vpop.eup %8128 }
 0x5a2   :  { %741 = vrot.lane.b32.xlu1 %v8129_v55, %s8546_s30 }
 0x614   :  { %v742_v56 = vpop.permute.xlu1 %741 }
 0x615   :  { %v8841_v57 = vmul.f32 %v8127_v46, %v742_v56  ;;  %v7127_v46 = vld [vmem:[%s11538_s0 + $0x30] sm:$0xff]   ;;  %v8942_v56 = vunpack.c.h.bf16 %v7124_v44 }
 0x616   :  { %v8936_v50 = vunpack.c.l.bf16 %v7127_v46 }
 0x617   :  { %v745_v58 = vpack.c.bf16 %v8841_v57, %v8841_v57  ;;  %11731 = vst [vmem:[#allocation32_spill] sm:$0xff] %v8942_v56 }
 0x618   :  { %11730 = vst [vmem:[#allocation31_spill] sm:$0xff] %v8936_v50 }
 0x619   :  { %747 = vrot.lane.b32.xlu0 %v745_v58, %s8553_s27  ;;  %v8944_v58 = vunpack.c.h.bf16 %v7127_v46 }
 0x61b   :  { %11732 = vst [vmem:[#allocation33_spill] sm:$0xff] %v8944_v58 }
 0x68b   :  { %v748_v59 = vpop.permute.xlu0 %747 }
 0x68c   :  { %7709 = vmatmul.mubr.msk.bf16.vlgmr.msra.gmra.mxu1 %vm97_vm2, %v748_v59  ;;  %v7128_v59 = vld [vmem:[%s11538_s0 + $0x38] sm:$0xff]  }
 0x68d   :  { %7713 = vmatpush3.bf16.msra.mxu1 %v8651_v5  ;;  %7728 = vmatprep.mubr.msk.bf16.mxu1 %vm8551_vm0, %v11552_v1  ;;  %v6979_v5 = vld [vmem:[%s11538_s0] sm:$0xff]  }
 0x68e   :  { %7714 = vmatprep.subr.bf16.mxu1 %v11552_v1 }
 0x691   :  { %7715 = vmatpush3.bf16.msra.mxu1 %v8654_v6  ;;  %v8871_v6 = vld [vmem:[%s11547_s9] ss:$0 sm:$0xff] }
 0x692   :  { %7716 = vmatprep.subr.bf16.mxu1 %v11552_v1 }
 0x695   :  { %7717 = vmatpush3.bf16.msra.mxu1 %v8658_v7  ;;  %v8873_v7 = vunpack.c.h.bf16 %v6979_v5 }
 0x696   :  { %7718 = vmatprep.subr.bf16.mxu1 %v11552_v1 }
 0x699   :  { %7719 = vmatpush3.bf16.msra.mxu1 %v8661_v8  ;;  %v8875_v8 = vunpack.c.l.bf16 %v6979_v5 }
 0x69a   :  { %7720 = vmatprep.subr.bf16.mxu1 %v11552_v1 }
 0x69b   :  { %11720 = vst [vmem:[#allocation21_spill] sm:$0xff] %v8875_v8 }
 0x69d   :  { %7721 = vmatpush3.bf16.msra.mxu1 %v8684_v14 }
 0x69e   :  { %7722 = vmatprep.subr.bf16.mxu1 %v11552_v1 }
 0x6a1   :  { %7723 = vmatpush3.bf16.msra.mxu1 %v8687_v15  ;;  %v7122_v15 = vld [vmem:[%s11538_s0 + $0x8] sm:$0xff]  }
 0x6a2   :  { %7724 = vmatprep.subr.bf16.mxu1 %v11552_v1  ;;  %v8887_v62 = vunpack.c.l.bf16 %v7122_v15  ;;  %v8889_v63 = vunpack.c.h.bf16 %v7122_v15  ;;  %v8953_v15 = vunpack.c.l.bf16 %v7128_v59 }
 0x6a4   :  { %11721 = vst [vmem:[#allocation22_spill] sm:$0xff] %v8887_v62  ;;  %11722 = vst [vmem:[#allocation23_spill] sm:$0xff] %v8889_v63 }
 0x6a5   :  { %7725 = vmatpush3.bf16.msra.mxu1 %v8703_v20  ;;  %11733 = vst [vmem:[#allocation34_spill] sm:$0xff] %v8953_v15 }
 0x6a6   :  { %7726 = vmatprep.subr.bf16.mxu1 %v11552_v1 }
 0x6a9   :  { %7727 = vmatpush3.bf16.msra.mxu1 %v8710_v22 }
 0x6aa   :  { %7732 = vmatprep.subr.bf16.mxu1 %v11552_v1  ;;  %v9088_v1 = vld [vmem:[%s11548_s10 + $0x58] sm:$0xff]  }
 0x74c   :  { %v798_v14 = vpop.f32.mrf.mxu1 }
 0x74d   :  { %v8881_v20 = vadd.f32 %v8871_v6, %v798_v14 }
 0x74e   :  { %v7710_v22 = vpop.f32.mrf.mxu1 }
 0x74f   :  { %v805_v60 = vmul.f32 %v8873_v7, %v8881_v20  ;;  %v804_v61 = vmul.f32 %v8875_v8, %v8881_v20  ;;  %v806_v18 = vmul.f32 %v8887_v62, %v8881_v20  ;;  %v807_v21 = vmul.f32 %v8889_v63, %v8881_v20 }
 0x750   :  { %v801_v11 = vpop.f32.mrf.mxu1  ;;  %v812_v34 = vmul.f32 %v8898_v23, %v8881_v20  ;;  %v813_v36 = vmul.f32 %v8900_v30, %v8881_v20  ;;  %v808_v40 = vmul.f32 %v8912_v37, %v8881_v20  ;;  %v814_v41 = vmul.f32 %v8914_v38, %v8881_v20 }
 0x751   :  { %822 = vadd.xlane.f32.xlu0 %v805_v60  ;;  %820 = vadd.xlane.f32.xlu1 %v804_v61  ;;  %v809_v47 = vmul.f32 %v8920_v42, %v8881_v20  ;;  %v815_v48 = vmul.f32 %v8922_v43, %v8881_v20  ;;  %v810_v51 = vmul.f32 %v8934_v49, %v8881_v20  ;;  %v8955_v22 = vunpack.c.h.bf16 %v7128_v59 }
 0x752   :  { %v7711_v13 = vpop.f32.mrf.mxu1  ;;  %v816_v55 = vmul.f32 %v8936_v50, %v8881_v20  ;;  %v811_v5 = vmul.f32 %v8942_v56, %v8881_v20  ;;  %v817_v14 = vmul.f32 %v8944_v58, %v8881_v20  ;;  %v818_v60 = vmul.f32 %v8953_v15, %v8881_v20 }
 0x753   :  { %11734 = vst [vmem:[#allocation35_spill] sm:$0xff] %v8955_v22  ;;  %v819_v61 = vmul.f32 %v8955_v22, %v8881_v20 }
 0x755   :  { %824 = vadd.xlane.f32.xlu0 %v806_v18  ;;  %826 = vadd.xlane.f32.xlu1 %v807_v21  ;;  %v8962_v21 = vshrl.u32 %v292_v0, 7 }
 0x759   :  { %836 = vadd.xlane.f32.xlu0 %v812_v34  ;;  %838 = vadd.xlane.f32.xlu1 %v813_v36  ;;  %v8966_v34 = vsub.s32 %v8647_v2, %v8962_v21 }
 0x75b   :  { %11735 = vst [vmem:[#allocation36_spill] sm:$0xff] %v8966_v34 }
 0x75d   :  { %828 = vadd.xlane.f32.xlu0 %v808_v40  ;;  %840 = vadd.xlane.f32.xlu1 %v814_v41 }
 0x761   :  { %830 = vadd.xlane.f32.xlu0 %v809_v47  ;;  %842 = vadd.xlane.f32.xlu1 %v815_v48 }
 0x765   :  { %832 = vadd.xlane.f32.xlu0 %v810_v51  ;;  %844 = vadd.xlane.f32.xlu1 %v816_v55 }
 0x769   :  { %834 = vadd.xlane.f32.xlu0 %v811_v5  ;;  %846 = vadd.xlane.f32.xlu1 %v817_v14 }
 0x76d   :  { %848 = vadd.xlane.f32.xlu0 %v818_v60  ;;  %850 = vadd.xlane.f32.xlu1 %v819_v61 }
 0x7da   :  { %v823_v11 = vpop.xlane.xlu0 %822  ;;  %v821_v12 = vpop.xlane.xlu1 %820 }
 0x7db   :  { %v875_v41 = vrot.slane %v823_v11, %v8966_v34  ;;  %v871_v44 = vrot.slane %v821_v12, %v8966_v34 }
 0x7dd   :  { %v933_v0 = vsel %vm932_vm6, %v875_v41, %v871_v44 }
 0x7de   :  { %v825_v13 = vpop.xlane.xlu0 %824  ;;  %v827_v18 = vpop.xlane.xlu1 %826 }
 0x7df   :  { %v879_v46 = vrot.slane %v825_v13, %v8966_v34  ;;  %v883_v51 = vrot.slane %v827_v18, %v8966_v34 }
 0x7e1   :  { %v935_v55 = vsel %vm934_vm7, %v879_v46, %v933_v0 }
 0x7e2   :  { %v837_v31 = vpop.xlane.xlu0 %836  ;;  %v839_v32 = vpop.xlane.xlu1 %838  ;;  %v937_v13 = vsel %vm936_vm8, %v883_v51, %v935_v55 }
 0x7e3   :  { %v903_v61 = vrot.slane %v837_v31, %v8966_v34  ;;  %v907_v11 = vrot.slane %v839_v32, %v8966_v34 }
 0x7e5   :  { %v946_v0 = vsel %vm932_vm6, %v907_v11, %v903_v61 }
 0x7e6   :  { %v829_v36 = vpop.xlane.xlu0 %828  ;;  %v841_v40 = vpop.xlane.xlu1 %840 }
 0x7e7   :  { %v887_v59 = vrot.slane %v829_v36, %v8966_v34  ;;  %v911_v18 = vrot.slane %v841_v40, %v8966_v34 }
 0x7e9   :  { %v939_v41 = vsel %vm938_vm9, %v887_v59, %v937_v13  ;;  %v947_v55 = vsel %vm934_vm7, %v911_v18, %v946_v0  ;;  %v9001_v18 = vld [vmem:[%s11540_s2] sm:$0xff] }
 0x7ea   :  { %v831_v47 = vpop.xlane.xlu0 %830  ;;  %v843_v48 = vpop.xlane.xlu1 %842  ;;  %11736 = vst [vmem:[#allocation37_spill] sm:$0xff] %v9001_v18 }
 0x7eb   :  { %v891_v60 = vrot.slane %v831_v47, %v8966_v34  ;;  %v915_v36 = vrot.slane %v843_v48, %v8966_v34 }
 0x7ed   :  { %v941_v32 = vsel %vm940_vm10, %v891_v60, %v939_v41  ;;  %v948_v48 = vsel %vm936_vm8, %v915_v36, %v947_v55 }
 0x7ee   :  { %v833_v5 = vpop.xlane.xlu0 %832  ;;  %v845_v14 = vpop.xlane.xlu1 %844 }
 0x7ef   :  { %v895_v12 = vrot.slane %v833_v5, %v8966_v34  ;;  %v919_v47 = vrot.slane %v845_v14, %v8966_v34 }
 0x7f1   :  { %v943_v40 = vsel %vm942_vm11, %v895_v12, %v941_v32  ;;  %v949_v14 = vsel %vm938_vm9, %v919_v47, %v948_v48  ;;  %v9013_v48 = vld [vmem:[%s11548_s10 + $0x78] sm:$0xff]  }
 0x7f2   :  { %v835_v44 = vpop.xlane.xlu0 %834  ;;  %v847_v46 = vpop.xlane.xlu1 %846  ;;  %7194 = vmatprep.subr.bf16.mxu0 %v9013_v48 }
 0x7f3   :  { %v899_v31 = vrot.slane %v835_v44, %v8966_v34  ;;  %v923_v51 = vrot.slane %v847_v46, %v8966_v34 }
 0x7f5   :  { %v945_v59 = vsel %vm944_vm12, %v899_v31, %v943_v40  ;;  %v950_v61 = vsel %vm940_vm10, %v923_v51, %v949_v14 }
 0x7f6   :  { %v849_v5 = vpop.xlane.xlu0 %848  ;;  %955 = vxpose.xlu0.b32.start [1/2] (short) (narrow) %v945_v59, 8  ;;  %v851_v13 = vpop.xlane.xlu1 %850 }
 0x7f7   :  { %v927_v44 = vrot.slane %v849_v5, %v8966_v34  ;;  %v931_v60 = vrot.slane %v851_v13, %v8966_v34  ;;  %v9016_v5 = vsub.s32 1, %v8962_v21  ;;  %v9019_v13 = vsub.s32 0, %v8962_v21 }
 0x7f8   :  { %v9092_v34 = vsub.s32 7, %v8962_v21 }
 0x7f9   :  { %v951_v11 = vsel %vm942_vm11, %v927_v44, %v950_v61  ;;  %11737 = vst [vmem:[#allocation38_spill] sm:$0xff] %v9016_v5  ;;  %11738 = vst [vmem:[#allocation39_spill] sm:$0xff] %v9019_v13  ;;  %v9025_v44 = vld [vmem:[%s11548_s10 + $0x38] sm:$0xff]  }
 0x7fa   :  { %v952_v12 = vsel %vm944_vm12, %v931_v60, %v951_v11  ;;  %v9030_v60 = vld [vmem:[%s11548_s10 + $0x70] sm:$0xff]   ;;  %7195 = vmatpush3.bf16.msra.mxu0 %v9025_v44  ;;  %11744 = vst [vmem:[#allocation45_spill] sm:$0xff] %v9092_v34 }
 0x7fb   :  { %956 = vxpose.xlu0.b32.end [2/2] (short) (narrow) %v952_v12, 8  ;;  %v9035_v12 = vsub.s32 4, %v8962_v21  ;;  %7196 = vmatprep.subr.bf16.mxu0 %v9030_v60 }
 0x7fd   :  { %11739 = vst [vmem:[#allocation40_spill] sm:$0xff] %v9035_v12 }
 0x873   :  { %v971_v41 = vpop.trf.xlu0 }
 0x874   :  { %v987_v36 = vadd.f32 %v971_v41, %v9001_v18  ;;  %v9038_v41 = vsub.s32 2, %v8962_v21 }
 0x876   :  { %v989_v46 = vsel %vm988_vm13, %v987_v36, -inf  ;;  %11740 = vst [vmem:[#allocation41_spill] sm:$0xff] %v9038_v41 }
 0x877   :  { %990 = vmax.xlane.f32.xlu1 %v989_v46  ;;  %v9050_v46 = vld [vmem:[%s11548_s10 + $0x68] sm:$0xff]  }
 0x900   :  { %v991_v47 = vpop.xlane.xlu1 %990 }
 0x901   :  { %v992_v31 = vsub.f32 %v987_v36, %v991_v47  ;;  %v9045_v36 = vld [vmem:[%s11548_s10 + $0x30] sm:$0xff]  }
 0x902   :  { %7197 = vmatpush3.bf16.msra.mxu0 %v9045_v36 }
 0x903   :  { %v993_v32 = vmul.f32 1.442695, %v992_v31  ;;  %7198 = vmatprep.subr.bf16.mxu0 %v9050_v46 }
 0x905   :  { %8130 = vpow2.f32 %v993_v32  ;;  %v9055_v32 = vsub.s32 6, %v8962_v21 }
 0x907   :  { %11741 = vst [vmem:[#allocation42_spill] sm:$0xff] %v9055_v32 }
 0x912   :  { %v8131_v0 = vpop.eup %8130 }
 0x913   :  { %v995_v51 = vsel %vm988_vm13, %v8131_v0, 0.0 }
 0x914   :  { %996 = vadd.xlane.f32.xlu1 %v995_v51 }
 0x99d   :  { %v997_v40 = vpop.xlane.xlu1 %996 }
 0x99e   :  { %8132 = vrcp.f32 %v997_v40  ;;  %v9065_v40 = vld [vmem:[%s11548_s10 + $0x28] sm:$0xff]  }
 0x99f   :  { %7199 = vmatpush3.bf16.msra.mxu0 %v9065_v40 }
 0x9ab   :  { %v8133_v55 = vpop.eup %8132 }
 0x9ac   :  { %v999_v59 = vmul.f32 %v8133_v55, %v8131_v0  ;;  %v9058_v0 = vsub.s32 3, %v8962_v21  ;;  %v9070_v55 = vld [vmem:[%s11548_s10 + $0x60] sm:$0xff]  }
 0x9ad   :  { %7200 = vmatprep.subr.bf16.mxu0 %v9070_v55 }
 0x9ae   :  { %1000 = vxpose.xlu1.b32.start.end [1/1] (short) (narrow) %v999_v59, 16  ;;  %1324 = vst.msk [vmem:[%s11551_s13] sm:$0xff] %vm988_vm13, %v999_v59  ;;  %11742 = vst [vmem:[#allocation43_spill] sm:$0xff] %v9058_v0 }
 0xa2a   :  { %v1016_v14 = vpop.trf.xlu1 }
 0xa2b   :  { %v1042_v61 = vrot.slane %v1016_v14, %v9016_v5  ;;  %v1035_v11 = vrot.slane %v1016_v14, %v9019_v13  ;;  %v1063_v47 = vrot.slane %v1016_v14, %v9035_v12  ;;  %v1049_v31 = vrot.slane %v1016_v14, %v9038_v41 }
 0xa2c   :  { %v1077_v59 = vrot.slane %v1016_v14, %v9055_v32 }
 0xa2d   :  { %1044 = vbcast.lane.b32.xlu1 %v1042_v61, 256  ;;  %1037 = vbcast.lane.b32.xlu0 %v1035_v11, 256  ;;  %v1056_v61 = vrot.slane %v1016_v14, %v9058_v0  ;;  %v9075_v11 = vsub.s32 5, %v8962_v21  ;;  %v1084_v21 = vrot.slane %v1016_v14, %v9092_v34 }
 0xa2e   :  { %v1017_v51 = vpop.trf.xlu1 }
 0xa2f   :  { %11743 = vst [vmem:[#allocation44_spill] sm:$0xff] %v9075_v11  ;;  %v1070_v18 = vrot.slane %v1016_v14, %v9075_v11  ;;  %v1119_v14 = vrot.slane %v1017_v51, %v9035_v12  ;;  %v1133_v12 = vrot.slane %v1017_v51, %v9055_v32  ;;  %v7011_v32 = vld [vmem:[%s11539_s1] sm:$0xff]  }
 0xa30   :  { %v9155_v22 = vunpack.c.h.bf16 %v7011_v32 }
 0xa31   :  { %1065 = vbcast.lane.b32.xlu1 %v1063_v47, 256  ;;  %1051 = vbcast.lane.b32.xlu0 %v1049_v31, 256  ;;  %v1091_v47 = vrot.slane %v1017_v51, %v9019_v13  ;;  %v9083_v31 = vld [vmem:[%s11548_s10 + $0x20] sm:$0xff]   ;;  %v9105_v13 = vld [vmem:[%s11548_s10 + $0x50] sm:$0xff]  }
 0xa32   :  { %7201 = vmatpush3.bf16.msra.mxu0 %v9083_v31  ;;  %11746 = vst [vmem:[#allocation47_spill] sm:$0xff] %v9155_v22 }
 0xa33   :  { %7202 = vmatprep.subr.bf16.mxu0 %v9088_v1 }
 0xa35   :  { %1079 = vbcast.lane.b32.xlu1 %v1077_v59, 256  ;;  %1058 = vbcast.lane.b32.xlu0 %v1056_v61, 256  ;;  %v1105_v59 = vrot.slane %v1017_v51, %v9038_v41  ;;  %v9100_v61 = vld [vmem:[%s11548_s10 + $0x18] sm:$0xff]   ;;  %v1098_v41 = vrot.slane %v1017_v51, %v9016_v5  ;;  %v1112_v5 = vrot.slane %v1017_v51, %v9058_v0 }
 0xa36   :  { %7203 = vmatpush3.bf16.msra.mxu0 %v9100_v61  ;;  %v1140_v0 = vrot.slane %v1017_v51, %v9092_v34  ;;  %v7130_v34 = vld [vmem:[%s11539_s1 + $0x10] sm:$0xff]  }
 0xa37   :  { %7204 = vmatprep.subr.bf16.mxu0 %v9105_v13  ;;  %v9167_v49 = vunpack.c.l.bf16 %v7130_v34  ;;  %v9173_v42 = vunpack.c.h.bf16 %v7130_v34 }
 0xa39   :  { %1072 = vbcast.lane.b32.xlu0 %v1070_v18, 256  ;;  %1093 = vbcast.lane.b32.xlu1 %v1091_v47, 256  ;;  %v9113_v18 = vld [vmem:[%s11548_s10 + $0x10] sm:$0xff]   ;;  %v9118_v47 = vld [vmem:[%s11548_s10 + $0x48] sm:$0xff]   ;;  %11749 = vst [vmem:[#allocation50_spill] sm:$0xff] %v9167_v49  ;;  %11750 = vst [vmem:[#allocation51_spill] sm:$0xff] %v9173_v42 }
 0xa3a   :  { %7205 = vmatpush3.bf16.msra.mxu0 %v9113_v18 }
 0xa3b   :  { %7206 = vmatprep.subr.bf16.mxu0 %v9118_v47 }
 0xa3d   :  { %1086 = vbcast.lane.b32.xlu0 %v1084_v21, 256  ;;  %1107 = vbcast.lane.b32.xlu1 %v1105_v59, 256  ;;  %v9127_v59 = vld [vmem:[%s11548_s10 + $0x8] sm:$0xff]   ;;  %v9132_v21 = vld [vmem:[%s11548_s10 + $0x40] sm:$0xff]  }
 0xa3e   :  { %7207 = vmatpush3.bf16.msra.mxu0 %v9127_v59 }
 0xa3f   :  { %7208 = vmatprep.subr.bf16.mxu0 %v9132_v21 }
 0xa41   :  { %1100 = vbcast.lane.b32.xlu0 %v1098_v41, 256  ;;  %1121 = vbcast.lane.b32.xlu1 %v1119_v14, 256  ;;  %v9140_v41 = vld [vmem:[%s11548_s10] sm:$0xff]   ;;  %v1126_v14 = vrot.slane %v1017_v51, %v9075_v11 }
 0xa42   :  { %7209 = vmatpush3.bf16.msra.mxu0 %v9140_v41 }
 0xa43   :  { %7225 = vmatprep.subr.bf16.mxu0 %v8666_v9 }
 0xa45   :  { %1114 = vbcast.lane.b32.xlu0 %v1112_v5, 256  ;;  %1135 = vbcast.lane.b32.xlu1 %v1133_v12, 256  ;;  %v7129_v5 = vld [vmem:[%s11539_s1 + $0x8] sm:$0xff]   ;;  %v9153_v12 = vunpack.c.l.bf16 %v7011_v32 }
 0xa46   :  { %v9165_v50 = vunpack.c.h.bf16 %v7129_v5 }
 0xa47   :  { %11745 = vst [vmem:[#allocation46_spill] sm:$0xff] %v9153_v12 }
 0xa48   :  { %11748 = vst [vmem:[#allocation49_spill] sm:$0xff] %v9165_v50 }
 0xa49   :  { %1128 = vbcast.lane.b32.xlu0 %v1126_v14, 256  ;;  %v9157_v14 = vunpack.c.l.bf16 %v7129_v5 }
 0xa4b   :  { %11747 = vst [vmem:[#allocation48_spill] sm:$0xff] %v9157_v14 }
 0xa4d   :  { %1142 = vbcast.lane.b32.xlu0 %v1140_v0, 256 }
 0xa9f   :  { %v1038_v11 = vpop.permute.xlu0 %1037  ;;  %v1045_v15 = vpop.permute.xlu1 %1044 }
 0xaa0   :  { %v1144_v9 = vmul.f32 %v9153_v12, %v1038_v11  ;;  %v1145_v0 = vmul.f32 %v9155_v22, %v1045_v15  ;;  %v7131_v11 = vld [vmem:[%s11539_s1 + $0x18] sm:$0xff]  }
 0xaa2   :  { %v1160_v32 = vadd.f32 %v1145_v0, %v1144_v9  ;;  %v9179_v0 = vunpack.c.l.bf16 %v7131_v11 }
 0xaa3   :  { %v1052_v51 = vpop.permute.xlu0 %1051  ;;  %v1066_v58 = vpop.permute.xlu1 %1065 }
 0xaa4   :  { %v1146_v56 = vmul.f32 %v9157_v14, %v1052_v51  ;;  %v7132_v51 = vld [vmem:[%s11539_s1 + $0x20] sm:$0xff]   ;;  %v1148_v5 = vmul.f32 %v9167_v49, %v1066_v58  ;;  %11751 = vst [vmem:[#allocation52_spill] sm:$0xff] %v9179_v0  ;;  %v7133_v58 = vld [vmem:[%s11539_s1 + $0x28] sm:$0xff]  }
 0xaa5   :  { %v9182_v23 = vunpack.c.l.bf16 %v7132_v51 }
 0xaa6   :  { %v1161_v15 = vadd.f32 %v1160_v32, %v1146_v56  ;;  %v9184_v56 = vunpack.c.h.bf16 %v7131_v11 }
 0xaa7   :  { %v1059_v43 = vpop.permute.xlu0 %1058  ;;  %v1080_v12 = vpop.permute.xlu1 %1079  ;;  %11752 = vst [vmem:[#allocation53_spill] sm:$0xff] %v9182_v23 }
 0xaa8   :  { %v1147_v22 = vmul.f32 %v9165_v50, %v1059_v43  ;;  %11753 = vst [vmem:[#allocation54_spill] sm:$0xff] %v9184_v56  ;;  %v1150_v43 = vmul.f32 %v9179_v0, %v1080_v12  ;;  %v9200_v0 = vunpack.c.h.bf16 %v7133_v58 }
 0xaaa   :  { %v1162_v9 = vadd.f32 %v1161_v15, %v1147_v22 }
 0xaab   :  { %v1073_v14 = vpop.permute.xlu0 %1072  ;;  %v1094_v38 = vpop.permute.xlu1 %1093 }
 0xaac   :  { %v1149_v37 = vmul.f32 %v9173_v42, %v1073_v14  ;;  %v1163_v30 = vadd.f32 %v1162_v9, %v1148_v5  ;;  %v1152_v15 = vmul.f32 %v9182_v23, %v1094_v38  ;;  %v9192_v14 = vunpack.c.h.bf16 %v7132_v51 }
 0xaad   :  { %v9194_v9 = vunpack.c.l.bf16 %v7133_v58 }
 0xaae   :  { %v1164_v34 = vadd.f32 %v1163_v30, %v1149_v37  ;;  %11754 = vst [vmem:[#allocation55_spill] sm:$0xff] %v9192_v14  ;;  %v7134_v30 = vld [vmem:[%s11539_s1 + $0x30] sm:$0xff]  }
 0xaaf   :  { %v1087_v32 = vpop.permute.xlu0 %1086  ;;  %v1108_v22 = vpop.permute.xlu1 %1107  ;;  %11755 = vst [vmem:[#allocation56_spill] sm:$0xff] %v9194_v9 }
 0xab0   :  { %v1151_v49 = vmul.f32 %v9184_v56, %v1087_v32  ;;  %v1165_v50 = vadd.f32 %v1164_v34, %v1150_v43  ;;  %v1154_v38 = vmul.f32 %v9194_v9, %v1108_v22  ;;  %v9203_v43 = vunpack.c.l.bf16 %v7134_v30 }
 0xab1   :  { %v9209_v56 = vunpack.c.h.bf16 %v7134_v30 }
 0xab2   :  { %v1166_v5 = vadd.f32 %v1165_v50, %v1151_v49  ;;  %v7135_v49 = vld [vmem:[%s11539_s1 + $0x38] sm:$0xff]  }
 0xab3   :  { %v1101_v11 = vpop.permute.xlu0 %1100  ;;  %v1122_v42 = vpop.permute.xlu1 %1121  ;;  %v9215_v9 = vunpack.c.h.bf16 %v7135_v49 }
 0xab4   :  { %v1153_v37 = vmul.f32 %v9192_v14, %v1101_v11  ;;  %v1167_v12 = vadd.f32 %v1166_v5, %v1152_v15  ;;  %v1156_v15 = vmul.f32 %v9203_v43, %v1122_v42  ;;  %v9212_v5 = vunpack.c.l.bf16 %v7135_v49  ;;  %v9227_v49 = vld [vmem:[%s11542_s4 + $0x38] sm:$0xff]  }
 0xab5   :  { %v7136_v42 = vpack.c.bf16 %v8881_v20, %v8881_v20  ;;  %v9239_v20 = vld [vmem:[%s11542_s4 + $0x30] sm:$0xff]  }
 0xab6   :  { %v1168_v32 = vadd.f32 %v1167_v12, %v1153_v37 }
 0xab7   :  { %v1115_v51 = vpop.permute.xlu0 %1114  ;;  %v1136_v11 = vpop.permute.xlu1 %1135 }
 0xab8   :  { %v1155_v50 = vmul.f32 %v9200_v0, %v1115_v51  ;;  %v1169_v34 = vadd.f32 %v1168_v32, %v1154_v38  ;;  %v1158_v14 = vmul.f32 %v9212_v5, %v1136_v11 }
 0xaba   :  { %v1170_v58 = vadd.f32 %v1169_v34, %v1155_v50  ;;  %v9257_v50 = vld [vmem:[%s11542_s4 + $0x60] sm:$0xff]  }
 0xabb   :  { %v1129_v22 = vpop.permute.xlu0 %1128  ;;  %v9263_v34 = vld [vmem:[%s11542_s4 + $0x20] sm:$0xff]  }
 0xabc   :  { %v1157_v37 = vmul.f32 %v9209_v56, %v1129_v22  ;;  %v1171_v12 = vadd.f32 %v1170_v58, %v1156_v15  ;;  %v9269_v15 = vld [vmem:[%s11542_s4 + $0x58] sm:$0xff]   ;;  %v9285_v22 = vld [vmem:[#allocation16] ss:$0 sm:$0xff] }
 0xabd   :  { %v9275_v58 = vld [vmem:[%s11542_s4 + $0x18] sm:$0xff]  }
 0xabe   :  { %v1172_v23 = vadd.f32 %v1171_v12, %v1157_v37 }
 0xabf   :  { %v1143_v63 = vpop.permute.xlu0 %1142 }
 0xac0   :  { %v1159_v38 = vmul.f32 %v9215_v9, %v1143_v63  ;;  %v1173_v30 = vadd.f32 %v1172_v23, %v1158_v14  ;;  %v9233_v63 = vld [vmem:[%s11542_s4 + $0x70] sm:$0xff]   ;;  %v9245_v23 = vld [vmem:[%s11542_s4 + $0x68] sm:$0xff]  }
 0xac1   :  { %v9251_v14 = vld [vmem:[%s11542_s4 + $0x28] sm:$0xff]  }
 0xac2   :  { %v1174_v32 = vadd.f32 %v1173_v30, %v1159_v38 }
 0xac4   :  { %v9219_v51 = vpack.c.bf16 %v1174_v32, %v1174_v32 }
 0xac6   :  { %1315 = vmatprep.mubr.bf16.mxu0 %v9219_v51 }
 0xac7   :  { %1316 = vmatmul.mubr.bf16.vlgmr.msra.gmra.mxu0 %v7136_v42 }
 0xac8   :  { %7226 = vmatpush3.bf16.msra.mxu0 %v9227_v49  ;;  %1465 = vmatprep.mubr.bf16.mxu0 %v9219_v51 }
 0xac9   :  { %7227 = vmatprep.subr.bf16.mxu0 %v9233_v63 }
 0xacc   :  { %7228 = vmatpush3.bf16.msra.mxu0 %v9239_v20 }
 0xacd   :  { %7229 = vmatprep.subr.bf16.mxu0 %v9245_v23 }
 0xad0   :  { %7230 = vmatpush3.bf16.msra.mxu0 %v9251_v14 }
 0xad1   :  { %7231 = vmatprep.subr.bf16.mxu0 %v9257_v50 }
 0xad4   :  { %7232 = vmatpush3.bf16.msra.mxu0 %v9263_v34 }
 0xad5   :  { %7233 = vmatprep.subr.bf16.mxu0 %v9269_v15 }
 0xad8   :  { %7234 = vmatpush3.bf16.msra.mxu0 %v9275_v58 }
 0xad9   :  { %7235 = vmatprep.subr.bf16.mxu0 %v8718_v24 }
 0xadc   :  { %7236 = vmatpush3.bf16.msra.mxu0 %v8723_v25 }
 0xadd   :  { %7237 = vmatprep.subr.bf16.mxu0 %v8738_v26 }
 0xae0   :  { %7238 = vmatpush3.bf16.msra.mxu0 %v8743_v27 }
 0xae1   :  { %7239 = vmatprep.subr.bf16.mxu0 %v8750_v28 }
 0xae4   :  { %7240 = vmatpush3.bf16.msra.mxu0 %v8755_v29 }
 0xae5   :  { %7258 = vmatprep.subr.bf16.mxu0 %v9013_v48 }
 0xb87   :  { %v7210_v11 = vpop.f32.mrf.mxu0 }
 0xb89   :  { %v7211_v37 = vpop.f32.mrf.mxu0 }
 0xb8a   :  { %v7212_v12 = vadd.f32 %v7211_v37, %v7210_v11 }
 0xb8b   :  { %v7213_v38 = vpop.f32.mrf.mxu0 }
 0xb8c   :  { %v1318_v24 = vadd.f32 %v7212_v12, %v9285_v22 }
 0xb8d   :  { %v7214_v30 = vpop.f32.mrf.mxu0 }
 0xb8e   :  { %1323 = vst [vmem:[%s11550_s12] sm:$0xff] %v1318_v24  ;;  %1325 = vmax.xlane.f32.xlu1 %v1318_v24 }
 0xb9f   :  { %1349 = vrot.lane.b32.xlu1 %v8810_v19, %s8553_s27 }
 0xc17   :  { %v1326_v25 = vpop.xlane.xlu1 %1325 }
 0xc18   :  { %vm1327_vm14 = vcmp.ge.f32.partialorder %v1318_v24, %v1326_v25 }
 0xc19   :  { %v1328_v26 = vsel %vm1327_vm14, %v8647_v2, 128 }
 0xc1a   :  { %v1330_v27 = vshra.s32 %v1328_v26, 16  ;;  %v1329_v42 = vand.u32 65535, %v1328_v26  ;;  %v11756_v26 = vmov 0.0  }
 0xc1b   :  { %v1350_v28 = vpop.permute.xlu1 %1349 }
 0xc1c   :  { %1352 = vst.msk [vmem:[#allocation2] sm:$0xff] %vm97_vm2, %v1350_v28  ;;  %v1332_v29 = vcvt.s32.f32 %v1330_v27  ;;  %v1331_v37 = vcvt.s32.f32 %v1329_v42 }
 0xc1e   :  { %1333 = vmin.xlane.f32.xlu0 %v1332_v29 }
 0xc23   :  { %v1415_v48 = vld [vmem:[#allocation2] sm:$0xff] }
 0xc24   :  { %v1416_v32 = vpack.c.bf16 %v1415_v48, %v1415_v48 }
 0xc26   :  { %1417 = vst.msk [vmem:[#allocation8 + $0x8] sm:$0xf] %vm395_vm3, %v1416_v32 }
 0xca7   :  { %v1334_v11 = vpop.xlane.xlu0 %1333 }
 0xca8   :  { %vm1335_vm15 = vcmp.eq.f32.partialorder %v1332_v29, %v1334_v11  ;;  %v1340_v19 = vcvt.f32.s32 %v1334_v11 }
 0xca9   :  { %v1336_v12 = vsel %vm1335_vm15, %v1331_v37, inf }
 0xcaa   :  { %1337 = vmin.xlane.f32.xlu0 %v1336_v12  ;;  %v1341_v24 = vshll.u32 %v1340_v19, 16 }
 0xcc0   :  { %1354 = vrot.lane.b32.xlu0 %v8789_v3, %s8554_s21  ;;  %v8107_v3 = vld [vmem:[#allocation8 + $0x8] ss:$0 sps:$4 sm:$0xff]  }
 0xd33   :  { %v1338_v38 = vpop.xlane.xlu0 %1337 }
 0xd34   :  { %v1339_v30 = vcvt.f32.s32 %v1338_v38 }
 0xd36   :  { %v1342_v25 = vadd.s32 %v1341_v24, %v1339_v30 }
 0xd37   :  { %v1355_v27 = vpop.permute.xlu0 %1354 }
 0xd38   :  { %vm1343_vm1 = vcmp.eq.s32.totalorder %v8647_v2, %v1342_v25  ;;  %1357 = vst.msk [vmem:[#allocation3] sm:$0xff] %vm97_vm2, %v1355_v27 }
 0xd39   :  { %v6856_v28 = vsel %vm1343_vm1, 1.0, %v11756_v26 }
 0xd3a   :  { %v1346_v48 = vpack.c.bf16 %v6856_v28, %v6856_v28 }
 0xd3c   :  { %1347 = vst [vmem:[#allocation7] sm:$0xf] %v1346_v48 }
 0xd43   :  { %v1369_v29 = vld [vmem:[#allocation7] sm:$0xf] }
 0xd44   :  { %7729 = vmatmul.mubr.bf16.vlgmr.msra.gmra.mxu1 %v1369_v29 }
 0xd45   :  { %7733 = vmatpush3.bf16.msra.mxu1 %v8764_v35  ;;  %7736 = vmatprep.mubr.msk.bf16.mxu1 %vm8551_vm0, %v11756_v26 }
 0xd46   :  { %7734 = vmatprep.subr.bf16.mxu1 %v11756_v26 }
 0xd49   :  { %7735 = vmatpush3.bf16.msra.mxu1 %v8770_v39 }
 0xd4a   :  { %7740 = vmatprep.subr.bf16.mxu1 %v11756_v26 }
 0xd4c   :  { %7737 = vmatmul.mubr.msk.bf16.vlgmr.msra.gmra.mxu1 %vm97_vm2, %v8107_v3 }
 0xd4d   :  { %7741 = vmatpush3.bf16.msra.mxu1 %v8792_v4  ;;  %7748 = vmatprep.mubr.msk.bf16.mxu1 %vm8551_vm0, %v11756_v26 }
 0xd4e   :  { %7742 = vmatprep.subr.bf16.mxu1 %v11756_v26 }
 0xd51   :  { %7743 = vmatpush3.bf16.msra.mxu1 %v8795_v10 }
 0xd52   :  { %7744 = vmatprep.subr.bf16.mxu1 %v11756_v26 }
 0xd55   :  { %7745 = vmatpush3.bf16.msra.mxu1 %v8802_v16 }
 0xd56   :  { %7746 = vmatprep.subr.bf16.mxu1 %v11756_v26 }
 0xd59   :  { %7747 = vmatpush3.bf16.msra.mxu1 %v8806_v17 }
 0xd5a   :  { %7752 = vmatprep.subr.bf16.mxu1 %v11756_v26 }
 0xe04   :  { %v1404_v35 = vpop.f32.mrf.mxu1 }
 0xe05   :  { %v8445_v4 = vpack.c.bf16 %v1404_v35, %v1404_v35 }
 0xe06   :  { %v7730_v39 = vpop.f32.mrf.mxu1 }
 0xe07   :  { %1466 = vmatmul.mubr.bf16.vlgmr.msra.gmra.mxu0 %v8445_v4 }
 0xe08   :  { %v1407_v32 = vpop.f32.mrf.mxu1  ;;  %7259 = vmatpush3.bf16.msra.mxu0 %v9025_v44  ;;  %v9337_v44 = vld [vmem:[%s11542_s4 + $0x78] sm:$0xff]  }
 0xe09   :  { %7260 = vmatprep.subr.bf16.mxu0 %v9030_v60 }
 0xe0a   :  { %v7731_v42 = vpop.f32.mrf.mxu1 }
 0xe0c   :  { %v1507_v10 = vpop.f32.mrf.mxu1  ;;  %7261 = vmatpush3.bf16.msra.mxu0 %v9045_v36 }
 0xe0d   :  { %7262 = vmatprep.subr.bf16.mxu0 %v9050_v46 }
 0xe0e   :  { %v7738_v16 = vpop.f32.mrf.mxu1 }
 0xe10   :  { %v1510_v11 = vpop.f32.mrf.mxu1  ;;  %7263 = vmatpush3.bf16.msra.mxu0 %v9065_v40 }
 0xe11   :  { %7264 = vmatprep.subr.bf16.mxu0 %v9070_v55 }
 0xe12   :  { %v7739_v17 = vpop.f32.mrf.mxu1 }
 0xe14   :  { %7265 = vmatpush3.bf16.msra.mxu0 %v9083_v31 }
 0xe15   :  { %7266 = vmatprep.subr.bf16.mxu0 %v9088_v1 }
 0xe18   :  { %7267 = vmatpush3.bf16.msra.mxu0 %v9100_v61  ;;  %v1513_v61 = vld [vmem:[#allocation3] sm:$0xff] }
 0xe19   :  { %7268 = vmatprep.subr.bf16.mxu0 %v9105_v13 }
 0xe1c   :  { %7269 = vmatpush3.bf16.msra.mxu0 %v9113_v18 }
 0xe1d   :  { %7270 = vmatprep.subr.bf16.mxu0 %v9118_v47 }
 0xe20   :  { %7271 = vmatpush3.bf16.msra.mxu0 %v9127_v59 }
 0xe21   :  { %7272 = vmatprep.subr.bf16.mxu0 %v9132_v21 }
 0xe24   :  { %7273 = vmatpush3.bf16.msra.mxu0 %v9140_v41 }
 0xe25   :  { %7289 = vmatprep.subr.bf16.mxu0 %v9337_v44 }
 0xec7   :  { %v7241_v1 = vpop.f32.mrf.mxu0 }
 0xec9   :  { %v7242_v60 = vpop.f32.mrf.mxu0 }
 0xeca   :  { %v7243_v13 = vadd.f32 %v7242_v60, %v7241_v1 }
 0xecb   :  { %v7244_v36 = vpop.f32.mrf.mxu0 }
 0xecc   :  { %v1468_v46 = vadd.f32 %v7243_v13, %v8783_v45 }
 0xecd   :  { %v7245_v40 = vpop.f32.mrf.mxu0 }
 0xece   :  { %v1508_v55 = vadd.f32 %v1507_v10, %v1468_v46 }
 0xed0   :  { %8134 = vtanh.f32 %v1508_v55  ;;  %v6861_v18 = vmul.f32 -1.442695, %v1508_v55 }
 0xed2   :  { %8136 = vpow2.f32 %v6861_v18 }
 0xedd   :  { %v8135_v31 = vpop.eup %8134 }
 0xede   :  { %1527 = vrot.lane.b32.xlu1 %v8135_v31, %s8546_s30 }
 0xedf   :  { %v8137_v47 = vpop.eup %8136 }
 0xee0   :  { %v1517_v59 = vadd.f32 1.0, %v8137_v47  ;;  %v9383_v47 = vld [vmem:[#allocation11 + $0x38] sm:$0xff]  }
 0xee2   :  { %1522 = vrot.lane.b32.xlu1 %v1513_v61, %s8553_s27  ;;  %8138 = vrcp.f32 %v1517_v59  ;;  %v9389_v59 = vld [vmem:[#allocation11 + $0x30] sm:$0xff]  }
 0xee6   :  { %1359 = vrot.lane.b32.xlu1 %v8841_v57, %s8553_s27 }
 0xeef   :  { %v8139_v21 = vpop.eup %8138 }
 0xf50   :  { %v1528_v41 = vpop.permute.xlu1 %1527 }
 0xf51   :  { %v1530_v45 = vmul.f32 %v8139_v21, %v1528_v41  ;;  %v9397_v41 = vld [vmem:[#allocation11 + $0x20] sm:$0xff]  }
 0xf53   :  { %1532 = vrot.lane.b32.xlu0 %v1530_v45, %s8553_s27  ;;  %v9401_v45 = vld [vmem:[#allocation11 + $0x18] sm:$0xff]  }
 0xf54   :  { %v1523_v51 = vpop.permute.xlu1 %1522 }
 0xf55   :  { %v1525_v12 = vmul.f32 %v8139_v21, %v1523_v51  ;;  %v9405_v51 = vld [vmem:[#allocation11 + $0x10] sm:$0xff]  }
 0xf58   :  { %v1360_v37 = vpop.permute.xlu1 %1359 }
 0xf59   :  { %1362 = vst.msk [vmem:[#allocation4] sm:$0xff] %vm97_vm2, %v1360_v37  ;;  %v9409_v37 = vld [vmem:[#allocation11 + $0x8] sm:$0xff]  }
 0xf60   :  { %v1550_v24 = vld [vmem:[#allocation4] sm:$0xff] }
 0xf61   :  { %v6965_v30 = vpack.c.bf16 %v1550_v24, %v1550_v24 }
 0xfc5   :  { %v1533_v19 = vpop.permute.xlu0 %1532 }
 0xfc6   :  { %v9347_v38 = vadd.f32 %v1533_v19, %v1525_v12  ;;  %v9413_v12 = vld [vmem:[#allocation11] sm:$0xff]  }
 0xfc8   :  { %8140 = vtanh.f32 %v9347_v38 }
 0xfd5   :  { %v8141_v57 = vpop.eup %8140 }
 0xfd6   :  { %1538 = vrot.lane.b32.xlu0 %v8141_v57, %s8546_s30 }
 0xfda   :  { %1555 = vrot.lane.b32.xlu0 %v6965_v30, %s8553_s27 }
0x1048   :  { %v1539_v25 = vpop.permute.xlu0 %1538 }
0x1049   :  { %v9352_v27 = vmul.f32 %v8139_v21, %v1539_v25  ;;  %v9393_v21 = vld [vmem:[#allocation11 + $0x28] sm:$0xff]  }
0x104b   :  { %v6964_v28 = vpack.c.bf16 %v9352_v27, %v9352_v27 }
0x104c   :  { %v1556_v29 = vpop.permute.xlu0 %1555 }
0x104d   :  { %1546 = vrot.lane.b32.xlu1 %v6964_v28, %s8553_s27 }
0x1051   :  { %1364 = vrot.lane.b32.xlu1 %v8829_v52, %s8554_s21 }
0x10bf   :  { %v1547_v48 = vpop.permute.xlu1 %1546 }
0x10c0   :  { %1549 = vst.msk [vmem:[#allocation9] sm:$0xf] %vm395_vm3, %v1547_v48 }
0x10c1   :  { %1558 = vst.msk [vmem:[#allocation9] sm:$0xf] %vm645_vm4, %v1556_v29 }
0x10c3   :  { %v1365_v3 = vpop.permute.xlu1 %1364 }
0x10c4   :  { %1367 = vst.msk [vmem:[#allocation5] sm:$0xff] %vm97_vm2, %v1365_v3  ;;  %v11757_v3 = vld [vmem:[#allocation23_spill] sm:$0xff] }
0x10c8   :  { %v1559_v35 = vld [vmem:[#allocation9] sm:$0xf] }
0x10c9   :  { %7749 = vmatmul.mubr.msk.bf16.vlgmr.msra.gmra.mxu1 %vm672_vm5, %v1559_v35 }
0x10ca   :  { %7753 = vmatpush3.bf16.msra.mxu1 %v8832_v53  ;;  %7756 = vmatprep.mubr.msk.bf16.mxu1 %vm8551_vm0, %v11756_v26 }
0x10cb   :  { %v1603_v39 = vld [vmem:[#allocation5] sm:$0xff]  ;;  %7754 = vmatprep.subr.bf16.mxu1 %v11756_v26 }
0x10cc   :  { %1612 = vrot.lane.b32.xlu1 %v1603_v39, %s8553_s27 }
0x10ce   :  { %7755 = vmatpush3.bf16.msra.mxu1 %v8835_v54 }
0x10cf   :  { %7760 = vmatprep.subr.bf16.mxu1 %v11756_v26 }
0x113e   :  { %v1613_v13 = vpop.permute.xlu1 %1612 }
0x1189   :  { %v1597_v52 = vpop.f32.mrf.mxu1 }
0x118a   :  { %v1598_v4 = vadd.f32 %v8824_v33, %v1597_v52  ;;  %v11759_v52 = vld [vmem:[#allocation25_spill] sm:$0xff] }
0x118b   :  { %v7750_v32 = vpop.f32.mrf.mxu1 }
0x118c   :  { %8142 = vtanh.f32 %v1598_v4  ;;  %v6865_v16 = vmul.f32 -1.442695, %v1598_v4  ;;  %v11760_v32 = vld [vmem:[#allocation26_spill] sm:$0xff] }
0x118d   :  { %v1600_v42 = vpop.f32.mrf.mxu1 }
0x118e   :  { %8144 = vpow2.f32 %v6865_v16  ;;  %v11762_v16 = vld [vmem:[#allocation28_spill] sm:$0xff] }
0x118f   :  { %v7751_v10 = vpop.f32.mrf.mxu1 }
0x1190   :  { %v11761_v10 = vld [vmem:[#allocation27_spill] sm:$0xff] }
0x1199   :  { %v8143_v53 = vpop.eup %8142 }
0x119a   :  { %1617 = vrot.lane.b32.xlu0 %v8143_v53, %s8546_s30 }
0x119b   :  { %v8145_v11 = vpop.eup %8144 }
0x119c   :  { %v1607_v17 = vadd.f32 1.0, %v8145_v11 }
0x119e   :  { %8146 = vrcp.f32 %v1607_v17  ;;  %v11763_v17 = vld [vmem:[#allocation29_spill] sm:$0xff] }
0x11ab   :  { %v8147_v1 = vpop.eup %8146 }
0x11ac   :  { %v1615_v36 = vmul.f32 %v8147_v1, %v1613_v13  ;;  %v11765_v13 = vld [vmem:[#allocation31_spill] sm:$0xff] }
0x120c   :  { %v1618_v60 = vpop.permute.xlu0 %1617 }
0x120d   :  { %v1620_v54 = vmul.f32 %v8147_v1, %v1618_v60  ;;  %v11764_v60 = vld [vmem:[#allocation30_spill] sm:$0xff] }
0x120f   :  { %1622 = vrot.lane.b32.xlu0 %v1620_v54, %s8553_s27 }
0x1281   :  { %v1623_v33 = vpop.permute.xlu0 %1622 }
0x1282   :  { %v9373_v46 = vadd.f32 %v1623_v33, %v1615_v36  ;;  %v11766_v33 = vld [vmem:[#allocation32_spill] sm:$0xff] }
0x1284   :  { %8148 = vtanh.f32 %v9373_v46 }
0x1291   :  { %v8149_v40 = vpop.eup %8148 }
0x1292   :  { %1628 = vrot.lane.b32.xlu1 %v8149_v40, %s8546_s30 }
0x1304   :  { %v1629_v55 = vpop.permute.xlu1 %1628 }
0x1305   :  { %v9377_v31 = vmul.f32 %v8147_v1, %v1629_v55  ;;  %v11767_v55 = vld [vmem:[#allocation33_spill] sm:$0xff] }
0x1307   :  { %v1632_v61 = vpack.c.bf16 %v9377_v31, %v9377_v31 }
0x1309   :  { %1634 = vrot.lane.b32.xlu0 %v1632_v61, %s8553_s27 }
0x137b   :  { %v1635_v18 = vpop.permute.xlu0 %1634 }
0x137c   :  { %7757 = vmatmul.mubr.msk.bf16.vlgmr.msra.gmra.mxu1 %vm97_vm2, %v1635_v18  ;;  %v11768_v18 = vld [vmem:[#allocation34_spill] sm:$0xff] }
0x137d   :  { %7761 = vmatpush3.bf16.msra.mxu1 %v9383_v47  ;;  %7776 = vmatprep.mubr.msk.bf16.mxu1 %vm8551_vm0, %v11756_v26 }
0x137e   :  { %7762 = vmatprep.subr.bf16.mxu1 %v11756_v26 }
0x1381   :  { %7763 = vmatpush3.bf16.msra.mxu1 %v9389_v59 }
0x1382   :  { %7764 = vmatprep.subr.bf16.mxu1 %v11756_v26 }
0x1385   :  { %7765 = vmatpush3.bf16.msra.mxu1 %v9393_v21 }
0x1386   :  { %7766 = vmatprep.subr.bf16.mxu1 %v11756_v26 }
0x1389   :  { %7767 = vmatpush3.bf16.msra.mxu1 %v9397_v41 }
0x138a   :  { %7768 = vmatprep.subr.bf16.mxu1 %v11756_v26 }
0x138d   :  { %7769 = vmatpush3.bf16.msra.mxu1 %v9401_v45 }
0x138e   :  { %7770 = vmatprep.subr.bf16.mxu1 %v11756_v26 }
0x1391   :  { %7771 = vmatpush3.bf16.msra.mxu1 %v9405_v51 }
0x1392   :  { %7772 = vmatprep.subr.bf16.mxu1 %v11756_v26 }
0x1395   :  { %7773 = vmatpush3.bf16.msra.mxu1 %v9409_v37 }
0x1396   :  { %7774 = vmatprep.subr.bf16.mxu1 %v11756_v26 }
0x1399   :  { %7775 = vmatpush3.bf16.msra.mxu1 %v9413_v12 }
0x139a   :  { %7780 = vmatprep.subr.bf16.mxu1 %v11756_v26 }
0x143c   :  { %v1673_v19 = vpop.f32.mrf.mxu1 }
0x143d   :  { %v9418_v57 = vadd.f32 %v8871_v6, %v1673_v19  ;;  %v11758_v6 = vld [vmem:[#allocation24_spill] sm:$0xff] }
0x143e   :  { %v7758_v24 = vpop.f32.mrf.mxu1 }
0x143f   :  { %v1680_v30 = vmul.f32 %v8873_v7, %v9418_v57  ;;  %v1679_v25 = vmul.f32 %v8875_v8, %v9418_v57  ;;  %v1681_v29 = vmul.f32 %v8887_v62, %v9418_v57  ;;  %v1682_v35 = vmul.f32 %v11757_v3, %v9418_v57  ;;  %v11769_v24 = vld [vmem:[#allocation35_spill] sm:$0xff] }
0x1440   :  { %v1676_v28 = vpop.f32.mrf.mxu1  ;;  %v1687_v39 = vmul.f32 %v11758_v6, %v9418_v57  ;;  %v1688_v4 = vmul.f32 %v11759_v52, %v9418_v57  ;;  %v1683_v42 = vmul.f32 %v11760_v32, %v9418_v57  ;;  %v1689_v53 = vmul.f32 %v11761_v10, %v9418_v57 }
0x1441   :  { %1697 = vadd.xlane.f32.xlu0 %v1680_v30  ;;  %1695 = vadd.xlane.f32.xlu1 %v1679_v25  ;;  %v1684_v11 = vmul.f32 %v11762_v16, %v9418_v57  ;;  %v1690_v1 = vmul.f32 %v11763_v17, %v9418_v57  ;;  %v1685_v54 = vmul.f32 %v11764_v60, %v9418_v57 }
0x1442   :  { %v7759_v48 = vpop.f32.mrf.mxu1  ;;  %v1691_v36 = vmul.f32 %v11765_v13, %v9418_v57  ;;  %v1686_v40 = vmul.f32 %v11766_v33, %v9418_v57  ;;  %v1692_v61 = vmul.f32 %v11767_v55, %v9418_v57  ;;  %v1693_v19 = vmul.f32 %v11768_v18, %v9418_v57 }
0x1443   :  { %v1694_v30 = vmul.f32 %v11769_v24, %v9418_v57 }
0x1445   :  { %1699 = vadd.xlane.f32.xlu0 %v1681_v29  ;;  %1701 = vadd.xlane.f32.xlu1 %v1682_v35 }
0x1449   :  { %1711 = vadd.xlane.f32.xlu0 %v1687_v39  ;;  %1713 = vadd.xlane.f32.xlu1 %v1688_v4 }
0x144d   :  { %1703 = vadd.xlane.f32.xlu0 %v1683_v42  ;;  %1715 = vadd.xlane.f32.xlu1 %v1689_v53  ;;  %v11770_v53 = vld [vmem:[#allocation36_spill] sm:$0xff] }
0x1451   :  { %1705 = vadd.xlane.f32.xlu0 %v1684_v11  ;;  %1717 = vadd.xlane.f32.xlu1 %v1690_v1 }
0x1455   :  { %1707 = vadd.xlane.f32.xlu0 %v1685_v54  ;;  %1719 = vadd.xlane.f32.xlu1 %v1691_v36 }
0x1459   :  { %1709 = vadd.xlane.f32.xlu0 %v1686_v40  ;;  %1721 = vadd.xlane.f32.xlu1 %v1692_v61 }
0x145d   :  { %1723 = vadd.xlane.f32.xlu0 %v1693_v19  ;;  %1725 = vadd.xlane.f32.xlu1 %v1694_v30 }
0x14ca   :  { %v1698_v25 = vpop.xlane.xlu0 %1697  ;;  %v1696_v28 = vpop.xlane.xlu1 %1695 }
0x14cb   :  { %v1750_v11 = vrot.slane %v1698_v25, %v11770_v53  ;;  %v1746_v1 = vrot.slane %v1696_v28, %v11770_v53 }
0x14cd   :  { %v1807_v61 = vsel %vm932_vm6, %v1750_v11, %v1746_v1 }
0x14ce   :  { %v1700_v48 = vpop.xlane.xlu0 %1699  ;;  %v1702_v29 = vpop.xlane.xlu1 %1701 }
0x14cf   :  { %v1754_v54 = vrot.slane %v1700_v48, %v11770_v53  ;;  %v1758_v19 = vrot.slane %v1702_v29, %v11770_v53 }
0x14d1   :  { %v1808_v30 = vsel %vm934_vm7, %v1754_v54, %v1807_v61 }
0x14d2   :  { %v1712_v35 = vpop.xlane.xlu0 %1711  ;;  %v1714_v39 = vpop.xlane.xlu1 %1713  ;;  %v1809_v13 = vsel %vm936_vm8, %v1758_v19, %v1808_v30 }
0x14d3   :  { %v1778_v25 = vrot.slane %v1712_v35, %v11770_v53  ;;  %v1782_v28 = vrot.slane %v1714_v39, %v11770_v53 }
0x14d5   :  { %v1814_v39 = vsel %vm932_vm6, %v1782_v28, %v1778_v25 }
0x14d6   :  { %v1704_v4 = vpop.xlane.xlu0 %1703  ;;  %v1716_v42 = vpop.xlane.xlu1 %1715 }
0x14d7   :  { %v1762_v24 = vrot.slane %v1704_v4, %v11770_v53  ;;  %v1786_v11 = vrot.slane %v1716_v42, %v11770_v53 }
0x14d9   :  { %v1810_v29 = vsel %vm938_vm9, %v1762_v24, %v1809_v13  ;;  %v1815_v42 = vsel %vm934_vm7, %v1786_v11, %v1814_v39 }
0x14da   :  { %v1706_v36 = vpop.xlane.xlu0 %1705  ;;  %v1718_v40 = vpop.xlane.xlu1 %1717 }
0x14db   :  { %v1766_v33 = vrot.slane %v1706_v36, %v11770_v53  ;;  %v1790_v1 = vrot.slane %v1718_v40, %v11770_v53 }
0x14dd   :  { %v1811_v35 = vsel %vm940_vm10, %v1766_v33, %v1810_v29  ;;  %v1816_v24 = vsel %vm936_vm8, %v1790_v1, %v1815_v42  ;;  %v11771_v29 = vld [vmem:[#allocation37_spill] sm:$0xff] }
0x14de   :  { %v1708_v18 = vpop.xlane.xlu0 %1707  ;;  %v1720_v55 = vpop.xlane.xlu1 %1719 }
0x14df   :  { %v1770_v48 = vrot.slane %v1708_v18, %v11770_v53  ;;  %v1794_v61 = vrot.slane %v1720_v55, %v11770_v53 }
0x14e1   :  { %v1812_v19 = vsel %vm942_vm11, %v1770_v48, %v1811_v35  ;;  %v1817_v55 = vsel %vm938_vm9, %v1794_v61, %v1816_v24 }
0x14e2   :  { %v1710_v54 = vpop.xlane.xlu0 %1709  ;;  %v1722_v4 = vpop.xlane.xlu1 %1721 }
0x14e3   :  { %v1774_v36 = vrot.slane %v1710_v54, %v11770_v53  ;;  %v1798_v18 = vrot.slane %v1722_v4, %v11770_v53 }
0x14e5   :  { %v1813_v13 = vsel %vm944_vm12, %v1774_v36, %v1812_v19  ;;  %v1818_v25 = vsel %vm940_vm10, %v1798_v18, %v1817_v55  ;;  %v11773_v55 = vld [vmem:[#allocation39_spill] sm:$0xff] }
0x14e6   :  { %v1724_v40 = vpop.xlane.xlu0 %1723  ;;  %1823 = vxpose.xlu0.b32.start [1/2] (short) (narrow) %v1813_v13, 8  ;;  %v1726_v30 = vpop.xlane.xlu1 %1725 }
0x14e7   :  { %v1802_v54 = vrot.slane %v1724_v40, %v11770_v53  ;;  %v1806_v33 = vrot.slane %v1726_v30, %v11770_v53  ;;  %v11772_v40 = vld [vmem:[#allocation38_spill] sm:$0xff]  ;;  %v11785_v53 = vld [vmem:[#allocation51_spill] sm:$0xff] }
0x14e9   :  { %v1819_v28 = vsel %vm942_vm11, %v1802_v54, %v1818_v25 }
0x14ea   :  { %v1820_v48 = vsel %vm944_vm12, %v1806_v33, %v1819_v28  ;;  %v11774_v33 = vld [vmem:[#allocation40_spill] sm:$0xff]  ;;  %v11775_v28 = vld [vmem:[#allocation41_spill] sm:$0xff] }
0x14eb   :  { %1824 = vxpose.xlu0.b32.end [2/2] (short) (narrow) %v1820_v48, 8 }
0x1563   :  { %v1839_v11 = vpop.trf.xlu0 }
0x1564   :  { %v1855_v4 = vadd.f32 %v1839_v11, %v11771_v29  ;;  %v11776_v29 = vld [vmem:[#allocation42_spill] sm:$0xff] }
0x1566   :  { %v1856_v1 = vsel %vm988_vm13, %v1855_v4, -inf }
0x1567   :  { %1857 = vmax.xlane.f32.xlu1 %v1856_v1  ;;  %v11777_v1 = vld [vmem:[#allocation43_spill] sm:$0xff] }
0x15f0   :  { %v1858_v36 = vpop.xlane.xlu1 %1857 }
0x15f1   :  { %v1859_v35 = vsub.f32 %v1855_v4, %v1858_v36 }
0x15f3   :  { %v1860_v61 = vmul.f32 1.442695, %v1859_v35 }
0x15f5   :  { %8150 = vpow2.f32 %v1860_v61  ;;  %v11778_v61 = vld [vmem:[#allocation44_spill] sm:$0xff] }
0x1602   :  { %v8151_v39 = vpop.eup %8150 }
0x1603   :  { %v1862_v19 = vsel %vm988_vm13, %v8151_v39, 0.0 }
0x1604   :  { %1863 = vadd.xlane.f32.xlu1 %v1862_v19 }
0x168d   :  { %v1864_v18 = vpop.xlane.xlu1 %1863 }
0x168e   :  { %8152 = vrcp.f32 %v1864_v18  ;;  %v11779_v18 = vld [vmem:[#allocation45_spill] sm:$0xff] }
0x169b   :  { %v8153_v42 = vpop.eup %8152 }
0x169c   :  { %v1866_v13 = vmul.f32 %v8153_v42, %v8151_v39 }
0x169e   :  { %1867 = vxpose.xlu1.b32.start.end [1/1] (short) (narrow) %v1866_v13, 16  ;;  %6870 = vst.msk [vmem:[%s11551_s13 + $0x8] sm:$0xff] %vm988_vm13, %v1866_v13 }
0x171a   :  { %v1883_v24 = vpop.trf.xlu1 }
0x171b   :  { %v1909_v30 = vrot.slane %v1883_v24, %v11772_v40  ;;  %v1902_v54 = vrot.slane %v1883_v24, %v11773_v55  ;;  %v1930_v25 = vrot.slane %v1883_v24, %v11774_v33  ;;  %v1916_v48 = vrot.slane %v1883_v24, %v11775_v28 }
0x171c   :  { %v1944_v4 = vrot.slane %v1883_v24, %v11776_v29  ;;  %v1923_v36 = vrot.slane %v1883_v24, %v11777_v1  ;;  %v1937_v39 = vrot.slane %v1883_v24, %v11778_v61  ;;  %v1951_v42 = vrot.slane %v1883_v24, %v11779_v18 }
0x171d   :  { %1911 = vbcast.lane.b32.xlu1 %v1909_v30, 256  ;;  %1904 = vbcast.lane.b32.xlu0 %v1902_v54, 256 }
0x171e   :  { %v1884_v11 = vpop.trf.xlu1 }
0x171f   :  { %v1958_v35 = vrot.slane %v1884_v11, %v11773_v55  ;;  %v1972_v19 = vrot.slane %v1884_v11, %v11775_v28  ;;  %v1965_v13 = vrot.slane %v1884_v11, %v11772_v40  ;;  %v1986_v30 = vrot.slane %v1884_v11, %v11774_v33  ;;  %v11782_v28 = vld [vmem:[#allocation48_spill] sm:$0xff]  ;;  %v11783_v55 = vld [vmem:[#allocation49_spill] sm:$0xff] }
0x1720   :  { %v1979_v54 = vrot.slane %v1884_v11, %v11777_v1 }
0x1721   :  { %1932 = vbcast.lane.b32.xlu1 %v1930_v25, 256  ;;  %1918 = vbcast.lane.b32.xlu0 %v1916_v48, 256  ;;  %v2000_v25 = vrot.slane %v1884_v11, %v11776_v29  ;;  %v1993_v48 = vrot.slane %v1884_v11, %v11778_v61 }
0x1725   :  { %1946 = vbcast.lane.b32.xlu1 %v1944_v4, 256  ;;  %1925 = vbcast.lane.b32.xlu0 %v1923_v36, 256  ;;  %v2007_v4 = vrot.slane %v1884_v11, %v11779_v18 }
0x1729   :  { %1939 = vbcast.lane.b32.xlu0 %v1937_v39, 256  ;;  %1960 = vbcast.lane.b32.xlu1 %v1958_v35, 256  ;;  %v11780_v35 = vld [vmem:[#allocation46_spill] sm:$0xff] }
0x172d   :  { %1953 = vbcast.lane.b32.xlu0 %v1951_v42, 256  ;;  %1974 = vbcast.lane.b32.xlu1 %v1972_v19, 256  ;;  %v11781_v19 = vld [vmem:[#allocation47_spill] sm:$0xff] }
0x1731   :  { %1967 = vbcast.lane.b32.xlu0 %v1965_v13, 256  ;;  %1988 = vbcast.lane.b32.xlu1 %v1986_v30, 256 }
0x1735   :  { %1981 = vbcast.lane.b32.xlu0 %v1979_v54, 256  ;;  %2002 = vbcast.lane.b32.xlu1 %v2000_v25, 256 }
0x1739   :  { %1995 = vbcast.lane.b32.xlu0 %v1993_v48, 256  ;;  %v11784_v48 = vld [vmem:[#allocation50_spill] sm:$0xff] }
0x173d   :  { %2009 = vbcast.lane.b32.xlu0 %v2007_v4, 256 }
0x178f   :  { %v1905_v24 = vpop.permute.xlu0 %1904  ;;  %v1912_v36 = vpop.permute.xlu1 %1911 }
0x1790   :  { %v2011_v39 = vmul.f32 %v11780_v35, %v1905_v24  ;;  %v2012_v42 = vmul.f32 %v11781_v19, %v1912_v36  ;;  %v11786_v35 = vld [vmem:[#allocation52_spill] sm:$0xff] }
0x1792   :  { %v2027_v33 = vadd.f32 %v2012_v42, %v2011_v39  ;;  %v11788_v42 = vld [vmem:[#allocation54_spill] sm:$0xff] }
0x1793   :  { %v1919_v13 = vpop.permute.xlu0 %1918  ;;  %v1933_v30 = vpop.permute.xlu1 %1932 }
0x1794   :  { %v2013_v1 = vmul.f32 %v11782_v28, %v1919_v13  ;;  %v2015_v40 = vmul.f32 %v11784_v48, %v1933_v30  ;;  %v11787_v13 = vld [vmem:[#allocation53_spill] sm:$0xff]  ;;  %v11790_v48 = vld [vmem:[#allocation56_spill] sm:$0xff] }
0x1796   :  { %v2028_v25 = vadd.f32 %v2027_v33, %v2013_v1 }
0x1797   :  { %v1926_v29 = vpop.permute.xlu0 %1925  ;;  %v1947_v54 = vpop.permute.xlu1 %1946 }
0x1798   :  { %v2014_v61 = vmul.f32 %v11783_v55, %v1926_v29  ;;  %v2017_v36 = vmul.f32 %v11786_v35, %v1947_v54  ;;  %v11789_v55 = vld [vmem:[#allocation55_spill] sm:$0xff] }
0x179a   :  { %v2029_v11 = vadd.f32 %v2028_v25, %v2014_v61 }
0x179b   :  { %v1940_v4 = vpop.permute.xlu0 %1939  ;;  %v1961_v18 = vpop.permute.xlu1 %1960 }
0x179c   :  { %v2016_v60 = vmul.f32 %v11785_v53, %v1940_v4  ;;  %v2030_v24 = vadd.f32 %v2029_v11, %v2015_v40  ;;  %v2019_v39 = vmul.f32 %v11787_v13, %v1961_v18 }
0x179e   :  { %v2031_v19 = vadd.f32 %v2030_v24, %v2016_v60 }
0x179f   :  { %v1954_v17 = vpop.permute.xlu0 %1953  ;;  %v1975_v16 = vpop.permute.xlu1 %1974 }
0x17a0   :  { %v2018_v28 = vmul.f32 %v11788_v42, %v1954_v17  ;;  %v2032_v33 = vadd.f32 %v2031_v19, %v2017_v36  ;;  %v2021_v10 = vmul.f32 %v11790_v48, %v1975_v16 }
0x17a2   :  { %v2033_v1 = vadd.f32 %v2032_v33, %v2018_v28 }
0x17a3   :  { %v1968_v29 = vpop.permute.xlu0 %1967  ;;  %v1989_v25 = vpop.permute.xlu1 %1988 }
0x17a4   :  { %v2020_v30 = vmul.f32 %v11789_v55, %v1968_v29  ;;  %v2034_v61 = vadd.f32 %v2033_v1, %v2019_v39  ;;  %v2023_v11 = vmul.f32 %v9203_v43, %v1989_v25 }
0x17a6   :  { %v2035_v4 = vadd.f32 %v2034_v61, %v2020_v30 }
0x17a7   :  { %v1982_v40 = vpop.permute.xlu0 %1981  ;;  %v2003_v18 = vpop.permute.xlu1 %2002 }
0x17a8   :  { %v2022_v54 = vmul.f32 %v9200_v0, %v1982_v40  ;;  %v2036_v60 = vadd.f32 %v2035_v4, %v2021_v10  ;;  %v2025_v19 = vmul.f32 %v9212_v5, %v2003_v18  ;;  %v7138_v10 = vpack.c.bf16 %v9418_v57, %v9418_v57 }
0x17aa   :  { %v2037_v24 = vadd.f32 %v2036_v60, %v2022_v54 }
0x17ab   :  { %v1996_v13 = vpop.permute.xlu0 %1995 }
0x17ac   :  { %v2024_v17 = vmul.f32 %v9209_v56, %v1996_v13  ;;  %v2038_v28 = vadd.f32 %v2037_v24, %v2023_v11 }
0x17ae   :  { %v2039_v36 = vadd.f32 %v2038_v28, %v2024_v17 }
0x17af   :  { %v2010_v39 = vpop.permute.xlu0 %2009 }
0x17b0   :  { %v2026_v33 = vmul.f32 %v9215_v9, %v2010_v39  ;;  %v2040_v16 = vadd.f32 %v2039_v36, %v2025_v19 }
0x17b2   :  { %v2041_v1 = vadd.f32 %v2040_v16, %v2026_v33 }
0x17b4   :  { %v9521_v29 = vpack.c.bf16 %v2041_v1, %v2041_v1 }
0x17b6   :  { %2086 = vmatprep.mubr.bf16.mxu0 %v9521_v29 }
0x17b7   :  { %2087 = vmatmul.mubr.bf16.vlgmr.msra.gmra.mxu0 %v7138_v10 }
0x17b8   :  { %7290 = vmatpush3.bf16.msra.mxu0 %v9227_v49  ;;  %v9538_v49 = vld [vmem:[%s11542_s4 + $0x50] sm:$0xff]   ;;  %2238 = vmatprep.mubr.bf16.mxu0 %v9521_v29 }
0x17b9   :  { %7291 = vmatprep.subr.bf16.mxu0 %v9233_v63  ;;  %v9544_v63 = vld [vmem:[%s11542_s4 + $0x10] sm:$0xff]  }
0x17ba   :  { %v9642_v29 = vld [vmem:[%s11548_s10 + $0x30] sm:$0xff]  }
0x17bc   :  { %7292 = vmatpush3.bf16.msra.mxu0 %v9239_v20  ;;  %v9550_v20 = vld [vmem:[%s11542_s4 + $0x48] sm:$0xff]  }
0x17bd   :  { %7293 = vmatprep.subr.bf16.mxu0 %v9245_v23  ;;  %v9556_v23 = vld [vmem:[%s11542_s4 + $0x8] sm:$0xff]  }
0x17c0   :  { %7294 = vmatpush3.bf16.msra.mxu0 %v9251_v14  ;;  %v9562_v14 = vld [vmem:[%s11542_s4 + $0x40] sm:$0xff]  }
0x17c1   :  { %7295 = vmatprep.subr.bf16.mxu0 %v9257_v50  ;;  %v9568_v50 = vld [vmem:[%s11542_s4] sm:$0xff]  }
0x17c4   :  { %7296 = vmatpush3.bf16.msra.mxu0 %v9263_v34  ;;  %v9574_v34 = vld [vmem:[%s11548_s10 + $0x78] sm:$0xff]  }
0x17c5   :  { %7297 = vmatprep.subr.bf16.mxu0 %v9269_v15 }
0x17c8   :  { %7298 = vmatpush3.bf16.msra.mxu0 %v9275_v58 }
0x17c9   :  { %7299 = vmatprep.subr.bf16.mxu0 %v9538_v49 }
0x17cc   :  { %7300 = vmatpush3.bf16.msra.mxu0 %v9544_v63 }
0x17cd   :  { %7301 = vmatprep.subr.bf16.mxu0 %v9550_v20 }
0x17d0   :  { %7302 = vmatpush3.bf16.msra.mxu0 %v9556_v23 }
0x17d1   :  { %7303 = vmatprep.subr.bf16.mxu0 %v9562_v14 }
0x17d4   :  { %7304 = vmatpush3.bf16.msra.mxu0 %v9568_v50 }
0x17d5   :  { %7322 = vmatprep.subr.bf16.mxu0 %v9574_v34 }
0x1877   :  { %v7274_v15 = vpop.f32.mrf.mxu0 }
0x1879   :  { %v7275_v58 = vpop.f32.mrf.mxu0 }
0x187a   :  { %v7276_v57 = vadd.f32 %v7275_v58, %v7274_v15  ;;  %v9603_v58 = vld [vmem:[%s11542_s4 + $0x80] sm:$0xff]  }
0x187b   :  { %v7277_v13 = vpop.f32.mrf.mxu0 }
0x187c   :  { %v2089_v30 = vadd.f32 %v7276_v57, %v9285_v22  ;;  %v9608_v13 = vld [vmem:[#allocation13 + $0x18] sm:$0xff]  }
0x187d   :  { %v7278_v61 = vpop.f32.mrf.mxu0 }
0x187e   :  { %6869 = vst [vmem:[%s11550_s12 + $0x8] sm:$0xff] %v2089_v30  ;;  %2098 = vmax.xlane.f32.xlu1 %v2089_v30  ;;  %v9618_v61 = vld [vmem:[#allocation13 + $0x8] sm:$0xff]  }
0x188f   :  { %2122 = vrot.lane.b32.xlu1 %v9352_v27, %s8553_s27 }
0x1907   :  { %v2099_v25 = vpop.xlane.xlu1 %2098 }
0x1908   :  { %vm2100_vm14 = vcmp.ge.f32.partialorder %v2089_v30, %v2099_v25  ;;  %v9614_v30 = vld [vmem:[#allocation13 + $0x10] sm:$0xff]   ;;  %v9622_v25 = vld [vmem:[#allocation13] sm:$0xff]  }
0x1909   :  { %v2101_v4 = vsel %vm2100_vm14, %v8647_v2, 128 }
0x190a   :  { %v2103_v40 = vshra.s32 %v2101_v4, 16  ;;  %v2102_v24 = vand.u32 65535, %v2101_v4 }
0x190b   :  { %v2123_v54 = vpop.permute.xlu1 %2122 }
0x190c   :  { %2125 = vst.msk [vmem:[#allocation2] sm:$0xff] %vm97_vm2, %v2123_v54  ;;  %v2105_v60 = vcvt.s32.f32 %v2103_v40  ;;  %v2104_v17 = vcvt.s32.f32 %v2102_v24 }
0x190e   :  { %2106 = vmin.xlane.f32.xlu0 %v2105_v60 }
0x1913   :  { %v2188_v22 = vld [vmem:[#allocation2] sm:$0xff] }
0x1914   :  { %v2189_v11 = vpack.c.bf16 %v2188_v22, %v2188_v22 }
0x1916   :  { %2190 = vst.msk [vmem:[#allocation8 + $0x8] sm:$0xf] %vm395_vm3, %v2189_v11  ;;  %v9630_v11 = vld [vmem:[%s11548_s10 + $0x38] sm:$0xff]  }
0x191d   :  { %v8108_v57 = vld [vmem:[#allocation8 + $0x8] ss:$0 sps:$4 sm:$0xff]  }
0x1997   :  { %v2107_v18 = vpop.xlane.xlu0 %2106 }
0x1998   :  { %vm2108_vm15 = vcmp.eq.f32.partialorder %v2105_v60, %v2107_v18  ;;  %v2113_v27 = vcvt.f32.s32 %v2107_v18  ;;  %v9636_v18 = vld [vmem:[%s11548_s10 + $0x70] sm:$0xff]  }
0x1999   :  { %v2109_v28 = vsel %vm2108_vm15, %v2104_v17, inf }
0x199a   :  { %2110 = vmin.xlane.f32.xlu0 %v2109_v28  ;;  %v2114_v36 = vshll.u32 %v2113_v27, 16  ;;  %v9648_v27 = vld [vmem:[%s11548_s10 + $0x68] sm:$0xff]  }
0x19b0   :  { %2127 = vrot.lane.b32.xlu0 %v9347_v38, %s8554_s21  ;;  %v9594_v38 = vld [vmem:[%s11542_s4 + $0x88] sm:$0xff]  }
0x1a23   :  { %v2111_v19 = vpop.xlane.xlu0 %2110 }
0x1a24   :  { %v2112_v39 = vcvt.f32.s32 %v2111_v19 }
0x1a26   :  { %v2115_v33 = vadd.s32 %v2114_v36, %v2112_v39  ;;  %v9654_v36 = vld [vmem:[%s11548_s10 + $0x28] sm:$0xff]   ;;  %v9660_v39 = vld [vmem:[%s11548_s10 + $0x60] sm:$0xff]  }
0x1a27   :  { %v2128_v16 = vpop.permute.xlu0 %2127 }
0x1a28   :  { %vm2116_vm1 = vcmp.eq.s32.totalorder %v8647_v2, %v2115_v33  ;;  %2130 = vst.msk [vmem:[#allocation3] sm:$0xff] %vm97_vm2, %v2128_v16  ;;  %v9666_v33 = vld [vmem:[%s11548_s10 + $0x20] sm:$0xff]   ;;  %v9672_v16 = vld [vmem:[%s11548_s10 + $0x58] sm:$0xff]  }
0x1a29   :  { %v6871_v1 = vsel %vm2116_vm1, 1.0, %v11756_v26  ;;  %11791 = vst [vmem:[#allocation37_spill] sm:$0xff] %v9672_v16 }
0x1a2a   :  { %v2119_v10 = vpack.c.bf16 %v6871_v1, %v6871_v1  ;;  %v9678_v1 = vld [vmem:[%s11548_s10 + $0x18] sm:$0xff]  }
0x1a2b   :  { %11792 = vst [vmem:[#allocation51_spill] sm:$0xff] %v9678_v1 }
0x1a2c   :  { %2120 = vst [vmem:[#allocation7] sm:$0xf] %v2119_v10  ;;  %v9684_v10 = vld [vmem:[%s11548_s10 + $0x50] sm:$0xff]  }
0x1a2d   :  { %11793 = vst [vmem:[#allocation52_spill] sm:$0xff] %v9684_v10 }
0x1a33   :  { %v2142_v15 = vld [vmem:[#allocation7] sm:$0xf] }
0x1a34   :  { %7777 = vmatmul.mubr.bf16.vlgmr.msra.gmra.mxu1 %v2142_v15  ;;  %v9690_v15 = vld [vmem:[%s11548_s10 + $0x10] sm:$0xff]  }
0x1a35   :  { %7781 = vmatpush3.bf16.msra.mxu1 %v9594_v38  ;;  %7784 = vmatprep.mubr.msk.bf16.mxu1 %vm8551_vm0, %v11756_v26  ;;  %11794 = vst [vmem:[#allocation54_spill] sm:$0xff] %v9690_v15 }
0x1a36   :  { %7782 = vmatprep.subr.bf16.mxu1 %v11756_v26 }
0x1a39   :  { %7783 = vmatpush3.bf16.msra.mxu1 %v9603_v58 }
0x1a3a   :  { %7788 = vmatprep.subr.bf16.mxu1 %v11756_v26 }
0x1a3c   :  { %7785 = vmatmul.mubr.msk.bf16.vlgmr.msra.gmra.mxu1 %vm97_vm2, %v8108_v57  ;;  %v9696_v57 = vld [vmem:[%s11548_s10 + $0x48] sm:$0xff]  }
0x1a3d   :  { %7789 = vmatpush3.bf16.msra.mxu1 %v9608_v13  ;;  %7796 = vmatprep.mubr.msk.bf16.mxu1 %vm8551_vm0, %v11756_v26  ;;  %11795 = vst [vmem:[#allocation55_spill] sm:$0xff] %v9696_v57 }
0x1a3e   :  { %7790 = vmatprep.subr.bf16.mxu1 %v11756_v26 }
0x1a41   :  { %7791 = vmatpush3.bf16.msra.mxu1 %v9614_v30 }
0x1a42   :  { %7792 = vmatprep.subr.bf16.mxu1 %v11756_v26 }
0x1a45   :  { %7793 = vmatpush3.bf16.msra.mxu1 %v9618_v61 }
0x1a46   :  { %7794 = vmatprep.subr.bf16.mxu1 %v11756_v26 }
0x1a49   :  { %7795 = vmatpush3.bf16.msra.mxu1 %v9622_v25 }
0x1a4a   :  { %7800 = vmatprep.subr.bf16.mxu1 %v11756_v26 }
0x1af4   :  { %v2177_v4 = vpop.f32.mrf.mxu1 }
0x1af5   :  { %v8447_v54 = vpack.c.bf16 %v2177_v4, %v2177_v4  ;;  %v9702_v4 = vld [vmem:[%s11548_s10 + $0x8] sm:$0xff]  }
0x1af6   :  { %v7778_v40 = vpop.f32.mrf.mxu1  ;;  %11796 = vst [vmem:[#allocation56_spill] sm:$0xff] %v9702_v4 }
0x1af7   :  { %2239 = vmatmul.mubr.bf16.vlgmr.msra.gmra.mxu0 %v8447_v54  ;;  %v9708_v40 = vld [vmem:[%s11548_s10 + $0x40] sm:$0xff]  }
0x1af8   :  { %v2180_v60 = vpop.f32.mrf.mxu1  ;;  %7323 = vmatpush3.bf16.msra.mxu0 %v9630_v11  ;;  %11797 = vst [vmem:[#allocation57_spill] sm:$0xff] %v9708_v40  ;;  %v9714_v54 = vld [vmem:[%s11548_s10] sm:$0xff]  }
0x1af9   :  { %7324 = vmatprep.subr.bf16.mxu0 %v9636_v18  ;;  %11798 = vst [vmem:[#allocation58_spill] sm:$0xff] %v9714_v54 }
0x1afa   :  { %v7779_v22 = vpop.f32.mrf.mxu1 }
0x1afc   :  { %v2280_v24 = vpop.f32.mrf.mxu1  ;;  %7325 = vmatpush3.bf16.msra.mxu0 %v9642_v29 }
0x1afd   :  { %7326 = vmatprep.subr.bf16.mxu0 %v9648_v27 }
0x1afe   :  { %v7786_v17 = vpop.f32.mrf.mxu1 }
0x1b00   :  { %v2283_v28 = vpop.f32.mrf.mxu1  ;;  %7327 = vmatpush3.bf16.msra.mxu0 %v9654_v36 }
0x1b01   :  { %7328 = vmatprep.subr.bf16.mxu0 %v9660_v39 }
0x1b02   :  { %v7787_v19 = vpop.f32.mrf.mxu1 }
0x1b03   :  { %v9721_v19 = vld [vmem:[%s11543_s5] ss:$0 sm:$0xff] }
0x1b04   :  { %7329 = vmatpush3.bf16.msra.mxu0 %v9666_v33  ;;  %11799 = vst [vmem:[#allocation59_spill] sm:$0xff] %v9721_v19 }
0x1b05   :  { %7330 = vmatprep.subr.bf16.mxu0 %v9672_v16 }
0x1b08   :  { %7331 = vmatpush3.bf16.msra.mxu0 %v9678_v1 }
0x1b09   :  { %7332 = vmatprep.subr.bf16.mxu0 %v9684_v10 }
0x1b0c   :  { %7333 = vmatpush3.bf16.msra.mxu0 %v9690_v15 }
0x1b0d   :  { %7334 = vmatprep.subr.bf16.mxu0 %v9696_v57 }
0x1b10   :  { %7335 = vmatpush3.bf16.msra.mxu0 %v9702_v4 }
0x1b11   :  { %7336 = vmatprep.subr.bf16.mxu0 %v9708_v40 }
0x1b14   :  { %7337 = vmatpush3.bf16.msra.mxu0 %v9714_v54  ;;  %v2286_v54 = vld [vmem:[#allocation3] sm:$0xff] }
0x1b15   :  { %7353 = vmatprep.subr.bf16.mxu0 %v9337_v44 }
0x1bb7   :  { %v7305_v60 = vpop.f32.mrf.mxu0 }
0x1bb9   :  { %v7306_v22 = vpop.f32.mrf.mxu0 }
0x1bba   :  { %v7307_v17 = vadd.f32 %v7306_v22, %v7305_v60 }
0x1bbb   :  { %v7308_v28 = vpop.f32.mrf.mxu0 }
0x1bbc   :  { %v2241_v40 = vadd.f32 %v9721_v19, %v7307_v17 }
0x1bbd   :  { %v7309_v4 = vpop.f32.mrf.mxu0 }
0x1bbe   :  { %v2281_v57 = vadd.f32 %v2280_v24, %v2241_v40 }
0x1bc0   :  { %8154 = vtanh.f32 %v2281_v57  ;;  %v6876_v44 = vmul.f32 -1.442695, %v2281_v57 }
0x1bc2   :  { %8156 = vpow2.f32 %v6876_v44 }
0x1bcd   :  { %v8155_v15 = vpop.eup %8154 }
0x1bce   :  { %2300 = vrot.lane.b32.xlu1 %v8155_v15, %s8546_s30 }
0x1bcf   :  { %v8157_v60 = vpop.eup %8156 }
0x1bd0   :  { %v2290_v22 = vadd.f32 1.0, %v8157_v60 }
0x1bd2   :  { %2295 = vrot.lane.b32.xlu1 %v2286_v54, %s8553_s27  ;;  %8158 = vrcp.f32 %v2290_v22 }
0x1bd6   :  { %2132 = vrot.lane.b32.xlu1 %v9377_v31, %s8553_s27 }
0x1bdf   :  { %v8159_v28 = vpop.eup %8158 }
0x1c40   :  { %v2301_v10 = vpop.permute.xlu1 %2300 }
0x1c41   :  { %v2303_v17 = vmul.f32 %v8159_v28, %v2301_v10 }
0x1c43   :  { %2305 = vrot.lane.b32.xlu0 %v2303_v17, %s8553_s27 }
0x1c44   :  { %v2296_v24 = vpop.permute.xlu1 %2295 }
0x1c45   :  { %v2298_v15 = vmul.f32 %v8159_v28, %v2296_v24 }
0x1c48   :  { %v2133_v4 = vpop.permute.xlu1 %2132 }
0x1c49   :  { %2135 = vst.msk [vmem:[#allocation4] sm:$0xff] %vm97_vm2, %v2133_v4 }
0x1c50   :  { %v2323_v57 = vld [vmem:[#allocation4] sm:$0xff] }
0x1c51   :  { %v6967_v44 = vpack.c.bf16 %v2323_v57, %v2323_v57  ;;  %v9760_v57 = vld [vmem:[%s11545_s7] ss:$0 sm:$0xff] }
0x1cb5   :  { %v2306_v40 = vpop.permute.xlu0 %2305 }
0x1cb6   :  { %v9730_v54 = vadd.f32 %v2306_v40, %v2298_v15  ;;  %v9753_v40 = vld [vmem:[#allocation15] sm:$0xff]  }
0x1cb7   :  { %11801 = vst [vmem:[#allocation61_spill] sm:$0xff] %v9753_v40 }
0x1cb8   :  { %8160 = vtanh.f32 %v9730_v54 }
0x1cc5   :  { %v8161_v31 = vpop.eup %8160 }
0x1cc6   :  { %2311 = vrot.lane.b32.xlu0 %v8161_v31, %s8546_s30 }
0x1cca   :  { %2328 = vrot.lane.b32.xlu0 %v6967_v44, %s8553_s27 }
0x1d38   :  { %v2312_v10 = vpop.permute.xlu0 %2311 }
0x1d39   :  { %v9735_v60 = vmul.f32 %v8159_v28, %v2312_v10  ;;  %v9746_v28 = vld [vmem:[#allocation15 + $0x8] sm:$0xff]  }
0x1d3a   :  { %11800 = vst [vmem:[#allocation60_spill] sm:$0xff] %v9746_v28 }
0x1d3b   :  { %v6966_v22 = vpack.c.bf16 %v9735_v60, %v9735_v60 }
0x1d3c   :  { %v2329_v24 = vpop.permute.xlu0 %2328 }
0x1d3d   :  { %2319 = vrot.lane.b32.xlu1 %v6966_v22, %s8553_s27 }
0x1d41   :  { %2137 = vrot.lane.b32.xlu1 %v9373_v46, %s8554_s21 }
0x1daf   :  { %v2320_v17 = vpop.permute.xlu1 %2319 }
0x1db0   :  { %2322 = vst.msk [vmem:[#allocation9] sm:$0xf] %vm395_vm3, %v2320_v17 }
0x1db1   :  { %2331 = vst.msk [vmem:[#allocation9] sm:$0xf] %vm645_vm4, %v2329_v24 }
0x1db3   :  { %v2138_v4 = vpop.permute.xlu1 %2137 }
0x1db4   :  { %2140 = vst.msk [vmem:[#allocation5] sm:$0xff] %vm97_vm2, %v2138_v4 }
0x1db8   :  { %v2332_v15 = vld [vmem:[#allocation9] sm:$0xf] }
0x1db9   :  { %7797 = vmatmul.mubr.msk.bf16.vlgmr.msra.gmra.mxu1 %vm672_vm5, %v2332_v15 }
0x1dba   :  { %7801 = vmatpush3.bf16.msra.mxu1 %v9746_v28  ;;  %7804 = vmatprep.mubr.msk.bf16.mxu1 %vm8551_vm0, %v11756_v26 }
0x1dbb   :  { %v2376_v46 = vld [vmem:[#allocation5] sm:$0xff]  ;;  %7802 = vmatprep.subr.bf16.mxu1 %v11756_v26 }
0x1dbc   :  { %2385 = vrot.lane.b32.xlu1 %v2376_v46, %s8553_s27 }
0x1dbe   :  { %7803 = vmatpush3.bf16.msra.mxu1 %v9753_v40 }
0x1dbf   :  { %7808 = vmatprep.subr.bf16.mxu1 %v11756_v26 }
0x1e2e   :  { %v2386_v1 = vpop.permute.xlu1 %2385 }
0x1e79   :  { %v2370_v31 = vpop.f32.mrf.mxu1 }
0x1e7a   :  { %v2371_v44 = vadd.f32 %v9760_v57, %v2370_v31 }
0x1e7b   :  { %v7798_v10 = vpop.f32.mrf.mxu1 }
0x1e7c   :  { %8162 = vtanh.f32 %v2371_v44  ;;  %v6880_v4 = vmul.f32 -1.442695, %v2371_v44 }
0x1e7d   :  { %v2373_v22 = vpop.f32.mrf.mxu1 }
0x1e7e   :  { %8164 = vpow2.f32 %v6880_v4 }
0x1e7f   :  { %v7799_v17 = vpop.f32.mrf.mxu1 }
0x1e89   :  { %v8163_v24 = vpop.eup %8162 }
0x1e8a   :  { %2390 = vrot.lane.b32.xlu0 %v8163_v24, %s8546_s30 }
0x1e8b   :  { %v8165_v15 = vpop.eup %8164 }
0x1e8c   :  { %v2380_v46 = vadd.f32 1.0, %v8165_v15  ;;  %v11802_v15 = vld [vmem:[#allocation27_spill] sm:$0xff] }
0x1e8e   :  { %8166 = vrcp.f32 %v2380_v46 }
0x1e9b   :  { %v8167_v40 = vpop.eup %8166 }
0x1e9c   :  { %v2388_v16 = vmul.f32 %v8167_v40, %v2386_v1 }
0x1efc   :  { %v2391_v28 = vpop.permute.xlu0 %2390 }
0x1efd   :  { %v2393_v19 = vmul.f32 %v8167_v40, %v2391_v28 }
0x1eff   :  { %2395 = vrot.lane.b32.xlu0 %v2393_v19, %s8553_s27 }
0x1f71   :  { %v2396_v31 = vpop.permute.xlu0 %2395 }
0x1f72   :  { %v9765_v10 = vadd.f32 %v2396_v31, %v2388_v16  ;;  %v11803_v31 = vld [vmem:[#allocation28_spill] sm:$0xff] }
0x1f74   :  { %8168 = vtanh.f32 %v9765_v10 }
0x1f81   :  { %v8169_v22 = vpop.eup %8168 }
0x1f82   :  { %2401 = vrot.lane.b32.xlu1 %v8169_v22, %s8546_s30 }
0x1ff4   :  { %v2402_v44 = vpop.permute.xlu1 %2401 }
0x1ff5   :  { %v9769_v17 = vmul.f32 %v8167_v40, %v2402_v44  ;;  %v11804_v44 = vld [vmem:[#allocation29_spill] sm:$0xff] }
0x1ff7   :  { %v2405_v24 = vpack.c.bf16 %v9769_v17, %v9769_v17 }
0x1ff9   :  { %2407 = vrot.lane.b32.xlu0 %v2405_v24, %s8553_s27 }
0x206b   :  { %v2408_v28 = vpop.permute.xlu0 %2407 }
0x206c   :  { %7805 = vmatmul.mubr.msk.bf16.vlgmr.msra.gmra.mxu1 %vm97_vm2, %v2408_v28  ;;  %v11805_v28 = vld [vmem:[#allocation30_spill] sm:$0xff] }
0x206d   :  { %7809 = vmatpush3.bf16.msra.mxu1 %v9383_v47  ;;  %7824 = vmatprep.mubr.msk.bf16.mxu1 %vm8551_vm0, %v11756_v26 }
0x206e   :  { %7810 = vmatprep.subr.bf16.mxu1 %v11756_v26 }
0x2071   :  { %7811 = vmatpush3.bf16.msra.mxu1 %v9389_v59  ;;  %v9796_v59 = vld [vmem:[%s11547_s9] ss:$0 sm:$0xff] }
0x2072   :  { %7812 = vmatprep.subr.bf16.mxu1 %v11756_v26 }
0x2075   :  { %7813 = vmatpush3.bf16.msra.mxu1 %v9393_v21 }
0x2076   :  { %7814 = vmatprep.subr.bf16.mxu1 %v11756_v26 }
0x2079   :  { %7815 = vmatpush3.bf16.msra.mxu1 %v9397_v41 }
0x207a   :  { %7816 = vmatprep.subr.bf16.mxu1 %v11756_v26 }
0x207d   :  { %7817 = vmatpush3.bf16.msra.mxu1 %v9401_v45 }
0x207e   :  { %7818 = vmatprep.subr.bf16.mxu1 %v11756_v26 }
0x2081   :  { %7819 = vmatpush3.bf16.msra.mxu1 %v9405_v51 }
0x2082   :  { %7820 = vmatprep.subr.bf16.mxu1 %v11756_v26 }
0x2085   :  { %7821 = vmatpush3.bf16.msra.mxu1 %v9409_v37 }
0x2086   :  { %7822 = vmatprep.subr.bf16.mxu1 %v11756_v26 }
0x2089   :  { %7823 = vmatpush3.bf16.msra.mxu1 %v9413_v12 }
0x208a   :  { %7828 = vmatprep.subr.bf16.mxu1 %v11756_v26 }
0x212c   :  { %v2446_v47 = vpop.f32.mrf.mxu1 }
0x212d   :  { %v9799_v21 = vadd.f32 %v9796_v59, %v2446_v47 }
0x212e   :  { %v7806_v41 = vpop.f32.mrf.mxu1 }
0x212f   :  { %v2453_v45 = vmul.f32 %v8873_v7, %v9799_v21  ;;  %v2452_v51 = vmul.f32 %v8875_v8, %v9799_v21  ;;  %v2454_v16 = vmul.f32 %v8887_v62, %v9799_v21  ;;  %v2455_v1 = vmul.f32 %v11757_v3, %v9799_v21  ;;  %v11806_v41 = vld [vmem:[#allocation31_spill] sm:$0xff] }
0x2130   :  { %v2449_v37 = vpop.f32.mrf.mxu1  ;;  %v2460_v19 = vmul.f32 %v11758_v6, %v9799_v21  ;;  %v2461_v40 = vmul.f32 %v11759_v52, %v9799_v21  ;;  %v2456_v4 = vmul.f32 %v11760_v32, %v9799_v21  ;;  %v2462_v46 = vmul.f32 %v11802_v15, %v9799_v21 }
0x2131   :  { %2470 = vadd.xlane.f32.xlu0 %v2453_v45  ;;  %2468 = vadd.xlane.f32.xlu1 %v2452_v51  ;;  %v2457_v22 = vmul.f32 %v11803_v31, %v9799_v21  ;;  %v2463_v24 = vmul.f32 %v11804_v44, %v9799_v21  ;;  %v2458_v47 = vmul.f32 %v11805_v28, %v9799_v21  ;;  %v11807_v51 = vld [vmem:[#allocation32_spill] sm:$0xff] }
0x2132   :  { %v7807_v12 = vpop.f32.mrf.mxu1  ;;  %v2464_v45 = vmul.f32 %v11806_v41, %v9799_v21  ;;  %v2459_v37 = vmul.f32 %v11807_v51, %v9799_v21  ;;  %v11811_v44 = vld [vmem:[#allocation36_spill] sm:$0xff] }
0x2133   :  { %v11808_v12 = vld [vmem:[#allocation33_spill] sm:$0xff] }
0x2135   :  { %2472 = vadd.xlane.f32.xlu0 %v2454_v16  ;;  %2474 = vadd.xlane.f32.xlu1 %v2455_v1  ;;  %v2465_v16 = vmul.f32 %v11808_v12, %v9799_v21  ;;  %v11809_v1 = vld [vmem:[#allocation34_spill] sm:$0xff] }
0x2139   :  { %2484 = vadd.xlane.f32.xlu0 %v2460_v19  ;;  %2486 = vadd.xlane.f32.xlu1 %v2461_v40  ;;  %v2466_v19 = vmul.f32 %v11809_v1, %v9799_v21  ;;  %v11810_v40 = vld [vmem:[#allocation35_spill] sm:$0xff] }
0x213d   :  { %2476 = vadd.xlane.f32.xlu0 %v2456_v4  ;;  %2488 = vadd.xlane.f32.xlu1 %v2462_v46  ;;  %v2467_v4 = vmul.f32 %v11810_v40, %v9799_v21 }
0x2141   :  { %2478 = vadd.xlane.f32.xlu0 %v2457_v22  ;;  %2490 = vadd.xlane.f32.xlu1 %v2463_v24 }
0x2145   :  { %2480 = vadd.xlane.f32.xlu0 %v2458_v47  ;;  %2492 = vadd.xlane.f32.xlu1 %v2464_v45 }
0x2149   :  { %2482 = vadd.xlane.f32.xlu0 %v2459_v37  ;;  %2494 = vadd.xlane.f32.xlu1 %v2465_v16 }
0x214d   :  { %2496 = vadd.xlane.f32.xlu0 %v2466_v19  ;;  %2498 = vadd.xlane.f32.xlu1 %v2467_v4 }
0x21ba   :  { %v2471_v46 = vpop.xlane.xlu0 %2470  ;;  %v2469_v22 = vpop.xlane.xlu1 %2468 }
0x21bb   :  { %v2523_v12 = vrot.slane %v2471_v46, %v11811_v44  ;;  %v2519_v37 = vrot.slane %v2469_v22, %v11811_v44 }
0x21bd   :  { %v2580_v40 = vsel %vm932_vm6, %v2523_v12, %v2519_v37 }
0x21be   :  { %v2473_v24 = vpop.xlane.xlu0 %2472  ;;  %v2475_v47 = vpop.xlane.xlu1 %2474 }
0x21bf   :  { %v2527_v16 = vrot.slane %v2473_v24, %v11811_v44  ;;  %v2531_v19 = vrot.slane %v2475_v47, %v11811_v44 }
0x21c1   :  { %v2581_v4 = vsel %vm934_vm7, %v2527_v16, %v2580_v40 }
0x21c2   :  { %v2485_v45 = vpop.xlane.xlu0 %2484  ;;  %v2487_v41 = vpop.xlane.xlu1 %2486  ;;  %v2582_v3 = vsel %vm936_vm8, %v2531_v19, %v2581_v4 }
0x21c3   :  { %v2551_v46 = vrot.slane %v2485_v45, %v11811_v44  ;;  %v2555_v22 = vrot.slane %v2487_v41, %v11811_v44 }
0x21c5   :  { %v2587_v41 = vsel %vm932_vm6, %v2555_v22, %v2551_v46 }
0x21c6   :  { %v2477_v51 = vpop.xlane.xlu0 %2476  ;;  %v2489_v28 = vpop.xlane.xlu1 %2488 }
0x21c7   :  { %v2535_v15 = vrot.slane %v2477_v51, %v11811_v44  ;;  %v2559_v12 = vrot.slane %v2489_v28, %v11811_v44 }
0x21c9   :  { %v2583_v47 = vsel %vm938_vm9, %v2535_v15, %v2582_v3  ;;  %v2588_v28 = vsel %vm934_vm7, %v2559_v12, %v2587_v41 }
0x21ca   :  { %v2479_v1 = vpop.xlane.xlu0 %2478  ;;  %v2491_v31 = vpop.xlane.xlu1 %2490 }
0x21cb   :  { %v2539_v6 = vrot.slane %v2479_v1, %v11811_v44  ;;  %v2563_v40 = vrot.slane %v2491_v31, %v11811_v44 }
0x21cd   :  { %v2584_v16 = vsel %vm940_vm10, %v2539_v6, %v2583_v47  ;;  %v2589_v15 = vsel %vm936_vm8, %v2563_v40, %v2588_v28  ;;  %v9866_v40 = vld [vmem:[%s11540_s2] sm:$0xff] }
0x21ce   :  { %v2481_v32 = vpop.xlane.xlu0 %2480  ;;  %v2493_v52 = vpop.xlane.xlu1 %2492  ;;  %11812 = vst [vmem:[#allocation62_spill] sm:$0xff] %v9866_v40 }
0x21cf   :  { %v2543_v24 = vrot.slane %v2481_v32, %v11811_v44  ;;  %v2567_v1 = vrot.slane %v2493_v52, %v11811_v44 }
0x21d1   :  { %v2585_v19 = vsel %vm942_vm11, %v2543_v24, %v2584_v16  ;;  %v2590_v6 = vsel %vm938_vm9, %v2567_v1, %v2589_v15 }
0x21d2   :  { %v2483_v37 = vpop.xlane.xlu0 %2482  ;;  %v2495_v51 = vpop.xlane.xlu1 %2494 }
0x21d3   :  { %v2547_v45 = vrot.slane %v2483_v37, %v11811_v44  ;;  %v2571_v32 = vrot.slane %v2495_v51, %v11811_v44 }
0x21d5   :  { %v2586_v3 = vsel %vm944_vm12, %v2547_v45, %v2585_v19  ;;  %v2591_v46 = vsel %vm940_vm10, %v2571_v32, %v2590_v6  ;;  %v11814_v6 = vld [vmem:[#allocation39_spill] sm:$0xff] }
0x21d6   :  { %v2497_v31 = vpop.xlane.xlu0 %2496  ;;  %2596 = vxpose.xlu0.b32.start [1/2] (short) (narrow) %v2586_v3, 8  ;;  %v2499_v4 = vpop.xlane.xlu1 %2498 }
0x21d7   :  { %v2575_v52 = vrot.slane %v2497_v31, %v11811_v44  ;;  %v2579_v47 = vrot.slane %v2499_v4, %v11811_v44  ;;  %v11813_v31 = vld [vmem:[#allocation38_spill] sm:$0xff] }
0x21d9   :  { %v2592_v22 = vsel %vm942_vm11, %v2575_v52, %v2591_v46 }
0x21da   :  { %v2593_v24 = vsel %vm944_vm12, %v2579_v47, %v2592_v22  ;;  %v11815_v47 = vld [vmem:[#allocation40_spill] sm:$0xff]  ;;  %v11816_v22 = vld [vmem:[#allocation41_spill] sm:$0xff] }
0x21db   :  { %2597 = vxpose.xlu0.b32.end [2/2] (short) (narrow) %v2593_v24, 8 }
0x2253   :  { %v2612_v12 = vpop.trf.xlu0 }
0x2254   :  { %v2628_v37 = vadd.f32 %v9866_v40, %v2612_v12 }
0x2256   :  { %v2629_v51 = vsel %vm988_vm13, %v2628_v37, -inf }
0x2257   :  { %2630 = vmax.xlane.f32.xlu1 %v2629_v51 }
0x22e0   :  { %v2631_v16 = vpop.xlane.xlu1 %2630 }
0x22e1   :  { %v2632_v1 = vsub.f32 %v2628_v37, %v2631_v16  ;;  %v11817_v37 = vld [vmem:[#allocation42_spill] sm:$0xff]  ;;  %v11818_v16 = vld [vmem:[#allocation43_spill] sm:$0xff] }
0x22e3   :  { %v2633_v45 = vmul.f32 1.442695, %v2632_v1 }
0x22e5   :  { %8170 = vpow2.f32 %v2633_v45 }
0x22f2   :  { %v8171_v41 = vpop.eup %8170 }
0x22f3   :  { %v2635_v32 = vsel %vm988_vm13, %v8171_v41, 0.0 }
0x22f4   :  { %2636 = vadd.xlane.f32.xlu1 %v2635_v32 }
0x237d   :  { %v2637_v19 = vpop.xlane.xlu1 %2636 }
0x237e   :  { %8172 = vrcp.f32 %v2637_v19 }
0x238b   :  { %v8173_v28 = vpop.eup %8172 }
0x238c   :  { %v2639_v3 = vmul.f32 %v8173_v28, %v8171_v41  ;;  %v11819_v41 = vld [vmem:[#allocation44_spill] sm:$0xff]  ;;  %v11820_v28 = vld [vmem:[#allocation45_spill] sm:$0xff] }
0x238e   :  { %2640 = vxpose.xlu1.b32.start.end [1/1] (short) (narrow) %v2639_v3, 16  ;;  %6885 = vst.msk [vmem:[%s11551_s13 + $0x10] sm:$0xff] %vm988_vm13, %v2639_v3 }
0x240a   :  { %v2656_v15 = vpop.trf.xlu1 }
0x240b   :  { %v2682_v4 = vrot.slane %v2656_v15, %v11813_v31  ;;  %v2675_v52 = vrot.slane %v2656_v15, %v11814_v6  ;;  %v2703_v46 = vrot.slane %v2656_v15, %v11815_v47  ;;  %v2689_v24 = vrot.slane %v2656_v15, %v11816_v22 }
0x240c   :  { %v2717_v51 = vrot.slane %v2656_v15, %v11817_v37  ;;  %v2696_v1 = vrot.slane %v2656_v15, %v11818_v16  ;;  %v2710_v32 = vrot.slane %v2656_v15, %v11819_v41  ;;  %v2724_v3 = vrot.slane %v2656_v15, %v11820_v28 }
0x240d   :  { %2684 = vbcast.lane.b32.xlu1 %v2682_v4, 256  ;;  %2677 = vbcast.lane.b32.xlu0 %v2675_v52, 256 }
0x240e   :  { %v2657_v12 = vpop.trf.xlu1 }
0x240f   :  { %v2731_v45 = vrot.slane %v2657_v12, %v11814_v6  ;;  %v2745_v19 = vrot.slane %v2657_v12, %v11816_v22  ;;  %v2738_v4 = vrot.slane %v2657_v12, %v11813_v31  ;;  %v2759_v52 = vrot.slane %v2657_v12, %v11815_v47  ;;  %v11823_v47 = vld [vmem:[#allocation48_spill] sm:$0xff]  ;;  %v11824_v31 = vld [vmem:[#allocation49_spill] sm:$0xff] }
0x2411   :  { %2705 = vbcast.lane.b32.xlu1 %v2703_v46, 256  ;;  %2691 = vbcast.lane.b32.xlu0 %v2689_v24, 256  ;;  %v2752_v46 = vrot.slane %v2657_v12, %v11818_v16  ;;  %v2773_v24 = vrot.slane %v2657_v12, %v11817_v37 }
0x2415   :  { %2719 = vbcast.lane.b32.xlu1 %v2717_v51, 256  ;;  %2698 = vbcast.lane.b32.xlu0 %v2696_v1, 256  ;;  %v2766_v51 = vrot.slane %v2657_v12, %v11819_v41  ;;  %v2780_v1 = vrot.slane %v2657_v12, %v11820_v28 }
0x2419   :  { %2712 = vbcast.lane.b32.xlu0 %v2710_v32, 256  ;;  %2733 = vbcast.lane.b32.xlu1 %v2731_v45, 256  ;;  %v11821_v32 = vld [vmem:[#allocation46_spill] sm:$0xff] }
0x241d   :  { %2726 = vbcast.lane.b32.xlu0 %v2724_v3, 256  ;;  %2747 = vbcast.lane.b32.xlu1 %v2745_v19, 256  ;;  %v11822_v3 = vld [vmem:[#allocation47_spill] sm:$0xff] }
0x2421   :  { %2740 = vbcast.lane.b32.xlu0 %v2738_v4, 256  ;;  %2761 = vbcast.lane.b32.xlu1 %v2759_v52, 256 }
0x2425   :  { %2754 = vbcast.lane.b32.xlu0 %v2752_v46, 256  ;;  %2775 = vbcast.lane.b32.xlu1 %v2773_v24, 256 }
0x2429   :  { %2768 = vbcast.lane.b32.xlu0 %v2766_v51, 256  ;;  %v11825_v51 = vld [vmem:[#allocation50_spill] sm:$0xff] }
0x242d   :  { %2782 = vbcast.lane.b32.xlu0 %v2780_v1, 256 }
0x247f   :  { %v2678_v15 = vpop.permute.xlu0 %2677  ;;  %v2685_v45 = vpop.permute.xlu1 %2684 }
0x2480   :  { %v2784_v19 = vmul.f32 %v11821_v32, %v2678_v15  ;;  %v2785_v22 = vmul.f32 %v11822_v3, %v2685_v45 }
0x2482   :  { %v2800_v6 = vadd.f32 %v2785_v22, %v2784_v19 }
0x2483   :  { %v2692_v4 = vpop.permute.xlu0 %2691  ;;  %v2706_v52 = vpop.permute.xlu1 %2705 }
0x2484   :  { %v2786_v16 = vmul.f32 %v11823_v47, %v2692_v4  ;;  %v2788_v40 = vmul.f32 %v11825_v51, %v2706_v52  ;;  %v11826_v4 = vld [vmem:[#allocation53_spill] sm:$0xff] }
0x2486   :  { %v2801_v24 = vadd.f32 %v2800_v6, %v2786_v16 }
0x2487   :  { %v2699_v37 = vpop.permute.xlu0 %2698  ;;  %v2720_v46 = vpop.permute.xlu1 %2719 }
0x2488   :  { %v2787_v41 = vmul.f32 %v11824_v31, %v2699_v37  ;;  %v2790_v45 = vmul.f32 %v11786_v35, %v2720_v46 }
0x248a   :  { %v2802_v12 = vadd.f32 %v2801_v24, %v2787_v41 }
0x248b   :  { %v2713_v1 = vpop.permute.xlu0 %2712  ;;  %v2734_v28 = vpop.permute.xlu1 %2733 }
0x248c   :  { %v2789_v44 = vmul.f32 %v11785_v53, %v2713_v1  ;;  %v2803_v15 = vadd.f32 %v2802_v12, %v2788_v40  ;;  %v2792_v22 = vmul.f32 %v11826_v4, %v2734_v28 }
0x248e   :  { %v2804_v3 = vadd.f32 %v2803_v15, %v2789_v44 }
0x248f   :  { %v2727_v32 = vpop.permute.xlu0 %2726  ;;  %v2748_v62 = vpop.permute.xlu1 %2747 }
0x2490   :  { %v2791_v19 = vmul.f32 %v11788_v42, %v2727_v32  ;;  %v2805_v6 = vadd.f32 %v2804_v3, %v2790_v45  ;;  %v2794_v51 = vmul.f32 %v11790_v48, %v2748_v62 }
0x2492   :  { %v2806_v16 = vadd.f32 %v2805_v6, %v2791_v19 }
0x2493   :  { %v2741_v37 = vpop.permute.xlu0 %2740  ;;  %v2762_v24 = vpop.permute.xlu1 %2761 }
0x2494   :  { %v2793_v52 = vmul.f32 %v11789_v55, %v2741_v37  ;;  %v2807_v41 = vadd.f32 %v2806_v16, %v2792_v22  ;;  %v2796_v12 = vmul.f32 %v9203_v43, %v2762_v24  ;;  %v9939_v24 = vld [vmem:[%s11542_s4 + $0x28] sm:$0xff]  }
0x2496   :  { %v2808_v1 = vadd.f32 %v2807_v41, %v2793_v52  ;;  %v9921_v52 = vld [vmem:[%s11542_s4 + $0x70] sm:$0xff]   ;;  %v9933_v41 = vld [vmem:[%s11542_s4 + $0x68] sm:$0xff]  }
0x2497   :  { %v2755_v40 = vpop.permute.xlu0 %2754  ;;  %v2776_v28 = vpop.permute.xlu1 %2775 }
0x2498   :  { %v2795_v46 = vmul.f32 %v9200_v0, %v2755_v40  ;;  %v2809_v44 = vadd.f32 %v2808_v1, %v2794_v51  ;;  %v2798_v45 = vmul.f32 %v9212_v5, %v2776_v28  ;;  %v7140_v51 = vpack.c.bf16 %v9799_v21, %v9799_v21  ;;  %v9927_v21 = vld [vmem:[%s11542_s4 + $0x30] sm:$0xff]   ;;  %v9945_v1 = vld [vmem:[%s11542_s4 + $0x60] sm:$0xff]  }
0x2499   :  { %v9951_v40 = vld [vmem:[%s11542_s4 + $0x20] sm:$0xff]  }
0x249a   :  { %v2810_v15 = vadd.f32 %v2809_v44, %v2795_v46  ;;  %v9957_v46 = vld [vmem:[%s11542_s4 + $0x58] sm:$0xff]  }
0x249b   :  { %v2769_v4 = vpop.permute.xlu0 %2768  ;;  %v9963_v44 = vld [vmem:[%s11542_s4 + $0x18] sm:$0xff]  }
0x249c   :  { %v2797_v32 = vmul.f32 %v9209_v56, %v2769_v4  ;;  %v2811_v3 = vadd.f32 %v2810_v15, %v2796_v12  ;;  %v9915_v4 = vld [vmem:[%s11542_s4 + $0x38] sm:$0xff]  }
0x249e   :  { %v2812_v19 = vadd.f32 %v2811_v3, %v2797_v32  ;;  %v9973_v3 = vld [vmem:[#allocation16] ss:$0 sm:$0xff] }
0x249f   :  { %v2783_v22 = vpop.permute.xlu0 %2782 }
0x24a0   :  { %v2799_v6 = vmul.f32 %v9215_v9, %v2783_v22  ;;  %v2813_v62 = vadd.f32 %v2812_v19, %v2798_v45 }
0x24a2   :  { %v2814_v16 = vadd.f32 %v2813_v62, %v2799_v6 }
0x24a4   :  { %v9907_v37 = vpack.c.bf16 %v2814_v16, %v2814_v16 }
0x24a6   :  { %2859 = vmatprep.mubr.bf16.mxu0 %v9907_v37 }
0x24a7   :  { %2860 = vmatmul.mubr.bf16.vlgmr.msra.gmra.mxu0 %v7140_v51 }
0x24a8   :  { %7354 = vmatpush3.bf16.msra.mxu0 %v9915_v4  ;;  %3011 = vmatprep.mubr.bf16.mxu0 %v9907_v37  ;;  %v11827_v37 = vld [vmem:[#allocation37_spill] sm:$0xff] }
0x24a9   :  { %7355 = vmatprep.subr.bf16.mxu0 %v9921_v52 }
0x24ac   :  { %7356 = vmatpush3.bf16.msra.mxu0 %v9927_v21 }
0x24ad   :  { %7357 = vmatprep.subr.bf16.mxu0 %v9933_v41 }
0x24b0   :  { %7358 = vmatpush3.bf16.msra.mxu0 %v9939_v24 }
0x24b1   :  { %7359 = vmatprep.subr.bf16.mxu0 %v9945_v1 }
0x24b4   :  { %7360 = vmatpush3.bf16.msra.mxu0 %v9951_v40 }
0x24b5   :  { %7361 = vmatprep.subr.bf16.mxu0 %v9957_v46 }
0x24b8   :  { %7362 = vmatpush3.bf16.msra.mxu0 %v9963_v44 }
0x24b9   :  { %7363 = vmatprep.subr.bf16.mxu0 %v9538_v49 }
0x24bc   :  { %7364 = vmatpush3.bf16.msra.mxu0 %v9544_v63 }
0x24bd   :  { %7365 = vmatprep.subr.bf16.mxu0 %v9550_v20 }
0x24c0   :  { %7366 = vmatpush3.bf16.msra.mxu0 %v9556_v23 }
0x24c1   :  { %7367 = vmatprep.subr.bf16.mxu0 %v9562_v14 }
0x24c4   :  { %7368 = vmatpush3.bf16.msra.mxu0 %v9568_v50 }
0x24c5   :  { %7386 = vmatprep.subr.bf16.mxu0 %v9574_v34 }
0x2567   :  { %v7338_v12 = vpop.f32.mrf.mxu0 }
0x2569   :  { %v7339_v15 = vpop.f32.mrf.mxu0 }
0x256a   :  { %v7340_v28 = vadd.f32 %v7339_v15, %v7338_v12 }
0x256b   :  { %v7341_v32 = vpop.f32.mrf.mxu0 }
0x256c   :  { %v2862_v49 = vadd.f32 %v9973_v3, %v7340_v28 }
0x256d   :  { %v7342_v45 = vpop.f32.mrf.mxu0 }
0x256e   :  { %6884 = vst [vmem:[%s11550_s12 + $0x10] sm:$0xff] %v2862_v49  ;;  %2871 = vmax.xlane.f32.xlu1 %v2862_v49 }
0x257f   :  { %2895 = vrot.lane.b32.xlu1 %v9735_v60, %s8553_s27 }
0x25f7   :  { %v2872_v63 = vpop.xlane.xlu1 %2871 }
0x25f8   :  { %vm2873_vm14 = vcmp.ge.f32.partialorder %v2862_v49, %v2872_v63 }
0x25f9   :  { %v2874_v20 = vsel %vm2873_vm14, %v8647_v2, 128 }
0x25fa   :  { %v2876_v23 = vshra.s32 %v2874_v20, 16  ;;  %v2875_v22 = vand.u32 65535, %v2874_v20 }
0x25fb   :  { %v2896_v14 = vpop.permute.xlu1 %2895 }
0x25fc   :  { %2898 = vst.msk [vmem:[#allocation2] sm:$0xff] %vm97_vm2, %v2896_v14  ;;  %v2878_v50 = vcvt.s32.f32 %v2876_v23  ;;  %v2877_v62 = vcvt.s32.f32 %v2875_v22 }
0x25fe   :  { %2879 = vmin.xlane.f32.xlu0 %v2878_v50 }
0x2603   :  { %v2961_v34 = vld [vmem:[#allocation2] sm:$0xff] }
0x2604   :  { %v2962_v19 = vpack.c.bf16 %v2961_v34, %v2961_v34  ;;  %v11831_v34 = vld [vmem:[#allocation55_spill] sm:$0xff] }
0x2606   :  { %2963 = vst.msk [vmem:[#allocation8 + $0x8] sm:$0xf] %vm395_vm3, %v2962_v19  ;;  %v11834_v19 = vld [vmem:[#allocation58_spill] sm:$0xff] }
0x2687   :  { %v2880_v6 = vpop.xlane.xlu0 %2879 }
0x2688   :  { %vm2881_vm15 = vcmp.eq.f32.partialorder %v2878_v50, %v2880_v6  ;;  %v2886_v60 = vcvt.f32.s32 %v2880_v6  ;;  %v11828_v50 = vld [vmem:[#allocation51_spill] sm:$0xff] }
0x2689   :  { %v2882_v16 = vsel %vm2881_vm15, %v2877_v62, inf  ;;  %v11835_v62 = vld [vmem:[#allocation59_spill] sm:$0xff] }
0x268a   :  { %2883 = vmin.xlane.f32.xlu0 %v2882_v16  ;;  %v2887_v12 = vshll.u32 %v2886_v60, 16 }
0x26a0   :  { %2900 = vrot.lane.b32.xlu0 %v9730_v54, %s8554_s21  ;;  %v8109_v54 = vld [vmem:[#allocation8 + $0x8] ss:$0 sps:$4 sm:$0xff]  }
0x2713   :  { %v2884_v51 = vpop.xlane.xlu0 %2883 }
0x2714   :  { %v2885_v15 = vcvt.f32.s32 %v2884_v51 }
0x2716   :  { %v2888_v28 = vadd.s32 %v2887_v12, %v2885_v15 }
0x2717   :  { %v2901_v32 = vpop.permute.xlu0 %2900 }
0x2718   :  { %vm2889_vm1 = vcmp.eq.s32.totalorder %v8647_v2, %v2888_v28  ;;  %2903 = vst.msk [vmem:[#allocation3] sm:$0xff] %vm97_vm2, %v2901_v32 }
0x2719   :  { %v6886_v49 = vsel %vm2889_vm1, 1.0, %v11756_v26 }
0x271a   :  { %v2892_v45 = vpack.c.bf16 %v6886_v49, %v6886_v49 }
0x271c   :  { %2893 = vst [vmem:[#allocation7] sm:$0xf] %v2892_v45 }
0x271f   :  { %v3059_v15 = vld [vmem:[#allocation3] sm:$0xff] }
0x2723   :  { %v2915_v63 = vld [vmem:[#allocation7] sm:$0xf] }
0x2724   :  { %7825 = vmatmul.mubr.bf16.vlgmr.msra.gmra.mxu1 %v2915_v63 }
0x2725   :  { %7829 = vmatpush3.bf16.msra.mxu1 %v9594_v38  ;;  %7832 = vmatprep.mubr.msk.bf16.mxu1 %vm8551_vm0, %v11756_v26 }
0x2726   :  { %7830 = vmatprep.subr.bf16.mxu1 %v11756_v26 }
0x2729   :  { %7831 = vmatpush3.bf16.msra.mxu1 %v9603_v58 }
0x272a   :  { %7836 = vmatprep.subr.bf16.mxu1 %v11756_v26 }
0x272c   :  { %7833 = vmatmul.mubr.msk.bf16.vlgmr.msra.gmra.mxu1 %vm97_vm2, %v8109_v54 }
0x272d   :  { %7837 = vmatpush3.bf16.msra.mxu1 %v9608_v13  ;;  %7844 = vmatprep.mubr.msk.bf16.mxu1 %vm8551_vm0, %v11756_v26 }
0x272e   :  { %7838 = vmatprep.subr.bf16.mxu1 %v11756_v26 }
0x2731   :  { %7839 = vmatpush3.bf16.msra.mxu1 %v9614_v30 }
0x2732   :  { %7840 = vmatprep.subr.bf16.mxu1 %v11756_v26 }
0x2735   :  { %7841 = vmatpush3.bf16.msra.mxu1 %v9618_v61 }
0x2736   :  { %7842 = vmatprep.subr.bf16.mxu1 %v11756_v26 }
0x2739   :  { %7843 = vmatpush3.bf16.msra.mxu1 %v9622_v25 }
0x273a   :  { %7848 = vmatprep.subr.bf16.mxu1 %v11756_v26 }
0x27e4   :  { %v2950_v38 = vpop.f32.mrf.mxu1 }
0x27e5   :  { %v8449_v13 = vpack.c.bf16 %v2950_v38, %v2950_v38 }
0x27e6   :  { %v7826_v58 = vpop.f32.mrf.mxu1 }
0x27e7   :  { %3012 = vmatmul.mubr.bf16.vlgmr.msra.gmra.mxu0 %v8449_v13 }
0x27e8   :  { %v2953_v20 = vpop.f32.mrf.mxu1  ;;  %7387 = vmatpush3.bf16.msra.mxu0 %v9630_v11  ;;  %v11829_v11 = vld [vmem:[#allocation52_spill] sm:$0xff] }
0x27e9   :  { %7388 = vmatprep.subr.bf16.mxu0 %v9636_v18  ;;  %v11830_v18 = vld [vmem:[#allocation54_spill] sm:$0xff] }
0x27ea   :  { %v7827_v23 = vpop.f32.mrf.mxu1 }
0x27ec   :  { %v3053_v30 = vpop.f32.mrf.mxu1  ;;  %7389 = vmatpush3.bf16.msra.mxu0 %v9642_v29  ;;  %v11832_v29 = vld [vmem:[#allocation56_spill] sm:$0xff] }
0x27ed   :  { %7390 = vmatprep.subr.bf16.mxu0 %v9648_v27  ;;  %v11833_v27 = vld [vmem:[#allocation57_spill] sm:$0xff] }
0x27ee   :  { %v7834_v61 = vpop.f32.mrf.mxu1 }
0x27f0   :  { %v3056_v14 = vpop.f32.mrf.mxu1  ;;  %7391 = vmatpush3.bf16.msra.mxu0 %v9654_v36  ;;  %v10025_v36 = vld [vmem:[%s11542_s4 + $0x78] sm:$0xff]  }
0x27f1   :  { %7392 = vmatprep.subr.bf16.mxu0 %v9660_v39 }
0x27f2   :  { %v7835_v25 = vpop.f32.mrf.mxu1 }
0x27f4   :  { %7393 = vmatpush3.bf16.msra.mxu0 %v9666_v33 }
0x27f5   :  { %7394 = vmatprep.subr.bf16.mxu0 %v11827_v37 }
0x27f8   :  { %7395 = vmatpush3.bf16.msra.mxu0 %v11828_v50 }
0x27f9   :  { %7396 = vmatprep.subr.bf16.mxu0 %v11829_v11 }
0x27fc   :  { %7397 = vmatpush3.bf16.msra.mxu0 %v11830_v18 }
0x27fd   :  { %7398 = vmatprep.subr.bf16.mxu0 %v11831_v34 }
0x2800   :  { %7399 = vmatpush3.bf16.msra.mxu0 %v11832_v29  ;;  %v11836_v29 = vld [vmem:[#allocation60_spill] sm:$0xff] }
0x2801   :  { %7400 = vmatprep.subr.bf16.mxu0 %v11833_v27 }
0x2804   :  { %7401 = vmatpush3.bf16.msra.mxu0 %v11834_v19 }
0x2805   :  { %7417 = vmatprep.subr.bf16.mxu0 %v10025_v36 }
0x28a7   :  { %v7369_v39 = vpop.f32.mrf.mxu0 }
0x28a9   :  { %v7370_v33 = vpop.f32.mrf.mxu0 }
0x28aa   :  { %v7371_v22 = vadd.f32 %v7370_v33, %v7369_v39 }
0x28ab   :  { %v7372_v6 = vpop.f32.mrf.mxu0 }
0x28ac   :  { %v3014_v16 = vadd.f32 %v11835_v62, %v7371_v22 }
0x28ad   :  { %v7373_v60 = vpop.f32.mrf.mxu0 }
0x28ae   :  { %v3054_v51 = vadd.f32 %v3053_v30, %v3014_v16 }
0x28b0   :  { %8174 = vtanh.f32 %v3054_v51  ;;  %v6891_v28 = vmul.f32 -1.442695, %v3054_v51 }
0x28b2   :  { %8176 = vpow2.f32 %v6891_v28 }
0x28bd   :  { %v8175_v12 = vpop.eup %8174 }
0x28be   :  { %3073 = vrot.lane.b32.xlu1 %v8175_v12, %s8546_s30 }
0x28bf   :  { %v8177_v32 = vpop.eup %8176 }
0x28c0   :  { %v3063_v49 = vadd.f32 1.0, %v8177_v32 }
0x28c2   :  { %3068 = vrot.lane.b32.xlu1 %v3059_v15, %s8553_s27  ;;  %8178 = vrcp.f32 %v3063_v49 }
0x28c6   :  { %2905 = vrot.lane.b32.xlu1 %v9769_v17, %s8553_s27 }
0x28cf   :  { %v8179_v45 = vpop.eup %8178 }
0x2930   :  { %v3074_v63 = vpop.permute.xlu1 %3073 }
0x2931   :  { %v3076_v54 = vmul.f32 %v8179_v45, %v3074_v63 }
0x2933   :  { %3078 = vrot.lane.b32.xlu0 %v3076_v54, %s8553_s27 }
0x2934   :  { %v3069_v38 = vpop.permute.xlu1 %3068 }
0x2935   :  { %v3071_v13 = vmul.f32 %v8179_v45, %v3069_v38 }
0x2938   :  { %v2906_v58 = vpop.permute.xlu1 %2905 }
0x2939   :  { %2908 = vst.msk [vmem:[#allocation4] sm:$0xff] %vm97_vm2, %v2906_v58 }
0x2940   :  { %v3096_v30 = vld [vmem:[#allocation4] sm:$0xff] }
0x2941   :  { %v6969_v61 = vpack.c.bf16 %v3096_v30, %v3096_v30  ;;  %v10081_v30 = vld [vmem:[#allocation11 + $0x28] sm:$0xff]  }
0x29a5   :  { %v3079_v20 = vpop.permute.xlu0 %3078 }
0x29a6   :  { %v10035_v23 = vadd.f32 %v3079_v20, %v3071_v13  ;;  %v10071_v20 = vld [vmem:[#allocation11 + $0x38] sm:$0xff]  }
0x29a8   :  { %8180 = vtanh.f32 %v10035_v23 }
0x29b5   :  { %v8181_v17 = vpop.eup %8180 }
0x29b6   :  { %3084 = vrot.lane.b32.xlu0 %v8181_v17, %s8546_s30  ;;  %v10077_v17 = vld [vmem:[#allocation11 + $0x30] sm:$0xff]  }
0x29ba   :  { %3101 = vrot.lane.b32.xlu0 %v6969_v61, %s8553_s27  ;;  %v10085_v61 = vld [vmem:[#allocation11 + $0x20] sm:$0xff]  }
0x2a28   :  { %v3085_v14 = vpop.permute.xlu0 %3084 }
0x2a29   :  { %v10040_v25 = vmul.f32 %v8179_v45, %v3085_v14  ;;  %v10089_v14 = vld [vmem:[#allocation11 + $0x18] sm:$0xff]  }
0x2a2b   :  { %v6968_v37 = vpack.c.bf16 %v10040_v25, %v10040_v25 }
0x2a2c   :  { %v3102_v11 = vpop.permute.xlu0 %3101 }
0x2a2d   :  { %3092 = vrot.lane.b32.xlu1 %v6968_v37, %s8553_s27  ;;  %v10093_v37 = vld [vmem:[#allocation11 + $0x10] sm:$0xff]  }
0x2a31   :  { %2910 = vrot.lane.b32.xlu1 %v9765_v10, %s8554_s21  ;;  %v11837_v10 = vld [vmem:[#allocation61_spill] sm:$0xff] }
0x2a9f   :  { %v3093_v50 = vpop.permute.xlu1 %3092 }
0x2aa0   :  { %3095 = vst.msk [vmem:[#allocation9] sm:$0xf] %vm395_vm3, %v3093_v50  ;;  %v10097_v50 = vld [vmem:[#allocation11 + $0x8] sm:$0xff]  }
0x2aa1   :  { %3104 = vst.msk [vmem:[#allocation9] sm:$0xf] %vm645_vm4, %v3102_v11  ;;  %v10101_v11 = vld [vmem:[#allocation11] sm:$0xff]  }
0x2aa3   :  { %v2911_v18 = vpop.permute.xlu1 %2910 }
0x2aa4   :  { %2913 = vst.msk [vmem:[#allocation5] sm:$0xff] %vm97_vm2, %v2911_v18 }
0x2aa8   :  { %v3105_v34 = vld [vmem:[#allocation9] sm:$0xf] }
0x2aa9   :  { %7845 = vmatmul.mubr.msk.bf16.vlgmr.msra.gmra.mxu1 %vm672_vm5, %v3105_v34 }
0x2aaa   :  { %7849 = vmatpush3.bf16.msra.mxu1 %v11836_v29  ;;  %7852 = vmatprep.mubr.msk.bf16.mxu1 %vm8551_vm0, %v11756_v26 }
0x2aab   :  { %v3149_v27 = vld [vmem:[#allocation5] sm:$0xff]  ;;  %7850 = vmatprep.subr.bf16.mxu1 %v11756_v26 }
0x2aac   :  { %3158 = vrot.lane.b32.xlu1 %v3149_v27, %s8553_s27 }
0x2aae   :  { %7851 = vmatpush3.bf16.msra.mxu1 %v11837_v10 }
0x2aaf   :  { %7856 = vmatprep.subr.bf16.mxu1 %v11756_v26 }
0x2b1e   :  { %v3159_v32 = vpop.permute.xlu1 %3158 }
0x2b69   :  { %v3143_v19 = vpop.f32.mrf.mxu1 }
0x2b6a   :  { %v3144_v39 = vadd.f32 %v9760_v57, %v3143_v19 }
0x2b6b   :  { %v7846_v33 = vpop.f32.mrf.mxu1 }
0x2b6c   :  { %8182 = vtanh.f32 %v3144_v39  ;;  %v6895_v16 = vmul.f32 -1.442695, %v3144_v39  ;;  %v11838_v33 = vld [vmem:[#allocation22_spill] sm:$0xff] }
0x2b6d   :  { %v3146_v22 = vpop.f32.mrf.mxu1 }
0x2b6e   :  { %8184 = vpow2.f32 %v6895_v16 }
0x2b6f   :  { %v7847_v6 = vpop.f32.mrf.mxu1 }
0x2b70   :  { %v11839_v6 = vld [vmem:[#allocation23_spill] sm:$0xff] }
0x2b79   :  { %v8183_v62 = vpop.eup %8182 }
0x2b7a   :  { %3163 = vrot.lane.b32.xlu0 %v8183_v62, %s8546_s30 }
0x2b7b   :  { %v8185_v60 = vpop.eup %8184 }
0x2b7c   :  { %v3153_v51 = vadd.f32 1.0, %v8185_v60  ;;  %v11841_v60 = vld [vmem:[#allocation25_spill] sm:$0xff] }
0x2b7e   :  { %8186 = vrcp.f32 %v3153_v51 }
0x2b8b   :  { %v8187_v12 = vpop.eup %8186 }
0x2b8c   :  { %v3161_v49 = vmul.f32 %v8187_v12, %v3159_v32 }
0x2bec   :  { %v3164_v15 = vpop.permute.xlu0 %3163 }
0x2bed   :  { %v3166_v28 = vmul.f32 %v8187_v12, %v3164_v15 }
0x2bef   :  { %3168 = vrot.lane.b32.xlu0 %v3166_v28, %s8553_s27  ;;  %v11843_v28 = vld [vmem:[#allocation27_spill] sm:$0xff] }
0x2c61   :  { %v3169_v57 = vpop.permute.xlu0 %3168 }
0x2c62   :  { %v10061_v45 = vadd.f32 %v3169_v57, %v3161_v49  ;;  %v11844_v49 = vld [vmem:[#allocation28_spill] sm:$0xff] }
0x2c64   :  { %8188 = vtanh.f32 %v10061_v45 }
0x2c71   :  { %v8189_v63 = vpop.eup %8188 }
0x2c72   :  { %3174 = vrot.lane.b32.xlu1 %v8189_v63, %s8546_s30  ;;  %v11845_v63 = vld [vmem:[#allocation29_spill] sm:$0xff] }
0x2ce4   :  { %v3175_v54 = vpop.permute.xlu1 %3174 }
0x2ce5   :  { %v10065_v38 = vmul.f32 %v8187_v12, %v3175_v54  ;;  %v11842_v12 = vld [vmem:[#allocation26_spill] sm:$0xff] }
0x2ce7   :  { %v3178_v58 = vpack.c.bf16 %v10065_v38, %v10065_v38 }
0x2ce9   :  { %3180 = vrot.lane.b32.xlu0 %v3178_v58, %s8553_s27  ;;  %v11846_v58 = vld [vmem:[#allocation30_spill] sm:$0xff] }
0x2d5b   :  { %v3181_v13 = vpop.permute.xlu0 %3180 }
0x2d5c   :  { %7853 = vmatmul.mubr.msk.bf16.vlgmr.msra.gmra.mxu1 %vm97_vm2, %v3181_v13 }
0x2d5d   :  { %7857 = vmatpush3.bf16.msra.mxu1 %v10071_v20  ;;  %7872 = vmatprep.mubr.msk.bf16.mxu1 %vm8551_vm0, %v11756_v26 }
0x2d5e   :  { %7858 = vmatprep.subr.bf16.mxu1 %v11756_v26 }
0x2d61   :  { %7859 = vmatpush3.bf16.msra.mxu1 %v10077_v17 }
0x2d62   :  { %7860 = vmatprep.subr.bf16.mxu1 %v11756_v26 }
0x2d65   :  { %7861 = vmatpush3.bf16.msra.mxu1 %v10081_v30 }
0x2d66   :  { %7862 = vmatprep.subr.bf16.mxu1 %v11756_v26 }
0x2d69   :  { %7863 = vmatpush3.bf16.msra.mxu1 %v10085_v61 }
0x2d6a   :  { %7864 = vmatprep.subr.bf16.mxu1 %v11756_v26 }
0x2d6d   :  { %7865 = vmatpush3.bf16.msra.mxu1 %v10089_v14 }
0x2d6e   :  { %7866 = vmatprep.subr.bf16.mxu1 %v11756_v26 }
0x2d71   :  { %7867 = vmatpush3.bf16.msra.mxu1 %v10093_v37 }
0x2d72   :  { %7868 = vmatprep.subr.bf16.mxu1 %v11756_v26 }
0x2d75   :  { %7869 = vmatpush3.bf16.msra.mxu1 %v10097_v50 }
0x2d76   :  { %7870 = vmatprep.subr.bf16.mxu1 %v11756_v26 }
0x2d79   :  { %7871 = vmatpush3.bf16.msra.mxu1 %v10101_v11 }
0x2d7a   :  { %7876 = vmatprep.subr.bf16.mxu1 %v11756_v26 }
0x2e1c   :  { %v3219_v18 = vpop.f32.mrf.mxu1 }
0x2e1d   :  { %v10106_v34 = vadd.f32 %v9796_v59, %v3219_v18  ;;  %v11840_v59 = vld [vmem:[#allocation24_spill] sm:$0xff]  ;;  %v11847_v18 = vld [vmem:[#allocation31_spill] sm:$0xff] }
0x2e1e   :  { %v7854_v29 = vpop.f32.mrf.mxu1 }
0x2e1f   :  { %v3226_v27 = vmul.f32 %v8873_v7, %v10106_v34  ;;  %v3225_v10 = vmul.f32 %v8875_v8, %v10106_v34  ;;  %v3227_v22 = vmul.f32 %v11838_v33, %v10106_v34  ;;  %v3228_v62 = vmul.f32 %v11839_v6, %v10106_v34 }
0x2e20   :  { %v3222_v19 = vpop.f32.mrf.mxu1  ;;  %v3233_v16 = vmul.f32 %v11840_v59, %v10106_v34  ;;  %v3234_v51 = vmul.f32 %v11841_v60, %v10106_v34  ;;  %v3229_v15 = vmul.f32 %v11842_v12, %v10106_v34  ;;  %v3235_v32 = vmul.f32 %v11843_v28, %v10106_v34 }
0x2e21   :  { %3243 = vadd.xlane.f32.xlu0 %v3226_v27  ;;  %3241 = vadd.xlane.f32.xlu1 %v3225_v10  ;;  %v3230_v57 = vmul.f32 %v11844_v49, %v10106_v34  ;;  %v3236_v54 = vmul.f32 %v11845_v63, %v10106_v34  ;;  %v3231_v13 = vmul.f32 %v11846_v58, %v10106_v34  ;;  %v11848_v27 = vld [vmem:[#allocation32_spill] sm:$0xff]  ;;  %v11849_v19 = vld [vmem:[#allocation33_spill] sm:$0xff] }
0x2e22   :  { %v7855_v39 = vpop.f32.mrf.mxu1  ;;  %v3237_v29 = vmul.f32 %v11847_v18, %v10106_v34  ;;  %v3232_v10 = vmul.f32 %v11848_v27, %v10106_v34  ;;  %v11852_v58 = vld [vmem:[#allocation36_spill] sm:$0xff] }
0x2e23   :  { %v3238_v39 = vmul.f32 %v11849_v19, %v10106_v34 }
0x2e25   :  { %3245 = vadd.xlane.f32.xlu0 %v3227_v22  ;;  %3247 = vadd.xlane.f32.xlu1 %v3228_v62  ;;  %v11850_v22 = vld [vmem:[#allocation34_spill] sm:$0xff] }
0x2e26   :  { %v3239_v62 = vmul.f32 %v11850_v22, %v10106_v34 }
0x2e29   :  { %3257 = vadd.xlane.f32.xlu0 %v3233_v16  ;;  %3259 = vadd.xlane.f32.xlu1 %v3234_v51  ;;  %v11851_v16 = vld [vmem:[#allocation35_spill] sm:$0xff] }
0x2e2a   :  { %v3240_v51 = vmul.f32 %v11851_v16, %v10106_v34 }
0x2e2d   :  { %3249 = vadd.xlane.f32.xlu0 %v3229_v15  ;;  %3261 = vadd.xlane.f32.xlu1 %v3235_v32 }
0x2e31   :  { %3251 = vadd.xlane.f32.xlu0 %v3230_v57  ;;  %3263 = vadd.xlane.f32.xlu1 %v3236_v54 }
0x2e35   :  { %3253 = vadd.xlane.f32.xlu0 %v3231_v13  ;;  %3265 = vadd.xlane.f32.xlu1 %v3237_v29 }
0x2e39   :  { %3255 = vadd.xlane.f32.xlu0 %v3232_v10  ;;  %3267 = vadd.xlane.f32.xlu1 %v3238_v39 }
0x2e3d   :  { %3269 = vadd.xlane.f32.xlu0 %v3239_v62  ;;  %3271 = vadd.xlane.f32.xlu1 %v3240_v51 }
0x2eaa   :  { %v3244_v15 = vpop.xlane.xlu0 %3243  ;;  %v3242_v32 = vpop.xlane.xlu1 %3241 }
0x2eab   :  { %v3296_v19 = vrot.slane %v3244_v15, %v11852_v58  ;;  %v3292_v10 = vrot.slane %v3242_v32, %v11852_v58 }
0x2ead   :  { %v3353_v16 = vsel %vm932_vm6, %v3296_v19, %v3292_v10 }
0x2eae   :  { %v3246_v57 = vpop.xlane.xlu0 %3245  ;;  %v3248_v54 = vpop.xlane.xlu1 %3247 }
0x2eaf   :  { %v3300_v39 = vrot.slane %v3246_v57, %v11852_v58  ;;  %v3304_v62 = vrot.slane %v3248_v54, %v11852_v58 }
0x2eb1   :  { %v3354_v51 = vsel %vm934_vm7, %v3300_v39, %v3353_v16 }
0x2eb2   :  { %v3258_v13 = vpop.xlane.xlu0 %3257  ;;  %v3260_v29 = vpop.xlane.xlu1 %3259  ;;  %v3355_v59 = vsel %vm936_vm8, %v3304_v62, %v3354_v51 }
0x2eb3   :  { %v3324_v15 = vrot.slane %v3258_v13, %v11852_v58  ;;  %v3328_v32 = vrot.slane %v3260_v29, %v11852_v58 }
0x2eb5   :  { %v3360_v29 = vsel %vm932_vm6, %v3328_v32, %v3324_v15 }
0x2eb6   :  { %v3250_v27 = vpop.xlane.xlu0 %3249  ;;  %v3262_v18 = vpop.xlane.xlu1 %3261 }
0x2eb7   :  { %v3308_v49 = vrot.slane %v3250_v27, %v11852_v58  ;;  %v3332_v19 = vrot.slane %v3262_v18, %v11852_v58 }
0x2eb9   :  { %v3356_v54 = vsel %vm938_vm9, %v3308_v49, %v3355_v59  ;;  %v3361_v18 = vsel %vm934_vm7, %v3332_v19, %v3360_v29 }
0x2eba   :  { %v3252_v22 = vpop.xlane.xlu0 %3251  ;;  %v3264_v63 = vpop.xlane.xlu1 %3263 }
0x2ebb   :  { %v3312_v60 = vrot.slane %v3252_v22, %v11852_v58  ;;  %v3336_v16 = vrot.slane %v3264_v63, %v11852_v58 }
0x2ebd   :  { %v3357_v39 = vsel %vm940_vm10, %v3312_v60, %v3356_v54  ;;  %v3362_v49 = vsel %vm936_vm8, %v3336_v16, %v3361_v18 }
0x2ebe   :  { %v3254_v28 = vpop.xlane.xlu0 %3253  ;;  %v3266_v12 = vpop.xlane.xlu1 %3265 }
0x2ebf   :  { %v3316_v57 = vrot.slane %v3254_v28, %v11852_v58  ;;  %v3340_v22 = vrot.slane %v3266_v12, %v11852_v58 }
0x2ec1   :  { %v3358_v62 = vsel %vm942_vm11, %v3316_v57, %v3357_v39  ;;  %v3363_v60 = vsel %vm938_vm9, %v3340_v22, %v3362_v49 }
0x2ec2   :  { %v3256_v10 = vpop.xlane.xlu0 %3255  ;;  %v3268_v27 = vpop.xlane.xlu1 %3267 }
0x2ec3   :  { %v3320_v13 = vrot.slane %v3256_v10, %v11852_v58  ;;  %v3344_v28 = vrot.slane %v3268_v27, %v11852_v58  ;;  %v11853_v10 = vld [vmem:[#allocation62_spill] sm:$0xff] }
0x2ec5   :  { %v3359_v59 = vsel %vm944_vm12, %v3320_v13, %v3358_v62  ;;  %v3364_v15 = vsel %vm940_vm10, %v3344_v28, %v3363_v60  ;;  %v11855_v60 = vld [vmem:[#allocation39_spill] sm:$0xff] }
0x2ec6   :  { %v3270_v63 = vpop.xlane.xlu0 %3269  ;;  %3369 = vxpose.xlu0.b32.start [1/2] (short) (narrow) %v3359_v59, 8  ;;  %v3272_v51 = vpop.xlane.xlu1 %3271 }
0x2ec7   :  { %v3348_v12 = vrot.slane %v3270_v63, %v11852_v58  ;;  %v3352_v54 = vrot.slane %v3272_v51, %v11852_v58  ;;  %v11854_v63 = vld [vmem:[#allocation38_spill] sm:$0xff] }
0x2ec9   :  { %v3365_v32 = vsel %vm942_vm11, %v3348_v12, %v3364_v15 }
0x2eca   :  { %v3366_v57 = vsel %vm944_vm12, %v3352_v54, %v3365_v32  ;;  %v11856_v54 = vld [vmem:[#allocation40_spill] sm:$0xff]  ;;  %v11857_v32 = vld [vmem:[#allocation41_spill] sm:$0xff] }
0x2ecb   :  { %3370 = vxpose.xlu0.b32.end [2/2] (short) (narrow) %v3366_v57, 8 }
0x2f43   :  { %v3385_v19 = vpop.trf.xlu0 }
0x2f44   :  { %v3401_v27 = vadd.f32 %v11853_v10, %v3385_v19  ;;  %v11858_v10 = vld [vmem:[#allocation42_spill] sm:$0xff] }
0x2f46   :  { %v3402_v16 = vsel %vm988_vm13, %v3401_v27, -inf }
0x2f47   :  { %3403 = vmax.xlane.f32.xlu1 %v3402_v16  ;;  %v11859_v16 = vld [vmem:[#allocation43_spill] sm:$0xff] }
0x2fd0   :  { %v3404_v39 = vpop.xlane.xlu1 %3403 }
0x2fd1   :  { %v3405_v13 = vsub.f32 %v3401_v27, %v3404_v39 }
0x2fd3   :  { %v3406_v22 = vmul.f32 1.442695, %v3405_v13 }
0x2fd5   :  { %8190 = vpow2.f32 %v3406_v22  ;;  %v11860_v22 = vld [vmem:[#allocation44_spill] sm:$0xff] }
0x2fe2   :  { %v8191_v29 = vpop.eup %8190 }
0x2fe3   :  { %v3408_v62 = vsel %vm988_vm13, %v8191_v29, 0.0 }
0x2fe4   :  { %3409 = vadd.xlane.f32.xlu1 %v3408_v62 }
0x306d   :  { %v3410_v28 = vpop.xlane.xlu1 %3409 }
0x306e   :  { %8192 = vrcp.f32 %v3410_v28  ;;  %v11861_v28 = vld [vmem:[#allocation45_spill] sm:$0xff] }
0x307b   :  { %v8193_v18 = vpop.eup %8192 }
0x307c   :  { %v3412_v59 = vmul.f32 %v8193_v18, %v8191_v29 }
0x307e   :  { %3413 = vxpose.xlu1.b32.start.end [1/1] (short) (narrow) %v3412_v59, 16  ;;  %6900 = vst.msk [vmem:[%s11551_s13 + $0x18] sm:$0xff] %vm988_vm13, %v3412_v59 }
0x30fa   :  { %v3429_v49 = vpop.trf.xlu1 }
0x30fb   :  { %v3455_v51 = vrot.slane %v3429_v49, %v11854_v63  ;;  %v3448_v12 = vrot.slane %v3429_v49, %v11855_v60  ;;  %v3476_v15 = vrot.slane %v3429_v49, %v11856_v54  ;;  %v3462_v57 = vrot.slane %v3429_v49, %v11857_v32 }
0x30fc   :  { %v3490_v27 = vrot.slane %v3429_v49, %v11858_v10  ;;  %v3469_v39 = vrot.slane %v3429_v49, %v11859_v16  ;;  %v3483_v29 = vrot.slane %v3429_v49, %v11860_v22  ;;  %v3497_v18 = vrot.slane %v3429_v49, %v11861_v28 }
0x30fd   :  { %3457 = vbcast.lane.b32.xlu1 %v3455_v51, 256  ;;  %3450 = vbcast.lane.b32.xlu0 %v3448_v12, 256 }
0x30fe   :  { %v3430_v19 = vpop.trf.xlu1 }
0x30ff   :  { %v3504_v13 = vrot.slane %v3430_v19, %v11855_v60  ;;  %v3518_v62 = vrot.slane %v3430_v19, %v11857_v32  ;;  %v3511_v59 = vrot.slane %v3430_v19, %v11854_v63  ;;  %v3532_v51 = vrot.slane %v3430_v19, %v11856_v54 }
0x3100   :  { %v3525_v12 = vrot.slane %v3430_v19, %v11859_v16 }
0x3101   :  { %3478 = vbcast.lane.b32.xlu1 %v3476_v15, 256  ;;  %3464 = vbcast.lane.b32.xlu0 %v3462_v57, 256  ;;  %v3546_v15 = vrot.slane %v3430_v19, %v11858_v10  ;;  %v3539_v57 = vrot.slane %v3430_v19, %v11860_v22 }
0x3105   :  { %3492 = vbcast.lane.b32.xlu1 %v3490_v27, 256  ;;  %3471 = vbcast.lane.b32.xlu0 %v3469_v39, 256  ;;  %v3553_v27 = vrot.slane %v3430_v19, %v11861_v28 }
0x3109   :  { %3485 = vbcast.lane.b32.xlu0 %v3483_v29, 256  ;;  %3506 = vbcast.lane.b32.xlu1 %v3504_v13, 256  ;;  %v11862_v13 = vld [vmem:[#allocation46_spill] sm:$0xff] }
0x310d   :  { %3499 = vbcast.lane.b32.xlu0 %v3497_v18, 256  ;;  %3520 = vbcast.lane.b32.xlu1 %v3518_v62, 256  ;;  %v11863_v62 = vld [vmem:[#allocation47_spill] sm:$0xff] }
0x3111   :  { %3513 = vbcast.lane.b32.xlu0 %v3511_v59, 256  ;;  %3534 = vbcast.lane.b32.xlu1 %v3532_v51, 256 }
0x3115   :  { %3527 = vbcast.lane.b32.xlu0 %v3525_v12, 256  ;;  %3548 = vbcast.lane.b32.xlu1 %v3546_v15, 256 }
0x3119   :  { %3541 = vbcast.lane.b32.xlu0 %v3539_v57, 256  ;;  %v11864_v57 = vld [vmem:[#allocation50_spill] sm:$0xff] }
0x311d   :  { %3555 = vbcast.lane.b32.xlu0 %v3553_v27, 256 }
0x316f   :  { %v3451_v49 = vpop.permute.xlu0 %3450  ;;  %v3458_v39 = vpop.permute.xlu1 %3457 }
0x3170   :  { %v3557_v29 = vmul.f32 %v11862_v13, %v3451_v49  ;;  %v3558_v18 = vmul.f32 %v11863_v62, %v3458_v39 }
0x3172   :  { %v3573_v32 = vadd.f32 %v3558_v18, %v3557_v29 }
0x3173   :  { %v3465_v59 = vpop.permute.xlu0 %3464  ;;  %v3479_v51 = vpop.permute.xlu1 %3478 }
0x3174   :  { %v3559_v16 = vmul.f32 %v11823_v47, %v3465_v59  ;;  %v3561_v54 = vmul.f32 %v11864_v57, %v3479_v51  ;;  %v11865_v59 = vld [vmem:[#allocation53_spill] sm:$0xff] }
0x3176   :  { %v3574_v15 = vadd.f32 %v3573_v32, %v3559_v16 }
0x3177   :  { %v3472_v10 = vpop.permute.xlu0 %3471  ;;  %v3493_v12 = vpop.permute.xlu1 %3492 }
0x3178   :  { %v3560_v22 = vmul.f32 %v11824_v31, %v3472_v10  ;;  %v3563_v39 = vmul.f32 %v11786_v35, %v3493_v12 }
0x317a   :  { %v3575_v19 = vadd.f32 %v3574_v15, %v3560_v22 }
0x317b   :  { %v3486_v27 = vpop.permute.xlu0 %3485  ;;  %v3507_v28 = vpop.permute.xlu1 %3506 }
0x317c   :  { %v3562_v60 = vmul.f32 %v11785_v53, %v3486_v27  ;;  %v3576_v49 = vadd.f32 %v3575_v19, %v3561_v54  ;;  %v3565_v29 = vmul.f32 %v11865_v59, %v3507_v28 }
0x317e   :  { %v3577_v62 = vadd.f32 %v3576_v49, %v3562_v60 }
0x317f   :  { %v3500_v13 = vpop.permute.xlu0 %3499  ;;  %v3521_v63 = vpop.permute.xlu1 %3520 }
0x3180   :  { %v3564_v18 = vmul.f32 %v11788_v42, %v3500_v13  ;;  %v3578_v32 = vadd.f32 %v3577_v62, %v3563_v39  ;;  %v3567_v57 = vmul.f32 %v11790_v48, %v3521_v63 }
0x3182   :  { %v3579_v16 = vadd.f32 %v3578_v32, %v3564_v18 }
0x3183   :  { %v3514_v10 = vpop.permute.xlu0 %3513  ;;  %v3535_v15 = vpop.permute.xlu1 %3534 }
0x3184   :  { %v3566_v51 = vmul.f32 %v11789_v55, %v3514_v10  ;;  %v3580_v22 = vadd.f32 %v3579_v16, %v3565_v29  ;;  %v3569_v19 = vmul.f32 %v9203_v43, %v3535_v15 }
0x3186   :  { %v3581_v27 = vadd.f32 %v3580_v22, %v3566_v51 }
0x3187   :  { %v3528_v54 = vpop.permute.xlu0 %3527  ;;  %v3549_v28 = vpop.permute.xlu1 %3548 }
0x3188   :  { %v3568_v12 = vmul.f32 %v9200_v0, %v3528_v54  ;;  %v3582_v60 = vadd.f32 %v3581_v27, %v3567_v57  ;;  %v3571_v39 = vmul.f32 %v9212_v5, %v3549_v28  ;;  %v7142_v57 = vpack.c.bf16 %v10106_v34, %v10106_v34 }
0x318a   :  { %v3583_v49 = vadd.f32 %v3582_v60, %v3568_v12 }
0x318b   :  { %v3542_v59 = vpop.permute.xlu0 %3541 }
0x318c   :  { %v3570_v13 = vmul.f32 %v9209_v56, %v3542_v59  ;;  %v3584_v62 = vadd.f32 %v3583_v49, %v3569_v19 }
0x318e   :  { %v3585_v18 = vadd.f32 %v3584_v62, %v3570_v13 }
0x318f   :  { %v3556_v29 = vpop.permute.xlu0 %3555 }
0x3190   :  { %v3572_v32 = vmul.f32 %v9215_v9, %v3556_v29  ;;  %v3586_v63 = vadd.f32 %v3585_v18, %v3571_v39 }
0x3192   :  { %v3587_v16 = vadd.f32 %v3586_v63, %v3572_v32 }
0x3194   :  { %v10209_v10 = vpack.c.bf16 %v3587_v16, %v3587_v16 }
0x3196   :  { %3632 = vmatprep.mubr.bf16.mxu0 %v10209_v10 }
0x3197   :  { %3633 = vmatmul.mubr.bf16.vlgmr.msra.gmra.mxu0 %v7142_v57 }
0x3198   :  { %7418 = vmatpush3.bf16.msra.mxu0 %v9915_v4  ;;  %v10226_v4 = vld [vmem:[%s11542_s4 + $0x50] sm:$0xff]   ;;  %3784 = vmatprep.mubr.bf16.mxu0 %v10209_v10 }
0x3199   :  { %7419 = vmatprep.subr.bf16.mxu0 %v9921_v52  ;;  %v10232_v52 = vld [vmem:[%s11542_s4 + $0x10] sm:$0xff]  }
0x319a   :  { %v10330_v10 = vld [vmem:[%s11548_s10 + $0x30] sm:$0xff]  }
0x319c   :  { %7420 = vmatpush3.bf16.msra.mxu0 %v9927_v21  ;;  %v10238_v21 = vld [vmem:[%s11542_s4 + $0x48] sm:$0xff]  }
0x319d   :  { %7421 = vmatprep.subr.bf16.mxu0 %v9933_v41  ;;  %v10244_v41 = vld [vmem:[%s11542_s4 + $0x8] sm:$0xff]  }
0x31a0   :  { %7422 = vmatpush3.bf16.msra.mxu0 %v9939_v24  ;;  %v10250_v24 = vld [vmem:[%s11542_s4 + $0x40] sm:$0xff]  }
0x31a1   :  { %7423 = vmatprep.subr.bf16.mxu0 %v9945_v1  ;;  %v10256_v1 = vld [vmem:[%s11542_s4] sm:$0xff]  }
0x31a4   :  { %7424 = vmatpush3.bf16.msra.mxu0 %v9951_v40  ;;  %v10262_v40 = vld [vmem:[%s11548_s10 + $0x78] sm:$0xff]  }
0x31a5   :  { %7425 = vmatprep.subr.bf16.mxu0 %v9957_v46 }
0x31a8   :  { %7426 = vmatpush3.bf16.msra.mxu0 %v9963_v44 }
0x31a9   :  { %7427 = vmatprep.subr.bf16.mxu0 %v10226_v4 }
0x31ac   :  { %7428 = vmatpush3.bf16.msra.mxu0 %v10232_v52 }
0x31ad   :  { %7429 = vmatprep.subr.bf16.mxu0 %v10238_v21 }
0x31b0   :  { %7430 = vmatpush3.bf16.msra.mxu0 %v10244_v41 }
0x31b1   :  { %7431 = vmatprep.subr.bf16.mxu0 %v10250_v24 }
0x31b4   :  { %7432 = vmatpush3.bf16.msra.mxu0 %v10256_v1 }
0x31b5   :  { %7450 = vmatprep.subr.bf16.mxu0 %v10262_v40 }
0x3257   :  { %v7402_v46 = vpop.f32.mrf.mxu0 }
0x3259   :  { %v7403_v44 = vpop.f32.mrf.mxu0 }
0x325a   :  { %v7404_v34 = vadd.f32 %v7403_v44, %v7402_v46  ;;  %v10291_v44 = vld [vmem:[%s11542_s4 + $0x80] sm:$0xff]  }
0x325b   :  { %v7405_v59 = vpop.f32.mrf.mxu0 }
0x325c   :  { %v3635_v51 = vadd.f32 %v9973_v3, %v7404_v34  ;;  %v10296_v59 = vld [vmem:[#allocation13 + $0x18] sm:$0xff]  }
0x325d   :  { %v7406_v22 = vpop.f32.mrf.mxu0 }
0x325e   :  { %6899 = vst [vmem:[%s11550_s12 + $0x18] sm:$0xff] %v3635_v51  ;;  %3644 = vmax.xlane.f32.xlu1 %v3635_v51  ;;  %v10306_v22 = vld [vmem:[#allocation13 + $0x8] sm:$0xff]  }
0x326f   :  { %3668 = vrot.lane.b32.xlu1 %v10040_v25, %s8553_s27 }
0x32e7   :  { %v3645_v15 = vpop.xlane.xlu1 %3644 }
0x32e8   :  { %vm3646_vm14 = vcmp.ge.f32.partialorder %v3635_v51, %v3645_v15  ;;  %v10302_v51 = vld [vmem:[#allocation13 + $0x10] sm:$0xff]   ;;  %v10310_v15 = vld [vmem:[#allocation13] sm:$0xff]  }
0x32e9   :  { %v3647_v27 = vsel %vm3646_vm14, %v8647_v2, 128 }
0x32ea   :  { %v3649_v54 = vshra.s32 %v3647_v27, 16  ;;  %v3648_v49 = vand.u32 65535, %v3647_v27 }
0x32eb   :  { %v3669_v12 = vpop.permute.xlu1 %3668 }
0x32ec   :  { %3671 = vst.msk [vmem:[#allocation2] sm:$0xff] %vm97_vm2, %v3669_v12  ;;  %v3651_v60 = vcvt.s32.f32 %v3649_v54  ;;  %v3650_v13 = vcvt.s32.f32 %v3648_v49 }
0x32ee   :  { %3652 = vmin.xlane.f32.xlu0 %v3651_v60 }
0x32f3   :  { %v3734_v3 = vld [vmem:[#allocation2] sm:$0xff] }
0x32f4   :  { %v3735_v19 = vpack.c.bf16 %v3734_v3, %v3734_v3 }
0x32f6   :  { %3736 = vst.msk [vmem:[#allocation8 + $0x8] sm:$0xf] %vm395_vm3, %v3735_v19  ;;  %v10318_v19 = vld [vmem:[%s11548_s10 + $0x38] sm:$0xff]  }
0x32fd   :  { %v8110_v34 = vld [vmem:[#allocation8 + $0x8] ss:$0 sps:$4 sm:$0xff]  }
0x3377   :  { %v3653_v28 = vpop.xlane.xlu0 %3652 }
0x3378   :  { %vm3654_vm15 = vcmp.eq.f32.partialorder %v3651_v60, %v3653_v28  ;;  %v3659_v25 = vcvt.f32.s32 %v3653_v28  ;;  %v10324_v28 = vld [vmem:[%s11548_s10 + $0x70] sm:$0xff]  }
0x3379   :  { %v3655_v62 = vsel %vm3654_vm15, %v3650_v13, inf }
0x337a   :  { %3656 = vmin.xlane.f32.xlu0 %v3655_v62  ;;  %v3660_v18 = vshll.u32 %v3659_v25, 16  ;;  %v10336_v25 = vld [vmem:[%s11548_s10 + $0x68] sm:$0xff]  }
0x3390   :  { %3673 = vrot.lane.b32.xlu0 %v10035_v23, %s8554_s21  ;;  %v10282_v23 = vld [vmem:[%s11542_s4 + $0x88] sm:$0xff]  }
0x3403   :  { %v3657_v39 = vpop.xlane.xlu0 %3656 }
0x3404   :  { %v3658_v29 = vcvt.f32.s32 %v3657_v39 }
0x3406   :  { %v3661_v32 = vadd.s32 %v3660_v18, %v3658_v29  ;;  %v10342_v18 = vld [vmem:[%s11548_s10 + $0x28] sm:$0xff]   ;;  %v10348_v29 = vld [vmem:[%s11548_s10 + $0x60] sm:$0xff]  }
0x3407   :  { %v3674_v63 = vpop.permute.xlu0 %3673 }
0x3408   :  { %vm3662_vm1 = vcmp.eq.s32.totalorder %v8647_v2, %v3661_v32  ;;  %3676 = vst.msk [vmem:[#allocation3] sm:$0xff] %vm97_vm2, %v3674_v63  ;;  %v10354_v32 = vld [vmem:[%s11548_s10 + $0x20] sm:$0xff]   ;;  %v10360_v63 = vld [vmem:[%s11548_s10 + $0x58] sm:$0xff]  }
0x3409   :  { %v6901_v16 = vsel %vm3662_vm1, 1.0, %v11756_v26  ;;  %11866 = vst [vmem:[#allocation48_spill] sm:$0xff] %v10360_v63 }
0x340a   :  { %v3665_v57 = vpack.c.bf16 %v6901_v16, %v6901_v16  ;;  %v10366_v16 = vld [vmem:[%s11548_s10 + $0x18] sm:$0xff]  }
0x340b   :  { %11867 = vst [vmem:[#allocation49_spill] sm:$0xff] %v10366_v16 }
0x340c   :  { %3666 = vst [vmem:[#allocation7] sm:$0xf] %v3665_v57  ;;  %v10372_v57 = vld [vmem:[%s11548_s10 + $0x50] sm:$0xff]  }
0x340d   :  { %11868 = vst [vmem:[#allocation37_spill] sm:$0xff] %v10372_v57 }
0x3413   :  { %v3688_v46 = vld [vmem:[#allocation7] sm:$0xf] }
0x3414   :  { %7873 = vmatmul.mubr.bf16.vlgmr.msra.gmra.mxu1 %v3688_v46  ;;  %v10378_v46 = vld [vmem:[%s11548_s10 + $0x10] sm:$0xff]  }
0x3415   :  { %7877 = vmatpush3.bf16.msra.mxu1 %v10282_v23  ;;  %7880 = vmatprep.mubr.msk.bf16.mxu1 %vm8551_vm0, %v11756_v26  ;;  %11869 = vst [vmem:[#allocation51_spill] sm:$0xff] %v10378_v46 }
0x3416   :  { %7878 = vmatprep.subr.bf16.mxu1 %v11756_v26 }
0x3419   :  { %7879 = vmatpush3.bf16.msra.mxu1 %v10291_v44 }
0x341a   :  { %7884 = vmatprep.subr.bf16.mxu1 %v11756_v26 }
0x341c   :  { %7881 = vmatmul.mubr.msk.bf16.vlgmr.msra.gmra.mxu1 %vm97_vm2, %v8110_v34  ;;  %v10384_v34 = vld [vmem:[%s11548_s10 + $0x48] sm:$0xff]  }
0x341d   :  { %7885 = vmatpush3.bf16.msra.mxu1 %v10296_v59  ;;  %7892 = vmatprep.mubr.msk.bf16.mxu1 %vm8551_vm0, %v11756_v26  ;;  %11870 = vst [vmem:[#allocation52_spill] sm:$0xff] %v10384_v34 }
0x341e   :  { %7886 = vmatprep.subr.bf16.mxu1 %v11756_v26 }
0x3421   :  { %7887 = vmatpush3.bf16.msra.mxu1 %v10302_v51 }
0x3422   :  { %7888 = vmatprep.subr.bf16.mxu1 %v11756_v26 }
0x3425   :  { %7889 = vmatpush3.bf16.msra.mxu1 %v10306_v22 }
0x3426   :  { %7890 = vmatprep.subr.bf16.mxu1 %v11756_v26 }
0x3429   :  { %7891 = vmatpush3.bf16.msra.mxu1 %v10310_v15 }
0x342a   :  { %7896 = vmatprep.subr.bf16.mxu1 %v11756_v26 }
0x34d4   :  { %v3723_v27 = vpop.f32.mrf.mxu1 }
0x34d5   :  { %v8451_v12 = vpack.c.bf16 %v3723_v27, %v3723_v27  ;;  %v10390_v27 = vld [vmem:[%s11548_s10 + $0x8] sm:$0xff]  }
0x34d6   :  { %v7874_v54 = vpop.f32.mrf.mxu1  ;;  %11871 = vst [vmem:[#allocation54_spill] sm:$0xff] %v10390_v27 }
0x34d7   :  { %3785 = vmatmul.mubr.bf16.vlgmr.msra.gmra.mxu0 %v8451_v12  ;;  %v10396_v54 = vld [vmem:[%s11548_s10 + $0x40] sm:$0xff]  }
0x34d8   :  { %v3726_v60 = vpop.f32.mrf.mxu1  ;;  %7451 = vmatpush3.bf16.msra.mxu0 %v10318_v19  ;;  %11872 = vst [vmem:[#allocation55_spill] sm:$0xff] %v10396_v54  ;;  %v10402_v12 = vld [vmem:[%s11548_s10] sm:$0xff]  }
0x34d9   :  { %7452 = vmatprep.subr.bf16.mxu0 %v10324_v28  ;;  %11873 = vst [vmem:[#allocation56_spill] sm:$0xff] %v10402_v12 }
0x34da   :  { %v7875_v3 = vpop.f32.mrf.mxu1 }
0x34dc   :  { %v3826_v49 = vpop.f32.mrf.mxu1  ;;  %7453 = vmatpush3.bf16.msra.mxu0 %v10330_v10 }
0x34dd   :  { %7454 = vmatprep.subr.bf16.mxu0 %v10336_v25 }
0x34de   :  { %v7882_v13 = vpop.f32.mrf.mxu1 }
0x34e0   :  { %v3829_v62 = vpop.f32.mrf.mxu1  ;;  %7455 = vmatpush3.bf16.msra.mxu0 %v10342_v18 }
0x34e1   :  { %7456 = vmatprep.subr.bf16.mxu0 %v10348_v29 }
0x34e2   :  { %v7883_v39 = vpop.f32.mrf.mxu1 }
0x34e3   :  { %v10409_v39 = vld [vmem:[%s11543_s5] ss:$0 sm:$0xff] }
0x34e4   :  { %7457 = vmatpush3.bf16.msra.mxu0 %v10354_v32  ;;  %11874 = vst [vmem:[#allocation57_spill] sm:$0xff] %v10409_v39 }
0x34e5   :  { %7458 = vmatprep.subr.bf16.mxu0 %v10360_v63 }
0x34e8   :  { %7459 = vmatpush3.bf16.msra.mxu0 %v10366_v16 }
0x34e9   :  { %7460 = vmatprep.subr.bf16.mxu0 %v10372_v57 }
0x34ec   :  { %7461 = vmatpush3.bf16.msra.mxu0 %v10378_v46 }
0x34ed   :  { %7462 = vmatprep.subr.bf16.mxu0 %v10384_v34 }
0x34f0   :  { %7463 = vmatpush3.bf16.msra.mxu0 %v10390_v27 }
0x34f1   :  { %7464 = vmatprep.subr.bf16.mxu0 %v10396_v54 }
0x34f4   :  { %7465 = vmatpush3.bf16.msra.mxu0 %v10402_v12  ;;  %v3832_v12 = vld [vmem:[#allocation3] sm:$0xff] }
0x34f5   :  { %7481 = vmatprep.subr.bf16.mxu0 %v10025_v36 }
0x3597   :  { %v7433_v60 = vpop.f32.mrf.mxu0 }
0x3599   :  { %v7434_v3 = vpop.f32.mrf.mxu0 }
0x359a   :  { %v7435_v13 = vadd.f32 %v7434_v3, %v7433_v60 }
0x359b   :  { %v7436_v62 = vpop.f32.mrf.mxu0 }
0x359c   :  { %v3787_v54 = vadd.f32 %v10409_v39, %v7435_v13 }
0x359d   :  { %v7437_v27 = vpop.f32.mrf.mxu0 }
0x359e   :  { %v3827_v34 = vadd.f32 %v3826_v49, %v3787_v54 }
0x35a0   :  { %8194 = vtanh.f32 %v3827_v34  ;;  %v6906_v36 = vmul.f32 -1.442695, %v3827_v34 }
0x35a2   :  { %8196 = vpow2.f32 %v6906_v36 }
0x35ad   :  { %v8195_v46 = vpop.eup %8194 }
0x35ae   :  { %3846 = vrot.lane.b32.xlu1 %v8195_v46, %s8546_s30 }
0x35af   :  { %v8197_v60 = vpop.eup %8196 }
0x35b0   :  { %v3836_v3 = vadd.f32 1.0, %v8197_v60 }
0x35b2   :  { %3841 = vrot.lane.b32.xlu1 %v3832_v12, %s8553_s27  ;;  %8198 = vrcp.f32 %v3836_v3 }
0x35b6   :  { %3678 = vrot.lane.b32.xlu1 %v10065_v38, %s8553_s27 }
0x35bf   :  { %v8199_v62 = vpop.eup %8198 }
0x3620   :  { %v3847_v57 = vpop.permute.xlu1 %3846 }
0x3621   :  { %v3849_v13 = vmul.f32 %v8199_v62, %v3847_v57 }
0x3623   :  { %3851 = vrot.lane.b32.xlu0 %v3849_v13, %s8553_s27 }
0x3624   :  { %v3842_v49 = vpop.permute.xlu1 %3841 }
0x3625   :  { %v3844_v46 = vmul.f32 %v8199_v62, %v3842_v49 }
0x3628   :  { %v3679_v27 = vpop.permute.xlu1 %3678 }
0x3629   :  { %3681 = vst.msk [vmem:[#allocation4] sm:$0xff] %vm97_vm2, %v3679_v27 }
0x3630   :  { %v3869_v34 = vld [vmem:[#allocation4] sm:$0xff] }
0x3631   :  { %v6971_v36 = vpack.c.bf16 %v3869_v34, %v3869_v34  ;;  %v10448_v34 = vld [vmem:[%s11545_s7] ss:$0 sm:$0xff] }
0x3695   :  { %v3852_v54 = vpop.permute.xlu0 %3851 }
0x3696   :  { %v10418_v12 = vadd.f32 %v3852_v54, %v3844_v46  ;;  %v10441_v54 = vld [vmem:[#allocation15] sm:$0xff]  }
0x3697   :  { %11876 = vst [vmem:[#allocation59_spill] sm:$0xff] %v10441_v54 }
0x3698   :  { %8200 = vtanh.f32 %v10418_v12 }
0x36a5   :  { %v8201_v38 = vpop.eup %8200 }
0x36a6   :  { %3857 = vrot.lane.b32.xlu0 %v8201_v38, %s8546_s30 }
0x36aa   :  { %3874 = vrot.lane.b32.xlu0 %v6971_v36, %s8553_s27 }
0x3718   :  { %v3858_v57 = vpop.permute.xlu0 %3857 }
0x3719   :  { %v10423_v60 = vmul.f32 %v8199_v62, %v3858_v57  ;;  %v10434_v62 = vld [vmem:[#allocation15 + $0x8] sm:$0xff]  }
0x371a   :  { %11875 = vst [vmem:[#allocation58_spill] sm:$0xff] %v10434_v62 }
0x371b   :  { %v6970_v3 = vpack.c.bf16 %v10423_v60, %v10423_v60 }
0x371c   :  { %v3875_v49 = vpop.permute.xlu0 %3874 }
0x371d   :  { %3865 = vrot.lane.b32.xlu1 %v6970_v3, %s8553_s27 }
0x3721   :  { %3683 = vrot.lane.b32.xlu1 %v10061_v45, %s8554_s21 }
0x378f   :  { %v3866_v13 = vpop.permute.xlu1 %3865 }
0x3790   :  { %3868 = vst.msk [vmem:[#allocation9] sm:$0xf] %vm395_vm3, %v3866_v13 }
0x3791   :  { %3877 = vst.msk [vmem:[#allocation9] sm:$0xf] %vm645_vm4, %v3875_v49 }
0x3793   :  { %v3684_v27 = vpop.permute.xlu1 %3683 }
0x3794   :  { %3686 = vst.msk [vmem:[#allocation5] sm:$0xff] %vm97_vm2, %v3684_v27 }
0x3798   :  { %v3878_v46 = vld [vmem:[#allocation9] sm:$0xf] }
0x3799   :  { %7893 = vmatmul.mubr.msk.bf16.vlgmr.msra.gmra.mxu1 %vm672_vm5, %v3878_v46 }
0x379a   :  { %7897 = vmatpush3.bf16.msra.mxu1 %v10434_v62  ;;  %7900 = vmatprep.mubr.msk.bf16.mxu1 %vm8551_vm0, %v11756_v26 }
0x379b   :  { %v3922_v45 = vld [vmem:[#allocation5] sm:$0xff]  ;;  %7898 = vmatprep.subr.bf16.mxu1 %v11756_v26 }
0x379c   :  { %3931 = vrot.lane.b32.xlu1 %v3922_v45, %s8553_s27 }
0x379e   :  { %7899 = vmatpush3.bf16.msra.mxu1 %v10441_v54 }
0x379f   :  { %7904 = vmatprep.subr.bf16.mxu1 %v11756_v26 }
0x380e   :  { %v3932_v16 = vpop.permute.xlu1 %3931 }
0x3859   :  { %v3916_v38 = vpop.f32.mrf.mxu1 }
0x385a   :  { %v3917_v36 = vadd.f32 %v10448_v34, %v3916_v38 }
0x385b   :  { %v7894_v57 = vpop.f32.mrf.mxu1 }
0x385c   :  { %8202 = vtanh.f32 %v3917_v36  ;;  %v6910_v27 = vmul.f32 -1.442695, %v3917_v36 }
0x385d   :  { %v3919_v3 = vpop.f32.mrf.mxu1 }
0x385e   :  { %8204 = vpow2.f32 %v6910_v27  ;;  %v11878_v27 = vld [vmem:[#allocation25_spill] sm:$0xff] }
0x385f   :  { %v7895_v13 = vpop.f32.mrf.mxu1 }
0x3869   :  { %v8203_v49 = vpop.eup %8202 }
0x386a   :  { %3936 = vrot.lane.b32.xlu0 %v8203_v49, %s8546_s30 }
0x386b   :  { %v8205_v46 = vpop.eup %8204 }
0x386c   :  { %v3926_v45 = vadd.f32 1.0, %v8205_v46 }
0x386e   :  { %8206 = vrcp.f32 %v3926_v45  ;;  %v11879_v45 = vld [vmem:[#allocation26_spill] sm:$0xff] }
0x387b   :  { %v8207_v54 = vpop.eup %8206 }
0x387c   :  { %v3934_v63 = vmul.f32 %v8207_v54, %v3932_v16 }
0x38dc   :  { %v3937_v62 = vpop.permute.xlu0 %3936 }
0x38dd   :  { %v3939_v39 = vmul.f32 %v8207_v54, %v3937_v62 }
0x38df   :  { %3941 = vrot.lane.b32.xlu0 %v3939_v39, %s8553_s27  ;;  %v11877_v39 = vld [vmem:[#allocation24_spill] sm:$0xff] }
0x3951   :  { %v3942_v38 = vpop.permute.xlu0 %3941 }
0x3952   :  { %v10453_v57 = vadd.f32 %v3942_v38, %v3934_v63 }
0x3954   :  { %8208 = vtanh.f32 %v10453_v57 }
0x3961   :  { %v8209_v3 = vpop.eup %8208 }
0x3962   :  { %3947 = vrot.lane.b32.xlu1 %v8209_v3, %s8546_s30  ;;  %v11880_v3 = vld [vmem:[#allocation27_spill] sm:$0xff] }
0x39d4   :  { %v3948_v36 = vpop.permute.xlu1 %3947 }
0x39d5   :  { %v10457_v13 = vmul.f32 %v8207_v54, %v3948_v36 }
0x39d7   :  { %v3951_v49 = vpack.c.bf16 %v10457_v13, %v10457_v13 }
0x39d9   :  { %3953 = vrot.lane.b32.xlu0 %v3951_v49, %s8553_s27  ;;  %v11881_v49 = vld [vmem:[#allocation28_spill] sm:$0xff] }
0x3a4b   :  { %v3954_v62 = vpop.permute.xlu0 %3953 }
0x3a4c   :  { %7901 = vmatmul.mubr.msk.bf16.vlgmr.msra.gmra.mxu1 %vm97_vm2, %v3954_v62 }
0x3a4d   :  { %7905 = vmatpush3.bf16.msra.mxu1 %v10071_v20  ;;  %7920 = vmatprep.mubr.msk.bf16.mxu1 %vm8551_vm0, %v11756_v26 }
0x3a4e   :  { %7906 = vmatprep.subr.bf16.mxu1 %v11756_v26 }
0x3a51   :  { %7907 = vmatpush3.bf16.msra.mxu1 %v10077_v17  ;;  %v10484_v17 = vld [vmem:[%s11547_s9] ss:$0 sm:$0xff] }
0x3a52   :  { %7908 = vmatprep.subr.bf16.mxu1 %v11756_v26 }
0x3a55   :  { %7909 = vmatpush3.bf16.msra.mxu1 %v10081_v30 }
0x3a56   :  { %7910 = vmatprep.subr.bf16.mxu1 %v11756_v26 }
0x3a59   :  { %7911 = vmatpush3.bf16.msra.mxu1 %v10085_v61 }
0x3a5a   :  { %7912 = vmatprep.subr.bf16.mxu1 %v11756_v26 }
0x3a5d   :  { %7913 = vmatpush3.bf16.msra.mxu1 %v10089_v14 }
0x3a5e   :  { %7914 = vmatprep.subr.bf16.mxu1 %v11756_v26 }
0x3a61   :  { %7915 = vmatpush3.bf16.msra.mxu1 %v10093_v37 }
0x3a62   :  { %7916 = vmatprep.subr.bf16.mxu1 %v11756_v26 }
0x3a65   :  { %7917 = vmatpush3.bf16.msra.mxu1 %v10097_v50 }
0x3a66   :  { %7918 = vmatprep.subr.bf16.mxu1 %v11756_v26 }
0x3a69   :  { %7919 = vmatpush3.bf16.msra.mxu1 %v10101_v11 }
0x3a6a   :  { %7924 = vmatprep.subr.bf16.mxu1 %v11756_v26 }
0x3b0c   :  { %v3992_v20 = vpop.f32.mrf.mxu1 }
0x3b0d   :  { %v10487_v30 = vadd.f32 %v10484_v17, %v3992_v20  ;;  %v11882_v20 = vld [vmem:[#allocation29_spill] sm:$0xff] }
0x3b0e   :  { %v7902_v61 = vpop.f32.mrf.mxu1 }
0x3b0f   :  { %v3999_v14 = vmul.f32 %v8873_v7, %v10487_v30  ;;  %v3998_v37 = vmul.f32 %v8875_v8, %v10487_v30  ;;  %v4000_v63 = vmul.f32 %v11838_v33, %v10487_v30  ;;  %v4001_v16 = vmul.f32 %v11839_v6, %v10487_v30 }
0x3b10   :  { %v3995_v50 = vpop.f32.mrf.mxu1  ;;  %v4006_v54 = vmul.f32 %v11877_v39, %v10487_v30  ;;  %v4007_v46 = vmul.f32 %v11878_v27, %v10487_v30  ;;  %v4002_v38 = vmul.f32 %v11879_v45, %v10487_v30  ;;  %v4008_v36 = vmul.f32 %v11880_v3, %v10487_v30 }
0x3b11   :  { %4016 = vadd.xlane.f32.xlu0 %v3999_v14  ;;  %4014 = vadd.xlane.f32.xlu1 %v3998_v37  ;;  %v4003_v62 = vmul.f32 %v11881_v49, %v10487_v30  ;;  %v4009_v61 = vmul.f32 %v11882_v20, %v10487_v30  ;;  %v11883_v14 = vld [vmem:[#allocation30_spill] sm:$0xff]  ;;  %v11884_v50 = vld [vmem:[#allocation31_spill] sm:$0xff] }
0x3b12   :  { %v7903_v11 = vpop.f32.mrf.mxu1  ;;  %v4004_v37 = vmul.f32 %v11883_v14, %v10487_v30 }
0x3b13   :  { %v4010_v11 = vmul.f32 %v11884_v50, %v10487_v30 }
0x3b15   :  { %4018 = vadd.xlane.f32.xlu0 %v4000_v63  ;;  %4020 = vadd.xlane.f32.xlu1 %v4001_v16  ;;  %v11885_v63 = vld [vmem:[#allocation32_spill] sm:$0xff] }
0x3b16   :  { %v4005_v16 = vmul.f32 %v11885_v63, %v10487_v30 }
0x3b19   :  { %4030 = vadd.xlane.f32.xlu0 %v4006_v54  ;;  %4032 = vadd.xlane.f32.xlu1 %v4007_v46  ;;  %v11886_v54 = vld [vmem:[#allocation33_spill] sm:$0xff] }
0x3b1a   :  { %v4011_v46 = vmul.f32 %v11886_v54, %v10487_v30 }
0x3b1d   :  { %4022 = vadd.xlane.f32.xlu0 %v4002_v38  ;;  %4034 = vadd.xlane.f32.xlu1 %v4008_v36  ;;  %v11887_v38 = vld [vmem:[#allocation34_spill] sm:$0xff] }
0x3b1e   :  { %v4012_v36 = vmul.f32 %v11887_v38, %v10487_v30 }
0x3b21   :  { %4024 = vadd.xlane.f32.xlu0 %v4003_v62  ;;  %4036 = vadd.xlane.f32.xlu1 %v4009_v61  ;;  %v11888_v62 = vld [vmem:[#allocation35_spill] sm:$0xff] }
0x3b22   :  { %v4013_v61 = vmul.f32 %v11888_v62, %v10487_v30 }
0x3b25   :  { %4026 = vadd.xlane.f32.xlu0 %v4004_v37  ;;  %4038 = vadd.xlane.f32.xlu1 %v4010_v11 }
0x3b29   :  { %4028 = vadd.xlane.f32.xlu0 %v4005_v16  ;;  %4040 = vadd.xlane.f32.xlu1 %v4011_v46 }
0x3b2d   :  { %4042 = vadd.xlane.f32.xlu0 %v4012_v36  ;;  %4044 = vadd.xlane.f32.xlu1 %v4013_v61 }
0x3b9a   :  { %v4017_v14 = vpop.xlane.xlu0 %4016  ;;  %v4015_v50 = vpop.xlane.xlu1 %4014 }
0x3b9b   :  { %v4069_v54 = vrot.slane %v4017_v14, %v11852_v58  ;;  %v4065_v16 = vrot.slane %v4015_v50, %v11852_v58 }
0x3b9d   :  { %v4126_v62 = vsel %vm932_vm6, %v4069_v54, %v4065_v16 }
0x3b9e   :  { %v4019_v37 = vpop.xlane.xlu0 %4018  ;;  %v4021_v11 = vpop.xlane.xlu1 %4020 }
0x3b9f   :  { %v4073_v46 = vrot.slane %v4019_v37, %v11852_v58  ;;  %v4077_v36 = vrot.slane %v4021_v11, %v11852_v58 }
0x3ba1   :  { %v4127_v61 = vsel %vm934_vm7, %v4073_v46, %v4126_v62 }
0x3ba2   :  { %v4031_v20 = vpop.xlane.xlu0 %4030  ;;  %v4033_v49 = vpop.xlane.xlu1 %4032  ;;  %v4128_v8 = vsel %vm936_vm8, %v4077_v36, %v4127_v61 }
0x3ba3   :  { %v4097_v14 = vrot.slane %v4031_v20, %v11852_v58  ;;  %v4101_v50 = vrot.slane %v4033_v49, %v11852_v58 }
0x3ba5   :  { %v4133_v49 = vsel %vm932_vm6, %v4101_v50, %v4097_v14 }
0x3ba6   :  { %v4023_v63 = vpop.xlane.xlu0 %4022  ;;  %v4035_v3 = vpop.xlane.xlu1 %4034 }
0x3ba7   :  { %v4081_v27 = vrot.slane %v4023_v63, %v11852_v58  ;;  %v4105_v54 = vrot.slane %v4035_v3, %v11852_v58 }
0x3ba9   :  { %v4129_v11 = vsel %vm938_vm9, %v4081_v27, %v4128_v8  ;;  %v4134_v3 = vsel %vm934_vm7, %v4105_v54, %v4133_v49 }
0x3baa   :  { %v4025_v38 = vpop.xlane.xlu0 %4024  ;;  %v4037_v45 = vpop.xlane.xlu1 %4036 }
0x3bab   :  { %v4085_v33 = vrot.slane %v4025_v38, %v11852_v58  ;;  %v4109_v62 = vrot.slane %v4037_v45, %v11852_v58 }
0x3bad   :  { %v4130_v46 = vsel %vm940_vm10, %v4085_v33, %v4129_v11  ;;  %v4135_v27 = vsel %vm936_vm8, %v4109_v62, %v4134_v3  ;;  %v10554_v62 = vld [vmem:[%s11540_s2] sm:$0xff] }
0x3bae   :  { %v4027_v39 = vpop.xlane.xlu0 %4026  ;;  %v4039_v6 = vpop.xlane.xlu1 %4038  ;;  %11889 = vst [vmem:[#allocation60_spill] sm:$0xff] %v10554_v62 }
0x3baf   :  { %v4089_v37 = vrot.slane %v4027_v39, %v11852_v58  ;;  %v4113_v38 = vrot.slane %v4039_v6, %v11852_v58 }
0x3bb1   :  { %v4131_v36 = vsel %vm942_vm11, %v4089_v37, %v4130_v46  ;;  %v4136_v33 = vsel %vm938_vm9, %v4113_v38, %v4135_v27 }
0x3bb2   :  { %v4029_v16 = vpop.xlane.xlu0 %4028  ;;  %v4041_v63 = vpop.xlane.xlu1 %4040 }
0x3bb3   :  { %v4093_v20 = vrot.slane %v4029_v16, %v11852_v58  ;;  %v4117_v39 = vrot.slane %v4041_v63, %v11852_v58 }
0x3bb5   :  { %v4132_v8 = vsel %vm944_vm12, %v4093_v20, %v4131_v36  ;;  %v4137_v14 = vsel %vm940_vm10, %v4117_v39, %v4136_v33  ;;  %v11891_v33 = vld [vmem:[#allocation39_spill] sm:$0xff] }
0x3bb6   :  { %v4043_v45 = vpop.xlane.xlu0 %4042  ;;  %4142 = vxpose.xlu0.b32.start [1/2] (short) (narrow) %v4132_v8, 8  ;;  %v4045_v61 = vpop.xlane.xlu1 %4044 }
0x3bb7   :  { %v4121_v6 = vrot.slane %v4043_v45, %v11852_v58  ;;  %v4125_v11 = vrot.slane %v4045_v61, %v11852_v58  ;;  %v11890_v45 = vld [vmem:[#allocation38_spill] sm:$0xff] }
0x3bb9   :  { %v4138_v50 = vsel %vm942_vm11, %v4121_v6, %v4137_v14 }
0x3bba   :  { %v4139_v37 = vsel %vm944_vm12, %v4125_v11, %v4138_v50  ;;  %v11892_v11 = vld [vmem:[#allocation40_spill] sm:$0xff]  ;;  %v11893_v50 = vld [vmem:[#allocation41_spill] sm:$0xff] }
0x3bbb   :  { %4143 = vxpose.xlu0.b32.end [2/2] (short) (narrow) %v4139_v37, 8 }
0x3c33   :  { %v4158_v54 = vpop.trf.xlu0 }
0x3c34   :  { %v4174_v16 = vadd.f32 %v10554_v62, %v4158_v54 }
0x3c36   :  { %v4175_v63 = vsel %vm988_vm13, %v4174_v16, -inf }
0x3c37   :  { %4176 = vmax.xlane.f32.xlu1 %v4175_v63 }
0x3cc0   :  { %v4177_v46 = vpop.xlane.xlu1 %4176 }
0x3cc1   :  { %v4178_v38 = vsub.f32 %v4174_v16, %v4177_v46  ;;  %v11894_v16 = vld [vmem:[#allocation42_spill] sm:$0xff]  ;;  %v11895_v46 = vld [vmem:[#allocation43_spill] sm:$0xff] }
0x3cc3   :  { %v4179_v20 = vmul.f32 1.442695, %v4178_v38 }
0x3cc5   :  { %8210 = vpow2.f32 %v4179_v20 }
0x3cd2   :  { %v8211_v49 = vpop.eup %8210 }
0x3cd3   :  { %v4181_v39 = vsel %vm988_vm13, %v8211_v49, 0.0 }
0x3cd4   :  { %4182 = vadd.xlane.f32.xlu1 %v4181_v39 }
0x3d5d   :  { %v4183_v36 = vpop.xlane.xlu1 %4182 }
0x3d5e   :  { %8212 = vrcp.f32 %v4183_v36 }
0x3d6b   :  { %v8213_v3 = vpop.eup %8212 }
0x3d6c   :  { %v4185_v8 = vmul.f32 %v8213_v3, %v8211_v49  ;;  %v11896_v49 = vld [vmem:[#allocation44_spill] sm:$0xff]  ;;  %v11897_v3 = vld [vmem:[#allocation45_spill] sm:$0xff] }
0x3d6e   :  { %4186 = vxpose.xlu1.b32.start.end [1/1] (short) (narrow) %v4185_v8, 16  ;;  %6915 = vst.msk [vmem:[%s11551_s13 + $0x20] sm:$0xff] %vm988_vm13, %v4185_v8 }
0x3dea   :  { %v4202_v27 = vpop.trf.xlu1 }
0x3deb   :  { %v4228_v61 = vrot.slane %v4202_v27, %v11890_v45  ;;  %v4221_v6 = vrot.slane %v4202_v27, %v11891_v33  ;;  %v4249_v14 = vrot.slane %v4202_v27, %v11892_v11  ;;  %v4235_v37 = vrot.slane %v4202_v27, %v11893_v50 }
0x3dec   :  { %v4263_v63 = vrot.slane %v4202_v27, %v11894_v16  ;;  %v4242_v38 = vrot.slane %v4202_v27, %v11895_v46  ;;  %v4256_v39 = vrot.slane %v4202_v27, %v11896_v49  ;;  %v4270_v8 = vrot.slane %v4202_v27, %v11897_v3 }
0x3ded   :  { %4230 = vbcast.lane.b32.xlu1 %v4228_v61, 256  ;;  %4223 = vbcast.lane.b32.xlu0 %v4221_v6, 256 }
0x3dee   :  { %v4203_v54 = vpop.trf.xlu1 }
0x3def   :  { %v4277_v20 = vrot.slane %v4203_v54, %v11891_v33  ;;  %v4291_v36 = vrot.slane %v4203_v54, %v11893_v50  ;;  %v4284_v61 = vrot.slane %v4203_v54, %v11890_v45  ;;  %v4305_v6 = vrot.slane %v4203_v54, %v11892_v11 }
0x3df1   :  { %4251 = vbcast.lane.b32.xlu1 %v4249_v14, 256  ;;  %4237 = vbcast.lane.b32.xlu0 %v4235_v37, 256  ;;  %v4298_v14 = vrot.slane %v4203_v54, %v11895_v46  ;;  %v4319_v37 = vrot.slane %v4203_v54, %v11894_v16 }
0x3df5   :  { %4265 = vbcast.lane.b32.xlu1 %v4263_v63, 256  ;;  %4244 = vbcast.lane.b32.xlu0 %v4242_v38, 256  ;;  %v4312_v63 = vrot.slane %v4203_v54, %v11896_v49  ;;  %v4326_v38 = vrot.slane %v4203_v54, %v11897_v3 }
0x3df9   :  { %4258 = vbcast.lane.b32.xlu0 %v4256_v39, 256  ;;  %4279 = vbcast.lane.b32.xlu1 %v4277_v20, 256  ;;  %v11898_v39 = vld [vmem:[#allocation46_spill] sm:$0xff] }
0x3dfd   :  { %4272 = vbcast.lane.b32.xlu0 %v4270_v8, 256  ;;  %4293 = vbcast.lane.b32.xlu1 %v4291_v36, 256  ;;  %v11899_v8 = vld [vmem:[#allocation47_spill] sm:$0xff] }
0x3e01   :  { %4286 = vbcast.lane.b32.xlu0 %v4284_v61, 256  ;;  %4307 = vbcast.lane.b32.xlu1 %v4305_v6, 256 }
0x3e05   :  { %4300 = vbcast.lane.b32.xlu0 %v4298_v14, 256  ;;  %4321 = vbcast.lane.b32.xlu1 %v4319_v37, 256 }
0x3e09   :  { %4314 = vbcast.lane.b32.xlu0 %v4312_v63, 256  ;;  %v11900_v63 = vld [vmem:[#allocation50_spill] sm:$0xff] }
0x3e0d   :  { %4328 = vbcast.lane.b32.xlu0 %v4326_v38, 256 }
0x3e5f   :  { %v4224_v27 = vpop.permute.xlu0 %4223  ;;  %v4231_v20 = vpop.permute.xlu1 %4230 }
0x3e60   :  { %v4330_v36 = vmul.f32 %v11898_v39, %v4224_v27  ;;  %v4331_v50 = vmul.f32 %v11899_v8, %v4231_v20 }
0x3e62   :  { %v4346_v11 = vadd.f32 %v4331_v50, %v4330_v36 }
0x3e63   :  { %v4238_v61 = vpop.permute.xlu0 %4237  ;;  %v4252_v6 = vpop.permute.xlu1 %4251 }
0x3e64   :  { %v4332_v46 = vmul.f32 %v11823_v47, %v4238_v61  ;;  %v4334_v33 = vmul.f32 %v11900_v63, %v4252_v6  ;;  %v11901_v61 = vld [vmem:[#allocation53_spill] sm:$0xff] }
0x3e66   :  { %v4347_v37 = vadd.f32 %v4346_v11, %v4332_v46 }
0x3e67   :  { %v4245_v16 = vpop.permute.xlu0 %4244  ;;  %v4266_v14 = vpop.permute.xlu1 %4265 }
0x3e68   :  { %v4333_v49 = vmul.f32 %v11824_v31, %v4245_v16  ;;  %v4336_v20 = vmul.f32 %v11786_v35, %v4266_v14 }
0x3e6a   :  { %v4348_v54 = vadd.f32 %v4347_v37, %v4333_v49 }
0x3e6b   :  { %v4259_v38 = vpop.permute.xlu0 %4258  ;;  %v4280_v3 = vpop.permute.xlu1 %4279 }
0x3e6c   :  { %v4335_v45 = vmul.f32 %v11785_v53, %v4259_v38  ;;  %v4349_v27 = vadd.f32 %v4348_v54, %v4334_v33  ;;  %v4338_v50 = vmul.f32 %v11901_v61, %v4280_v3 }
0x3e6e   :  { %v4350_v8 = vadd.f32 %v4349_v27, %v4335_v45 }
0x3e6f   :  { %v4273_v39 = vpop.permute.xlu0 %4272  ;;  %v4294_v62 = vpop.permute.xlu1 %4293 }
0x3e70   :  { %v4337_v36 = vmul.f32 %v11788_v42, %v4273_v39  ;;  %v4351_v11 = vadd.f32 %v4350_v8, %v4336_v20  ;;  %v4340_v63 = vmul.f32 %v11790_v48, %v4294_v62 }
0x3e72   :  { %v4352_v46 = vadd.f32 %v4351_v11, %v4337_v36 }
0x3e73   :  { %v4287_v16 = vpop.permute.xlu0 %4286  ;;  %v4308_v37 = vpop.permute.xlu1 %4307 }
0x3e74   :  { %v4339_v6 = vmul.f32 %v11789_v55, %v4287_v16  ;;  %v4353_v49 = vadd.f32 %v4352_v46, %v4338_v50  ;;  %v4342_v54 = vmul.f32 %v9203_v43, %v4308_v37  ;;  %v10627_v37 = vld [vmem:[%s11542_s4 + $0x28] sm:$0xff]  }
0x3e76   :  { %v4354_v38 = vadd.f32 %v4353_v49, %v4339_v6  ;;  %v10609_v6 = vld [vmem:[%s11542_s4 + $0x70] sm:$0xff]   ;;  %v10621_v49 = vld [vmem:[%s11542_s4 + $0x68] sm:$0xff]  }
0x3e77   :  { %v4301_v33 = vpop.permute.xlu0 %4300  ;;  %v4322_v3 = vpop.permute.xlu1 %4321 }
0x3e78   :  { %v4341_v14 = vmul.f32 %v9200_v0, %v4301_v33  ;;  %v4355_v45 = vadd.f32 %v4354_v38, %v4340_v63  ;;  %v4344_v20 = vmul.f32 %v9212_v5, %v4322_v3  ;;  %v7144_v63 = vpack.c.bf16 %v10487_v30, %v10487_v30  ;;  %v10615_v30 = vld [vmem:[%s11542_s4 + $0x30] sm:$0xff]   ;;  %v10633_v38 = vld [vmem:[%s11542_s4 + $0x60] sm:$0xff]  }
0x3e79   :  { %v10639_v33 = vld [vmem:[%s11542_s4 + $0x20] sm:$0xff]  }
0x3e7a   :  { %v4356_v27 = vadd.f32 %v4355_v45, %v4341_v14  ;;  %v10645_v14 = vld [vmem:[%s11542_s4 + $0x58] sm:$0xff]  }
0x3e7b   :  { %v4315_v61 = vpop.permute.xlu0 %4314  ;;  %v10651_v45 = vld [vmem:[%s11542_s4 + $0x18] sm:$0xff]  }
0x3e7c   :  { %v4343_v39 = vmul.f32 %v9209_v56, %v4315_v61  ;;  %v4357_v8 = vadd.f32 %v4356_v27, %v4342_v54  ;;  %v10603_v61 = vld [vmem:[%s11542_s4 + $0x38] sm:$0xff]  }
0x3e7e   :  { %v4358_v36 = vadd.f32 %v4357_v8, %v4343_v39  ;;  %v10661_v8 = vld [vmem:[#allocation16] ss:$0 sm:$0xff] }
0x3e7f   :  { %v4329_v50 = vpop.permute.xlu0 %4328 }
0x3e80   :  { %v4345_v11 = vmul.f32 %v9215_v9, %v4329_v50  ;;  %v4359_v62 = vadd.f32 %v4358_v36, %v4344_v20 }
0x3e82   :  { %v4360_v46 = vadd.f32 %v4359_v62, %v4345_v11 }
0x3e84   :  { %v10595_v16 = vpack.c.bf16 %v4360_v46, %v4360_v46 }
0x3e86   :  { %4405 = vmatprep.mubr.bf16.mxu0 %v10595_v16 }
0x3e87   :  { %4406 = vmatmul.mubr.bf16.vlgmr.msra.gmra.mxu0 %v7144_v63 }
0x3e88   :  { %7482 = vmatpush3.bf16.msra.mxu0 %v10603_v61  ;;  %4557 = vmatprep.mubr.bf16.mxu0 %v10595_v16  ;;  %v11902_v16 = vld [vmem:[#allocation48_spill] sm:$0xff] }
0x3e89   :  { %7483 = vmatprep.subr.bf16.mxu0 %v10609_v6 }
0x3e8c   :  { %7484 = vmatpush3.bf16.msra.mxu0 %v10615_v30 }
0x3e8d   :  { %7485 = vmatprep.subr.bf16.mxu0 %v10621_v49 }
0x3e90   :  { %7486 = vmatpush3.bf16.msra.mxu0 %v10627_v37 }
0x3e91   :  { %7487 = vmatprep.subr.bf16.mxu0 %v10633_v38 }
0x3e94   :  { %7488 = vmatpush3.bf16.msra.mxu0 %v10639_v33 }
0x3e95   :  { %7489 = vmatprep.subr.bf16.mxu0 %v10645_v14 }
0x3e98   :  { %7490 = vmatpush3.bf16.msra.mxu0 %v10651_v45 }
0x3e99   :  { %7491 = vmatprep.subr.bf16.mxu0 %v10226_v4 }
0x3e9c   :  { %7492 = vmatpush3.bf16.msra.mxu0 %v10232_v52 }
0x3e9d   :  { %7493 = vmatprep.subr.bf16.mxu0 %v10238_v21 }
0x3ea0   :  { %7494 = vmatpush3.bf16.msra.mxu0 %v10244_v41 }
0x3ea1   :  { %7495 = vmatprep.subr.bf16.mxu0 %v10250_v24 }
0x3ea4   :  { %7496 = vmatpush3.bf16.msra.mxu0 %v10256_v1 }
0x3ea5   :  { %7514 = vmatprep.subr.bf16.mxu0 %v10262_v40 }
0x3f47   :  { %v7466_v54 = vpop.f32.mrf.mxu0 }
0x3f49   :  { %v7467_v27 = vpop.f32.mrf.mxu0 }
0x3f4a   :  { %v7468_v3 = vadd.f32 %v7467_v27, %v7466_v54 }
0x3f4b   :  { %v7469_v39 = vpop.f32.mrf.mxu0 }
0x3f4c   :  { %v4408_v4 = vadd.f32 %v10661_v8, %v7468_v3 }
0x3f4d   :  { %v7470_v20 = vpop.f32.mrf.mxu0 }
0x3f4e   :  { %6914 = vst [vmem:[%s11550_s12 + $0x20] sm:$0xff] %v4408_v4  ;;  %4417 = vmax.xlane.f32.xlu1 %v4408_v4 }
0x3f5f   :  { %4441 = vrot.lane.b32.xlu1 %v10423_v60, %s8553_s27 }
0x3fd7   :  { %v4418_v52 = vpop.xlane.xlu1 %4417 }
0x3fd8   :  { %vm4419_vm14 = vcmp.ge.f32.partialorder %v4408_v4, %v4418_v52 }
0x3fd9   :  { %v4420_v21 = vsel %vm4419_vm14, %v8647_v2, 128 }
0x3fda   :  { %v4422_v41 = vshra.s32 %v4420_v21, 16  ;;  %v4421_v50 = vand.u32 65535, %v4420_v21 }
0x3fdb   :  { %v4442_v24 = vpop.permute.xlu1 %4441 }
0x3fdc   :  { %4444 = vst.msk [vmem:[#allocation2] sm:$0xff] %vm97_vm2, %v4442_v24  ;;  %v4424_v1 = vcvt.s32.f32 %v4422_v41  ;;  %v4423_v62 = vcvt.s32.f32 %v4421_v50 }
0x3fde   :  { %4425 = vmin.xlane.f32.xlu0 %v4424_v1 }
0x3fe3   :  { %v4507_v40 = vld [vmem:[#allocation2] sm:$0xff] }
0x3fe4   :  { %v4508_v36 = vpack.c.bf16 %v4507_v40, %v4507_v40  ;;  %v11906_v40 = vld [vmem:[#allocation52_spill] sm:$0xff] }
0x3fe6   :  { %4509 = vst.msk [vmem:[#allocation8 + $0x8] sm:$0xf] %vm395_vm3, %v4508_v36  ;;  %v11909_v36 = vld [vmem:[#allocation56_spill] sm:$0xff] }
0x4067   :  { %v4426_v11 = vpop.xlane.xlu0 %4425 }
0x4068   :  { %vm4427_vm15 = vcmp.eq.f32.partialorder %v4424_v1, %v4426_v11  ;;  %v4432_v60 = vcvt.f32.s32 %v4426_v11  ;;  %v11903_v1 = vld [vmem:[#allocation49_spill] sm:$0xff] }
0x4069   :  { %v4428_v46 = vsel %vm4427_vm15, %v4423_v62, inf  ;;  %v11910_v62 = vld [vmem:[#allocation57_spill] sm:$0xff] }
0x406a   :  { %4429 = vmin.xlane.f32.xlu0 %v4428_v46  ;;  %v4433_v54 = vshll.u32 %v4432_v60, 16 }
0x4080   :  { %4446 = vrot.lane.b32.xlu0 %v10418_v12, %s8554_s21  ;;  %v8111_v12 = vld [vmem:[#allocation8 + $0x8] ss:$0 sps:$4 sm:$0xff]  }
0x40f3   :  { %v4430_v63 = vpop.xlane.xlu0 %4429 }
0x40f4   :  { %v4431_v27 = vcvt.f32.s32 %v4430_v63 }
0x40f6   :  { %v4434_v3 = vadd.s32 %v4433_v54, %v4431_v27 }
0x40f7   :  { %v4447_v39 = vpop.permute.xlu0 %4446 }
0x40f8   :  { %vm4435_vm1 = vcmp.eq.s32.totalorder %v8647_v2, %v4434_v3  ;;  %4449 = vst.msk [vmem:[#allocation3] sm:$0xff] %vm97_vm2, %v4447_v39 }
0x40f9   :  { %v6916_v4 = vsel %vm4435_vm1, 1.0, %v11756_v26 }
0x40fa   :  { %v4438_v20 = vpack.c.bf16 %v6916_v4, %v6916_v4 }
0x40fc   :  { %4439 = vst [vmem:[#allocation7] sm:$0xf] %v4438_v20 }
0x40ff   :  { %v4605_v27 = vld [vmem:[#allocation3] sm:$0xff] }
0x4103   :  { %v4461_v52 = vld [vmem:[#allocation7] sm:$0xf] }
0x4104   :  { %7921 = vmatmul.mubr.bf16.vlgmr.msra.gmra.mxu1 %v4461_v52 }
0x4105   :  { %7925 = vmatpush3.bf16.msra.mxu1 %v10282_v23  ;;  %7928 = vmatprep.mubr.msk.bf16.mxu1 %vm8551_vm0, %v11756_v26 }
0x4106   :  { %7926 = vmatprep.subr.bf16.mxu1 %v11756_v26 }
0x4109   :  { %7927 = vmatpush3.bf16.msra.mxu1 %v10291_v44 }
0x410a   :  { %7932 = vmatprep.subr.bf16.mxu1 %v11756_v26 }
0x410c   :  { %7929 = vmatmul.mubr.msk.bf16.vlgmr.msra.gmra.mxu1 %vm97_vm2, %v8111_v12 }
0x410d   :  { %7933 = vmatpush3.bf16.msra.mxu1 %v10296_v59  ;;  %7940 = vmatprep.mubr.msk.bf16.mxu1 %vm8551_vm0, %v11756_v26 }
0x410e   :  { %7934 = vmatprep.subr.bf16.mxu1 %v11756_v26 }
0x4111   :  { %7935 = vmatpush3.bf16.msra.mxu1 %v10302_v51 }
0x4112   :  { %7936 = vmatprep.subr.bf16.mxu1 %v11756_v26 }
0x4115   :  { %7937 = vmatpush3.bf16.msra.mxu1 %v10306_v22 }
0x4116   :  { %7938 = vmatprep.subr.bf16.mxu1 %v11756_v26 }
0x4119   :  { %7939 = vmatpush3.bf16.msra.mxu1 %v10310_v15 }
0x411a   :  { %7944 = vmatprep.subr.bf16.mxu1 %v11756_v26 }
0x41c4   :  { %v4496_v23 = vpop.f32.mrf.mxu1 }
0x41c5   :  { %v8453_v59 = vpack.c.bf16 %v4496_v23, %v4496_v23 }
0x41c6   :  { %v7922_v44 = vpop.f32.mrf.mxu1 }
0x41c7   :  { %4558 = vmatmul.mubr.bf16.vlgmr.msra.gmra.mxu0 %v8453_v59 }
0x41c8   :  { %v4499_v21 = vpop.f32.mrf.mxu1  ;;  %7515 = vmatpush3.bf16.msra.mxu0 %v10318_v19  ;;  %v11904_v19 = vld [vmem:[#allocation37_spill] sm:$0xff] }
0x41c9   :  { %7516 = vmatprep.subr.bf16.mxu0 %v10324_v28  ;;  %v11905_v28 = vld [vmem:[#allocation51_spill] sm:$0xff] }
0x41ca   :  { %v7923_v41 = vpop.f32.mrf.mxu1 }
0x41cc   :  { %v4599_v51 = vpop.f32.mrf.mxu1  ;;  %7517 = vmatpush3.bf16.msra.mxu0 %v10330_v10  ;;  %v11907_v10 = vld [vmem:[#allocation54_spill] sm:$0xff] }
0x41cd   :  { %7518 = vmatprep.subr.bf16.mxu0 %v10336_v25  ;;  %v11908_v25 = vld [vmem:[#allocation55_spill] sm:$0xff] }
0x41ce   :  { %v7930_v22 = vpop.f32.mrf.mxu1 }
0x41d0   :  { %v4602_v24 = vpop.f32.mrf.mxu1  ;;  %7519 = vmatpush3.bf16.msra.mxu0 %v10342_v18  ;;  %v10713_v18 = vld [vmem:[%s11542_s4 + $0x78] sm:$0xff]  }
0x41d1   :  { %7520 = vmatprep.subr.bf16.mxu0 %v10348_v29 }
0x41d2   :  { %v7931_v15 = vpop.f32.mrf.mxu1 }
0x41d4   :  { %7521 = vmatpush3.bf16.msra.mxu0 %v10354_v32 }
0x41d5   :  { %7522 = vmatprep.subr.bf16.mxu0 %v11902_v16 }
0x41d8   :  { %7523 = vmatpush3.bf16.msra.mxu0 %v11903_v1 }
0x41d9   :  { %7524 = vmatprep.subr.bf16.mxu0 %v11904_v19 }
0x41dc   :  { %7525 = vmatpush3.bf16.msra.mxu0 %v11905_v28 }
0x41dd   :  { %7526 = vmatprep.subr.bf16.mxu0 %v11906_v40 }
0x41e0   :  { %7527 = vmatpush3.bf16.msra.mxu0 %v11907_v10  ;;  %v11911_v10 = vld [vmem:[#allocation58_spill] sm:$0xff] }
0x41e1   :  { %7528 = vmatprep.subr.bf16.mxu0 %v11908_v25 }
0x41e4   :  { %7529 = vmatpush3.bf16.msra.mxu0 %v11909_v36 }
0x41e5   :  { %7545 = vmatprep.subr.bf16.mxu0 %v10713_v18 }
0x4287   :  { %v7497_v29 = vpop.f32.mrf.mxu0 }
0x4289   :  { %v7498_v32 = vpop.f32.mrf.mxu0 }
0x428a   :  { %v7499_v50 = vadd.f32 %v7498_v32, %v7497_v29 }
0x428b   :  { %v7500_v11 = vpop.f32.mrf.mxu0 }
0x428c   :  { %v4560_v46 = vadd.f32 %v11910_v62, %v7499_v50 }
0x428d   :  { %v7501_v60 = vpop.f32.mrf.mxu0 }
0x428e   :  { %v4600_v63 = vadd.f32 %v4599_v51, %v4560_v46 }
0x4290   :  { %8214 = vtanh.f32 %v4600_v63  ;;  %v6921_v3 = vmul.f32 -1.442695, %v4600_v63 }
0x4292   :  { %8216 = vpow2.f32 %v6921_v3 }
0x429d   :  { %v8215_v54 = vpop.eup %8214 }
0x429e   :  { %4619 = vrot.lane.b32.xlu1 %v8215_v54, %s8546_s30 }
0x429f   :  { %v8217_v39 = vpop.eup %8216 }
0x42a0   :  { %v4609_v4 = vadd.f32 1.0, %v8217_v39 }
0x42a2   :  { %4614 = vrot.lane.b32.xlu1 %v4605_v27, %s8553_s27  ;;  %8218 = vrcp.f32 %v4609_v4 }
0x42a6   :  { %4451 = vrot.lane.b32.xlu1 %v10457_v13, %s8553_s27 }
0x42af   :  { %v8219_v20 = vpop.eup %8218 }
0x4310   :  { %v4620_v52 = vpop.permute.xlu1 %4619 }
0x4311   :  { %v4622_v12 = vmul.f32 %v8219_v20, %v4620_v52 }
0x4313   :  { %4624 = vrot.lane.b32.xlu0 %v4622_v12, %s8553_s27 }
0x4314   :  { %v4615_v23 = vpop.permute.xlu1 %4614 }
0x4315   :  { %v4617_v59 = vmul.f32 %v8219_v20, %v4615_v23 }
0x4318   :  { %v4452_v44 = vpop.permute.xlu1 %4451 }
0x4319   :  { %4454 = vst.msk [vmem:[#allocation4] sm:$0xff] %vm97_vm2, %v4452_v44 }
0x4320   :  { %v4642_v51 = vld [vmem:[#allocation4] sm:$0xff] }
0x4321   :  { %v6973_v22 = vpack.c.bf16 %v4642_v51, %v4642_v51  ;;  %v10769_v51 = vld [vmem:[#allocation11 + $0x28] sm:$0xff]  }
0x4385   :  { %v4625_v21 = vpop.permute.xlu0 %4624 }
0x4386   :  { %v10723_v41 = vadd.f32 %v4625_v21, %v4617_v59  ;;  %v10759_v21 = vld [vmem:[#allocation11 + $0x38] sm:$0xff]  }
0x4388   :  { %8220 = vtanh.f32 %v10723_v41 }
0x4395   :  { %v8221_v13 = vpop.eup %8220 }
0x4396   :  { %4630 = vrot.lane.b32.xlu0 %v8221_v13, %s8546_s30  ;;  %v10765_v13 = vld [vmem:[#allocation11 + $0x30] sm:$0xff]  }
0x439a   :  { %4647 = vrot.lane.b32.xlu0 %v6973_v22, %s8553_s27  ;;  %v10773_v22 = vld [vmem:[#allocation11 + $0x20] sm:$0xff]  }
0x4408   :  { %v4631_v24 = vpop.permute.xlu0 %4630 }
0x4409   :  { %v10728_v15 = vmul.f32 %v8219_v20, %v4631_v24  ;;  %v10777_v24 = vld [vmem:[#allocation11 + $0x18] sm:$0xff]  }
0x440b   :  { %v6972_v16 = vpack.c.bf16 %v10728_v15, %v10728_v15 }
0x440c   :  { %v4648_v19 = vpop.permute.xlu0 %4647 }
0x440d   :  { %4638 = vrot.lane.b32.xlu1 %v6972_v16, %s8553_s27  ;;  %v10781_v16 = vld [vmem:[#allocation11 + $0x10] sm:$0xff]  }
0x4411   :  { %4456 = vrot.lane.b32.xlu1 %v10453_v57, %s8554_s21  ;;  %v11912_v57 = vld [vmem:[#allocation59_spill] sm:$0xff] }
0x447f   :  { %v4639_v1 = vpop.permute.xlu1 %4638 }
0x4480   :  { %4641 = vst.msk [vmem:[#allocation9] sm:$0xf] %vm395_vm3, %v4639_v1  ;;  %v10785_v1 = vld [vmem:[#allocation11 + $0x8] sm:$0xff]  }
0x4481   :  { %4650 = vst.msk [vmem:[#allocation9] sm:$0xf] %vm645_vm4, %v4648_v19  ;;  %v10789_v19 = vld [vmem:[#allocation11] sm:$0xff]  }
0x4483   :  { %v4457_v28 = vpop.permute.xlu1 %4456 }
0x4484   :  { %4459 = vst.msk [vmem:[#allocation5] sm:$0xff] %vm97_vm2, %v4457_v28 }
0x4488   :  { %v4651_v40 = vld [vmem:[#allocation9] sm:$0xf] }
0x4489   :  { %7941 = vmatmul.mubr.msk.bf16.vlgmr.msra.gmra.mxu1 %vm672_vm5, %v4651_v40 }
0x448a   :  { %7945 = vmatpush3.bf16.msra.mxu1 %v11911_v10  ;;  %7948 = vmatprep.mubr.msk.bf16.mxu1 %vm8551_vm0, %v11756_v26 }
0x448b   :  { %v4695_v25 = vld [vmem:[#allocation5] sm:$0xff]  ;;  %7946 = vmatprep.subr.bf16.mxu1 %v11756_v26 }
0x448c   :  { %4704 = vrot.lane.b32.xlu1 %v4695_v25, %s8553_s27 }
0x448e   :  { %7947 = vmatpush3.bf16.msra.mxu1 %v11912_v57  ;;  %v11913_v57 = vld [vmem:[#allocation21_spill] sm:$0xff] }
0x448f   :  { %7952 = vmatprep.subr.bf16.mxu1 %v11756_v26 }
0x44fe   :  { %v4705_v39 = vpop.permute.xlu1 %4704 }
0x4549   :  { %v4689_v36 = vpop.f32.mrf.mxu1 }
0x454a   :  { %v4690_v29 = vadd.f32 %v10448_v34, %v4689_v36 }
0x454b   :  { %v7942_v32 = vpop.f32.mrf.mxu1 }
0x454c   :  { %8222 = vtanh.f32 %v4690_v29  ;;  %v6925_v46 = vmul.f32 -1.442695, %v4690_v29 }
0x454d   :  { %v4692_v50 = vpop.f32.mrf.mxu1 }
0x454e   :  { %8224 = vpow2.f32 %v6925_v46  ;;  %v11914_v50 = vld [vmem:[#allocation22_spill] sm:$0xff] }
0x454f   :  { %v7943_v11 = vpop.f32.mrf.mxu1 }
0x4559   :  { %v8223_v62 = vpop.eup %8222 }
0x455a   :  { %4709 = vrot.lane.b32.xlu0 %v8223_v62, %s8546_s30  ;;  %v11915_v62 = vld [vmem:[#allocation23_spill] sm:$0xff] }
0x455b   :  { %v8225_v60 = vpop.eup %8224 }
0x455c   :  { %v4699_v63 = vadd.f32 1.0, %v8225_v60 }
0x455e   :  { %8226 = vrcp.f32 %v4699_v63  ;;  %v11917_v63 = vld [vmem:[#allocation25_spill] sm:$0xff] }
0x456b   :  { %v8227_v54 = vpop.eup %8226 }
0x456c   :  { %v4707_v4 = vmul.f32 %v8227_v54, %v4705_v39  ;;  %v11919_v39 = vld [vmem:[#allocation27_spill] sm:$0xff] }
0x45cc   :  { %v4710_v27 = vpop.permute.xlu0 %4709 }
0x45cd   :  { %v4712_v3 = vmul.f32 %v8227_v54, %v4710_v27  ;;  %v11918_v27 = vld [vmem:[#allocation26_spill] sm:$0xff] }
0x45cf   :  { %4714 = vrot.lane.b32.xlu0 %v4712_v3, %s8553_s27 }
0x4641   :  { %v4715_v34 = vpop.permute.xlu0 %4714 }
0x4642   :  { %v10749_v20 = vadd.f32 %v4715_v34, %v4707_v4  ;;  %v11920_v34 = vld [vmem:[#allocation28_spill] sm:$0xff] }
0x4644   :  { %8228 = vtanh.f32 %v10749_v20 }
0x4651   :  { %v8229_v52 = vpop.eup %8228 }
0x4652   :  { %4720 = vrot.lane.b32.xlu1 %v8229_v52, %s8546_s30 }
0x46c4   :  { %v4721_v12 = vpop.permute.xlu1 %4720 }
0x46c5   :  { %v10753_v23 = vmul.f32 %v8227_v54, %v4721_v12  ;;  %v11921_v12 = vld [vmem:[#allocation29_spill] sm:$0xff] }
0x46c7   :  { %v4724_v44 = vpack.c.bf16 %v10753_v23, %v10753_v23 }
0x46c9   :  { %4726 = vrot.lane.b32.xlu0 %v4724_v44, %s8553_s27 }
0x473b   :  { %v4727_v59 = vpop.permute.xlu0 %4726 }
0x473c   :  { %7949 = vmatmul.mubr.msk.bf16.vlgmr.msra.gmra.mxu1 %vm97_vm2, %v4727_v59  ;;  %v11922_v59 = vld [vmem:[#allocation30_spill] sm:$0xff] }
0x473d   :  { %7953 = vmatpush3.bf16.msra.mxu1 %v10759_v21  ;;  %7968 = vmatprep.mubr.msk.bf16.mxu1 %vm8551_vm0, %v11756_v26 }
0x473e   :  { %7954 = vmatprep.subr.bf16.mxu1 %v11756_v26 }
0x4741   :  { %7955 = vmatpush3.bf16.msra.mxu1 %v10765_v13 }
0x4742   :  { %7956 = vmatprep.subr.bf16.mxu1 %v11756_v26 }
0x4745   :  { %7957 = vmatpush3.bf16.msra.mxu1 %v10769_v51 }
0x4746   :  { %7958 = vmatprep.subr.bf16.mxu1 %v11756_v26 }
0x4749   :  { %7959 = vmatpush3.bf16.msra.mxu1 %v10773_v22 }
0x474a   :  { %7960 = vmatprep.subr.bf16.mxu1 %v11756_v26 }
0x474d   :  { %7961 = vmatpush3.bf16.msra.mxu1 %v10777_v24 }
0x474e   :  { %7962 = vmatprep.subr.bf16.mxu1 %v11756_v26 }
0x4751   :  { %7963 = vmatpush3.bf16.msra.mxu1 %v10781_v16 }
0x4752   :  { %7964 = vmatprep.subr.bf16.mxu1 %v11756_v26 }
0x4755   :  { %7965 = vmatpush3.bf16.msra.mxu1 %v10785_v1 }
0x4756   :  { %7966 = vmatprep.subr.bf16.mxu1 %v11756_v26 }
0x4759   :  { %7967 = vmatpush3.bf16.msra.mxu1 %v10789_v19 }
0x475a   :  { %7972 = vmatprep.subr.bf16.mxu1 %v11756_v26 }
0x47fc   :  { %v4765_v28 = vpop.f32.mrf.mxu1 }
0x47fd   :  { %v10794_v40 = vadd.f32 %v10484_v17, %v4765_v28  ;;  %v11916_v17 = vld [vmem:[#allocation24_spill] sm:$0xff] }
0x47fe   :  { %v7950_v10 = vpop.f32.mrf.mxu1 }
0x47ff   :  { %v4772_v25 = vmul.f32 %v8873_v7, %v10794_v40  ;;  %v4771_v36 = vmul.f32 %v11913_v57, %v10794_v40  ;;  %v4773_v11 = vmul.f32 %v11914_v50, %v10794_v40  ;;  %v4774_v46 = vmul.f32 %v11915_v62, %v10794_v40  ;;  %v11923_v10 = vld [vmem:[#allocation31_spill] sm:$0xff] }
0x4800   :  { %v4768_v29 = vpop.f32.mrf.mxu1  ;;  %v4779_v60 = vmul.f32 %v11916_v17, %v10794_v40  ;;  %v4780_v54 = vmul.f32 %v11917_v63, %v10794_v40  ;;  %v4775_v3 = vmul.f32 %v11918_v27, %v10794_v40  ;;  %v4781_v4 = vmul.f32 %v11919_v39, %v10794_v40 }
0x4801   :  { %4789 = vadd.xlane.f32.xlu0 %v4772_v25  ;;  %4787 = vadd.xlane.f32.xlu1 %v4771_v36  ;;  %v4776_v52 = vmul.f32 %v11920_v34, %v10794_v40  ;;  %v4782_v44 = vmul.f32 %v11921_v12, %v10794_v40  ;;  %v4777_v28 = vmul.f32 %v11922_v59, %v10794_v40  ;;  %v11924_v36 = vld [vmem:[#allocation32_spill] sm:$0xff] }
0x4802   :  { %v7951_v32 = vpop.f32.mrf.mxu1  ;;  %v4783_v25 = vmul.f32 %v11923_v10, %v10794_v40  ;;  %v4778_v29 = vmul.f32 %v11924_v36, %v10794_v40 }
0x4803   :  { %v11925_v32 = vld [vmem:[#allocation33_spill] sm:$0xff] }
0x4805   :  { %4791 = vadd.xlane.f32.xlu0 %v4773_v11  ;;  %4793 = vadd.xlane.f32.xlu1 %v4774_v46  ;;  %v4784_v11 = vmul.f32 %v11925_v32, %v10794_v40  ;;  %v11926_v46 = vld [vmem:[#allocation34_spill] sm:$0xff] }
0x4809   :  { %4803 = vadd.xlane.f32.xlu0 %v4779_v60  ;;  %4805 = vadd.xlane.f32.xlu1 %v4780_v54  ;;  %v4785_v60 = vmul.f32 %v11926_v46, %v10794_v40  ;;  %v11927_v54 = vld [vmem:[#allocation35_spill] sm:$0xff] }
0x480d   :  { %4795 = vadd.xlane.f32.xlu0 %v4775_v3  ;;  %4807 = vadd.xlane.f32.xlu1 %v4781_v4  ;;  %v4786_v3 = vmul.f32 %v11927_v54, %v10794_v40 }
0x4811   :  { %4797 = vadd.xlane.f32.xlu0 %v4776_v52  ;;  %4809 = vadd.xlane.f32.xlu1 %v4782_v44 }
0x4815   :  { %4799 = vadd.xlane.f32.xlu0 %v4777_v28  ;;  %4811 = vadd.xlane.f32.xlu1 %v4783_v25 }
0x4819   :  { %4801 = vadd.xlane.f32.xlu0 %v4778_v29  ;;  %4813 = vadd.xlane.f32.xlu1 %v4784_v11 }
0x481d   :  { %4815 = vadd.xlane.f32.xlu0 %v4785_v60  ;;  %4817 = vadd.xlane.f32.xlu1 %v4786_v3 }
0x488a   :  { %v4790_v4 = vpop.xlane.xlu0 %4789  ;;  %v4788_v52 = vpop.xlane.xlu1 %4787 }
0x488b   :  { %v4842_v32 = vrot.slane %v4790_v4, %v11852_v58  ;;  %v4838_v29 = vrot.slane %v4788_v52, %v11852_v58 }
0x488d   :  { %v4899_v54 = vsel %vm932_vm6, %v4842_v32, %v4838_v29 }
0x488e   :  { %v4792_v44 = vpop.xlane.xlu0 %4791  ;;  %v4794_v28 = vpop.xlane.xlu1 %4793 }
0x488f   :  { %v4846_v11 = vrot.slane %v4792_v44, %v11852_v58  ;;  %v4850_v60 = vrot.slane %v4794_v28, %v11852_v58 }
0x4891   :  { %v4900_v3 = vsel %vm934_vm7, %v4846_v11, %v4899_v54 }
0x4892   :  { %v4804_v25 = vpop.xlane.xlu0 %4803  ;;  %v4806_v10 = vpop.xlane.xlu1 %4805  ;;  %v4901_v17 = vsel %vm936_vm8, %v4850_v60, %v4900_v3 }
0x4893   :  { %v4870_v4 = vrot.slane %v4804_v25, %v11852_v58  ;;  %v4874_v52 = vrot.slane %v4806_v10, %v11852_v58 }
0x4895   :  { %v4906_v10 = vsel %vm932_vm6, %v4874_v52, %v4870_v4 }
0x4896   :  { %v4796_v36 = vpop.xlane.xlu0 %4795  ;;  %v4808_v59 = vpop.xlane.xlu1 %4807 }
0x4897   :  { %v4854_v34 = vrot.slane %v4796_v36, %v11852_v58  ;;  %v4878_v32 = vrot.slane %v4808_v59, %v11852_v58 }
0x4899   :  { %v4902_v28 = vsel %vm938_vm9, %v4854_v34, %v4901_v17  ;;  %v4907_v59 = vsel %vm934_vm7, %v4878_v32, %v4906_v10 }
0x489a   :  { %v4798_v46 = vpop.xlane.xlu0 %4797  ;;  %v4810_v12 = vpop.xlane.xlu1 %4809 }
0x489b   :  { %v4858_v63 = vrot.slane %v4798_v46, %v11852_v58  ;;  %v4882_v54 = vrot.slane %v4810_v12, %v11852_v58 }
0x489d   :  { %v4903_v11 = vsel %vm940_vm10, %v4858_v63, %v4902_v28  ;;  %v4908_v34 = vsel %vm936_vm8, %v4882_v54, %v4907_v59 }
0x489e   :  { %v4800_v39 = vpop.xlane.xlu0 %4799  ;;  %v4812_v27 = vpop.xlane.xlu1 %4811 }
0x489f   :  { %v4862_v44 = vrot.slane %v4800_v39, %v11852_v58  ;;  %v4886_v46 = vrot.slane %v4812_v27, %v11852_v58 }
0x48a1   :  { %v4904_v60 = vsel %vm942_vm11, %v4862_v44, %v4903_v11  ;;  %v4909_v63 = vsel %vm938_vm9, %v4886_v46, %v4908_v34 }
0x48a2   :  { %v4802_v29 = vpop.xlane.xlu0 %4801  ;;  %v4814_v36 = vpop.xlane.xlu1 %4813 }
0x48a3   :  { %v4866_v25 = vrot.slane %v4802_v29, %v11852_v58  ;;  %v4890_v39 = vrot.slane %v4814_v36, %v11852_v58  ;;  %v11928_v29 = vld [vmem:[#allocation60_spill] sm:$0xff] }
0x48a5   :  { %v4905_v17 = vsel %vm944_vm12, %v4866_v25, %v4904_v60  ;;  %v4910_v4 = vsel %vm940_vm10, %v4890_v39, %v4909_v63  ;;  %v11930_v63 = vld [vmem:[#allocation39_spill] sm:$0xff] }
0x48a6   :  { %v4816_v12 = vpop.xlane.xlu0 %4815  ;;  %4915 = vxpose.xlu0.b32.start [1/2] (short) (narrow) %v4905_v17, 8  ;;  %v4818_v3 = vpop.xlane.xlu1 %4817 }
0x48a7   :  { %v4894_v27 = vrot.slane %v4816_v12, %v11852_v58  ;;  %v4898_v28 = vrot.slane %v4818_v3, %v11852_v58  ;;  %v11929_v12 = vld [vmem:[#allocation38_spill] sm:$0xff] }
0x48a9   :  { %v4911_v52 = vsel %vm942_vm11, %v4894_v27, %v4910_v4 }
0x48aa   :  { %v4912_v44 = vsel %vm944_vm12, %v4898_v28, %v4911_v52  ;;  %v11931_v28 = vld [vmem:[#allocation40_spill] sm:$0xff]  ;;  %v11932_v52 = vld [vmem:[#allocation41_spill] sm:$0xff] }
0x48ab   :  { %4916 = vxpose.xlu0.b32.end [2/2] (short) (narrow) %v4912_v44, 8 }
0x4923   :  { %v4931_v32 = vpop.trf.xlu0 }
0x4924   :  { %v4947_v36 = vadd.f32 %v11928_v29, %v4931_v32  ;;  %v11933_v29 = vld [vmem:[#allocation42_spill] sm:$0xff] }
0x4926   :  { %v4948_v54 = vsel %vm988_vm13, %v4947_v36, -inf }
0x4927   :  { %4949 = vmax.xlane.f32.xlu1 %v4948_v54  ;;  %v11934_v54 = vld [vmem:[#allocation43_spill] sm:$0xff] }
0x49b0   :  { %v4950_v11 = vpop.xlane.xlu1 %4949 }
0x49b1   :  { %v4951_v25 = vsub.f32 %v4947_v36, %v4950_v11 }
0x49b3   :  { %v4952_v46 = vmul.f32 1.442695, %v4951_v25 }
0x49b5   :  { %8230 = vpow2.f32 %v4952_v46  ;;  %v11935_v46 = vld [vmem:[#allocation44_spill] sm:$0xff] }
0x49c2   :  { %v8231_v10 = vpop.eup %8230 }
0x49c3   :  { %v4954_v60 = vsel %vm988_vm13, %v8231_v10, 0.0 }
0x49c4   :  { %4955 = vadd.xlane.f32.xlu1 %v4954_v60 }
0x4a4d   :  { %v4956_v39 = vpop.xlane.xlu1 %4955 }
0x4a4e   :  { %8232 = vrcp.f32 %v4956_v39  ;;  %v11936_v39 = vld [vmem:[#allocation45_spill] sm:$0xff] }
0x4a5b   :  { %v8233_v59 = vpop.eup %8232 }
0x4a5c   :  { %v4958_v17 = vmul.f32 %v8233_v59, %v8231_v10 }
0x4a5e   :  { %4959 = vxpose.xlu1.b32.start.end [1/1] (short) (narrow) %v4958_v17, 16  ;;  %6930 = vst.msk [vmem:[%s11551_s13 + $0x28] sm:$0xff] %vm988_vm13, %v4958_v17 }
0x4ada   :  { %v4975_v34 = vpop.trf.xlu1 }
0x4adb   :  { %v5001_v3 = vrot.slane %v4975_v34, %v11929_v12  ;;  %v4994_v27 = vrot.slane %v4975_v34, %v11930_v63  ;;  %v5022_v4 = vrot.slane %v4975_v34, %v11931_v28  ;;  %v5008_v44 = vrot.slane %v4975_v34, %v11932_v52 }
0x4adc   :  { %v5036_v36 = vrot.slane %v4975_v34, %v11933_v29  ;;  %v5015_v11 = vrot.slane %v4975_v34, %v11934_v54  ;;  %v5029_v10 = vrot.slane %v4975_v34, %v11935_v46  ;;  %v5043_v59 = vrot.slane %v4975_v34, %v11936_v39 }
0x4add   :  { %5003 = vbcast.lane.b32.xlu1 %v5001_v3, 256  ;;  %4996 = vbcast.lane.b32.xlu0 %v4994_v27, 256 }
0x4ade   :  { %v4976_v32 = vpop.trf.xlu1 }
0x4adf   :  { %v5050_v25 = vrot.slane %v4976_v32, %v11930_v63  ;;  %v5064_v60 = vrot.slane %v4976_v32, %v11932_v52  ;;  %v5057_v17 = vrot.slane %v4976_v32, %v11929_v12  ;;  %v5078_v3 = vrot.slane %v4976_v32, %v11931_v28 }
0x4ae0   :  { %v5071_v27 = vrot.slane %v4976_v32, %v11934_v54 }
0x4ae1   :  { %5024 = vbcast.lane.b32.xlu1 %v5022_v4, 256  ;;  %5010 = vbcast.lane.b32.xlu0 %v5008_v44, 256  ;;  %v5092_v4 = vrot.slane %v4976_v32, %v11933_v29  ;;  %v5085_v44 = vrot.slane %v4976_v32, %v11935_v46 }
0x4ae5   :  { %5038 = vbcast.lane.b32.xlu1 %v5036_v36, 256  ;;  %5017 = vbcast.lane.b32.xlu0 %v5015_v11, 256  ;;  %v5099_v36 = vrot.slane %v4976_v32, %v11936_v39 }
0x4ae9   :  { %5031 = vbcast.lane.b32.xlu0 %v5029_v10, 256  ;;  %5052 = vbcast.lane.b32.xlu1 %v5050_v25, 256  ;;  %v11937_v25 = vld [vmem:[#allocation46_spill] sm:$0xff] }
0x4aed   :  { %5045 = vbcast.lane.b32.xlu0 %v5043_v59, 256  ;;  %5066 = vbcast.lane.b32.xlu1 %v5064_v60, 256  ;;  %v11938_v60 = vld [vmem:[#allocation47_spill] sm:$0xff] }
0x4af1   :  { %5059 = vbcast.lane.b32.xlu0 %v5057_v17, 256  ;;  %5080 = vbcast.lane.b32.xlu1 %v5078_v3, 256 }
0x4af5   :  { %5073 = vbcast.lane.b32.xlu0 %v5071_v27, 256  ;;  %5094 = vbcast.lane.b32.xlu1 %v5092_v4, 256 }
0x4af9   :  { %5087 = vbcast.lane.b32.xlu0 %v5085_v44, 256  ;;  %v11939_v44 = vld [vmem:[#allocation50_spill] sm:$0xff] }
0x4afd   :  { %5101 = vbcast.lane.b32.xlu0 %v5099_v36, 256 }
0x4b4f   :  { %v4997_v34 = vpop.permute.xlu0 %4996  ;;  %v5004_v11 = vpop.permute.xlu1 %5003 }
0x4b50   :  { %v5103_v10 = vmul.f32 %v11937_v25, %v4997_v34  ;;  %v5104_v59 = vmul.f32 %v11938_v60, %v5004_v11 }
0x4b52   :  { %v5119_v52 = vadd.f32 %v5104_v59, %v5103_v10 }
0x4b53   :  { %v5011_v17 = vpop.permute.xlu0 %5010  ;;  %v5025_v3 = vpop.permute.xlu1 %5024 }
0x4b54   :  { %v5105_v54 = vmul.f32 %v11823_v47, %v5011_v17  ;;  %v5107_v28 = vmul.f32 %v11939_v44, %v5025_v3  ;;  %v11940_v17 = vld [vmem:[#allocation53_spill] sm:$0xff] }
0x4b56   :  { %v5120_v4 = vadd.f32 %v5119_v52, %v5105_v54 }
0x4b57   :  { %v5018_v29 = vpop.permute.xlu0 %5017  ;;  %v5039_v27 = vpop.permute.xlu1 %5038 }
0x4b58   :  { %v5106_v46 = vmul.f32 %v11824_v31, %v5018_v29  ;;  %v5109_v11 = vmul.f32 %v11786_v35, %v5039_v27 }
0x4b5a   :  { %v5121_v32 = vadd.f32 %v5120_v4, %v5106_v46 }
0x4b5b   :  { %v5032_v36 = vpop.permute.xlu0 %5031  ;;  %v5053_v39 = vpop.permute.xlu1 %5052 }
0x4b5c   :  { %v5108_v63 = vmul.f32 %v11785_v53, %v5032_v36  ;;  %v5122_v34 = vadd.f32 %v5121_v32, %v5107_v28  ;;  %v5111_v10 = vmul.f32 %v11940_v17, %v5053_v39 }
0x4b5e   :  { %v5123_v60 = vadd.f32 %v5122_v34, %v5108_v63 }
0x4b5f   :  { %v5046_v25 = vpop.permute.xlu0 %5045  ;;  %v5067_v12 = vpop.permute.xlu1 %5066 }
0x4b60   :  { %v5110_v59 = vmul.f32 %v11788_v42, %v5046_v25  ;;  %v5124_v52 = vadd.f32 %v5123_v60, %v5109_v11  ;;  %v5113_v44 = vmul.f32 %v11790_v48, %v5067_v12 }
0x4b62   :  { %v5125_v54 = vadd.f32 %v5124_v52, %v5110_v59 }
0x4b63   :  { %v5060_v29 = vpop.permute.xlu0 %5059  ;;  %v5081_v4 = vpop.permute.xlu1 %5080 }
0x4b64   :  { %v5112_v3 = vmul.f32 %v11789_v55, %v5060_v29  ;;  %v5126_v46 = vadd.f32 %v5125_v54, %v5111_v10  ;;  %v5115_v32 = vmul.f32 %v9203_v43, %v5081_v4 }
0x4b66   :  { %v5127_v36 = vadd.f32 %v5126_v46, %v5112_v3 }
0x4b67   :  { %v5074_v28 = vpop.permute.xlu0 %5073  ;;  %v5095_v39 = vpop.permute.xlu1 %5094 }
0x4b68   :  { %v5114_v27 = vmul.f32 %v9200_v0, %v5074_v28  ;;  %v5128_v63 = vadd.f32 %v5127_v36, %v5113_v44  ;;  %v5117_v11 = vmul.f32 %v9212_v5, %v5095_v39  ;;  %v7146_v44 = vpack.c.bf16 %v10794_v40, %v10794_v40 }
0x4b6a   :  { %v5129_v34 = vadd.f32 %v5128_v63, %v5114_v27 }
0x4b6b   :  { %v5088_v17 = vpop.permute.xlu0 %5087 }
0x4b6c   :  { %v5116_v25 = vmul.f32 %v9209_v56, %v5088_v17  ;;  %v5130_v60 = vadd.f32 %v5129_v34, %v5115_v32 }
0x4b6e   :  { %v5131_v59 = vadd.f32 %v5130_v60, %v5116_v25 }
0x4b6f   :  { %v5102_v10 = vpop.permute.xlu0 %5101 }
0x4b70   :  { %v5118_v52 = vmul.f32 %v9215_v9, %v5102_v10  ;;  %v5132_v12 = vadd.f32 %v5131_v59, %v5117_v11 }
0x4b72   :  { %v5133_v54 = vadd.f32 %v5132_v12, %v5118_v52 }
0x4b74   :  { %v10897_v29 = vpack.c.bf16 %v5133_v54, %v5133_v54 }
0x4b76   :  { %5178 = vmatprep.mubr.bf16.mxu0 %v10897_v29 }
0x4b77   :  { %5179 = vmatmul.mubr.bf16.vlgmr.msra.gmra.mxu0 %v7146_v44 }
0x4b78   :  { %7546 = vmatpush3.bf16.msra.mxu0 %v10603_v61  ;;  %v10914_v61 = vld [vmem:[%s11542_s4 + $0x50] sm:$0xff]   ;;  %5330 = vmatprep.mubr.bf16.mxu0 %v10897_v29 }
0x4b79   :  { %7547 = vmatprep.subr.bf16.mxu0 %v10609_v6  ;;  %v10920_v6 = vld [vmem:[%s11542_s4 + $0x10] sm:$0xff]  }
0x4b7a   :  { %v11018_v29 = vld [vmem:[%s11548_s10 + $0x30] sm:$0xff]  }
0x4b7c   :  { %7548 = vmatpush3.bf16.msra.mxu0 %v10615_v30  ;;  %v10926_v30 = vld [vmem:[%s11542_s4 + $0x48] sm:$0xff]  }
0x4b7d   :  { %7549 = vmatprep.subr.bf16.mxu0 %v10621_v49  ;;  %v10932_v49 = vld [vmem:[%s11542_s4 + $0x8] sm:$0xff]  }
0x4b80   :  { %7550 = vmatpush3.bf16.msra.mxu0 %v10627_v37  ;;  %v10938_v37 = vld [vmem:[%s11542_s4 + $0x40] sm:$0xff]  }
0x4b81   :  { %7551 = vmatprep.subr.bf16.mxu0 %v10633_v38  ;;  %v10944_v38 = vld [vmem:[%s11542_s4] sm:$0xff]  }
0x4b84   :  { %7552 = vmatpush3.bf16.msra.mxu0 %v10639_v33  ;;  %v10950_v33 = vld [vmem:[%s11548_s10 + $0x78] sm:$0xff]  }
0x4b85   :  { %7553 = vmatprep.subr.bf16.mxu0 %v10645_v14 }
0x4b88   :  { %7554 = vmatpush3.bf16.msra.mxu0 %v10651_v45 }
0x4b89   :  { %7555 = vmatprep.subr.bf16.mxu0 %v10914_v61 }
0x4b8c   :  { %7556 = vmatpush3.bf16.msra.mxu0 %v10920_v6 }
0x4b8d   :  { %7557 = vmatprep.subr.bf16.mxu0 %v10926_v30 }
0x4b90   :  { %7558 = vmatpush3.bf16.msra.mxu0 %v10932_v49 }
0x4b91   :  { %7559 = vmatprep.subr.bf16.mxu0 %v10938_v37 }
0x4b94   :  { %7560 = vmatpush3.bf16.msra.mxu0 %v10944_v38 }
0x4b95   :  { %7578 = vmatprep.subr.bf16.mxu0 %v10950_v33 }
0x4c37   :  { %v7530_v14 = vpop.f32.mrf.mxu0 }
0x4c39   :  { %v7531_v45 = vpop.f32.mrf.mxu0 }
0x4c3a   :  { %v7532_v40 = vadd.f32 %v7531_v45, %v7530_v14  ;;  %v10979_v45 = vld [vmem:[%s11542_s4 + $0x80] sm:$0xff]  }
0x4c3b   :  { %v7533_v17 = vpop.f32.mrf.mxu0 }
0x4c3c   :  { %v5181_v3 = vadd.f32 %v10661_v8, %v7532_v40  ;;  %v10984_v17 = vld [vmem:[#allocation13 + $0x18] sm:$0xff]  }
0x4c3d   :  { %v7534_v46 = vpop.f32.mrf.mxu0 }
0x4c3e   :  { %6929 = vst [vmem:[%s11550_s12 + $0x28] sm:$0xff] %v5181_v3  ;;  %5190 = vmax.xlane.f32.xlu1 %v5181_v3  ;;  %v10994_v46 = vld [vmem:[#allocation13 + $0x8] sm:$0xff]  }
0x4c4f   :  { %5214 = vrot.lane.b32.xlu1 %v10728_v15, %s8553_s27 }
0x4cc7   :  { %v5191_v4 = vpop.xlane.xlu1 %5190 }
0x4cc8   :  { %vm5192_vm14 = vcmp.ge.f32.partialorder %v5181_v3, %v5191_v4  ;;  %v10990_v3 = vld [vmem:[#allocation13 + $0x10] sm:$0xff]   ;;  %v10998_v4 = vld [vmem:[#allocation13] sm:$0xff]  }
0x4cc9   :  { %v5193_v36 = vsel %vm5192_vm14, %v8647_v2, 128 }
0x4cca   :  { %v5195_v28 = vshra.s32 %v5193_v36, 16  ;;  %v5194_v34 = vand.u32 65535, %v5193_v36 }
0x4ccb   :  { %v5215_v27 = vpop.permute.xlu1 %5214 }
0x4ccc   :  { %5217 = vst.msk [vmem:[#allocation2] sm:$0xff] %vm97_vm2, %v5215_v27  ;;  %v5197_v63 = vcvt.s32.f32 %v5195_v28  ;;  %v5196_v25 = vcvt.s32.f32 %v5194_v34 }
0x4cce   :  { %5198 = vmin.xlane.f32.xlu0 %v5197_v63 }
0x4cd3   :  { %v5280_v8 = vld [vmem:[#allocation2] sm:$0xff] }
0x4cd4   :  { %v5281_v32 = vpack.c.bf16 %v5280_v8, %v5280_v8 }
0x4cd6   :  { %5282 = vst.msk [vmem:[#allocation8 + $0x8] sm:$0xf] %vm395_vm3, %v5281_v32  ;;  %v11006_v32 = vld [vmem:[%s11548_s10 + $0x38] sm:$0xff]  }
0x4cdd   :  { %v8112_v40 = vld [vmem:[#allocation8 + $0x8] ss:$0 sps:$4 sm:$0xff]  }
0x4d57   :  { %v5199_v39 = vpop.xlane.xlu0 %5198 }
0x4d58   :  { %vm5200_vm15 = vcmp.eq.f32.partialorder %v5197_v63, %v5199_v39  ;;  %v5205_v15 = vcvt.f32.s32 %v5199_v39  ;;  %v11012_v39 = vld [vmem:[%s11548_s10 + $0x70] sm:$0xff]  }
0x4d59   :  { %v5201_v60 = vsel %vm5200_vm15, %v5196_v25, inf }
0x4d5a   :  { %5202 = vmin.xlane.f32.xlu0 %v5201_v60  ;;  %v5206_v59 = vshll.u32 %v5205_v15, 16  ;;  %v11024_v15 = vld [vmem:[%s11548_s10 + $0x68] sm:$0xff]  }
0x4d70   :  { %5219 = vrot.lane.b32.xlu0 %v10723_v41, %s8554_s21  ;;  %v10970_v41 = vld [vmem:[%s11542_s4 + $0x88] sm:$0xff]  }
0x4de3   :  { %v5203_v11 = vpop.xlane.xlu0 %5202 }
0x4de4   :  { %v5204_v10 = vcvt.f32.s32 %v5203_v11 }
0x4de6   :  { %v5207_v52 = vadd.s32 %v5206_v59, %v5204_v10  ;;  %v11030_v59 = vld [vmem:[%s11548_s10 + $0x28] sm:$0xff]   ;;  %v11036_v10 = vld [vmem:[%s11548_s10 + $0x60] sm:$0xff]  }
0x4de7   :  { %v5220_v12 = vpop.permute.xlu0 %5219 }
0x4de8   :  { %vm5208_vm1 = vcmp.eq.s32.totalorder %v8647_v2, %v5207_v52  ;;  %5222 = vst.msk [vmem:[#allocation3] sm:$0xff] %vm97_vm2, %v5220_v12  ;;  %v11042_v52 = vld [vmem:[%s11548_s10 + $0x20] sm:$0xff]   ;;  %v11048_v12 = vld [vmem:[%s11548_s10 + $0x58] sm:$0xff]  }
0x4de9   :  { %v6931_v54 = vsel %vm5208_vm1, 1.0, %v11756_v26  ;;  %11941 = vst [vmem:[#allocation61_spill] sm:$0xff] %v11048_v12 }
0x4dea   :  { %v5211_v44 = vpack.c.bf16 %v6931_v54, %v6931_v54  ;;  %v11054_v54 = vld [vmem:[%s11548_s10 + $0x18] sm:$0xff]  }
0x4deb   :  { %11942 = vst [vmem:[#allocation36_spill] sm:$0xff] %v11054_v54 }
0x4dec   :  { %5212 = vst [vmem:[#allocation7] sm:$0xf] %v5211_v44  ;;  %v11060_v44 = vld [vmem:[%s11548_s10 + $0x50] sm:$0xff]  }
0x4ded   :  { %11943 = vst [vmem:[#allocation62_spill] sm:$0xff] %v11060_v44 }
0x4df3   :  { %v5234_v14 = vld [vmem:[#allocation7] sm:$0xf] }
0x4df4   :  { %7969 = vmatmul.mubr.bf16.vlgmr.msra.gmra.mxu1 %v5234_v14  ;;  %v11066_v14 = vld [vmem:[%s11548_s10 + $0x10] sm:$0xff]  }
0x4df5   :  { %7973 = vmatpush3.bf16.msra.mxu1 %v10970_v41  ;;  %7976 = vmatprep.mubr.msk.bf16.mxu1 %vm8551_vm0, %v11756_v26  ;;  %11944 = vst [vmem:[#allocation48_spill] sm:$0xff] %v11066_v14 }
0x4df6   :  { %7974 = vmatprep.subr.bf16.mxu1 %v11756_v26 }
0x4df9   :  { %7975 = vmatpush3.bf16.msra.mxu1 %v10979_v45 }
0x4dfa   :  { %7980 = vmatprep.subr.bf16.mxu1 %v11756_v26 }
0x4dfc   :  { %7977 = vmatmul.mubr.msk.bf16.vlgmr.msra.gmra.mxu1 %vm97_vm2, %v8112_v40  ;;  %v11072_v40 = vld [vmem:[%s11548_s10 + $0x48] sm:$0xff]  }
0x4dfd   :  { %7981 = vmatpush3.bf16.msra.mxu1 %v10984_v17  ;;  %7988 = vmatprep.mubr.msk.bf16.mxu1 %vm8551_vm0, %v11756_v26  ;;  %11945 = vst [vmem:[#allocation49_spill] sm:$0xff] %v11072_v40 }
0x4dfe   :  { %7982 = vmatprep.subr.bf16.mxu1 %v11756_v26 }
0x4e01   :  { %7983 = vmatpush3.bf16.msra.mxu1 %v10990_v3 }
0x4e02   :  { %7984 = vmatprep.subr.bf16.mxu1 %v11756_v26 }
0x4e05   :  { %7985 = vmatpush3.bf16.msra.mxu1 %v10994_v46 }
0x4e06   :  { %7986 = vmatprep.subr.bf16.mxu1 %v11756_v26 }
0x4e09   :  { %7987 = vmatpush3.bf16.msra.mxu1 %v10998_v4 }
0x4e0a   :  { %7992 = vmatprep.subr.bf16.mxu1 %v11756_v26 }
0x4eb4   :  { %v5269_v36 = vpop.f32.mrf.mxu1 }
0x4eb5   :  { %v8455_v27 = vpack.c.bf16 %v5269_v36, %v5269_v36  ;;  %v11078_v36 = vld [vmem:[%s11548_s10 + $0x8] sm:$0xff]  }
0x4eb6   :  { %v7970_v28 = vpop.f32.mrf.mxu1  ;;  %11946 = vst [vmem:[#allocation37_spill] sm:$0xff] %v11078_v36 }
0x4eb7   :  { %5331 = vmatmul.mubr.bf16.vlgmr.msra.gmra.mxu0 %v8455_v27  ;;  %v11084_v28 = vld [vmem:[%s11548_s10 + $0x40] sm:$0xff]  }
0x4eb8   :  { %v5272_v63 = vpop.f32.mrf.mxu1  ;;  %7579 = vmatpush3.bf16.msra.mxu0 %v11006_v32  ;;  %11947 = vst [vmem:[#allocation51_spill] sm:$0xff] %v11084_v28  ;;  %v11090_v27 = vld [vmem:[%s11548_s10] sm:$0xff]  }
0x4eb9   :  { %7580 = vmatprep.subr.bf16.mxu0 %v11012_v39  ;;  %11948 = vst [vmem:[#allocation52_spill] sm:$0xff] %v11090_v27 }
0x4eba   :  { %v7971_v8 = vpop.f32.mrf.mxu1 }
0x4ebc   :  { %v5372_v34 = vpop.f32.mrf.mxu1  ;;  %7581 = vmatpush3.bf16.msra.mxu0 %v11018_v29 }
0x4ebd   :  { %7582 = vmatprep.subr.bf16.mxu0 %v11024_v15 }
0x4ebe   :  { %v7978_v25 = vpop.f32.mrf.mxu1 }
0x4ec0   :  { %v5375_v60 = vpop.f32.mrf.mxu1  ;;  %7583 = vmatpush3.bf16.msra.mxu0 %v11030_v59 }
0x4ec1   :  { %7584 = vmatprep.subr.bf16.mxu0 %v11036_v10 }
0x4ec2   :  { %v7979_v11 = vpop.f32.mrf.mxu1 }
0x4ec3   :  { %v11097_v11 = vld [vmem:[%s11543_s5] ss:$0 sm:$0xff] }
0x4ec4   :  { %7585 = vmatpush3.bf16.msra.mxu0 %v11042_v52  ;;  %11949 = vst [vmem:[#allocation54_spill] sm:$0xff] %v11097_v11 }
0x4ec5   :  { %7586 = vmatprep.subr.bf16.mxu0 %v11048_v12 }
0x4ec8   :  { %7587 = vmatpush3.bf16.msra.mxu0 %v11054_v54 }
0x4ec9   :  { %7588 = vmatprep.subr.bf16.mxu0 %v11060_v44 }
0x4ecc   :  { %7589 = vmatpush3.bf16.msra.mxu0 %v11066_v14 }
0x4ecd   :  { %7590 = vmatprep.subr.bf16.mxu0 %v11072_v40 }
0x4ed0   :  { %7591 = vmatpush3.bf16.msra.mxu0 %v11078_v36 }
0x4ed1   :  { %7592 = vmatprep.subr.bf16.mxu0 %v11084_v28 }
0x4ed4   :  { %7593 = vmatpush3.bf16.msra.mxu0 %v11090_v27  ;;  %v5378_v27 = vld [vmem:[#allocation3] sm:$0xff] }
0x4ed5   :  { %7609 = vmatprep.subr.bf16.mxu0 %v10713_v18 }
0x4f77   :  { %v7561_v63 = vpop.f32.mrf.mxu0 }
0x4f79   :  { %v7562_v8 = vpop.f32.mrf.mxu0 }
0x4f7a   :  { %v7563_v25 = vadd.f32 %v7562_v8, %v7561_v63 }
0x4f7b   :  { %v7564_v60 = vpop.f32.mrf.mxu0 }
0x4f7c   :  { %v5333_v28 = vadd.f32 %v11097_v11, %v7563_v25 }
0x4f7d   :  { %v7565_v36 = vpop.f32.mrf.mxu0 }
0x4f7e   :  { %v5373_v40 = vadd.f32 %v5372_v34, %v5333_v28 }
0x4f80   :  { %8234 = vtanh.f32 %v5373_v40  ;;  %v6936_v18 = vmul.f32 -1.442695, %v5373_v40 }
0x4f82   :  { %8236 = vpow2.f32 %v6936_v18 }
0x4f8d   :  { %v8235_v14 = vpop.eup %8234 }
0x4f8e   :  { %5392 = vrot.lane.b32.xlu1 %v8235_v14, %s8546_s30 }
0x4f8f   :  { %v8237_v63 = vpop.eup %8236 }
0x4f90   :  { %v5382_v8 = vadd.f32 1.0, %v8237_v63 }
0x4f92   :  { %5387 = vrot.lane.b32.xlu1 %v5378_v27, %s8553_s27  ;;  %8238 = vrcp.f32 %v5382_v8 }
0x4f96   :  { %5224 = vrot.lane.b32.xlu1 %v10753_v23, %s8553_s27 }
0x4f9f   :  { %v8239_v60 = vpop.eup %8238 }
0x5000   :  { %v5393_v44 = vpop.permute.xlu1 %5392 }
0x5001   :  { %v5395_v25 = vmul.f32 %v8239_v60, %v5393_v44 }
0x5003   :  { %5397 = vrot.lane.b32.xlu0 %v5395_v25, %s8553_s27 }
0x5004   :  { %v5388_v34 = vpop.permute.xlu1 %5387 }
0x5005   :  { %v5390_v14 = vmul.f32 %v8239_v60, %v5388_v34 }
0x5008   :  { %v5225_v36 = vpop.permute.xlu1 %5224 }
0x5009   :  { %5227 = vst.msk [vmem:[#allocation4] sm:$0xff] %vm97_vm2, %v5225_v36 }
0x5010   :  { %v5415_v40 = vld [vmem:[#allocation4] sm:$0xff] }
0x5011   :  { %v6975_v18 = vpack.c.bf16 %v5415_v40, %v5415_v40  ;;  %v11136_v40 = vld [vmem:[%s11545_s7] ss:$0 sm:$0xff] }
0x5075   :  { %v5398_v28 = vpop.permute.xlu0 %5397 }
0x5076   :  { %v11106_v27 = vadd.f32 %v5398_v28, %v5390_v14  ;;  %v11129_v28 = vld [vmem:[#allocation15] sm:$0xff]  }
0x5077   :  { %11951 = vst [vmem:[#allocation56_spill] sm:$0xff] %v11129_v28 }
0x5078   :  { %8240 = vtanh.f32 %v11106_v27 }
0x5085   :  { %v8241_v23 = vpop.eup %8240 }
0x5086   :  { %5403 = vrot.lane.b32.xlu0 %v8241_v23, %s8546_s30 }
0x508a   :  { %5420 = vrot.lane.b32.xlu0 %v6975_v18, %s8553_s27 }
0x50f8   :  { %v5404_v44 = vpop.permute.xlu0 %5403 }
0x50f9   :  { %v11111_v63 = vmul.f32 %v8239_v60, %v5404_v44  ;;  %v11122_v60 = vld [vmem:[#allocation15 + $0x8] sm:$0xff]  }
0x50fa   :  { %11950 = vst [vmem:[#allocation55_spill] sm:$0xff] %v11122_v60 }
0x50fb   :  { %v6974_v8 = vpack.c.bf16 %v11111_v63, %v11111_v63 }
0x50fc   :  { %v5421_v34 = vpop.permute.xlu0 %5420 }
0x50fd   :  { %5411 = vrot.lane.b32.xlu1 %v6974_v8, %s8553_s27 }
0x5101   :  { %5229 = vrot.lane.b32.xlu1 %v10749_v20, %s8554_s21 }
0x516f   :  { %v5412_v25 = vpop.permute.xlu1 %5411 }
0x5170   :  { %5414 = vst.msk [vmem:[#allocation9] sm:$0xf] %vm395_vm3, %v5412_v25 }
0x5171   :  { %5423 = vst.msk [vmem:[#allocation9] sm:$0xf] %vm645_vm4, %v5421_v34 }
0x5173   :  { %v5230_v36 = vpop.permute.xlu1 %5229 }
0x5174   :  { %5232 = vst.msk [vmem:[#allocation5] sm:$0xff] %vm97_vm2, %v5230_v36 }
0x5178   :  { %v5424_v14 = vld [vmem:[#allocation9] sm:$0xf] }
0x5179   :  { %7989 = vmatmul.mubr.msk.bf16.vlgmr.msra.gmra.mxu1 %vm672_vm5, %v5424_v14 }
0x517a   :  { %7993 = vmatpush3.bf16.msra.mxu1 %v11122_v60  ;;  %7996 = vmatprep.mubr.msk.bf16.mxu1 %vm8551_vm0, %v11756_v26 }
0x517b   :  { %v5468_v20 = vld [vmem:[#allocation5] sm:$0xff]  ;;  %7994 = vmatprep.subr.bf16.mxu1 %v11756_v26 }
0x517c   :  { %5477 = vrot.lane.b32.xlu1 %v5468_v20, %s8553_s27 }
0x517e   :  { %7995 = vmatpush3.bf16.msra.mxu1 %v11129_v28 }
0x517f   :  { %8000 = vmatprep.subr.bf16.mxu1 %v11756_v26 }
0x51ee   :  { %v5478_v54 = vpop.permute.xlu1 %5477 }
0x5239   :  { %v5462_v23 = vpop.f32.mrf.mxu1 }
0x523a   :  { %v5463_v18 = vadd.f32 %v11136_v40, %v5462_v23 }
0x523b   :  { %v7990_v44 = vpop.f32.mrf.mxu1 }
0x523c   :  { %8242 = vtanh.f32 %v5463_v18  ;;  %v6940_v36 = vmul.f32 -1.442695, %v5463_v18 }
0x523d   :  { %v5465_v8 = vpop.f32.mrf.mxu1 }
0x523e   :  { %8244 = vpow2.f32 %v6940_v36  ;;  %v11953_v36 = vld [vmem:[#allocation25_spill] sm:$0xff] }
0x523f   :  { %v7991_v25 = vpop.f32.mrf.mxu1 }
0x5249   :  { %v8243_v34 = vpop.eup %8242 }
0x524a   :  { %5482 = vrot.lane.b32.xlu0 %v8243_v34, %s8546_s30 }
0x524b   :  { %v8245_v14 = vpop.eup %8244 }
0x524c   :  { %v5472_v20 = vadd.f32 1.0, %v8245_v14 }
0x524e   :  { %8246 = vrcp.f32 %v5472_v20  ;;  %v11954_v20 = vld [vmem:[#allocation26_spill] sm:$0xff] }
0x525b   :  { %v8247_v28 = vpop.eup %8246 }
0x525c   :  { %v5480_v12 = vmul.f32 %v8247_v28, %v5478_v54 }
0x52bc   :  { %v5483_v60 = vpop.permute.xlu0 %5482 }
0x52bd   :  { %v5485_v11 = vmul.f32 %v8247_v28, %v5483_v60 }
0x52bf   :  { %5487 = vrot.lane.b32.xlu0 %v5485_v11, %s8553_s27  ;;  %v11952_v11 = vld [vmem:[#allocation24_spill] sm:$0xff] }
0x5331   :  { %v5488_v23 = vpop.permute.xlu0 %5487 }
0x5332   :  { %v11141_v44 = vadd.f32 %v5488_v23, %v5480_v12 }
0x5334   :  { %8248 = vtanh.f32 %v11141_v44 }
0x5341   :  { %v8249_v8 = vpop.eup %8248 }
0x5342   :  { %5493 = vrot.lane.b32.xlu1 %v8249_v8, %s8546_s30  ;;  %v11955_v8 = vld [vmem:[#allocation27_spill] sm:$0xff] }
0x53b4   :  { %v5494_v18 = vpop.permute.xlu1 %5493 }
0x53b5   :  { %v11145_v25 = vmul.f32 %v8247_v28, %v5494_v18 }
0x53b7   :  { %v5497_v34 = vpack.c.bf16 %v11145_v25, %v11145_v25 }
0x53b9   :  { %5499 = vrot.lane.b32.xlu0 %v5497_v34, %s8553_s27  ;;  %v11956_v34 = vld [vmem:[#allocation28_spill] sm:$0xff] }
0x542b   :  { %v5500_v60 = vpop.permute.xlu0 %5499 }
0x542c   :  { %7997 = vmatmul.mubr.msk.bf16.vlgmr.msra.gmra.mxu1 %vm97_vm2, %v5500_v60 }
0x542d   :  { %8001 = vmatpush3.bf16.msra.mxu1 %v10759_v21  ;;  %8016 = vmatprep.mubr.msk.bf16.mxu1 %vm8551_vm0, %v11756_v26 }
0x542e   :  { %8002 = vmatprep.subr.bf16.mxu1 %v11756_v26 }
0x5431   :  { %8003 = vmatpush3.bf16.msra.mxu1 %v10765_v13  ;;  %v11172_v13 = vld [vmem:[%s11547_s9] ss:$0 sm:$0xff] }
0x5432   :  { %8004 = vmatprep.subr.bf16.mxu1 %v11756_v26 }
0x5435   :  { %8005 = vmatpush3.bf16.msra.mxu1 %v10769_v51 }
0x5436   :  { %8006 = vmatprep.subr.bf16.mxu1 %v11756_v26 }
0x5439   :  { %8007 = vmatpush3.bf16.msra.mxu1 %v10773_v22 }
0x543a   :  { %8008 = vmatprep.subr.bf16.mxu1 %v11756_v26 }
0x543d   :  { %8009 = vmatpush3.bf16.msra.mxu1 %v10777_v24 }
0x543e   :  { %8010 = vmatprep.subr.bf16.mxu1 %v11756_v26 }
0x5441   :  { %8011 = vmatpush3.bf16.msra.mxu1 %v10781_v16 }
0x5442   :  { %8012 = vmatprep.subr.bf16.mxu1 %v11756_v26 }
0x5445   :  { %8013 = vmatpush3.bf16.msra.mxu1 %v10785_v1 }
0x5446   :  { %8014 = vmatprep.subr.bf16.mxu1 %v11756_v26 }
0x5449   :  { %8015 = vmatpush3.bf16.msra.mxu1 %v10789_v19 }
0x544a   :  { %8020 = vmatprep.subr.bf16.mxu1 %v11756_v26 }
0x54ec   :  { %v5538_v21 = vpop.f32.mrf.mxu1 }
0x54ed   :  { %v11175_v51 = vadd.f32 %v11172_v13, %v5538_v21  ;;  %v11957_v21 = vld [vmem:[#allocation29_spill] sm:$0xff] }
0x54ee   :  { %v7998_v22 = vpop.f32.mrf.mxu1 }
0x54ef   :  { %v5545_v24 = vmul.f32 %v8873_v7, %v11175_v51  ;;  %v5544_v16 = vmul.f32 %v11913_v57, %v11175_v51  ;;  %v5546_v12 = vmul.f32 %v11914_v50, %v11175_v51  ;;  %v5547_v54 = vmul.f32 %v11915_v62, %v11175_v51 }
0x54f0   :  { %v5541_v1 = vpop.f32.mrf.mxu1  ;;  %v5552_v28 = vmul.f32 %v11952_v11, %v11175_v51  ;;  %v5553_v14 = vmul.f32 %v11953_v36, %v11175_v51  ;;  %v5548_v23 = vmul.f32 %v11954_v20, %v11175_v51  ;;  %v5554_v18 = vmul.f32 %v11955_v8, %v11175_v51 }
0x54f1   :  { %5562 = vadd.xlane.f32.xlu0 %v5545_v24  ;;  %5560 = vadd.xlane.f32.xlu1 %v5544_v16  ;;  %v5549_v60 = vmul.f32 %v11956_v34, %v11175_v51  ;;  %v5555_v22 = vmul.f32 %v11957_v21, %v11175_v51  ;;  %v11958_v24 = vld [vmem:[#allocation30_spill] sm:$0xff]  ;;  %v11959_v1 = vld [vmem:[#allocation31_spill] sm:$0xff] }
0x54f2   :  { %v7999_v19 = vpop.f32.mrf.mxu1  ;;  %v5550_v16 = vmul.f32 %v11958_v24, %v11175_v51 }
0x54f3   :  { %v5556_v19 = vmul.f32 %v11959_v1, %v11175_v51 }
0x54f5   :  { %5564 = vadd.xlane.f32.xlu0 %v5546_v12  ;;  %5566 = vadd.xlane.f32.xlu1 %v5547_v54  ;;  %v11960_v12 = vld [vmem:[#allocation32_spill] sm:$0xff] }
0x54f6   :  { %v5551_v54 = vmul.f32 %v11960_v12, %v11175_v51 }
0x54f9   :  { %5576 = vadd.xlane.f32.xlu0 %v5552_v28  ;;  %5578 = vadd.xlane.f32.xlu1 %v5553_v14  ;;  %v11961_v28 = vld [vmem:[#allocation33_spill] sm:$0xff] }
0x54fa   :  { %v5557_v14 = vmul.f32 %v11961_v28, %v11175_v51 }
0x54fd   :  { %5568 = vadd.xlane.f32.xlu0 %v5548_v23  ;;  %5580 = vadd.xlane.f32.xlu1 %v5554_v18  ;;  %v11962_v23 = vld [vmem:[#allocation34_spill] sm:$0xff] }
0x54fe   :  { %v5558_v18 = vmul.f32 %v11962_v23, %v11175_v51 }
0x5501   :  { %5570 = vadd.xlane.f32.xlu0 %v5549_v60  ;;  %5582 = vadd.xlane.f32.xlu1 %v5555_v22  ;;  %v11963_v60 = vld [vmem:[#allocation35_spill] sm:$0xff] }
0x5502   :  { %v5559_v22 = vmul.f32 %v11963_v60, %v11175_v51 }
0x5505   :  { %5572 = vadd.xlane.f32.xlu0 %v5550_v16  ;;  %5584 = vadd.xlane.f32.xlu1 %v5556_v19 }
0x5509   :  { %5574 = vadd.xlane.f32.xlu0 %v5551_v54  ;;  %5586 = vadd.xlane.f32.xlu1 %v5557_v14 }
0x550d   :  { %5588 = vadd.xlane.f32.xlu0 %v5558_v18  ;;  %5590 = vadd.xlane.f32.xlu1 %v5559_v22 }
0x557a   :  { %v5563_v24 = vpop.xlane.xlu0 %5562  ;;  %v5561_v1 = vpop.xlane.xlu1 %5560 }
0x557b   :  { %v5615_v28 = vrot.slane %v5563_v24, %v11852_v58  ;;  %v5611_v54 = vrot.slane %v5561_v1, %v11852_v58 }
0x557d   :  { %v5672_v60 = vsel %vm932_vm6, %v5615_v28, %v5611_v54 }
0x557e   :  { %v5565_v16 = vpop.xlane.xlu0 %5564  ;;  %v5567_v19 = vpop.xlane.xlu1 %5566 }
0x557f   :  { %v5619_v14 = vrot.slane %v5565_v16, %v11852_v58  ;;  %v5623_v18 = vrot.slane %v5567_v19, %v11852_v58 }
0x5581   :  { %v5673_v22 = vsel %vm934_vm7, %v5619_v14, %v5672_v60 }
0x5582   :  { %v5577_v21 = vpop.xlane.xlu0 %5576  ;;  %v5579_v34 = vpop.xlane.xlu1 %5578  ;;  %v5674_v57 = vsel %vm936_vm8, %v5623_v18, %v5673_v22 }
0x5583   :  { %v5643_v24 = vrot.slane %v5577_v21, %v11852_v58  ;;  %v5647_v1 = vrot.slane %v5579_v34, %v11852_v58 }
0x5585   :  { %v5679_v34 = vsel %vm932_vm6, %v5647_v1, %v5643_v24 }
0x5586   :  { %v5569_v12 = vpop.xlane.xlu0 %5568  ;;  %v5581_v8 = vpop.xlane.xlu1 %5580 }
0x5587   :  { %v5627_v36 = vrot.slane %v5569_v12, %v11852_v58  ;;  %v5651_v28 = vrot.slane %v5581_v8, %v11852_v58 }
0x5589   :  { %v5675_v19 = vsel %vm938_vm9, %v5627_v36, %v5674_v57  ;;  %v5680_v8 = vsel %vm934_vm7, %v5651_v28, %v5679_v34 }
0x558a   :  { %v5571_v23 = vpop.xlane.xlu0 %5570  ;;  %v5583_v20 = vpop.xlane.xlu1 %5582 }
0x558b   :  { %v5631_v50 = vrot.slane %v5571_v23, %v11852_v58  ;;  %v5655_v60 = vrot.slane %v5583_v20, %v11852_v58 }
0x558d   :  { %v5676_v14 = vsel %vm940_vm10, %v5631_v50, %v5675_v19  ;;  %v5681_v36 = vsel %vm936_vm8, %v5655_v60, %v5680_v8  ;;  %v11242_v60 = vld [vmem:[%s11540_s2] sm:$0xff] }
0x558e   :  { %v5573_v11 = vpop.xlane.xlu0 %5572  ;;  %v5585_v62 = vpop.xlane.xlu1 %5584  ;;  %11964 = vst [vmem:[#allocation57_spill] sm:$0xff] %v11242_v60 }
0x558f   :  { %v5635_v16 = vrot.slane %v5573_v11, %v11852_v58  ;;  %v5659_v23 = vrot.slane %v5585_v62, %v11852_v58 }
0x5591   :  { %v5677_v11 = vsel %vm942_vm11, %v5635_v16, %v5676_v14  ;;  %v5682_v50 = vsel %vm938_vm9, %v5659_v23, %v5681_v36 }
0x5592   :  { %v5575_v54 = vpop.xlane.xlu0 %5574  ;;  %v5587_v12 = vpop.xlane.xlu1 %5586 }
0x5593   :  { %v5639_v21 = vrot.slane %v5575_v54, %v11852_v58  ;;  %v5663_v18 = vrot.slane %v5587_v12, %v11852_v58 }
0x5595   :  { %v5678_v57 = vsel %vm944_vm12, %v5639_v21, %v5677_v11  ;;  %v5683_v24 = vsel %vm940_vm10, %v5663_v18, %v5682_v50  ;;  %v11966_v50 = vld [vmem:[#allocation39_spill] sm:$0xff] }
0x5596   :  { %v5589_v20 = vpop.xlane.xlu0 %5588  ;;  %5688 = vxpose.xlu0.b32.start [1/2] (short) (narrow) %v5678_v57, 8  ;;  %v5591_v22 = vpop.xlane.xlu1 %5590 }
0x5597   :  { %v5667_v62 = vrot.slane %v5589_v20, %v11852_v58  ;;  %v5671_v19 = vrot.slane %v5591_v22, %v11852_v58  ;;  %v11965_v20 = vld [vmem:[#allocation38_spill] sm:$0xff] }
0x5599   :  { %v5684_v1 = vsel %vm942_vm11, %v5667_v62, %v5683_v24 }
0x559a   :  { %v5685_v16 = vsel %vm944_vm12, %v5671_v19, %v5684_v1  ;;  %v11967_v19 = vld [vmem:[#allocation40_spill] sm:$0xff]  ;;  %v11968_v1 = vld [vmem:[#allocation41_spill] sm:$0xff] }
0x559b   :  { %5689 = vxpose.xlu0.b32.end [2/2] (short) (narrow) %v5685_v16, 8 }
0x5613   :  { %v5704_v28 = vpop.trf.xlu0 }
0x5614   :  { %v5720_v54 = vadd.f32 %v11242_v60, %v5704_v28 }
0x5616   :  { %v5721_v12 = vsel %vm988_vm13, %v5720_v54, -inf }
0x5617   :  { %5722 = vmax.xlane.f32.xlu1 %v5721_v12 }
0x56a0   :  { %v5723_v14 = vpop.xlane.xlu1 %5722 }
0x56a1   :  { %v5724_v23 = vsub.f32 %v5720_v54, %v5723_v14  ;;  %v11969_v54 = vld [vmem:[#allocation42_spill] sm:$0xff]  ;;  %v11970_v14 = vld [vmem:[#allocation43_spill] sm:$0xff] }
0x56a3   :  { %v5725_v21 = vmul.f32 1.442695, %v5724_v23 }
0x56a5   :  { %8250 = vpow2.f32 %v5725_v21 }
0x56b2   :  { %v8251_v34 = vpop.eup %8250 }
0x56b3   :  { %v5727_v11 = vsel %vm988_vm13, %v8251_v34, 0.0 }
0x56b4   :  { %5728 = vadd.xlane.f32.xlu1 %v5727_v11 }
0x573d   :  { %v5729_v18 = vpop.xlane.xlu1 %5728 }
0x573e   :  { %8252 = vrcp.f32 %v5729_v18 }
0x574b   :  { %v8253_v8 = vpop.eup %8252 }
0x574c   :  { %v5731_v57 = vmul.f32 %v8253_v8, %v8251_v34  ;;  %v11971_v34 = vld [vmem:[#allocation44_spill] sm:$0xff]  ;;  %v11972_v8 = vld [vmem:[#allocation45_spill] sm:$0xff] }
0x574e   :  { %5732 = vxpose.xlu1.b32.start.end [1/1] (short) (narrow) %v5731_v57, 16  ;;  %6945 = vst.msk [vmem:[%s11551_s13 + $0x30] sm:$0xff] %vm988_vm13, %v5731_v57 }
0x57ca   :  { %v5748_v36 = vpop.trf.xlu1 }
0x57cb   :  { %v5774_v22 = vrot.slane %v5748_v36, %v11965_v20  ;;  %v5767_v62 = vrot.slane %v5748_v36, %v11966_v50  ;;  %v5795_v24 = vrot.slane %v5748_v36, %v11967_v19  ;;  %v5781_v16 = vrot.slane %v5748_v36, %v11968_v1 }
0x57cc   :  { %v5809_v12 = vrot.slane %v5748_v36, %v11969_v54  ;;  %v5788_v23 = vrot.slane %v5748_v36, %v11970_v14  ;;  %v5802_v11 = vrot.slane %v5748_v36, %v11971_v34  ;;  %v5816_v57 = vrot.slane %v5748_v36, %v11972_v8 }
0x57cd   :  { %5776 = vbcast.lane.b32.xlu1 %v5774_v22, 256  ;;  %5769 = vbcast.lane.b32.xlu0 %v5767_v62, 256 }
0x57ce   :  { %v5749_v28 = vpop.trf.xlu1 }
0x57cf   :  { %v5823_v21 = vrot.slane %v5749_v28, %v11966_v50  ;;  %v5837_v18 = vrot.slane %v5749_v28, %v11968_v1  ;;  %v5830_v22 = vrot.slane %v5749_v28, %v11965_v20  ;;  %v5851_v62 = vrot.slane %v5749_v28, %v11967_v19 }
0x57d1   :  { %5797 = vbcast.lane.b32.xlu1 %v5795_v24, 256  ;;  %5783 = vbcast.lane.b32.xlu0 %v5781_v16, 256  ;;  %v5844_v24 = vrot.slane %v5749_v28, %v11970_v14  ;;  %v5865_v16 = vrot.slane %v5749_v28, %v11969_v54 }
0x57d5   :  { %5811 = vbcast.lane.b32.xlu1 %v5809_v12, 256  ;;  %5790 = vbcast.lane.b32.xlu0 %v5788_v23, 256  ;;  %v5858_v12 = vrot.slane %v5749_v28, %v11971_v34  ;;  %v5872_v23 = vrot.slane %v5749_v28, %v11972_v8 }
0x57d9   :  { %5804 = vbcast.lane.b32.xlu0 %v5802_v11, 256  ;;  %5825 = vbcast.lane.b32.xlu1 %v5823_v21, 256  ;;  %v11973_v11 = vld [vmem:[#allocation46_spill] sm:$0xff] }
0x57dd   :  { %5818 = vbcast.lane.b32.xlu0 %v5816_v57, 256  ;;  %5839 = vbcast.lane.b32.xlu1 %v5837_v18, 256  ;;  %v11974_v57 = vld [vmem:[#allocation47_spill] sm:$0xff] }
0x57e1   :  { %5832 = vbcast.lane.b32.xlu0 %v5830_v22, 256  ;;  %5853 = vbcast.lane.b32.xlu1 %v5851_v62, 256 }
0x57e5   :  { %5846 = vbcast.lane.b32.xlu0 %v5844_v24, 256  ;;  %5867 = vbcast.lane.b32.xlu1 %v5865_v16, 256 }
0x57e9   :  { %5860 = vbcast.lane.b32.xlu0 %v5858_v12, 256  ;;  %v11975_v12 = vld [vmem:[#allocation50_spill] sm:$0xff] }
0x57ed   :  { %5874 = vbcast.lane.b32.xlu0 %v5872_v23, 256 }
0x583f   :  { %v5770_v36 = vpop.permute.xlu0 %5769  ;;  %v5777_v21 = vpop.permute.xlu1 %5776 }
0x5840   :  { %v5876_v18 = vmul.f32 %v11973_v11, %v5770_v36  ;;  %v5877_v1 = vmul.f32 %v11974_v57, %v5777_v21 }
0x5842   :  { %v5892_v19 = vadd.f32 %v5877_v1, %v5876_v18 }
0x5843   :  { %v5784_v22 = vpop.permute.xlu0 %5783  ;;  %v5798_v62 = vpop.permute.xlu1 %5797 }
0x5844   :  { %v5878_v14 = vmul.f32 %v11823_v47, %v5784_v22  ;;  %v5880_v50 = vmul.f32 %v11975_v12, %v5798_v62  ;;  %v11976_v22 = vld [vmem:[#allocation53_spill] sm:$0xff] }
0x5846   :  { %v5893_v16 = vadd.f32 %v5892_v19, %v5878_v14 }
0x5847   :  { %v5791_v54 = vpop.permute.xlu0 %5790  ;;  %v5812_v24 = vpop.permute.xlu1 %5811 }
0x5848   :  { %v5879_v34 = vmul.f32 %v11824_v31, %v5791_v54  ;;  %v5882_v21 = vmul.f32 %v11786_v35, %v5812_v24 }
0x584a   :  { %v5894_v28 = vadd.f32 %v5893_v16, %v5879_v34 }
0x584b   :  { %v5805_v23 = vpop.permute.xlu0 %5804  ;;  %v5826_v8 = vpop.permute.xlu1 %5825 }
0x584c   :  { %v5881_v20 = vmul.f32 %v11785_v53, %v5805_v23  ;;  %v5895_v36 = vadd.f32 %v5894_v28, %v5880_v50  ;;  %v5884_v1 = vmul.f32 %v11976_v22, %v5826_v8 }
0x584e   :  { %v5896_v57 = vadd.f32 %v5895_v36, %v5881_v20 }
0x584f   :  { %v5819_v11 = vpop.permute.xlu0 %5818  ;;  %v5840_v60 = vpop.permute.xlu1 %5839 }
0x5850   :  { %v5883_v18 = vmul.f32 %v11788_v42, %v5819_v11  ;;  %v5897_v19 = vadd.f32 %v5896_v57, %v5882_v21  ;;  %v5886_v12 = vmul.f32 %v11790_v48, %v5840_v60 }
0x5852   :  { %v5898_v14 = vadd.f32 %v5897_v19, %v5883_v18 }
0x5853   :  { %v5833_v54 = vpop.permute.xlu0 %5832  ;;  %v5854_v16 = vpop.permute.xlu1 %5853 }
0x5854   :  { %v5885_v62 = vmul.f32 %v11789_v55, %v5833_v54  ;;  %v5899_v34 = vadd.f32 %v5898_v14, %v5884_v1  ;;  %v5888_v28 = vmul.f32 %v9203_v43, %v5854_v16  ;;  %v8436_v16 = vld [vmem:[%s11542_s4 + $0x28] sm:$0xff]  }
0x5856   :  { %v5900_v23 = vadd.f32 %v5899_v34, %v5885_v62  ;;  %v8433_v62 = vld [vmem:[%s11542_s4 + $0x70] sm:$0xff]  }
0x5857   :  { %v5847_v50 = vpop.permute.xlu0 %5846  ;;  %v5868_v8 = vpop.permute.xlu1 %5867  ;;  %v8434_v34 = vld [vmem:[%s11542_s4 + $0x30] sm:$0xff]  }
0x5858   :  { %v5887_v24 = vmul.f32 %v9200_v0, %v5847_v50  ;;  %v5901_v20 = vadd.f32 %v5900_v23, %v5886_v12  ;;  %v5890_v21 = vmul.f32 %v9212_v5, %v5868_v8  ;;  %v7148_v12 = vpack.c.bf16 %v11175_v51, %v11175_v51  ;;  %v8435_v51 = vld [vmem:[%s11542_s4 + $0x68] sm:$0xff]   ;;  %v8437_v23 = vld [vmem:[%s11542_s4 + $0x60] sm:$0xff]  }
0x5859   :  { %v8438_v50 = vld [vmem:[%s11542_s4 + $0x20] sm:$0xff]  }
0x585a   :  { %v5902_v36 = vadd.f32 %v5901_v20, %v5887_v24  ;;  %v8439_v24 = vld [vmem:[%s11542_s4 + $0x58] sm:$0xff]  }
0x585b   :  { %v5861_v22 = vpop.permute.xlu0 %5860  ;;  %v8440_v20 = vld [vmem:[%s11542_s4 + $0x18] sm:$0xff]  }
0x585c   :  { %v5889_v11 = vmul.f32 %v9209_v56, %v5861_v22  ;;  %v5903_v57 = vadd.f32 %v5902_v36, %v5888_v28  ;;  %v8432_v22 = vld [vmem:[%s11542_s4 + $0x38] sm:$0xff]  }
0x585e   :  { %v5904_v18 = vadd.f32 %v5903_v57, %v5889_v11  ;;  %v11322_v57 = vld [vmem:[#allocation16] ss:$0 sm:$0xff] }
0x585f   :  { %v5875_v1 = vpop.permute.xlu0 %5874 }
0x5860   :  { %v5891_v19 = vmul.f32 %v9215_v9, %v5875_v1  ;;  %v5905_v60 = vadd.f32 %v5904_v18, %v5890_v21 }
0x5862   :  { %v5906_v14 = vadd.f32 %v5905_v60, %v5891_v19 }
0x5864   :  { %v11283_v54 = vpack.c.bf16 %v5906_v14, %v5906_v14 }
0x5866   :  { %5951 = vmatprep.mubr.bf16.mxu0 %v11283_v54 }
0x5867   :  { %5952 = vmatmul.mubr.bf16.vlgmr.msra.gmra.mxu0 %v7148_v12 }
0x5868   :  { %7610 = vmatpush3.bf16.msra.mxu0 %v8432_v22  ;;  %6103 = vmatprep.mubr.bf16.mxu0 %v11283_v54  ;;  %v11977_v54 = vld [vmem:[#allocation61_spill] sm:$0xff] }
0x5869   :  { %7611 = vmatprep.subr.bf16.mxu0 %v8433_v62 }
0x586c   :  { %7612 = vmatpush3.bf16.msra.mxu0 %v8434_v34 }
0x586d   :  { %7613 = vmatprep.subr.bf16.mxu0 %v8435_v51 }
0x5870   :  { %7614 = vmatpush3.bf16.msra.mxu0 %v8436_v16 }
0x5871   :  { %7615 = vmatprep.subr.bf16.mxu0 %v8437_v23 }
0x5874   :  { %7616 = vmatpush3.bf16.msra.mxu0 %v8438_v50 }
0x5875   :  { %7617 = vmatprep.subr.bf16.mxu0 %v8439_v24 }
0x5878   :  { %7618 = vmatpush3.bf16.msra.mxu0 %v8440_v20 }
0x5879   :  { %7619 = vmatprep.subr.bf16.mxu0 %v10914_v61 }
0x587c   :  { %7620 = vmatpush3.bf16.msra.mxu0 %v10920_v6 }
0x587d   :  { %7621 = vmatprep.subr.bf16.mxu0 %v10926_v30 }
0x5880   :  { %7622 = vmatpush3.bf16.msra.mxu0 %v10932_v49 }
0x5881   :  { %7623 = vmatprep.subr.bf16.mxu0 %v10938_v37 }
0x5884   :  { %7624 = vmatpush3.bf16.msra.mxu0 %v10944_v38 }
0x5885   :  { %7642 = vmatprep.subr.bf16.mxu0 %v10950_v33 }
0x5927   :  { %v7594_v28 = vpop.f32.mrf.mxu0 }
0x5929   :  { %v7595_v36 = vpop.f32.mrf.mxu0 }
0x592a   :  { %v7596_v8 = vadd.f32 %v7595_v36, %v7594_v28  ;;  %v11978_v36 = vld [vmem:[#allocation36_spill] sm:$0xff] }
0x592b   :  { %v7597_v11 = vpop.f32.mrf.mxu0 }
0x592c   :  { %v5954_v61 = vadd.f32 %v11322_v57, %v7596_v8  ;;  %v11981_v8 = vld [vmem:[#allocation49_spill] sm:$0xff]  ;;  %v11984_v11 = vld [vmem:[#allocation52_spill] sm:$0xff] }
0x592d   :  { %v7598_v21 = vpop.f32.mrf.mxu0 }
0x592e   :  { %6944 = vst [vmem:[%s11550_s12 + $0x30] sm:$0xff] %v5954_v61  ;;  %5963 = vmax.xlane.f32.xlu1 %v5954_v61  ;;  %v11985_v21 = vld [vmem:[#allocation54_spill] sm:$0xff] }
0x593f   :  { %5987 = vrot.lane.b32.xlu1 %v11111_v63, %s8553_s27 }
0x59b7   :  { %v5964_v6 = vpop.xlane.xlu1 %5963 }
0x59b8   :  { %vm5965_vm14 = vcmp.ge.f32.partialorder %v5954_v61, %v5964_v6 }
0x59b9   :  { %v5966_v30 = vsel %vm5965_vm14, %v8647_v2, 128 }
0x59ba   :  { %v5968_v49 = vshra.s32 %v5966_v30, 16  ;;  %v5967_v1 = vand.u32 65535, %v5966_v30 }
0x59bb   :  { %v5988_v37 = vpop.permute.xlu1 %5987 }
0x59bc   :  { %v5970_v38 = vcvt.s32.f32 %v5968_v49  ;;  %5990 = vst.msk [vmem:[#allocation2] sm:$0xff] %vm97_vm2, %v5988_v37  ;;  %v5969_v19 = vcvt.s32.f32 %v5967_v1 }
0x59be   :  { %5971 = vmin.xlane.f32.xlu0 %v5970_v38 }
0x59c3   :  { %v6053_v33 = vld [vmem:[#allocation2] sm:$0xff] }
0x59c4   :  { %v6054_v18 = vpack.c.bf16 %v6053_v33, %v6053_v33 }
0x59c6   :  { %6055 = vst.msk [vmem:[#allocation8 + $0x8] sm:$0xf] %vm395_vm3, %v6054_v18 }
0x5a47   :  { %v5972_v60 = vpop.xlane.xlu0 %5971 }
0x5a48   :  { %vm5973_vm15 = vcmp.eq.f32.partialorder %v5970_v38, %v5972_v60  ;;  %v5978_v63 = vcvt.f32.s32 %v5972_v60 }
0x5a49   :  { %v5974_v14 = vsel %vm5973_vm15, %v5969_v19, inf }
0x5a4a   :  { %5975 = vmin.xlane.f32.xlu0 %v5974_v14  ;;  %v5979_v22 = vshll.u32 %v5978_v63, 16 }
0x5a60   :  { %5992 = vrot.lane.b32.xlu0 %v11106_v27, %s8554_s21  ;;  %v8113_v27 = vld [vmem:[#allocation8 + $0x8] ss:$0 sps:$4 sm:$0xff]  }
0x5ad3   :  { %v5976_v12 = vpop.xlane.xlu0 %5975 }
0x5ad4   :  { %v5977_v62 = vcvt.f32.s32 %v5976_v12 }
0x5ad6   :  { %v5980_v34 = vadd.s32 %v5979_v22, %v5977_v62 }
0x5ad7   :  { %v5993_v51 = vpop.permute.xlu0 %5992 }
0x5ad8   :  { %vm5981_vm1 = vcmp.eq.s32.totalorder %v8647_v2, %v5980_v34  ;;  %5995 = vst.msk [vmem:[#allocation3] sm:$0xff] %vm97_vm2, %v5993_v51 }
0x5ad9   :  { %v6946_v16 = vsel %vm5981_vm1, 1.0, %v11756_v26 }
0x5ada   :  { %v5984_v23 = vpack.c.bf16 %v6946_v16, %v6946_v16 }
0x5adc   :  { %5985 = vst [vmem:[#allocation7] sm:$0xf] %v5984_v23 }
0x5adf   :  { %v6151_v38 = vld [vmem:[#allocation3] sm:$0xff] }
0x5ae3   :  { %v6007_v50 = vld [vmem:[#allocation7] sm:$0xf] }
0x5ae4   :  { %8017 = vmatmul.mubr.bf16.vlgmr.msra.gmra.mxu1 %v6007_v50 }
0x5ae5   :  { %8021 = vmatpush3.bf16.msra.mxu1 %v10970_v41  ;;  %8024 = vmatprep.mubr.msk.bf16.mxu1 %vm8551_vm0, %v11756_v26 }
0x5ae6   :  { %8022 = vmatprep.subr.bf16.mxu1 %v11756_v26 }
0x5ae9   :  { %8023 = vmatpush3.bf16.msra.mxu1 %v10979_v45 }
0x5aea   :  { %8028 = vmatprep.subr.bf16.mxu1 %v11756_v26 }
0x5aec   :  { %8025 = vmatmul.mubr.msk.bf16.vlgmr.msra.gmra.mxu1 %vm97_vm2, %v8113_v27 }
0x5aed   :  { %8029 = vmatpush3.bf16.msra.mxu1 %v10984_v17  ;;  %8036 = vmatprep.mubr.msk.bf16.mxu1 %vm8551_vm0, %v11756_v26 }
0x5aee   :  { %8030 = vmatprep.subr.bf16.mxu1 %v11756_v26 }
0x5af1   :  { %8031 = vmatpush3.bf16.msra.mxu1 %v10990_v3 }
0x5af2   :  { %8032 = vmatprep.subr.bf16.mxu1 %v11756_v26 }
0x5af5   :  { %8033 = vmatpush3.bf16.msra.mxu1 %v10994_v46 }
0x5af6   :  { %8034 = vmatprep.subr.bf16.mxu1 %v11756_v26 }
0x5af9   :  { %8035 = vmatpush3.bf16.msra.mxu1 %v10998_v4 }
0x5afa   :  { %8040 = vmatprep.subr.bf16.mxu1 %v11756_v26 }
0x5ba4   :  { %v6042_v41 = vpop.f32.mrf.mxu1 }
0x5ba5   :  { %v8456_v17 = vpack.c.bf16 %v6042_v41, %v6042_v41 }
0x5ba6   :  { %v8018_v45 = vpop.f32.mrf.mxu1 }
0x5ba7   :  { %6104 = vmatmul.mubr.bf16.vlgmr.msra.gmra.mxu0 %v8456_v17 }
0x5ba8   :  { %v6045_v24 = vpop.f32.mrf.mxu1  ;;  %7643 = vmatpush3.bf16.msra.mxu0 %v11006_v32  ;;  %v11979_v32 = vld [vmem:[#allocation62_spill] sm:$0xff] }
0x5ba9   :  { %7644 = vmatprep.subr.bf16.mxu0 %v11012_v39  ;;  %v11980_v39 = vld [vmem:[#allocation48_spill] sm:$0xff] }
0x5baa   :  { %v8019_v20 = vpop.f32.mrf.mxu1 }
0x5bab   :  { %v11986_v20 = vld [vmem:[#allocation55_spill] sm:$0xff] }
0x5bac   :  { %v6145_v3 = vpop.f32.mrf.mxu1  ;;  %7645 = vmatpush3.bf16.msra.mxu0 %v11018_v29  ;;  %v11982_v29 = vld [vmem:[#allocation37_spill] sm:$0xff] }
0x5bad   :  { %7646 = vmatprep.subr.bf16.mxu0 %v11024_v15  ;;  %v11983_v15 = vld [vmem:[#allocation51_spill] sm:$0xff] }
0x5bae   :  { %v8026_v46 = vpop.f32.mrf.mxu1 }
0x5bb0   :  { %v6148_v28 = vpop.f32.mrf.mxu1  ;;  %7647 = vmatpush3.bf16.msra.mxu0 %v11030_v59 }
0x5bb1   :  { %7648 = vmatprep.subr.bf16.mxu0 %v11036_v10 }
0x5bb2   :  { %v8027_v4 = vpop.f32.mrf.mxu1 }
0x5bb4   :  { %7649 = vmatpush3.bf16.msra.mxu0 %v11042_v52 }
0x5bb5   :  { %7650 = vmatprep.subr.bf16.mxu0 %v11977_v54 }
0x5bb8   :  { %7651 = vmatpush3.bf16.msra.mxu0 %v11978_v36 }
0x5bb9   :  { %7652 = vmatprep.subr.bf16.mxu0 %v11979_v32 }
0x5bbc   :  { %7653 = vmatpush3.bf16.msra.mxu0 %v11980_v39 }
0x5bbd   :  { %7654 = vmatprep.subr.bf16.mxu0 %v11981_v8 }
0x5bc0   :  { %7655 = vmatpush3.bf16.msra.mxu0 %v11982_v29 }
0x5bc1   :  { %7656 = vmatprep.subr.bf16.mxu0 %v11983_v15 }
0x5bc4   :  { %7657 = vmatpush3.bf16.msra.mxu0 %v11984_v11 }
0x5c67   :  { %v7625_v59 = vpop.f32.mrf.mxu0 }
0x5c69   :  { %v7626_v10 = vpop.f32.mrf.mxu0 }
0x5c6a   :  { %v7627_v61 = vadd.f32 %v7626_v10, %v7625_v59 }
0x5c6b   :  { %v7628_v52 = vpop.f32.mrf.mxu0 }
0x5c6c   :  { %v6106_v6 = vadd.f32 %v11985_v21, %v7627_v61 }
0x5c6d   :  { %v7629_v30 = vpop.f32.mrf.mxu0 }
0x5c6e   :  { %v6146_v49 = vadd.f32 %v6145_v3, %v6106_v6 }
0x5c70   :  { %8254 = vtanh.f32 %v6146_v49  ;;  %v6951_v33 = vmul.f32 -1.442695, %v6146_v49 }
0x5c72   :  { %8256 = vpow2.f32 %v6951_v33 }
0x5c7d   :  { %v8255_v37 = vpop.eup %8254 }
0x5c7e   :  { %6165 = vrot.lane.b32.xlu1 %v8255_v37, %s8546_s30 }
0x5c7f   :  { %v8257_v18 = vpop.eup %8256 }
0x5c80   :  { %v6155_v1 = vadd.f32 1.0, %v8257_v18 }
0x5c82   :  { %6160 = vrot.lane.b32.xlu1 %v6151_v38, %s8553_s27  ;;  %8258 = vrcp.f32 %v6155_v1 }
0x5c86   :  { %5997 = vrot.lane.b32.xlu1 %v11145_v25, %s8553_s27 }
0x5c8f   :  { %v8259_v19 = vpop.eup %8258 }
0x5cf0   :  { %v6166_v60 = vpop.permute.xlu1 %6165 }
0x5cf1   :  { %v6168_v14 = vmul.f32 %v8259_v19, %v6166_v60 }
0x5cf3   :  { %6170 = vrot.lane.b32.xlu0 %v6168_v14, %s8553_s27 }
0x5cf4   :  { %v6161_v63 = vpop.permute.xlu1 %6160 }
0x5cf5   :  { %v6163_v22 = vmul.f32 %v8259_v19, %v6161_v63 }
0x5cf8   :  { %v5998_v12 = vpop.permute.xlu1 %5997 }
0x5cf9   :  { %6000 = vst.msk [vmem:[#allocation4] sm:$0xff] %vm97_vm2, %v5998_v12  ;;  %v11989_v12 = vld [vmem:[#allocation22_spill] sm:$0xff] }
0x5d00   :  { %v6188_v51 = vld [vmem:[#allocation4] sm:$0xff] }
0x5d01   :  { %v6977_v16 = vpack.c.bf16 %v6188_v51, %v6188_v51 }
0x5d65   :  { %v6171_v62 = vpop.permute.xlu0 %6170 }
0x5d66   :  { %v11378_v34 = vadd.f32 %v6171_v62, %v6163_v22  ;;  %v11990_v62 = vld [vmem:[#allocation23_spill] sm:$0xff] }
0x5d68   :  { %8260 = vtanh.f32 %v11378_v34 }
0x5d75   :  { %v8261_v25 = vpop.eup %8260 }
0x5d76   :  { %6176 = vrot.lane.b32.xlu0 %v8261_v25, %s8546_s30 }
0x5d7a   :  { %6193 = vrot.lane.b32.xlu0 %v6977_v16, %s8553_s27 }
0x5de8   :  { %v6177_v23 = vpop.permute.xlu0 %6176 }
0x5de9   :  { %v11383_v50 = vmul.f32 %v8259_v19, %v6177_v23  ;;  %v11988_v19 = vld [vmem:[#allocation21_spill] sm:$0xff]  ;;  %v11993_v23 = vld [vmem:[#allocation26_spill] sm:$0xff] }
0x5deb   :  { %v6976_v27 = vpack.c.bf16 %v11383_v50, %v11383_v50 }
0x5dec   :  { %v6194_v45 = vpop.permute.xlu0 %6193 }
0x5ded   :  { %6184 = vrot.lane.b32.xlu1 %v6976_v27, %s8553_s27 }
0x5df1   :  { %6002 = vrot.lane.b32.xlu1 %v11141_v44, %s8554_s21  ;;  %v11987_v44 = vld [vmem:[#allocation56_spill] sm:$0xff] }
0x5e5f   :  { %v6185_v41 = vpop.permute.xlu1 %6184 }
0x5e60   :  { %6187 = vst.msk [vmem:[#allocation9] sm:$0xf] %vm395_vm3, %v6185_v41  ;;  %v11994_v41 = vld [vmem:[#allocation27_spill] sm:$0xff] }
0x5e61   :  { %6196 = vst.msk [vmem:[#allocation9] sm:$0xf] %vm645_vm4, %v6194_v45 }
0x5e63   :  { %v6003_v17 = vpop.permute.xlu1 %6002 }
0x5e64   :  { %6005 = vst.msk [vmem:[#allocation5] sm:$0xff] %vm97_vm2, %v6003_v17  ;;  %v11995_v17 = vld [vmem:[#allocation28_spill] sm:$0xff] }
0x5e68   :  { %v6197_v24 = vld [vmem:[#allocation9] sm:$0xf] }
0x5e69   :  { %8037 = vmatmul.mubr.msk.bf16.vlgmr.msra.gmra.mxu1 %vm672_vm5, %v6197_v24 }
0x5e6a   :  { %8041 = vmatpush3.bf16.msra.mxu1 %v11986_v20  ;;  %8044 = vmatprep.mubr.msk.bf16.mxu1 %vm8551_vm0, %v11756_v26  ;;  %v11996_v20 = vld [vmem:[#allocation29_spill] sm:$0xff] }
0x5e6b   :  { %v6241_v3 = vld [vmem:[#allocation5] sm:$0xff]  ;;  %8042 = vmatprep.subr.bf16.mxu1 %v11756_v26 }
0x5e6c   :  { %6250 = vrot.lane.b32.xlu1 %v6241_v3, %s8553_s27 }
0x5e6e   :  { %8043 = vmatpush3.bf16.msra.mxu1 %v11987_v44  ;;  %v11997_v44 = vld [vmem:[#allocation30_spill] sm:$0xff] }
0x5ede   :  { %v6251_v10 = vpop.permute.xlu1 %6250 }
0x5f29   :  { %v6235_v46 = vpop.f32.mrf.mxu1 }
0x5f2a   :  { %v6236_v28 = vadd.f32 %v11136_v40, %v6235_v46 }
0x5f2b   :  { %v8038_v4 = vpop.f32.mrf.mxu1 }
0x5f2c   :  { %8262 = vtanh.f32 %v6236_v28  ;;  %v6955_v39 = vmul.f32 -1.442695, %v6236_v28  ;;  %v11998_v28 = vld [vmem:[#allocation31_spill] sm:$0xff] }
0x5f2d   :  { %v6238_v54 = vpop.f32.mrf.mxu1 }
0x5f2e   :  { %8264 = vpow2.f32 %v6955_v39  ;;  %v11999_v54 = vld [vmem:[#allocation32_spill] sm:$0xff] }
0x5f2f   :  { %v8039_v36 = vpop.f32.mrf.mxu1 }
0x5f39   :  { %v8263_v32 = vpop.eup %8262 }
0x5f3a   :  { %6255 = vrot.lane.b32.xlu0 %v8263_v32, %s8546_s30  ;;  %v12000_v32 = vld [vmem:[#allocation33_spill] sm:$0xff] }
0x5f3b   :  { %v8265_v8 = vpop.eup %8264 }
0x5f3c   :  { %v6245_v29 = vadd.f32 1.0, %v8265_v8  ;;  %v12001_v8 = vld [vmem:[#allocation34_spill] sm:$0xff] }
0x5f3e   :  { %8266 = vrcp.f32 %v6245_v29 }
0x5f4b   :  { %v8267_v15 = vpop.eup %8266 }
0x5f4c   :  { %v6253_v61 = vmul.f32 %v8267_v15, %v6251_v10 }
0x5fac   :  { %v6256_v11 = vpop.permute.xlu0 %6255 }
0x5fad   :  { %v6258_v59 = vmul.f32 %v8267_v15, %v6256_v11 }
0x5faf   :  { %6260 = vrot.lane.b32.xlu0 %v6258_v59, %s8553_s27 }
0x6021   :  { %v6261_v40 = vpop.permute.xlu0 %6260 }
0x6022   :  { %v11403_v52 = vadd.f32 %v6261_v40, %v6253_v61 }
0x6024   :  { %8268 = vtanh.f32 %v11403_v52 }
0x6031   :  { %v8269_v21 = vpop.eup %8268 }
0x6032   :  { %6266 = vrot.lane.b32.xlu1 %v8269_v21, %s8546_s30 }
0x60a4   :  { %v6267_v6 = vpop.permute.xlu1 %6266 }
0x60a5   :  { %v11407_v30 = vmul.f32 %v8267_v15, %v6267_v6  ;;  %v12002_v15 = vld [vmem:[#allocation35_spill] sm:$0xff] }
0x60a7   :  { %v6270_v49 = vpack.c.bf16 %v11407_v30, %v11407_v30 }
0x60a9   :  { %6272 = vrot.lane.b32.xlu0 %v6270_v49, %s8553_s27 }
0x611b   :  { %v6273_v37 = vpop.permute.xlu0 %6272 }
0x611c   :  { %8045 = vmatmul.mubr.msk.bf16.vlgmr.msra.gmra.mxu1 %vm97_vm2, %v6273_v37 }
0x61dc   :  { %v6311_v38 = vpop.f32.mrf.mxu1 }
0x61dd   :  { %v11414_v33 = vadd.f32 %v11172_v13, %v6311_v38  ;;  %v11991_v13 = vld [vmem:[#allocation24_spill] sm:$0xff] }
0x61de   :  { %v8046_v18 = vpop.f32.mrf.mxu1 }
0x61df   :  { %v6318_v1 = vmul.f32 %v8873_v7, %v11414_v33  ;;  %v6317_v60 = vmul.f32 %v11988_v19, %v11414_v33  ;;  %v6319_v22 = vmul.f32 %v11989_v12, %v11414_v33  ;;  %v6320_v25 = vmul.f32 %v11990_v62, %v11414_v33  ;;  %v11992_v7 = vld [vmem:[#allocation25_spill] sm:$0xff] }
0x61e0   :  { %v6314_v14 = vpop.f32.mrf.mxu1  ;;  %v6325_v51 = vmul.f32 %v11991_v13, %v11414_v33  ;;  %v6326_v16 = vmul.f32 %v11992_v7, %v11414_v33  ;;  %v6321_v27 = vmul.f32 %v11993_v23, %v11414_v33  ;;  %v6327_v45 = vmul.f32 %v11994_v41, %v11414_v33 }
0x61e1   :  { %6335 = vadd.xlane.f32.xlu0 %v6318_v1  ;;  %6333 = vadd.xlane.f32.xlu1 %v6317_v60  ;;  %v6322_v24 = vmul.f32 %v11995_v17, %v11414_v33  ;;  %v6328_v3 = vmul.f32 %v11996_v20, %v11414_v33  ;;  %v6323_v46 = vmul.f32 %v11997_v44, %v11414_v33 }
0x61e2   :  { %v8047_v63 = vpop.f32.mrf.mxu1  ;;  %v6329_v4 = vmul.f32 %v11998_v28, %v11414_v33  ;;  %v6324_v36 = vmul.f32 %v11999_v54, %v11414_v33  ;;  %v6330_v39 = vmul.f32 %v12000_v32, %v11414_v33  ;;  %v6331_v29 = vmul.f32 %v12001_v8, %v11414_v33 }
0x61e3   :  { %v6332_v11 = vmul.f32 %v12002_v15, %v11414_v33 }
0x61e5   :  { %6337 = vadd.xlane.f32.xlu0 %v6319_v22  ;;  %6339 = vadd.xlane.f32.xlu1 %v6320_v25 }
0x61e9   :  { %6349 = vadd.xlane.f32.xlu0 %v6325_v51  ;;  %6351 = vadd.xlane.f32.xlu1 %v6326_v16 }
0x61ed   :  { %6341 = vadd.xlane.f32.xlu0 %v6321_v27  ;;  %6353 = vadd.xlane.f32.xlu1 %v6327_v45 }
0x61f1   :  { %6343 = vadd.xlane.f32.xlu0 %v6322_v24  ;;  %6355 = vadd.xlane.f32.xlu1 %v6328_v3 }
0x61f5   :  { %6345 = vadd.xlane.f32.xlu0 %v6323_v46  ;;  %6357 = vadd.xlane.f32.xlu1 %v6329_v4 }
0x61f9   :  { %6347 = vadd.xlane.f32.xlu0 %v6324_v36  ;;  %6359 = vadd.xlane.f32.xlu1 %v6330_v39 }
0x61fd   :  { %6361 = vadd.xlane.f32.xlu0 %v6331_v29  ;;  %6363 = vadd.xlane.f32.xlu1 %v6332_v11 }
0x626a   :  { %v6336_v59 = vpop.xlane.xlu0 %6335  ;;  %v6334_v10 = vpop.xlane.xlu1 %6333 }
0x626b   :  { %v6388_v38 = vrot.slane %v6336_v59, %v11852_v58  ;;  %v6384_v18 = vrot.slane %v6334_v10, %v11852_v58 }
0x626d   :  { %v6445_v14 = vsel %vm932_vm6, %v6388_v38, %v6384_v18 }
0x626e   :  { %v6338_v61 = vpop.xlane.xlu0 %6337  ;;  %v6340_v40 = vpop.xlane.xlu1 %6339 }
0x626f   :  { %v6392_v1 = vrot.slane %v6338_v61, %v11852_v58  ;;  %v6396_v63 = vrot.slane %v6340_v40, %v11852_v58 }
0x6271   :  { %v6446_v12 = vsel %vm934_vm7, %v6392_v1, %v6445_v14 }
0x6272   :  { %v6350_v21 = vpop.xlane.xlu0 %6349  ;;  %v6352_v6 = vpop.xlane.xlu1 %6351  ;;  %v6447_v23 = vsel %vm936_vm8, %v6396_v63, %v6446_v12  ;;  %v12004_v12 = vld [vmem:[#allocation38_spill] sm:$0xff] }
0x6273   :  { %v6416_v51 = vrot.slane %v6350_v21, %v11852_v58  ;;  %v6420_v7 = vrot.slane %v6352_v6, %v11852_v58  ;;  %v12003_v21 = vld [vmem:[#allocation57_spill] sm:$0xff] }
0x6275   :  { %v6452_v46 = vsel %vm932_vm6, %v6420_v7, %v6416_v51  ;;  %v12007_v7 = vld [vmem:[#allocation41_spill] sm:$0xff] }
0x6276   :  { %v6342_v49 = vpop.xlane.xlu0 %6341  ;;  %v6354_v37 = vpop.xlane.xlu1 %6353 }
0x6277   :  { %v6400_v22 = vrot.slane %v6342_v49, %v11852_v58  ;;  %v6424_v27 = vrot.slane %v6354_v37, %v11852_v58 }
0x6279   :  { %v6448_v41 = vsel %vm938_vm9, %v6400_v22, %v6447_v23  ;;  %v6453_v54 = vsel %vm934_vm7, %v6424_v27, %v6452_v46  ;;  %v12008_v27 = vld [vmem:[#allocation42_spill] sm:$0xff]  ;;  %v12011_v46 = vld [vmem:[#allocation45_spill] sm:$0xff] }
0x627a   :  { %v6344_v19 = vpop.xlane.xlu0 %6343  ;;  %v6356_v60 = vpop.xlane.xlu1 %6355 }
0x627b   :  { %v6404_v13 = vrot.slane %v6344_v19, %v11852_v58  ;;  %v6428_v45 = vrot.slane %v6356_v60, %v11852_v58 }
0x627d   :  { %v6449_v20 = vsel %vm940_vm10, %v6404_v13, %v6448_v41  ;;  %v6454_v32 = vsel %vm936_vm8, %v6428_v45, %v6453_v54  ;;  %v12006_v13 = vld [vmem:[#allocation40_spill] sm:$0xff]  ;;  %v12009_v45 = vld [vmem:[#allocation43_spill] sm:$0xff] }
0x627e   :  { %v6346_v62 = vpop.xlane.xlu0 %6345  ;;  %v6358_v25 = vpop.xlane.xlu1 %6357 }
0x627f   :  { %v6408_v16 = vrot.slane %v6346_v62, %v11852_v58  ;;  %v6432_v3 = vrot.slane %v6358_v25, %v11852_v58  ;;  %v12005_v62 = vld [vmem:[#allocation39_spill] sm:$0xff] }
0x6281   :  { %v6450_v28 = vsel %vm942_vm11, %v6408_v16, %v6449_v20  ;;  %v6455_v29 = vsel %vm938_vm9, %v6432_v3, %v6454_v32  ;;  %v12010_v20 = vld [vmem:[#allocation44_spill] sm:$0xff] }
0x6282   :  { %v6348_v17 = vpop.xlane.xlu0 %6347  ;;  %v6360_v24 = vpop.xlane.xlu1 %6359 }
0x6283   :  { %v6412_v44 = vrot.slane %v6348_v17, %v11852_v58  ;;  %v6436_v4 = vrot.slane %v6360_v24, %v11852_v58 }
0x6285   :  { %v6451_v36 = vsel %vm944_vm12, %v6412_v44, %v6450_v28  ;;  %v6456_v59 = vsel %vm940_vm10, %v6436_v4, %v6455_v29 }
0x6286   :  { %v6362_v39 = vpop.xlane.xlu0 %6361  ;;  %6461 = vxpose.xlu0.b32.start [1/2] (short) (narrow) %v6451_v36, 8  ;;  %v6364_v8 = vpop.xlane.xlu1 %6363 }
0x6287   :  { %v6440_v15 = vrot.slane %v6362_v39, %v11852_v58  ;;  %v6444_v11 = vrot.slane %v6364_v8, %v11852_v58 }
0x6289   :  { %v6457_v10 = vsel %vm942_vm11, %v6440_v15, %v6456_v59 }
0x628a   :  { %v6458_v61 = vsel %vm944_vm12, %v6444_v11, %v6457_v10  ;;  %v12012_v11 = vld [vmem:[#allocation46_spill] sm:$0xff]  ;;  %v12013_v10 = vld [vmem:[#allocation47_spill] sm:$0xff] }
0x628b   :  { %6462 = vxpose.xlu0.b32.end [2/2] (short) (narrow) %v6458_v61, 8 }
0x6303   :  { %v6477_v40 = vpop.trf.xlu0 }
0x6304   :  { %v6493_v6 = vadd.f32 %v12003_v21, %v6477_v40 }
0x6306   :  { %v6494_v49 = vsel %vm988_vm13, %v6493_v6, -inf }
0x6307   :  { %6495 = vmax.xlane.f32.xlu1 %v6494_v49 }
0x6390   :  { %v6496_v37 = vpop.xlane.xlu1 %6495 }
0x6391   :  { %v6497_v38 = vsub.f32 %v6493_v6, %v6496_v37 }
0x6393   :  { %v6498_v18 = vmul.f32 1.442695, %v6497_v38 }
0x6395   :  { %8270 = vpow2.f32 %v6498_v18 }
0x63a2   :  { %v8271_v1 = vpop.eup %8270 }
0x63a3   :  { %v6500_v58 = vsel %vm988_vm13, %v8271_v1, 0.0 }
0x63a4   :  { %6501 = vadd.xlane.f32.xlu1 %v6500_v58  ;;  %v12014_v58 = vld [vmem:[#allocation50_spill] sm:$0xff] }
0x642d   :  { %v6502_v19 = vpop.xlane.xlu1 %6501 }
0x642e   :  { %8272 = vrcp.f32 %v6502_v19 }
0x643b   :  { %v8273_v60 = vpop.eup %8272 }
0x643c   :  { %v6504_v14 = vmul.f32 %v8273_v60, %v8271_v1 }
0x643e   :  { %6505 = vxpose.xlu1.b32.start.end [1/1] (short) (narrow) %v6504_v14, 16  ;;  %6960 = vst.msk [vmem:[%s11551_s13 + $0x38] sm:$0xff] %vm988_vm13, %v6504_v14 }
0x64ba   :  { %v6521_v63 = vpop.trf.xlu1 }
0x64bb   :  { %v6547_v22 = vrot.slane %v6521_v63, %v12004_v12  ;;  %v6540_v25 = vrot.slane %v6521_v63, %v12005_v62  ;;  %v6568_v51 = vrot.slane %v6521_v63, %v12006_v13  ;;  %v6554_v16 = vrot.slane %v6521_v63, %v12007_v7 }
0x64bc   :  { %v6582_v41 = vrot.slane %v6521_v63, %v12008_v27  ;;  %v6561_v17 = vrot.slane %v6521_v63, %v12009_v45  ;;  %v6575_v3 = vrot.slane %v6521_v63, %v12010_v20  ;;  %v6589_v28 = vrot.slane %v6521_v63, %v12011_v46 }
0x64bd   :  { %6549 = vbcast.lane.b32.xlu1 %v6547_v22, 256  ;;  %6542 = vbcast.lane.b32.xlu0 %v6540_v25, 256 }
0x64be   :  { %v6522_v23 = vpop.trf.xlu1 }
0x64bf   :  { %v6596_v24 = vrot.slane %v6522_v23, %v12005_v62  ;;  %v6610_v44 = vrot.slane %v6522_v23, %v12007_v7  ;;  %v6603_v4 = vrot.slane %v6522_v23, %v12004_v12  ;;  %v6624_v54 = vrot.slane %v6522_v23, %v12006_v13 }
0x64c0   :  { %v6617_v36 = vrot.slane %v6522_v23, %v12009_v45  ;;  %v6638_v32 = vrot.slane %v6522_v23, %v12008_v27  ;;  %v6631_v39 = vrot.slane %v6522_v23, %v12010_v20  ;;  %v6645_v8 = vrot.slane %v6522_v23, %v12011_v46 }
0x64c1   :  { %6570 = vbcast.lane.b32.xlu1 %v6568_v51, 256  ;;  %6556 = vbcast.lane.b32.xlu0 %v6554_v16, 256 }
0x64c5   :  { %6584 = vbcast.lane.b32.xlu1 %v6582_v41, 256  ;;  %6563 = vbcast.lane.b32.xlu0 %v6561_v17, 256 }
0x64c9   :  { %6577 = vbcast.lane.b32.xlu0 %v6575_v3, 256  ;;  %6598 = vbcast.lane.b32.xlu1 %v6596_v24, 256 }
0x64cd   :  { %6591 = vbcast.lane.b32.xlu0 %v6589_v28, 256  ;;  %6612 = vbcast.lane.b32.xlu1 %v6610_v44, 256 }
0x64d1   :  { %6605 = vbcast.lane.b32.xlu0 %v6603_v4, 256  ;;  %6626 = vbcast.lane.b32.xlu1 %v6624_v54, 256 }
0x64d5   :  { %6619 = vbcast.lane.b32.xlu0 %v6617_v36, 256  ;;  %6640 = vbcast.lane.b32.xlu1 %v6638_v32, 256 }
0x64d9   :  { %6633 = vbcast.lane.b32.xlu0 %v6631_v39, 256 }
0x64dd   :  { %6647 = vbcast.lane.b32.xlu0 %v6645_v8, 256 }
0x652f   :  { %v6543_v29 = vpop.permute.xlu0 %6542  ;;  %v6550_v15 = vpop.permute.xlu1 %6549 }
0x6530   :  { %v6649_v59 = vmul.f32 %v12012_v11, %v6543_v29  ;;  %v6650_v61 = vmul.f32 %v12013_v10, %v6550_v15 }
0x6532   :  { %v6665_v49 = vadd.f32 %v6650_v61, %v6649_v59 }
0x6533   :  { %v6557_v40 = vpop.permute.xlu0 %6556  ;;  %v6571_v21 = vpop.permute.xlu1 %6570 }
0x6534   :  { %v6651_v6 = vmul.f32 %v11823_v47, %v6557_v40  ;;  %v6653_v19 = vmul.f32 %v12014_v58, %v6571_v21  ;;  %v12015_v47 = vld [vmem:[#allocation53_spill] sm:$0xff] }
0x6536   :  { %v6666_v18 = vadd.f32 %v6665_v49, %v6651_v6 }
0x6537   :  { %v6564_v37 = vpop.permute.xlu0 %6563  ;;  %v6585_v38 = vpop.permute.xlu1 %6584 }
0x6538   :  { %v6652_v1 = vmul.f32 %v11824_v31, %v6564_v37  ;;  %v6655_v62 = vmul.f32 %v11786_v35, %v6585_v38 }
0x653a   :  { %v6667_v60 = vadd.f32 %v6666_v18, %v6652_v1 }
0x653b   :  { %v6578_v14 = vpop.permute.xlu0 %6577  ;;  %v6599_v63 = vpop.permute.xlu1 %6598 }
0x653c   :  { %v6654_v12 = vmul.f32 %v11785_v53, %v6578_v14  ;;  %v6668_v22 = vadd.f32 %v6667_v60, %v6653_v19  ;;  %v6657_v7 = vmul.f32 %v12015_v47, %v6599_v63 }
0x653e   :  { %v6669_v25 = vadd.f32 %v6668_v22, %v6654_v12 }
0x653f   :  { %v6592_v13 = vpop.permute.xlu0 %6591  ;;  %v6613_v51 = vpop.permute.xlu1 %6612 }
0x6540   :  { %v6656_v16 = vmul.f32 %v11788_v42, %v6592_v13  ;;  %v6670_v23 = vadd.f32 %v6669_v25, %v6655_v62  ;;  %v6659_v24 = vmul.f32 %v11790_v48, %v6613_v51 }
0x6542   :  { %v6671_v27 = vadd.f32 %v6670_v23, %v6656_v16 }
0x6543   :  { %v6606_v31 = vpop.permute.xlu0 %6605  ;;  %v6627_v17 = vpop.permute.xlu1 %6626 }
0x6544   :  { %v6658_v41 = vmul.f32 %v11789_v55, %v6606_v31  ;;  %v6672_v45 = vadd.f32 %v6671_v27, %v6657_v7  ;;  %v6661_v44 = vmul.f32 %v9203_v43, %v6627_v17 }
0x6546   :  { %v6673_v53 = vadd.f32 %v6672_v45, %v6658_v41 }
0x6547   :  { %v6620_v20 = vpop.permute.xlu0 %6619  ;;  %v6641_v28 = vpop.permute.xlu1 %6640 }
0x6548   :  { %v6660_v35 = vmul.f32 %v9200_v0, %v6620_v20  ;;  %v6674_v3 = vadd.f32 %v6673_v53, %v6659_v24  ;;  %v6663_v36 = vmul.f32 %v9212_v5, %v6641_v28  ;;  %v7150_v0 = vpack.c.bf16 %v11414_v33, %v11414_v33 }
0x654a   :  { %v6675_v46 = vadd.f32 %v6674_v3, %v6660_v35 }
0x654b   :  { %v6634_v4 = vpop.permute.xlu0 %6633 }
0x654c   :  { %v6662_v42 = vmul.f32 %v9209_v56, %v6634_v4  ;;  %v6676_v54 = vadd.f32 %v6675_v46, %v6661_v44 }
0x654e   :  { %v6677_v55 = vadd.f32 %v6676_v54, %v6662_v42 }
0x654f   :  { %v6648_v32 = vpop.permute.xlu0 %6647 }
0x6550   :  { %v6664_v39 = vmul.f32 %v9215_v9, %v6648_v32  ;;  %v6678_v48 = vadd.f32 %v6677_v55, %v6663_v36 }
0x6552   :  { %v6679_v8 = vadd.f32 %v6678_v48, %v6664_v39 }
0x6554   :  { %v7151_v29 = vpack.c.bf16 %v6679_v8, %v6679_v8 }
0x6556   :  { %6724 = vmatprep.mubr.bf16.mxu0 %v7151_v29 }
0x6557   :  { %6725 = vmatmul.mubr.bf16.vlgmr.msra.gmra.mxu0 %v7150_v0 }
0x6617   :  { %v7658_v43 = vpop.f32.mrf.mxu0 }
0x6619   :  { %v7659_v15 = vpop.f32.mrf.mxu0 }
0x661a   :  { %v7660_v11 = vadd.f32 %v7659_v15, %v7658_v43 }
0x661b   :  { %v7661_v59 = vpop.f32.mrf.mxu0 }
0x661c   :  { %v6727_v56 = vadd.f32 %v11322_v57, %v7660_v11 }
0x661d   :  { %v7662_v10 = vpop.f32.mrf.mxu0 }
0x661e   :  { %6959 = vst [vmem:[%s11550_s12 + $0x38] sm:$0xff] %v6727_v56  ;;  %6736 = vmax.xlane.f32.xlu1 %v6727_v56 }
0x662f   :  { %6760 = vrot.lane.b32.xlu1 %v11383_v50, %s8553_s27 }
0x6633   :  { %6770 = vrot.lane.b32.xlu1 %v11407_v30, %s8553_s27 }
0x6637   :  { %6775 = vrot.lane.b32.xlu1 %v11403_v52, %s8554_s21 }
0x66a7   :  { %v6737_v9 = vpop.xlane.xlu1 %6736 }
0x66a8   :  { %vm6738_vm0 = vcmp.ge.f32.partialorder %v6727_v56, %v6737_v9 }
0x66a9   :  { %v6739_v5 = vsel %vm6738_vm0, %v8647_v2, 128 }
0x66aa   :  { %v6741_v57 = vshra.s32 %v6739_v5, 16  ;;  %v6740_v30 = vand.u32 65535, %v6739_v5 }
0x66ab   :  { %v6761_v33 = vpop.permute.xlu1 %6760 }
0x66ac   :  { %v6743_v61 = vcvt.s32.f32 %v6741_v57  ;;  %6763 = vst.msk [vmem:[#allocation2] sm:$0xff] %vm97_vm2, %v6761_v33  ;;  %v6742_v21 = vcvt.s32.f32 %v6740_v30 }
0x66ae   :  { %6744 = vmin.xlane.f32.xlu0 %v6743_v61 }
0x66af   :  { %v6771_v40 = vpop.permute.xlu1 %6770 }
0x66b0   :  { %6773 = vst.msk [vmem:[#allocation4] sm:$0xff] %vm97_vm2, %v6771_v40 }
0x66b3   :  { %v6776_v50 = vpop.permute.xlu1 %6775 }
0x66b4   :  { %6778 = vst.msk [vmem:[#allocation5] sm:$0xff] %vm97_vm2, %v6776_v50 }
0x6737   :  { %v6745_v6 = vpop.xlane.xlu0 %6744 }
0x6738   :  { %vm6746_vm3 = vcmp.eq.f32.partialorder %v6743_v61, %v6745_v6  ;;  %v6751_v49 = vcvt.f32.s32 %v6745_v6 }
0x6739   :  { %v6747_v52 = vsel %vm6746_vm3, %v6742_v21, inf }
0x673a   :  { %6748 = vmin.xlane.f32.xlu0 %v6747_v52  ;;  %v6752_v38 = vshll.u32 %v6751_v49, 16 }
0x6750   :  { %6765 = vrot.lane.b32.xlu0 %v11378_v34, %s8554_s21 }
0x67c3   :  { %v6749_v37 = vpop.xlane.xlu0 %6748 }
0x67c4   :  { %v6750_v18 = vcvt.f32.s32 %v6749_v37 }
0x67c6   :  { %v6753_v1 = vadd.s32 %v6752_v38, %v6750_v18 }
0x67c7   :  { %v6766_v58 = vpop.permute.xlu0 %6765 }
0x67c8   :  { %vm6754_vm4 = vcmp.eq.s32.totalorder %v8647_v2, %v6753_v1  ;;  %6768 = vst.msk [vmem:[#allocation3] sm:$0xff] %vm97_vm2, %v6766_v58 }
0x67c9   :  { %v6961_v19 = vsel %vm6754_vm4, 1.0, %v11756_v26 }
0x67ca   :  { %v6757_v60 = vpack.c.bf16 %v6961_v19, %v6961_v19 }
0x67cc   :  { %6758 = vst [vmem:[#allocation7] sm:$0xf] %v6757_v60 }
0x67cd   :  { %6788 = vsyncpa [#allocation12], 1 }
0x67ce   :  { %6789 = vsyncpa [#allocation14], 1 }
0x67cf   :  { %6790 = vsyncpa [#allocation17], 1 }

</bundles_post_ra>
